<compile_context>
chip_gen: v5e
topology: v5e:2x2
jax: 0.10.0
libtpu: 0.0.40
codegen_flags: <defaults>
</compile_context>

<pallas_src>
import functools

import jax
import jax.numpy as jnp
from jax.experimental import pallas as pl
from jax.experimental.pallas import tpu as pltpu

NEG_SLOPE = 0.01                 # F.leaky_relu default negative slope
MXU_DTYPE = jnp.bfloat16         # MXU operand dtype (None -> keep f32)
ACT_DTYPE = jnp.bfloat16         # inter-layer activation storage dtype


def _leaky(x):
    return jnp.where(x >= 0, x, NEG_SLOPE * x)


def _rup(a, m):
    return ((a + m - 1) // m) * m


def _vmem_limit_bytes():
    """Per-generation scoped VMEM limit (review: don't hard-code the v7x cap)."""
    try:
        cap = getattr(pltpu.get_tpu_info(), "vmem_capacity_bytes", None)
    except Exception:
        cap = None
    if not cap:
        return 48 * 1024 * 1024          # safe on every generation (v7x: 64 MiB)
    return int(min(cap * 3 // 4, 100 * 1024 * 1024))


_VMEM_LIMIT = _vmem_limit_bytes()


def _vbytes(shape, dtype):
    """VMEM bytes of one buffer incl. (8,128) tile padding of the last 2 dims."""
    shape = tuple(int(d) for d in shape)
    if len(shape) == 1:
        shape = (1,) + shape
    lead = 1
    for d in shape[:-2]:
        lead *= d
    return lead * _rup(shape[-2], 8) * _rup(shape[-1], 128) * jnp.dtype(dtype).itemsize


# ----------------------------------------------------------------------------
# Fused 3x3 / pad-1 conv kernel (stride 1 or 2), NHWC, grid over batch.
#   optional skip input        -> fused channel-concat (grouped patch columns)
#   optional leaky on input(s) -> fused post-concat activation
#   optional leaky on output   -> fused encoder activation
# ----------------------------------------------------------------------------
def _conv3x3_kernel(*refs, stride, has_skip, leaky_in, leaky_out, out_hw,
                    mxu_dtype):
    if has_skip:
        xm_ref, xs_ref, w_ref, b_ref, o_ref = refs
    else:
        xm_ref, w_ref, b_ref, o_ref = refs
        xs_ref = None
    Ho, Wo = out_hw
    M = Ho * Wo

    def prep(x):
        if leaky_in:
            x = _leaky(x)
        if mxu_dtype is not None:
            x = x.astype(mxu_dtype)
        return x

    def taps_stride1(x):
        # x: (Ho, Wo, C).  Zero halo built in VMEM; 9 contiguous tap slices.
        H, W, C = x.shape
        zr = jnp.zeros((1, W, C), x.dtype)
        xp = jnp.concatenate([zr, x, zr], axis=0)            # (H+2, W, C)
        zc = jnp.zeros((H + 2, 1, C), x.dtype)
        xp = jnp.concatenate([zc, xp, zc], axis=1)           # (H+2, W+2, C)
        taps = []
        for kh in range(3):
            for kw in range(3):
                taps.append(xp[kh:kh + Ho, kw:kw + Wo, :].reshape(M, C))
        return taps

    def taps_stride2(xf):
        # xf: (2*Ho, Wo, 2C) -- W already folded into lanes by the wrapper.
        # Folded col j holds original cols (2j, 2j+1); one zero col is added on
        # the left and one zero row top/bottom.  Row stride-2 phases come from
        # a free outer reshape; the two folded column taps are contiguous.
        # Column order of the 6 taps: (kh, ft) where
        #   ft=0 -> [orig col 2wo-2 (zero weight), orig col 2wo-1 (= kw 0)]
        #   ft=1 -> [orig col 2wo (= kw 1),        orig col 2wo+1 (= kw 2)]
        H, Wf, C2 = xf.shape
        zr = jnp.zeros((1, Wf, C2), xf.dtype)
        xp = jnp.concatenate([zr, xf, zr], axis=0)           # (2*Ho+2, Wf, 2C)
        zc = jnp.zeros((H + 2, 1, C2), xf.dtype)
        xp = jnp.concatenate([zc, xp], axis=1)               # (2*Ho+2, Wf+1, 2C)
        xq = xp.reshape(Ho + 1, 2, Wf + 1, C2)               # free outer split
        even, odd = xq[:, 0], xq[:, 1]                       # row phases
        bands = (even[0:Ho], odd[0:Ho], even[1:Ho + 1])      # kh = 0, 1, 2
        taps = []
        for band in bands:
            for ft in range(2):
                taps.append(band[:, ft:ft + Wo, :].reshape(M, C2))
        return taps

    make_taps = taps_stride1 if stride == 1 else taps_stride2
    cols = make_taps(prep(xm_ref[0]))
    if has_skip:
        cols = cols + make_taps(prep(xs_ref[0]))             # grouped: main | skip
    patches = jnp.concatenate(cols, axis=-1)                 # (M, K), VMEM only

    acc = jnp.dot(patches, w_ref[...], preferred_element_type=jnp.float32)
    acc = acc + b_ref[...]                                   # f32 epilogue
    if leaky_out:
        acc = _leaky(acc)
    o_ref[...] = acc.reshape(o_ref.shape).astype(o_ref.dtype)


def _expand_weight_stride2(w):
    """HWIO (3,3,C,Cout) -> (12*C, Cout) matching the folded stride-2 tap order."""
    C, Cout = w.shape[2], w.shape[3]
    zeros = jnp.zeros((C, Cout), w.dtype)
    blocks = []
    for kh in range(3):
        blocks.append(jnp.concatenate([zeros, w[kh, 0]], axis=0))       # ft = 0
        blocks.append(jnp.concatenate([w[kh, 1], w[kh, 2]], axis=0))    # ft = 1
    return jnp.concatenate(blocks, axis=0)


def conv3x3(x_main, w, b, *, stride=1, x_skip=None, leaky_in=False,
            leaky_out=False, out_dtype=None):
    """Fused leaky_out?(conv3x3(leaky_in?(cat(x_main, x_skip)))), pad = 1.

    x_* are NHWC, w is HWIO (3, 3, Cin_main[+Cin_skip], Cout).  Neither the
    concat, the zero halo, nor any im2col patches are materialized in HBM.
    """
    B, H, W, Cm = x_main.shape
    Cout = w.shape[-1]
    if out_dtype is None:
        out_dtype = x_main.dtype
    has_skip = x_skip is not None
    wdt = MXU_DTYPE if MXU_DTYPE is not None else w.dtype

    if stride == 1:
        Ho, Wo = H, W
        xm = x_main
    else:
        assert stride == 2 and H % 2 == 0 and W % 2 == 0 and not has_skip
        Ho, Wo = H // 2, W // 2
        xm = x_main.reshape(B, H, W // 2, 2 * Cm)   # free HBM view (W lane fold)
    M = Ho * Wo

    args = [xm]
    in_specs = [pl.BlockSpec((1,) + xm.shape[1:], lambda i: (i, 0, 0, 0))]

    if has_skip:
        Cs = x_skip.shape[-1]
        assert x_skip.shape[:3] == (B, H, W) and w.shape[2] == Cm + Cs
        args.append(x_skip)
        in_specs.append(pl.BlockSpec((1, H, W, Cs), lambda i: (i, 0, 0, 0)))
        # grouped patch columns: 9 main taps then 9 skip taps
        w2d = jnp.concatenate([w[:, :, :Cm, :].reshape(9 * Cm, Cout),
                               w[:, :, Cm:, :].reshape(9 * Cs, Cout)], axis=0)
    elif stride == 1:
        assert w.shape[2] == Cm
        w2d = w.reshape(9 * Cm, Cout)
    else:
        assert w.shape[2] == Cm
        w2d = _expand_weight_stride2(w)             # (12*Cm, Cout)

    w2d = w2d.astype(wdt)
    b2 = b.reshape(1, Cout).astype(jnp.float32)
    args += [w2d, b2]
    in_specs += [pl.BlockSpec(w2d.shape, lambda i: (0, 0)),
                 pl.BlockSpec((1, Cout), lambda i: (0, 0))]

    # Rough VMEM footprint guard (whole-image blocks don't scale to very large
    # spatial inputs -- see the row-tiling TODO at the top of the file).
    est = 2 * _vbytes(xm.shape[1:], xm.dtype) + 2 * _vbytes(w2d.shape, wdt)
    est += 2 * _vbytes((1, Cout), jnp.float32) + 2 * _vbytes((M, Cout), out_dtype)
    n_taps = 9 if stride == 1 else 6
    chans = [xm.shape[-1]]
    if has_skip:
        est += 2 * _vbytes(x_skip.shape[1:], x_skip.dtype)
        chans.append(Cs)
    for c in chans:
        est += _vbytes((Ho * stride + 2, Wo + 2, c), wdt)        # padded copy
        est += n_taps * _vbytes((M, c), wdt)                     # tap slices
    est += _vbytes((M, w2d.shape[0]), wdt) + _vbytes((M, Cout), jnp.float32)
    if est > _VMEM_LIMIT:
        raise NotImplementedError(
            "conv3x3: estimated VMEM footprint %.1f MiB exceeds the %.1f MiB "
            "limit. TODO(synk): row-tile with manual halo DMA for large inputs."
            % (est / 2 ** 20, _VMEM_LIMIT / 2 ** 20))

    kernel = functools.partial(
        _conv3x3_kernel, stride=stride, has_skip=has_skip, leaky_in=leaky_in,
        leaky_out=leaky_out, out_hw=(Ho, Wo), mxu_dtype=MXU_DTYPE)
    out = pl.pallas_call(
        kernel,
        out_shape=jax.ShapeDtypeStruct((B, M, Cout), out_dtype),
        grid=(B,),
        in_specs=in_specs,
        out_specs=pl.BlockSpec((1, M, Cout), lambda i: (i, 0, 0)),
        compiler_params=pltpu.CompilerParams(
            dimension_semantics=("parallel",),
            vmem_limit_bytes=_VMEM_LIMIT),
    )(*args)
    return out.reshape(B, Ho, Wo, Cout)      # free HBM view


def upsample2x(y):
    """2x nearest-neighbour upsample as a single broadcast+reshape op.

    TODO(synk): fuse into the consuming conv kernel (duplicate rows/cols in
    VMEM) to avoid the HBM round trip of the 4x upsampled activation.
    """
    B, H, W, C = y.shape
    y = jnp.broadcast_to(y[:, :, None, :, None, :], (B, H, 2, W, 2, C))
    return y.reshape(B, 2 * H, 2 * W, C)


# ----------------------------------------------------------------------------
# Parameter construction (deterministic, mirrors Shader.__init__ shapes)
# ----------------------------------------------------------------------------
def init_shader_params(key, lights_dim=4, expand_dim=8, dtype=jnp.float32):
    channels = [3, 16, 32, 64, 128, 256, 256]
    enc_specs = [(channels[i], channels[i + 1], 1 if i == 0 else 2)
                 for i in range(len(channels) - 1)]
    dch = list(channels)
    dch.append(dch[-1])        # [3,16,32,64,128,256,256,256]
    dch[0] = 1
    dch[-1] += 1               # [1,16,32,64,128,256,256,257]
    dch = list(reversed(dch))  # [257,256,256,128,64,32,16,1]
    dec_specs = [(dch[i] * (1 if i == 0 else 2), dch[i + 1], 1)
                 for i in range(len(dch) - 1)]

    def conv_param(k, cin, cout):
        kw_, kb_ = jax.random.split(k)
        bound = 1.0 / float(jnp.sqrt(cin * 9.0))
        wgt = jax.random.uniform(kw_, (3, 3, cin, cout), dtype, -bound, bound)
        bias = jax.random.uniform(kb_, (cout,), dtype, -bound, bound)
        return wgt, bias

    keys = jax.random.split(key, len(enc_specs) + len(dec_specs) + 1)
    params = {"encoder": [], "decoder": []}
    ki = 0
    for cin, cout, s in enc_specs:
        wgt, bias = conv_param(keys[ki], cin, cout)
        ki += 1
        params["encoder"].append((wgt, bias, s))
    for cin, cout, s in dec_specs:
        wgt, bias = conv_param(keys[ki], cin, cout)
        ki += 1
        params["decoder"].append((wgt, bias, s))
    kw_, kb_ = jax.random.split(keys[ki])
    bound = 1.0 / float(jnp.sqrt(float(lights_dim)))
    lw = jax.random.uniform(kw_, (lights_dim, expand_dim * expand_dim), dtype,
                            -bound, bound)
    lb = jax.random.uniform(kb_, (expand_dim * expand_dim,), dtype,
                            -bound, bound)
    params["lights_fc"] = (lw, lb)
    return params


# ----------------------------------------------------------------------------
# Forward pass (semantics of Shader.forward)
# ----------------------------------------------------------------------------
def shader_forward(params, x_nchw, lights, expand_dim):
    # NCHW -> NHWC; activations are carried in bf16 between layers (f32 math
    # inside the kernels; final output back in f32).
    x = jnp.transpose(x_nchw, (0, 2, 3, 1)).astype(ACT_DTYPE)

    encoded = []
    for (w, b, stride) in params["encoder"]:
        x = conv3x3(x, w, b, stride=stride, leaky_out=True)   # conv + leaky fused
        encoded.append(x)

    # lights FC: (B, 4) @ (4, expand_dim^2) -- pure launch overhead as a
    # kernel, so it stays in plain jnp (per the perf review).
    lw, lb = params["lights_fc"]
    B = lights.shape[0]
    l_img = (lights @ lw + lb).reshape(B, expand_dim, expand_dim, 1)
    l_img = l_img.astype(ACT_DTYPE)

    dec = params["decoder"]
    # PyTorch loop:  for ind in 0..len(dec)-2: x = dec[ind](x); if ind != 0:
    #   upsample(x); x = cat(x, encoded[-(ind+1)]); leaky(x).  Then dec[-1](x).
    # Here `y` always holds dec[ind-1]'s raw conv output; the cat and the
    # post-cat leaky are fused into the next conv call (skip input + leaky_in),
    # which reproduces PyTorch's double-leaky on the already-activated skips.
    w, b, _ = dec[0]
    y = conv3x3(encoded[-1], w, b, x_skip=l_img)               # cat(lights) fused
    for ind in range(1, len(dec)):
        if ind >= 2:        # PyTorch upsamples after dec[ind-1] when ind-1 != 0
            y = upsample2x(y)
        w, b, _ = dec[ind]
        out_dtype = jnp.float32 if ind == len(dec) - 1 else None
        y = conv3x3(y, w, b, x_skip=encoded[-ind], leaky_in=True,
                    out_dtype=out_dtype)
    return jnp.transpose(y, (0, 3, 1, 2))                      # NHWC -> NCHW


# ----------------------------------------------------------------------------
if __name__ == "__main__":
    key = jax.random.PRNGKey(0)
    kx, kl, kp = jax.random.split(key, 3)

    B, H, W = 2, 32, 32
    lights_dim = 4
    expand_dim = 1   # encoder downsamples spatial 32x -> 1x1 bottleneck

    x = jax.random.normal(kx, (B, 3, H, W), jnp.float32)       # NCHW input
    lights = jax.random.normal(kl, (B, lights_dim), jnp.float32)
    params = init_shader_params(kp, lights_dim, expand_dim)

    out = jax.block_until_ready(shader_forward(params, x, lights, expand_dim))
    assert out.shape == (B, 1, H, W), out.shape
    assert out.dtype == jnp.float32
    print("KERNEL_OK")
</pallas_src>

<mosaic_0001>
module attributes {stable_mosaic.version = 11 : i64} {
  func.func @_conv3x3_kernel(%arg0: i32, %arg1: memref<1x32x32x3xbf16, #tpu.memory_space<vmem>>, %arg2: memref<27x16xbf16, #tpu.memory_space<vmem>>, %arg3: memref<1x16xf32, #tpu.memory_space<vmem>>, %arg4: memref<1x1024x16xbf16, #tpu.memory_space<vmem>>) attributes {dimension_semantics = [#tpu.dimension_semantics<parallel>], iteration_bounds = array<i64: 2>, scalar_prefetch = 0 : i64, scratch_operands = 0 : i64, tpu.core_type = #tpu.core_type<tc>, window_params = [{transform_indices = @transform_0, window_bounds = array<i64: 1, 32, 32, 3>}, {pipeline_mode = #tpu.pipeline_mode<synchronous>, transform_indices = @transform_1, window_bounds = array<i64: 27, 16>}, {pipeline_mode = #tpu.pipeline_mode<synchronous>, transform_indices = @transform_2, window_bounds = array<i64: 1, 16>}, {transform_indices = @transform_3, window_bounds = array<i64: 1, 1024, 16>}]} {
    %c0 = arith.constant 0 : index
    %c0_0 = arith.constant 0 : index
    %c0_1 = arith.constant 0 : index
    %c0_2 = arith.constant 0 : index
    %0 = vector.load %arg1[%c0, %c0_0, %c0_1, %c0_2] : memref<1x32x32x3xbf16, #tpu.memory_space<vmem>>, vector<1x32x32x3xbf16>
    %1 = vector.shape_cast %0 : vector<1x32x32x3xbf16> to vector<32x32x3xbf16>
    %cst = arith.constant 0.000000e+00 : bf16
    %2 = vector.broadcast %cst : bf16 to vector<1x32x3xbf16>
    %3 = tpu.concatenate %2, %1, %2 in 0 : vector<1x32x3xbf16>, vector<32x32x3xbf16>, vector<1x32x3xbf16> -> vector<34x32x3xbf16>
    %cst_3 = arith.constant 0.000000e+00 : bf16
    %4 = vector.broadcast %cst_3 : bf16 to vector<34x1x3xbf16>
    %5 = tpu.concatenate %4, %3, %4 in 1 : vector<34x1x3xbf16>, vector<34x32x3xbf16>, vector<34x1x3xbf16> -> vector<34x34x3xbf16>
    %6 = vector.extract_strided_slice %5 {offsets = [0, 0, 0], sizes = [32, 32, 3], strides = [1, 1, 1]} : vector<34x34x3xbf16> to vector<32x32x3xbf16>
    %7 = vector.shape_cast %6 : vector<32x32x3xbf16> to vector<1024x3xbf16>
    %8 = vector.extract_strided_slice %5 {offsets = [0, 1, 0], sizes = [32, 32, 3], strides = [1, 1, 1]} : vector<34x34x3xbf16> to vector<32x32x3xbf16>
    %9 = vector.shape_cast %8 : vector<32x32x3xbf16> to vector<1024x3xbf16>
    %10 = vector.extract_strided_slice %5 {offsets = [0, 2, 0], sizes = [32, 32, 3], strides = [1, 1, 1]} : vector<34x34x3xbf16> to vector<32x32x3xbf16>
    %11 = vector.shape_cast %10 : vector<32x32x3xbf16> to vector<1024x3xbf16>
    %12 = vector.extract_strided_slice %5 {offsets = [1, 0, 0], sizes = [32, 32, 3], strides = [1, 1, 1]} : vector<34x34x3xbf16> to vector<32x32x3xbf16>
    %13 = vector.shape_cast %12 : vector<32x32x3xbf16> to vector<1024x3xbf16>
    %14 = vector.extract_strided_slice %5 {offsets = [1, 1, 0], sizes = [32, 32, 3], strides = [1, 1, 1]} : vector<34x34x3xbf16> to vector<32x32x3xbf16>
    %15 = vector.shape_cast %14 : vector<32x32x3xbf16> to vector<1024x3xbf16>
    %16 = vector.extract_strided_slice %5 {offsets = [1, 2, 0], sizes = [32, 32, 3], strides = [1, 1, 1]} : vector<34x34x3xbf16> to vector<32x32x3xbf16>
    %17 = vector.shape_cast %16 : vector<32x32x3xbf16> to vector<1024x3xbf16>
    %18 = vector.extract_strided_slice %5 {offsets = [2, 0, 0], sizes = [32, 32, 3], strides = [1, 1, 1]} : vector<34x34x3xbf16> to vector<32x32x3xbf16>
    %19 = vector.shape_cast %18 : vector<32x32x3xbf16> to vector<1024x3xbf16>
    %20 = vector.extract_strided_slice %5 {offsets = [2, 1, 0], sizes = [32, 32, 3], strides = [1, 1, 1]} : vector<34x34x3xbf16> to vector<32x32x3xbf16>
    %21 = vector.shape_cast %20 : vector<32x32x3xbf16> to vector<1024x3xbf16>
    %22 = vector.extract_strided_slice %5 {offsets = [2, 2, 0], sizes = [32, 32, 3], strides = [1, 1, 1]} : vector<34x34x3xbf16> to vector<32x32x3xbf16>
    %23 = vector.shape_cast %22 : vector<32x32x3xbf16> to vector<1024x3xbf16>
    %24 = tpu.concatenate %7, %9, %11, %13, %15, %17, %19, %21, %23 in 1 : vector<1024x3xbf16>, vector<1024x3xbf16>, vector<1024x3xbf16>, vector<1024x3xbf16>, vector<1024x3xbf16>, vector<1024x3xbf16>, vector<1024x3xbf16>, vector<1024x3xbf16>, vector<1024x3xbf16> -> vector<1024x27xbf16>
    %c0_4 = arith.constant 0 : index
    %c0_5 = arith.constant 0 : index
    %25 = vector.load %arg2[%c0_4, %c0_5] : memref<27x16xbf16, #tpu.memory_space<vmem>>, vector<27x16xbf16>
    %cst_6 = arith.constant dense<0.000000e+00> : vector<1024x16xf32>
    %26 = tpu.matmul %24, %25, %cst_6 {dimension_numbers = #tpu.dot_dimension_numbers<[1], [0], [0], [1], [0, 0, 1, 1], [], []>} : vector<1024x27xbf16>, vector<27x16xbf16>, vector<1024x16xf32> -> vector<1024x16xf32>
    %c0_7 = arith.constant 0 : index
    %c0_8 = arith.constant 0 : index
    %27 = vector.load %arg3[%c0_7, %c0_8] : memref<1x16xf32, #tpu.memory_space<vmem>>, vector<1x16xf32>
    %28 = vector.broadcast %27 : vector<1x16xf32> to vector<1024x16xf32>
    %29 = arith.addf %26, %28 : vector<1024x16xf32>
    %cst_9 = arith.constant 0.000000e+00 : f32
    %30 = vector.broadcast %cst_9 : f32 to vector<1024x16xf32>
    %31 = arith.cmpf oge, %29, %30 : vector<1024x16xf32>
    %cst_10 = arith.constant 0.00999999977 : f32
    %32 = vector.broadcast %cst_10 : f32 to vector<1024x16xf32>
    %33 = arith.mulf %32, %29 : vector<1024x16xf32>
    %34 = arith.select %31, %29, %33 : vector<1024x16xi1>, vector<1024x16xf32>
    %35 = vector.shape_cast %34 : vector<1024x16xf32> to vector<1x1024x16xf32>
    %36 = arith.truncf %35 : vector<1x1024x16xf32> to vector<1x1024x16xbf16>
    %c0_11 = arith.constant 0 : index
    %c0_12 = arith.constant 0 : index
    %c0_13 = arith.constant 0 : index
    %37 = vector.load %arg4[%c0_11, %c0_12, %c0_13] : memref<1x1024x16xbf16, #tpu.memory_space<vmem>>, vector<1x1024x16xbf16>
    tpu.vector_store %arg4[%c0_11, %c0_12, %c0_13], %36 {strides = array<i32>} : memref<1x1024x16xbf16, #tpu.memory_space<vmem>>, vector<1x1024x16xbf16>,
    return
  }
  func.func @transform_0(%arg0: i32) -> (i32, i32, i32, i32) {
    %c0_i32 = arith.constant 0 : i32
    %c0_i32_0 = arith.constant 0 : i32
    %c0_i32_1 = arith.constant 0 : i32
    %c0_i32_2 = arith.constant 0 : i32
    return %arg0, %c0_i32, %c0_i32_0, %c0_i32_1 : i32, i32, i32, i32
  }
  func.func @transform_1(%arg0: i32) -> (i32, i32) {
    %c0_i32 = arith.constant 0 : i32
    %c0_i32_0 = arith.constant 0 : i32
    %c0_i32_1 = arith.constant 0 : i32
    return %c0_i32, %c0_i32_0 : i32, i32
  }
  func.func @transform_2(%arg0: i32) -> (i32, i32) {
    %c0_i32 = arith.constant 0 : i32
    %c0_i32_0 = arith.constant 0 : i32
    %c0_i32_1 = arith.constant 0 : i32
    return %c0_i32, %c0_i32_0 : i32, i32
  }
  func.func @transform_3(%arg0: i32) -> (i32, i32, i32) {
    %c0_i32 = arith.constant 0 : i32
    %c0_i32_0 = arith.constant 0 : i32
    %c0_i32_1 = arith.constant 0 : i32
    return %arg0, %c0_i32, %c0_i32_0 : i32, i32, i32
  }
}

</mosaic_0001>

<bundles_post_ra>
// kernel: tpu_custom_call.1
= control target key start
LH: loop header
LB: loop body
LE: loop exit
PB: predicated region body
PF: predicated region fallthrough
CT: control target
= control target key end

     0   :  { %s5854_s12 = smov 0   ;;  %s10260_s0 = inlined_call_operand.vmem [shape: bf16[2,32,32,3], index: 0, kind: input, shape index: {}]   ;;  %s10261_s1 = inlined_call_operand.vmem [shape: bf16[27,16], index: 1, kind: input, shape index: {}]   ;;  %s10262_s2 = inlined_call_operand.vmem [shape: f32[1,16], index: 2, kind: input, shape index: {}]   ;;  %s10263_s3 = inlined_call_operand.vmem [shape: bf16[2,1024,16], index: 3, kind: output, shape index: {}]  }
   0x1 LB: > { %s5372_s13 = sadd.s32 4294967295, %s5822_s12   ;;  %p5376_p0 = scmp.ge.s32.totalorder %s5822_s12, 1  ;;  %s5822_s12 = sphi %s5854_s12, %s13_s12  }
   0x2   : > { %p137_p1 = scmp.lt.s32.totalorder %s5822_s12, 3 }
   0x4   : > { %p138_p2 = pnand %p5376_p0, %p137_p1 }
   0x6   : > { %141 = sbr.rel (%p138_p2) target bundleno = 1666 (0x682), region = 32 }
   0xb   : > { %vm620_vm0 = vsmask.f32 256  ;;  %vm1175_vm1 = vcmask 1040384   ;;  %v5824_v0 = vmov 0   ;;  %v10654_v2 = vmov 0  ;;  %p161_p3 = scmp.lt.s32.totalorder %s5372_s13, 1 }
   0xc   : > { %v5862_v1 = vrot.slane %v5824_v0, 7  ;;  %vm5865_vm2 = vmand %vm1175_vm1, %vm620_vm0  ;;  %vm1243_vm3 = vsmask.f32 7424  ;;  %s5825_s18 = smov 3   ;;  %vm1948_vm4 = vcmask 1046528   ;;  %s5826_s19 = smov 6  }
   0xd   : > { %v10655_v2 = vsel %vm5865_vm2, 4294967295, %v10654_v2  ;;  %s11908_s13 = smov (!%p161_p3, %s5372_s13), 1  ;;  %s5827_s20 = smov 9   ;;  %vm4340_vm5 = vcmask 1044480   ;;  %vm4341_vm6 = vcmask 1045504   ;;  %vm3160_vm7 = vcmask 23552  }
   0xe   : > { %10653 = vst [vmem:[#allocation2_spill] sm:$0xff] %v5862_v1  ;;  %v5872_v3 = vsel %vm5865_vm2, %v5862_v1, 0  ;;  %v1252_v4 = vshll.u32 %v5862_v1, 16  ;;  %v1256_v5 = vshrl.u32 %v5862_v1, 16  ;;  %v5879_v6 = vsel %vm5865_vm2, 0, %v5862_v1  ;;  %s5711_s14 = sshll.u32 %s11908_s13, 9 }
   0xf   : > { %10656 = vst [vmem:[#allocation3_spill] sm:$0xff] %v10655_v2  ;;  %v1260_v7 = vshll.u32 %v5872_v3, 16  ;;  %v1245_v8 = vshrl.u32 %v5879_v6, 16  ;;  %v1247_v9 = vshll.u32 %v5879_v6, 16  ;;  %s5892_s17 = scalar_lea.vmem %s10260_s0, %s5711_s14  ;;  %s5828_s21 = smov 12   ;;  %vm3289_vm8 = vcmask 48128  }
  0x10   : > { %10657 = vst [vmem:[#allocation4_spill] sm:$0xff] %v5879_v6  ;;  %v1254_v10 = vrot.slane %v1252_v4, 1  ;;  %v5715_v14 = vld [vmem:[%s5892_s17 + $0x10] sm:$0xff]  ;;  %v5716_v15 = vld [vmem:[%s5892_s17 + $0x18] sm:$0xff]  ;;  %v5713_v16 = vld [vmem:[%s5892_s17] sm:$0xff]  ;;  %s5829_s22 = smov 15   ;;  %s9054_s9 = scalar_lea.vmem %s10263_s3, %s5711_s14 }
  0x11   : > { %v1262_v11 = vrot.slane %v1260_v7, 1  ;;  %v1249_v12 = vrot.slane %v1247_v9, 1  ;;  %v5714_v18 = vld [vmem:[%s5892_s17 + $0x8] sm:$0xff]  ;;  %v5717_v19 = vld [vmem:[%s5892_s17 + $0x20] sm:$0xff]  ;;  %v645_v22 = vshrl.u32 %v5715_v14, 16  ;;  %v648_v23 = vshll.u32 %v5715_v14, 16 }
  0x12   : > { %v1258_v13 = vor.u32 %v1256_v5, %v1254_v10  ;;  %v5718_v20 = vld [vmem:[%s5892_s17 + $0x28] sm:$0xff]  ;;  %v652_v24 = vshrl.u32 %v5716_v15, 16  ;;  %v655_v26 = vshll.u32 %v5716_v15, 16  ;;  %v630_v27 = vshrl.u32 %v5713_v16, 16  ;;  %v5719_v61 = vld [vmem:[%s5892_s17 + $0x30] sm:$0xff]  ;;  %s5830_s23 = smov 18  }
  0x13   : > { %v1250_v17 = vor.u32 %v1249_v12, %v1245_v8  ;;  %v633_v28 = vshll.u32 %v5713_v16, 16  ;;  %v647_v29 = vrot.slane %v645_v22, 7  ;;  %v637_v31 = vshrl.u32 %v5714_v18, 16  ;;  %s5831_s24 = smov 21   ;;  %s5832_s25 = smov 24  }
  0x14   : > { %v5901_v21 = vsel %vm1243_vm3, %v1258_v13, %v1262_v11  ;;  %v654_v30 = vrot.slane %v652_v24, 7  ;;  %v640_v32 = vshll.u32 %v5714_v18, 16  ;;  %v632_v33 = vrot.slane %v630_v27, 7  ;;  %v5723_v24 = vld [vmem:[%s5892_s17 + $0x50] sm:$0xff] }
  0x15   : > { %10658 = vst [vmem:[#allocation5_spill] sm:$0xff] %v5901_v21  ;;  %2138 = vrot.lane.b32.xlu0 %v5901_v21, %s5825_s18  ;;  %v5906_v25 = vsel %vm1243_vm3, %v1250_v17, %v1254_v10  ;;  %v660_v34 = vshrl.u32 %v5717_v19, 16  ;;  %v663_v35 = vshll.u32 %v5717_v19, 16  ;;  %v667_v36 = vshrl.u32 %v5718_v20, 16  ;;  %v5720_v10 = vld [vmem:[%s5892_s17 + $0x38] sm:$0xff] }
  0x16   : > { %10659 = vst [vmem:[#allocation6_spill] sm:$0xff] %v5906_v25  ;;  %v650_v37 = vor.u32 %v648_v23, %v647_v29  ;;  %v657_v38 = vor.u32 %v655_v26, %v654_v30  ;;  %v639_v39 = vrot.slane %v637_v31, 7  ;;  %v670_v40 = vshll.u32 %v5718_v20, 16 }
  0x17   : > { %v635_v41 = vor.u32 %v633_v28, %v632_v33  ;;  %v662_v42 = vrot.slane %v660_v34, 7  ;;  %v669_v43 = vrot.slane %v667_v36, 7  ;;  %v5910_v44 = vsel %vm5865_vm2, %v654_v30, 0 }
  0x18   : > { %v5913_v45 = vsel %vm620_vm0, %v647_v29, %v657_v38  ;;  %v5917_v46 = vsel %vm5865_vm2, 0, %v650_v37  ;;  %v642_v47 = vor.u32 %v640_v32, %v639_v39  ;;  %v1300_v48 = vshll.u32 %v5910_v44, 16  ;;  %v5724_v38 = vld [vmem:[%s5892_s17 + $0x58] sm:$0xff] }
  0x19   : > { %10660 = vst [vmem:[#allocation7_spill] sm:$0xff] %v5913_v45  ;;  %v1285_v49 = vshrl.u32 %v5917_v46, 16  ;;  %v1287_v50 = vshll.u32 %v5917_v46, 16  ;;  %v1292_v51 = vshll.u32 %v5913_v45, 16  ;;  %v5925_v52 = vsel %vm5865_vm2, 0, %v635_v41 }
  0x1a   : > { %10661 = vst [vmem:[#allocation8_spill] sm:$0xff] %v5925_v52  ;;  %v5928_v53 = vsel %vm620_vm0, %v632_v33, %v642_v47  ;;  %v1265_v54 = vshrl.u32 %v5925_v52, 16  ;;  %v1267_v55 = vshll.u32 %v5925_v52, 16  ;;  %v665_v56 = vor.u32 %v663_v35, %v662_v42 }
  0x1b   : > { %10662 = vst [vmem:[#allocation9_spill] sm:$0xff] %v5928_v53  ;;  %v1289_v57 = vrot.slane %v1287_v50, 1  ;;  %v1294_v58 = vrot.slane %v1292_v51, 1  ;;  %v1272_v59 = vshll.u32 %v5928_v53, 16  ;;  %v672_v60 = vor.u32 %v670_v40, %v669_v43 }
  0x1c   : > { %v1269_v62 = vrot.slane %v1267_v55, 1  ;;  %v5938_v63 = vsel %vm5865_vm2, 0, %v665_v56  ;;  %v1296_v0 = vshrl.u32 %v5913_v45, 16  ;;  %v1302_v4 = vrot.slane %v1300_v48, 1  ;;  %v5721_v56 = vld [vmem:[%s5892_s17 + $0x40] sm:$0xff] }
  0x1d   : > { %2136 = vrot.lane.b32.xlu0 %v5906_v25, %s5825_s18  ;;  %10663 = vst [vmem:[#allocation10_spill] sm:$0xff] %v5938_v63  ;;  %v1290_v5 = vor.u32 %v1289_v57, %v1285_v49  ;;  %v1274_v7 = vrot.slane %v1272_v59, 1  ;;  %v5942_v8 = vsel %vm620_vm0, %v662_v42, %v672_v60  ;;  %v1305_v9 = vshrl.u32 %v5938_v63, 16  ;;  %v5722_v57 = vld [vmem:[%s5892_s17 + $0x48] sm:$0xff] }
  0x1e   : > { %10664 = vst [vmem:[#allocation11_spill] sm:$0xff] %v5942_v8  ;;  %v1270_v11 = vor.u32 %v1269_v62, %v1265_v54  ;;  %v1307_v12 = vshll.u32 %v5938_v63, 16  ;;  %v1312_v13 = vshll.u32 %v5942_v8, 16  ;;  %v1298_v14 = vor.u32 %v1296_v0, %v1294_v58 }
  0x1f   : > { %v5949_v15 = vsel %vm1243_vm3, %v1290_v5, %v1294_v58  ;;  %v5953_v16 = vsel %vm5865_vm2, %v639_v39, 0  ;;  %v1276_v17 = vshrl.u32 %v5928_v53, 16  ;;  %v675_v18 = vshrl.u32 %v5719_v61, 16 }
  0x20   : > { %10665 = vst [vmem:[#allocation12_spill] sm:$0xff] %v5949_v15  ;;  %2144 = vrot.lane.b32.xlu2 %v5949_v15, %s5825_s18  ;;  %v5959_v19 = vsel %vm1243_vm3, %v1270_v11, %v1274_v7  ;;  %v1309_v20 = vrot.slane %v1307_v12, 1  ;;  %v1314_v22 = vrot.slane %v1312_v13, 1  ;;  %v5962_v23 = vsel %vm1243_vm3, %v1298_v14, %v1302_v4  ;;  %v5725_v12 = vld [vmem:[%s5892_s17 + $0x60] sm:$0xff] }
  0x21   : > { %10666 = vst [vmem:[#allocation13_spill] sm:$0xff] %v5959_v19  ;;  %2140 = vrot.lane.b32.xlu1 %v5959_v19, %s5825_s18  ;;  %v1278_v26 = vor.u32 %v1276_v17, %v1274_v7  ;;  %v1280_v27 = vshll.u32 %v5953_v16, 16  ;;  %v677_v28 = vrot.slane %v675_v18, 7  ;;  %v682_v29 = vshrl.u32 %v5720_v10, 16 }
  0x22   : > { %10667 = vst [vmem:[#allocation14_spill] sm:$0xff] %v5962_v23  ;;  %v1310_v30 = vor.u32 %v1309_v20, %v1305_v9  ;;  %v685_v31 = vshll.u32 %v5720_v10, 16  ;;  %v678_v32 = vshll.u32 %v5719_v61, 16  ;;  %v5970_v33 = vsel %vm5865_vm2, %v669_v43, 0 }
  0x23   : > { %v1282_v34 = vrot.slane %v1280_v27, 1  ;;  %v684_v35 = vrot.slane %v682_v29, 7  ;;  %v1316_v36 = vshrl.u32 %v5942_v8, 16  ;;  %v1320_v37 = vshll.u32 %v5970_v33, 16  ;;  %v5726_v27 = vld [vmem:[%s5892_s17 + $0x68] sm:$0xff] }
  0x24   : > { %v5976_v39 = vsel %vm1243_vm3, %v1310_v30, %v1314_v22  ;;  %v680_v40 = vor.u32 %v678_v32, %v677_v28  ;;  %v705_v41 = vshrl.u32 %v5723_v24, 16  ;;  %v708_v42 = vshll.u32 %v5723_v24, 16 }
  0x25   : > { %10668 = vst [vmem:[#allocation15_spill] sm:$0xff] %v5976_v39  ;;  %2148 = vrot.lane.b32.xlu0 %v5976_v39, %s5825_s18  ;;  %v5981_v43 = vsel %vm1243_vm3, %v1278_v26, %v1282_v34  ;;  %v687_v47 = vor.u32 %v685_v31, %v684_v35  ;;  %v5985_v48 = vsel %vm5865_vm2, %v684_v35, 0  ;;  %v1318_v49 = vor.u32 %v1316_v36, %v1314_v22 }
  0x26   : > { %10669 = vst [vmem:[#allocation16_spill] sm:$0xff] %v5981_v43  ;;  %v1340_v50 = vshll.u32 %v5985_v48, 16  ;;  %v5990_v51 = vsel %vm5865_vm2, 0, %v680_v40  ;;  %v1322_v54 = vrot.slane %v1320_v37, 1  ;;  %v707_v55 = vrot.slane %v705_v41, 7 }
  0x27   : > { %10670 = vst [vmem:[#allocation17_spill] sm:$0xff] %v5990_v51  ;;  %v5995_v58 = vsel %vm620_vm0, %v677_v28, %v687_v47  ;;  %v1325_v59 = vshrl.u32 %v5990_v51, 16  ;;  %v1327_v60 = vshll.u32 %v5990_v51, 16  ;;  %v712_v61 = vshrl.u32 %v5724_v38, 16 }
  0x28   : > { %10671 = vst [vmem:[#allocation18_spill] sm:$0xff] %v5995_v58  ;;  %2146 = vrot.lane.b32.xlu2 %v5962_v23, %s5825_s18  ;;  %v1332_v62 = vshll.u32 %v5995_v58, 16  ;;  %v1336_v0 = vshrl.u32 %v5995_v58, 16  ;;  %v1342_v4 = vrot.slane %v1340_v50, 1  ;;  %v6004_v5 = vsel %vm1243_vm3, %v1318_v49, %v1322_v54  ;;  %v5737_v23 = vld [vmem:[%s5892_s17 + $0xc0] sm:$0xff] }
  0x29   : > { %10672 = vst [vmem:[#allocation19_spill] sm:$0xff] %v6004_v5  ;;  %2142 = vrot.lane.b32.xlu1 %v5981_v43, %s5825_s18  ;;  %v1329_v7 = vrot.slane %v1327_v60, 1  ;;  %v710_v9 = vor.u32 %v708_v42, %v707_v55  ;;  %v714_v10 = vrot.slane %v712_v61, 7  ;;  %v715_v11 = vshll.u32 %v5724_v38, 16 }
  0x2a   : > { %v1334_v13 = vrot.slane %v1332_v62, 1  ;;  %v690_v14 = vshrl.u32 %v5721_v56, 16  ;;  %v697_v17 = vshrl.u32 %v5722_v57, 16  ;;  %v700_v18 = vshll.u32 %v5722_v57, 16 }
  0x2b   : > { %v1330_v20 = vor.u32 %v1329_v7, %v1325_v59  ;;  %v717_v22 = vor.u32 %v715_v11, %v714_v10  ;;  %v6011_v24 = vsel %vm5865_vm2, 0, %v710_v9  ;;  %v693_v26 = vshll.u32 %v5721_v56, 16  ;;  %v5729_v11 = vld [vmem:[%s5892_s17 + $0x80] sm:$0xff] }
  0x2c   : > { %10673 = vst [vmem:[#allocation20_spill] sm:$0xff] %v6011_v24  ;;  %v1338_v28 = vor.u32 %v1336_v0, %v1334_v13  ;;  %v1365_v29 = vshrl.u32 %v6011_v24, 16  ;;  %v1367_v30 = vshll.u32 %v6011_v24, 16  ;;  %v692_v31 = vrot.slane %v690_v14, 7 }
  0x2d   : > { %v6017_v32 = vsel %vm1243_vm3, %v1330_v20, %v1334_v13  ;;  %v6020_v34 = vsel %vm620_vm0, %v707_v55, %v717_v22  ;;  %v699_v35 = vrot.slane %v697_v17, 7  ;;  %v720_v36 = vshrl.u32 %v5725_v12, 16 }
  0x2e   : > { %10674 = vst [vmem:[#allocation21_spill] sm:$0xff] %v6017_v32  ;;  %v6023_v37 = vsel %vm1243_vm3, %v1338_v28, %v1342_v4  ;;  %v1369_v38 = vrot.slane %v1367_v30, 1  ;;  %v1372_v40 = vshll.u32 %v6020_v34, 16  ;;  %v695_v41 = vor.u32 %v693_v26, %v692_v31 }
  0x2f   : > { %10675 = vst [vmem:[#allocation22_spill] sm:$0xff] %v6020_v34  ;;  %2154 = vrot.lane.b32.xlu0 %v6023_v37, %s5825_s18  ;;  %v702_v42 = vor.u32 %v700_v18, %v699_v35  ;;  %v6030_v47 = vsel %vm5865_vm2, %v699_v35, 0  ;;  %v722_v49 = vrot.slane %v720_v36, 7  ;;  %v727_v50 = vshrl.u32 %v5726_v27, 16 }
  0x30   : > { %10676 = vst [vmem:[#allocation23_spill] sm:$0xff] %v6023_v37  ;;  %2152 = vrot.lane.b32.xlu2 %v6017_v32, %s5825_s18  ;;  %v1370_v54 = vor.u32 %v1369_v38, %v1365_v29  ;;  %v1374_v55 = vrot.slane %v1372_v40, 1  ;;  %v1360_v56 = vshll.u32 %v6030_v47, 16  ;;  %v6037_v57 = vsel %vm5865_vm2, 0, %v695_v41  ;;  %v5730_v40 = vld [vmem:[%s5892_s17 + $0x88] sm:$0xff]  ;;  %v5727_v41 = vld [vmem:[%s5892_s17 + $0x70] sm:$0xff] }
  0x31   : > { %10677 = vst [vmem:[#allocation24_spill] sm:$0xff] %v6037_v57  ;;  %2150 = vrot.lane.b32.xlu1 %v6004_v5, %s5825_s18  ;;  %v6042_v59 = vsel %vm620_vm0, %v692_v31, %v702_v42  ;;  %v1345_v60 = vshrl.u32 %v6037_v57, 16  ;;  %v1347_v61 = vshll.u32 %v6037_v57, 16  ;;  %v729_v62 = vrot.slane %v727_v50, 7 }
  0x32   : > { %10678 = vst [vmem:[#allocation25_spill] sm:$0xff] %v6042_v59  ;;  %v6047_v0 = vsel %vm1243_vm3, %v1370_v54, %v1374_v55  ;;  %v1352_v4 = vshll.u32 %v6042_v59, 16  ;;  %v1356_v7 = vshrl.u32 %v6042_v59, 16  ;;  %v1362_v9 = vrot.slane %v1360_v56, 1  ;;  %v5728_v56 = vld [vmem:[%s5892_s17 + $0x78] sm:$0xff] }
  0x33   : > { %10679 = vst [vmem:[#allocation26_spill] sm:$0xff] %v6047_v0  ;;  %v1349_v13 = vrot.slane %v1347_v61, 1  ;;  %v730_v14 = vshll.u32 %v5726_v27, 16  ;;  %v6054_v17 = vsel %vm5865_vm2, %v729_v62, 0  ;;  %v723_v18 = vshll.u32 %v5725_v12, 16 }
  0x34   : > { %v1354_v20 = vrot.slane %v1352_v4, 1  ;;  %v1400_v22 = vshll.u32 %v6054_v17, 16  ;;  %v6059_v26 = vsel %vm5865_vm2, %v714_v10, 0  ;;  %v1376_v28 = vshrl.u32 %v6020_v34, 16 }
  0x35   : > { %v1350_v29 = vor.u32 %v1349_v13, %v1345_v60  ;;  %v732_v30 = vor.u32 %v730_v14, %v729_v62  ;;  %v725_v31 = vor.u32 %v723_v18, %v722_v49  ;;  %v1380_v27 = vshll.u32 %v6059_v26, 16  ;;  %v5731_v13 = vld [vmem:[%s5892_s17 + $0x90] sm:$0xff] }
  0x36   : > { %v1358_v35 = vor.u32 %v1356_v7, %v1354_v20  ;;  %v1402_v36 = vrot.slane %v1400_v22, 1  ;;  %v1378_v38 = vor.u32 %v1376_v28, %v1374_v55  ;;  %v750_v12 = vshrl.u32 %v5729_v11, 16 }
  0x37   : > { %2160 = vrot.lane.b32.xlu0 %v6047_v0, %s5825_s18  ;;  %v6068_v10 = vsel %vm1243_vm3, %v1350_v29, %v1354_v20  ;;  %v6071_v42 = vsel %vm620_vm0, %v722_v49, %v732_v30  ;;  %v6075_v50 = vsel %vm5865_vm2, 0, %v725_v31  ;;  %v1382_v54 = vrot.slane %v1380_v27, 1  ;;  %v5733_v0 = vld [vmem:[%s5892_s17 + $0xa0] sm:$0xff] }
  0x38   : > { %10680 = vst [vmem:[#allocation27_spill] sm:$0xff] %v6068_v10  ;;  %v6079_v55 = vsel %vm1243_vm3, %v1358_v35, %v1362_v9  ;;  %v1392_v60 = vshll.u32 %v6071_v42, 16  ;;  %v1396_v61 = vshrl.u32 %v6071_v42, 16  ;;  %v1385_v62 = vshrl.u32 %v6075_v50, 16 }
  0x39   : > { %10681 = vst [vmem:[#allocation28_spill] sm:$0xff] %v6071_v42  ;;  %2158 = vrot.lane.b32.xlu2 %v6079_v55, %s5825_s18  ;;  %2156 = vrot.lane.b32.xlu1 %v6068_v10, %s5825_s18  ;;  %v1387_v49 = vshll.u32 %v6075_v50, 16  ;;  %v6090_v4 = vsel %vm1243_vm3, %v1378_v38, %v1382_v54  ;;  %v752_v7 = vrot.slane %v750_v12, 7  ;;  %v753_v9 = vshll.u32 %v5729_v11, 16  ;;  %v5732_v12 = vld [vmem:[%s5892_s17 + $0x98] sm:$0xff] }
  0x3a   : > { %10682 = vst [vmem:[#allocation29_spill] sm:$0xff] %v6075_v50  ;;  %v1394_v14 = vrot.slane %v1392_v60, 1  ;;  %v757_v18 = vshrl.u32 %v5730_v40, 16  ;;  %v760_v20 = vshll.u32 %v5730_v40, 16  ;;  %v735_v22 = vshrl.u32 %v5727_v41, 16 }
  0x3b   : > { %10683 = vst [vmem:[#allocation30_spill] sm:$0xff] %v6079_v55  ;;  %v1389_v28 = vrot.slane %v1387_v49, 1  ;;  %v755_v29 = vor.u32 %v753_v9, %v752_v7  ;;  %v742_v30 = vshrl.u32 %v5728_v56, 16  ;;  %v745_v31 = vshll.u32 %v5728_v56, 16 }
  0x3c   : > { %10684 = vst [vmem:[#allocation31_spill] sm:$0xff] %v6090_v4  ;;  %v1398_v27 = vor.u32 %v1396_v61, %v1394_v14  ;;  %v759_v35 = vrot.slane %v757_v18, 7  ;;  %v737_v21 = vrot.slane %v735_v22, 7  ;;  %v738_v25 = vshll.u32 %v5727_v41, 16 }
  0x3d   : > { %v1390_v10 = vor.u32 %v1389_v28, %v1385_v62  ;;  %v6095_v38 = vsel %vm5865_vm2, 0, %v755_v29  ;;  %v744_v11 = vrot.slane %v742_v30, 7  ;;  %v765_v54 = vshrl.u32 %v5731_v13, 16 }
  0x3e   : > { %v6099_v60 = vsel %vm1243_vm3, %v1398_v27, %v1402_v36  ;;  %v762_v40 = vor.u32 %v760_v20, %v759_v35  ;;  %v1425_v49 = vshrl.u32 %v6095_v38, 16  ;;  %v1427_v56 = vshll.u32 %v6095_v38, 16 }
  0x3f   : > { %10685 = vst [vmem:[#allocation32_spill] sm:$0xff] %v6099_v60  ;;  %2166 = vrot.lane.b32.xlu0 %v6099_v60, %s5825_s18  ;;  %v6106_v41 = vsel %vm1243_vm3, %v1390_v10, %v1394_v14  ;;  %v747_v61 = vor.u32 %v745_v31, %v744_v11  ;;  %v6110_v62 = vsel %vm5865_vm2, %v744_v11, 0  ;;  %v740_v9 = vor.u32 %v738_v25, %v737_v21 }
  0x40   : > { %10686 = vst [vmem:[#allocation33_spill] sm:$0xff] %v6106_v41  ;;  %v6113_v36 = vsel %vm620_vm0, %v752_v7, %v762_v40  ;;  %v1429_v18 = vrot.slane %v1427_v56, 1  ;;  %v1420_v20 = vshll.u32 %v6110_v62, 16  ;;  %v767_v22 = vrot.slane %v765_v54, 7  ;;  %v5735_v56 = vld [vmem:[%s5892_s17 + $0xb0] sm:$0xff] }
  0x41   : > { %2164 = vrot.lane.b32.xlu2 %v6106_v41, %s5825_s18  ;;  %2162 = vrot.lane.b32.xlu1 %v6090_v4, %s5825_s18  ;;  %v1432_v10 = vshll.u32 %v6113_v36, 16  ;;  %v6122_v14 = vsel %vm620_vm0, %v737_v21, %v747_v61  ;;  %v6126_v25 = vsel %vm5865_vm2, 0, %v740_v9  ;;  %v772_v7 = vshrl.u32 %v5732_v12, 16 }
  0x42   : > { %v1430_v28 = vor.u32 %v1429_v18, %v1425_v49  ;;  %v1412_v29 = vshll.u32 %v6122_v14, 16  ;;  %v1416_v30 = vshrl.u32 %v6122_v14, 16  ;;  %v1422_v31 = vrot.slane %v1420_v20, 1 }
  0x43   : > { %v1434_v27 = vrot.slane %v1432_v10, 1  ;;  %v1405_v11 = vshrl.u32 %v6126_v25, 16  ;;  %v1407_v54 = vshll.u32 %v6126_v25, 16  ;;  %v774_v40 = vrot.slane %v772_v7, 7 }
  0x44   : > { %v1414_v21 = vrot.slane %v1412_v29, 1  ;;  %v775_v61 = vshll.u32 %v5732_v12, 16  ;;  %v768_v4 = vshll.u32 %v5731_v13, 16  ;;  %v6135_v49 = vsel %vm5865_vm2, %v759_v35, 0 }
  0x45   : > { %10687 = vst [vmem:[#allocation34_spill] sm:$0xff] %v6135_v49  ;;  %v6138_v9 = vsel %vm1243_vm3, %v1430_v28, %v1434_v27  ;;  %v1409_v18 = vrot.slane %v1407_v54, 1  ;;  %v6142_v20 = vsel %vm5865_vm2, %v774_v40, 0  ;;  %v1436_v10 = vshrl.u32 %v6113_v36, 16  ;;  %v5736_v54 = vld [vmem:[%s5892_s17 + $0xb8] sm:$0xff] }
  0x46   : > { %10688 = vst [vmem:[#allocation35_spill] sm:$0xff] %v6138_v9  ;;  %v1418_v7 = vor.u32 %v1416_v30, %v1414_v21  ;;  %v777_v29 = vor.u32 %v775_v61, %v774_v40  ;;  %v1460_v13 = vshll.u32 %v6142_v20, 16  ;;  %v770_v12 = vor.u32 %v768_v4, %v767_v22  ;;  %v5734_v40 = vld [vmem:[%s5892_s17 + $0xa8] sm:$0xff] }
  0x47   : > { %2172 = vrot.lane.b32.xlu0 %v6138_v9, %s5825_s18  ;;  %v1410_v35 = vor.u32 %v1409_v18, %v1405_v11  ;;  %v1438_v60 = vor.u32 %v1436_v10, %v1434_v27  ;;  %v1440_v28 = vshll.u32 %v6135_v49, 16  ;;  %v795_v41 = vshrl.u32 %v5735_v56, 16 }
  0x48   : > { %v6152_v55 = vsel %vm1243_vm3, %v1418_v7, %v1422_v31  ;;  %v6155_v5 = vsel %vm620_vm0, %v767_v22, %v777_v29  ;;  %v1462_v30 = vrot.slane %v1460_v13, 1  ;;  %v6159_v4 = vsel %vm5865_vm2, 0, %v770_v12 }
  0x49   : > { %10689 = vst [vmem:[#allocation36_spill] sm:$0xff] %v6152_v55  ;;  %2170 = vrot.lane.b32.xlu2 %v6152_v55, %s5825_s18  ;;  %v6165_v27 = vsel %vm1243_vm3, %v1410_v35, %v1414_v21  ;;  %v1452_v11 = vshll.u32 %v6155_v5, 16  ;;  %v1456_v31 = vshrl.u32 %v6155_v5, 16  ;;  %v1445_v61 = vshrl.u32 %v6159_v4, 16 }
  0x4a   : > { %10690 = vst [vmem:[#allocation37_spill] sm:$0xff] %v6155_v5  ;;  %2168 = vrot.lane.b32.xlu1 %v6165_v27, %s5825_s18  ;;  %v1447_v22 = vshll.u32 %v6159_v4, 16  ;;  %v1442_v18 = vrot.slane %v1440_v28, 1  ;;  %v797_v10 = vrot.slane %v795_v41, 7  ;;  %v798_v7 = vshll.u32 %v5735_v56, 16 }
  0x4b   : > { %10691 = vst [vmem:[#allocation38_spill] sm:$0xff] %v6165_v27  ;;  %v1454_v29 = vrot.slane %v1452_v11, 1  ;;  %v802_v13 = vshrl.u32 %v5736_v54, 16  ;;  %v805_v21 = vshll.u32 %v5736_v54, 16  ;;  %v780_v12 = vshrl.u32 %v5733_v0, 16  ;;  %v5738_v54 = vld [vmem:[%s5892_s17 + $0xc8] sm:$0xff] }
  0x4c   : > { %v1449_v35 = vrot.slane %v1447_v22, 1  ;;  %v6174_v9 = vsel %vm1243_vm3, %v1438_v60, %v1442_v18  ;;  %v800_v55 = vor.u32 %v798_v7, %v797_v10  ;;  %v787_v37 = vshrl.u32 %v5734_v40, 16 }
  0x4d   : > { %10692 = vst [vmem:[#allocation39_spill] sm:$0xff] %v6174_v9  ;;  %v1458_v32 = vor.u32 %v1456_v31, %v1454_v29  ;;  %v804_v15 = vrot.slane %v802_v13, 7  ;;  %v782_v27 = vrot.slane %v780_v12, 7  ;;  %v790_v39 = vshll.u32 %v5734_v40, 16 }
  0x4e   : > { %v1450_v43 = vor.u32 %v1449_v35, %v1445_v61  ;;  %v6179_v41 = vsel %vm5865_vm2, 0, %v800_v55  ;;  %v789_v56 = vrot.slane %v787_v37, 7  ;;  %v783_v28 = vshll.u32 %v5733_v0, 16 }
  0x4f   : > { %10693 = vst [vmem:[#allocation40_spill] sm:$0xff] %v6179_v41  ;;  %v6183_v11 = vsel %vm1243_vm3, %v1458_v32, %v1462_v30  ;;  %v807_v60 = vor.u32 %v805_v21, %v804_v15  ;;  %v1485_v22 = vshrl.u32 %v6179_v41, 16  ;;  %v1487_v31 = vshll.u32 %v6179_v41, 16 }
  0x50   : > { %10694 = vst [vmem:[#allocation41_spill] sm:$0xff] %v6183_v11  ;;  %2178 = vrot.lane.b32.xlu0 %v6183_v11, %s5825_s18  ;;  %v6190_v40 = vsel %vm1243_vm3, %v1450_v43, %v1454_v29  ;;  %v792_v61 = vor.u32 %v790_v39, %v789_v56  ;;  %v6194_v37 = vsel %vm5865_vm2, %v789_v56, 0  ;;  %v785_v0 = vor.u32 %v783_v28, %v782_v27 }
  0x51   : > { %10695 = vst [vmem:[#allocation42_spill] sm:$0xff] %v6190_v40  ;;  %2176 = vrot.lane.b32.xlu2 %v6190_v40, %s5825_s18  ;;  %v6199_v32 = vsel %vm620_vm0, %v797_v10, %v807_v60  ;;  %v1489_v55 = vrot.slane %v1487_v31, 1  ;;  %v1480_v30 = vshll.u32 %v6194_v37, 16  ;;  %v810_v18 = vshrl.u32 %v5737_v23, 16 }
  0x52   : > { %10696 = vst [vmem:[#allocation43_spill] sm:$0xff] %v6194_v37  ;;  %2174 = vrot.lane.b32.xlu1 %v6174_v9, %s5825_s18  ;;  %v1492_v39 = vshll.u32 %v6199_v32, 16  ;;  %v6206_v43 = vsel %vm620_vm0, %v782_v27, %v792_v61  ;;  %v6210_v7 = vsel %vm5865_vm2, 0, %v785_v0  ;;  %v817_v29 = vshrl.u32 %v5738_v54, 16  ;;  %v5741_v0 = vld [vmem:[%s5892_s17 + $0xe0] sm:$0xff] }
  0x53   : > { %10697 = vst [vmem:[#allocation44_spill] sm:$0xff] %v6199_v32  ;;  %v1490_v10 = vor.u32 %v1489_v55, %v1485_v22  ;;  %v1472_v13 = vshll.u32 %v6206_v43, 16  ;;  %v1476_v21 = vshrl.u32 %v6206_v43, 16  ;;  %v1482_v12 = vrot.slane %v1480_v30, 1 }
  0x54   : > { %10698 = vst [vmem:[#allocation45_spill] sm:$0xff] %v6206_v43  ;;  %v1494_v35 = vrot.slane %v1492_v39, 1  ;;  %v1465_v56 = vshrl.u32 %v6210_v7, 16  ;;  %v1467_v28 = vshll.u32 %v6210_v7, 16  ;;  %v812_v60 = vrot.slane %v810_v18, 7 }
  0x55   : > { %10699 = vst [vmem:[#allocation46_spill] sm:$0xff] %v6210_v7  ;;  %v1474_v31 = vrot.slane %v1472_v13, 1  ;;  %v819_v27 = vrot.slane %v817_v29, 7  ;;  %v820_v61 = vshll.u32 %v5738_v54, 16  ;;  %v813_v9 = vshll.u32 %v5737_v23, 16 }
  0x56   : > { %v6218_v11 = vsel %vm1243_vm3, %v1490_v10, %v1494_v35  ;;  %v1469_v22 = vrot.slane %v1467_v28, 1  ;;  %v6222_v55 = vsel %vm5865_vm2, %v804_v15, 0  ;;  %v1496_v30 = vshrl.u32 %v6199_v32, 16  ;;  %v5742_v28 = vld [vmem:[%s5892_s17 + $0xe8] sm:$0xff] }
  0x57   : > { %10700 = vst [vmem:[#allocation47_spill] sm:$0xff] %v6218_v11  ;;  %v1478_v39 = vor.u32 %v1476_v21, %v1474_v31  ;;  %v822_v18 = vor.u32 %v820_v61, %v819_v27  ;;  %v6227_v54 = vsel %vm5865_vm2, %v819_v27, 0  ;;  %v815_v23 = vor.u32 %v813_v9, %v812_v60  ;;  %v5739_v61 = vld [vmem:[%s5892_s17 + $0xd0] sm:$0xff] }
  0x58   : > { %10701 = vst [vmem:[#allocation48_spill] sm:$0xff] %v6222_v55  ;;  %2184 = vrot.lane.b32.xlu0 %v6218_v11, %s5825_s18  ;;  %v1470_v29 = vor.u32 %v1469_v22, %v1465_v56  ;;  %v1520_v10 = vshll.u32 %v6227_v54, 16  ;;  %v1498_v13 = vor.u32 %v1496_v30, %v1494_v35  ;;  %v1500_v15 = vshll.u32 %v6222_v55, 16  ;;  %v5740_v56 = vld [vmem:[%s5892_s17 + $0xd8] sm:$0xff] }
  0x59   : > { %10702 = vst [vmem:[#allocation49_spill] sm:$0xff] %v6227_v54  ;;  %v6235_v40 = vsel %vm1243_vm3, %v1478_v39, %v1482_v12  ;;  %v6238_v21 = vsel %vm620_vm0, %v812_v60, %v822_v18  ;;  %v6242_v27 = vsel %vm5865_vm2, 0, %v815_v23  ;;  %v840_v9 = vshrl.u32 %v5741_v0, 16 }
  0x5a   : > { %10703 = vst [vmem:[#allocation50_spill] sm:$0xff] %v6235_v40  ;;  %2182 = vrot.lane.b32.xlu2 %v6235_v40, %s5825_s18  ;;  %v6249_v35 = vsel %vm1243_vm3, %v1470_v29, %v1474_v31  ;;  %v1512_v12 = vshll.u32 %v6238_v21, 16  ;;  %v1516_v22 = vshrl.u32 %v6238_v21, 16  ;;  %v1522_v60 = vrot.slane %v1520_v10, 1  ;;  %v5743_v31 = vld [vmem:[%s5892_s17 + $0xf0] sm:$0xff] }
  0x5b   : > { %10704 = vst [vmem:[#allocation51_spill] sm:$0xff] %v6238_v21  ;;  %2180 = vrot.lane.b32.xlu1 %v6249_v35, %s5825_s18  ;;  %v1505_v30 = vshrl.u32 %v6242_v27, 16  ;;  %v1507_v39 = vshll.u32 %v6242_v27, 16  ;;  %v1502_v18 = vrot.slane %v1500_v15, 1  ;;  %v842_v23 = vrot.slane %v840_v9, 7 }
  0x5c   : > { %10705 = vst [vmem:[#allocation52_spill] sm:$0xff] %v6242_v27  ;;  %v1514_v11 = vrot.slane %v1512_v12, 1  ;;  %v843_v19 = vshll.u32 %v5741_v0, 16  ;;  %v847_v40 = vshrl.u32 %v5742_v28, 16  ;;  %v850_v55 = vshll.u32 %v5742_v28, 16 }
  0x5d   : > { %10706 = vst [vmem:[#allocation53_spill] sm:$0xff] %v6249_v35  ;;  %v1509_v29 = vrot.slane %v1507_v39, 1  ;;  %v6259_v54 = vsel %vm1243_vm3, %v1498_v13, %v1502_v18  ;;  %v825_v10 = vshrl.u32 %v5739_v61, 16  ;;  %v832_v21 = vshrl.u32 %v5740_v56, 16  ;;  %v5744_v13 = vld [vmem:[%s5892_s17 + $0xf8] sm:$0xff] }
  0x5e   : > { %10707 = vst [vmem:[#allocation54_spill] sm:$0xff] %v6259_v54  ;;  %v1518_v7 = vor.u32 %v1516_v22, %v1514_v11  ;;  %v845_v35 = vor.u32 %v843_v19, %v842_v23  ;;  %v849_v32 = vrot.slane %v847_v40, 7  ;;  %v835_v41 = vshll.u32 %v5740_v56, 16 }
  0x5f   : > { %v1510_v37 = vor.u32 %v1509_v29, %v1505_v30  ;;  %v827_v27 = vrot.slane %v825_v10, 7  ;;  %v834_v15 = vrot.slane %v832_v21, 7  ;;  %v828_v9 = vshll.u32 %v5739_v61, 16 }
  0x60   : > { %v6262_v0 = vsel %vm1243_vm3, %v1518_v7, %v1522_v60  ;;  %v852_v28 = vor.u32 %v850_v55, %v849_v32  ;;  %v6266_v12 = vsel %vm5865_vm2, 0, %v845_v35  ;;  %v855_v39 = vshrl.u32 %v5743_v31, 16 }
  0x61   : > { %10708 = vst [vmem:[#allocation55_spill] sm:$0xff] %v6262_v0  ;;  %2190 = vrot.lane.b32.xlu0 %v6262_v0, %s5825_s18  ;;  %v6272_v19 = vsel %vm1243_vm3, %v1510_v37, %v1514_v11  ;;  %v1545_v40 = vshrl.u32 %v6266_v12, 16  ;;  %v1547_v21 = vshll.u32 %v6266_v12, 16  ;;  %v837_v61 = vor.u32 %v835_v41, %v834_v15 }
  0x62   : > { %10709 = vst [vmem:[#allocation56_spill] sm:$0xff] %v6266_v12  ;;  %2188 = vrot.lane.b32.xlu2 %v6272_v19, %s5825_s18  ;;  %v6279_v7 = vsel %vm620_vm0, %v842_v23, %v852_v28  ;;  %v6283_v55 = vsel %vm5865_vm2, %v834_v15, 0  ;;  %v830_v56 = vor.u32 %v828_v9, %v827_v27  ;;  %v857_v35 = vrot.slane %v855_v39, 7 }
  0x63   : > { %10710 = vst [vmem:[#allocation57_spill] sm:$0xff] %v6272_v19  ;;  %2186 = vrot.lane.b32.xlu1 %v6259_v54, %s5825_s18  ;;  %v1549_v11 = vrot.slane %v1547_v21, 1  ;;  %v1552_v37 = vshll.u32 %v6279_v7, 16  ;;  %v6289_v41 = vsel %vm620_vm0, %v827_v27, %v837_v61  ;;  %v1540_v22 = vshll.u32 %v6283_v55, 16  ;;  %v5747_v61 = vld [vmem:[%s5892_s17 + $0x110] sm:$0xff] }
  0x64   : > { %10711 = vst [vmem:[#allocation58_spill] sm:$0xff] %v6279_v7  ;;  %v1532_v60 = vshll.u32 %v6289_v41, 16  ;;  %v1536_v30 = vshrl.u32 %v6289_v41, 16  ;;  %v6296_v18 = vsel %vm5865_vm2, 0, %v830_v56  ;;  %v862_v23 = vshrl.u32 %v5744_v13, 16 }
  0x65   : > { %10712 = vst [vmem:[#allocation59_spill] sm:$0xff] %v6283_v55  ;;  %v1550_v29 = vor.u32 %v1549_v11, %v1545_v40  ;;  %v1554_v10 = vrot.slane %v1552_v37, 1  ;;  %v1542_v15 = vrot.slane %v1540_v22, 1  ;;  %v1525_v9 = vshrl.u32 %v6296_v18, 16 }
  0x66   : > { %10713 = vst [vmem:[#allocation60_spill] sm:$0xff] %v6289_v41  ;;  %v1534_v28 = vrot.slane %v1532_v60, 1  ;;  %v1527_v27 = vshll.u32 %v6296_v18, 16  ;;  %v864_v39 = vrot.slane %v862_v23, 7  ;;  %v865_v21 = vshll.u32 %v5744_v13, 16 }
  0x67   : > { %10714 = vst [vmem:[#allocation61_spill] sm:$0xff] %v6296_v18  ;;  %v6302_v54 = vsel %vm1243_vm3, %v1550_v29, %v1554_v10  ;;  %v858_v0 = vshll.u32 %v5743_v31, 16  ;;  %v6306_v56 = vsel %vm5865_vm2, %v849_v32, 0  ;;  %v1556_v40 = vshrl.u32 %v6279_v7, 16  ;;  %v5748_v29 = vld [vmem:[%s5892_s17 + $0x118] sm:$0xff] }
  0x68   : > { %10715 = vst [vmem:[#allocation62_spill] sm:$0xff] %v6302_v54  ;;  %v1538_v11 = vor.u32 %v1536_v30, %v1534_v28  ;;  %v1529_v37 = vrot.slane %v1527_v27, 1  ;;  %v867_v22 = vor.u32 %v865_v21, %v864_v39  ;;  %v6311_v60 = vsel %vm5865_vm2, %v864_v39, 0  ;;  %v5745_v21 = vld [vmem:[%s5892_s17 + $0x100] sm:$0xff] }
  0x69   : > { %10716 = vst [vmem:[#allocation63_spill] sm:$0xff] %v6306_v56  ;;  %2196 = vrot.lane.b32.xlu0 %v6302_v54, %s5825_s18  ;;  %v1580_v31 = vshll.u32 %v6311_v60, 16  ;;  %v860_v13 = vor.u32 %v858_v0, %v857_v35  ;;  %v1558_v23 = vor.u32 %v1556_v40, %v1554_v10  ;;  %v1560_v32 = vshll.u32 %v6306_v56, 16 }
  0x6a   : > { %10717 = vst [vmem:[#allocation64_spill] sm:$0xff] %v6311_v60  ;;  %v6319_v19 = vsel %vm1243_vm3, %v1538_v11, %v1542_v15  ;;  %v1530_v30 = vor.u32 %v1529_v37, %v1525_v9  ;;  %v6322_v27 = vsel %vm620_vm0, %v857_v35, %v867_v22  ;;  %v885_v39 = vshrl.u32 %v5747_v61, 16  ;;  %v5746_v15 = vld [vmem:[%s5892_s17 + $0x108] sm:$0xff] }
  0x6b   : > { %10718 = vst [vmem:[#allocation65_spill] sm:$0xff] %v6319_v19  ;;  %2194 = vrot.lane.b32.xlu2 %v6319_v19, %s5825_s18  ;;  %v1572_v54 = vshll.u32 %v6322_v27, 16  ;;  %v1576_v0 = vshrl.u32 %v6322_v27, 16  ;;  %v1582_v10 = vrot.slane %v1580_v31, 1  ;;  %v6331_v40 = vsel %vm5865_vm2, 0, %v860_v13 }
  0x6c   : > { %10719 = vst [vmem:[#allocation66_spill] sm:$0xff] %v6322_v27  ;;  %v6335_v9 = vsel %vm1243_vm3, %v1530_v30, %v1534_v28  ;;  %v1565_v35 = vshrl.u32 %v6331_v40, 16  ;;  %v1567_v11 = vshll.u32 %v6331_v40, 16  ;;  %v1562_v37 = vrot.slane %v1560_v32, 1 }
  0x6d   : > { %10720 = vst [vmem:[#allocation67_spill] sm:$0xff] %v6331_v40  ;;  %2192 = vrot.lane.b32.xlu1 %v6335_v9, %s5825_s18  ;;  %v1574_v22 = vrot.slane %v1572_v54, 1  ;;  %v887_v19 = vrot.slane %v885_v39, 7  ;;  %v888_v56 = vshll.u32 %v5747_v61, 16  ;;  %v892_v31 = vshrl.u32 %v5748_v29, 16 }
  0x6e   : > { %10721 = vst [vmem:[#allocation68_spill] sm:$0xff] %v6335_v9  ;;  %v1569_v60 = vrot.slane %v1567_v11, 1  ;;  %v6342_v13 = vsel %vm1243_vm3, %v1558_v23, %v1562_v37  ;;  %v895_v27 = vshll.u32 %v5748_v29, 16  ;;  %v870_v28 = vshrl.u32 %v5745_v21, 16  ;;  %v5749_v29 = vld [vmem:[%s5892_s17 + $0x120] sm:$0xff] }
  0x6f   : > { %10722 = vst [vmem:[#allocation69_spill] sm:$0xff] %v6342_v13  ;;  %v1578_v30 = vor.u32 %v1576_v0, %v1574_v22  ;;  %v890_v18 = vor.u32 %v888_v56, %v887_v19  ;;  %v894_v7 = vrot.slane %v892_v31, 7  ;;  %v877_v12 = vshrl.u32 %v5746_v15, 16 }
  0x70   : > { %v1570_v40 = vor.u32 %v1569_v60, %v1565_v35  ;;  %v872_v32 = vrot.slane %v870_v28, 7  ;;  %v880_v55 = vshll.u32 %v5746_v15, 16  ;;  %v873_v9 = vshll.u32 %v5745_v21, 16 }
  0x71   : > { %v6345_v54 = vsel %vm1243_vm3, %v1578_v30, %v1582_v10  ;;  %v897_v61 = vor.u32 %v895_v27, %v894_v7  ;;  %v6349_v39 = vsel %vm5865_vm2, 0, %v890_v18  ;;  %v879_v23 = vrot.slane %v877_v12, 7  ;;  %v5750_v10 = vld [vmem:[%s5892_s17 + $0x128] sm:$0xff] }
  0x72   : > { %10723 = vst [vmem:[#allocation70_spill] sm:$0xff] %v6345_v54  ;;  %2202 = vrot.lane.b32.xlu0 %v6345_v54, %s5825_s18  ;;  %v6355_v56 = vsel %vm1243_vm3, %v1570_v40, %v1574_v22  ;;  %v1605_v60 = vshrl.u32 %v6349_v39, 16  ;;  %v1607_v21 = vshll.u32 %v6349_v39, 16  ;;  %v875_v0 = vor.u32 %v873_v9, %v872_v32 }
  0x73   : > { %10724 = vst [vmem:[#allocation71_spill] sm:$0xff] %v6349_v39  ;;  %2200 = vrot.lane.b32.xlu2 %v6355_v56, %s5825_s18  ;;  %v6362_v27 = vsel %vm620_vm0, %v887_v19, %v897_v61  ;;  %v882_v18 = vor.u32 %v880_v55, %v879_v23  ;;  %v6366_v12 = vsel %vm5865_vm2, %v879_v23, 0  ;;  %v900_v37 = vshrl.u32 %v5749_v29, 16  ;;  %v5753_v61 = vld [vmem:[%s5892_s17 + $0x140] sm:$0xff] }
  0x74   : > { %10725 = vst [vmem:[#allocation72_spill] sm:$0xff] %v6355_v56  ;;  %v1609_v40 = vrot.slane %v1607_v21, 1  ;;  %v1612_v15 = vshll.u32 %v6362_v27, 16  ;;  %v1600_v35 = vshll.u32 %v6366_v12, 16  ;;  %v6373_v9 = vsel %vm5865_vm2, 0, %v875_v0 }
  0x75   : > { %10726 = vst [vmem:[#allocation73_spill] sm:$0xff] %v6362_v27  ;;  %2198 = vrot.lane.b32.xlu1 %v6342_v13, %s5825_s18  ;;  %v6378_v19 = vsel %vm620_vm0, %v872_v32, %v882_v18  ;;  %v1585_v55 = vshrl.u32 %v6373_v9, 16  ;;  %v1587_v11 = vshll.u32 %v6373_v9, 16  ;;  %v902_v0 = vrot.slane %v900_v37, 7  ;;  %v5754_v37 = vld [vmem:[%s5892_s17 + $0x148] sm:$0xff] }
  0x76   : > { %10727 = vst [vmem:[#allocation74_spill] sm:$0xff] %v6366_v12  ;;  %v1610_v22 = vor.u32 %v1609_v40, %v1605_v60  ;;  %v1614_v31 = vrot.slane %v1612_v15, 1  ;;  %v1592_v28 = vshll.u32 %v6378_v19, 16  ;;  %v1596_v30 = vshrl.u32 %v6378_v19, 16 }
  0x77   : > { %10728 = vst [vmem:[#allocation75_spill] sm:$0xff] %v6373_v9  ;;  %v1602_v23 = vrot.slane %v1600_v35, 1  ;;  %v1589_v21 = vrot.slane %v1587_v11, 1  ;;  %v907_v54 = vshrl.u32 %v5750_v10, 16  ;;  %v910_v18 = vshll.u32 %v5750_v10, 16 }
  0x78   : > { %10729 = vst [vmem:[#allocation76_spill] sm:$0xff] %v6378_v19  ;;  %v6386_v13 = vsel %vm1243_vm3, %v1610_v22, %v1614_v31  ;;  %v1594_v32 = vrot.slane %v1592_v28, 1  ;;  %v903_v56 = vshll.u32 %v5749_v29, 16  ;;  %v6390_v60 = vsel %vm5865_vm2, %v894_v7, 0 }
  0x79   : > { %10730 = vst [vmem:[#allocation77_spill] sm:$0xff] %v6386_v13  ;;  %v1590_v9 = vor.u32 %v1589_v21, %v1585_v55  ;;  %v909_v39 = vrot.slane %v907_v54, 7  ;;  %v1616_v40 = vshrl.u32 %v6362_v27, 16  ;;  %v1620_v10 = vshll.u32 %v6390_v60, 16  ;;  %v5752_v21 = vld [vmem:[%s5892_s17 + $0x138] sm:$0xff] }
  0x7a   : > { %10731 = vst [vmem:[#allocation78_spill] sm:$0xff] %v6390_v60  ;;  %2208 = vrot.lane.b32.xlu0 %v6386_v13, %s5825_s18  ;;  %v1598_v15 = vor.u32 %v1596_v30, %v1594_v32  ;;  %v6395_v35 = vpop.permute.xlu2 %2144  ;;  %v905_v11 = vor.u32 %v903_v56, %v902_v0  ;;  %v930_v29 = vshrl.u32 %v5753_v61, 16  ;;  %v5751_v30 = vld [vmem:[%s5892_s17 + $0x130] sm:$0xff]  ;;  %v933_v60 = vshll.u32 %v5753_v61, 16 }
  0x7b   : > { %10732 = vst [vmem:[#allocation79_spill] sm:$0xff] %v6395_v35  ;;  %v6399_v54 = vsel %vm1243_vm3, %v1590_v9, %v1594_v32  ;;  %v912_v55 = vor.u32 %v910_v18, %v909_v39  ;;  %v6403_v7 = vsel %vm5865_vm2, %v909_v39, 0  ;;  %v1618_v32 = vor.u32 %v1616_v40, %v1614_v31  ;;  %v5755_v31 = vld [vmem:[%s5892_s17 + $0x150] sm:$0xff] }
  0x7c   : > { %10733 = vst [vmem:[#allocation80_spill] sm:$0xff] %v6399_v54  ;;  %v6407_v22 = vsel %vm1243_vm3, %v1598_v15, %v1602_v23  ;;  %v1640_v28 = vshll.u32 %v6403_v7, 16  ;;  %v6412_v56 = vsel %vm5865_vm2, 0, %v905_v11  ;;  %v1622_v11 = vrot.slane %v1620_v10, 1 }
  0x7d   : > { %10734 = vst [vmem:[#allocation81_spill] sm:$0xff] %v6403_v7  ;;  %2206 = vrot.lane.b32.xlu2 %v6407_v22, %s5825_s18  ;;  %2204 = vrot.lane.b32.xlu1 %v6399_v54, %s5825_s18  ;;  %v6421_v39 = vsel %vm620_vm0, %v902_v0, %v912_v55  ;;  %v1625_v9 = vshrl.u32 %v6412_v56, 16  ;;  %v1627_v23 = vshll.u32 %v6412_v56, 16  ;;  %v932_v35 = vrot.slane %v930_v29, 7 }
  0x7e   : > { %10735 = vst [vmem:[#allocation82_spill] sm:$0xff] %v6407_v22  ;;  %v1632_v18 = vshll.u32 %v6421_v39, 16  ;;  %v1636_v15 = vshrl.u32 %v6421_v39, 16  ;;  %v1642_v13 = vrot.slane %v1640_v28, 1  ;;  %v937_v7 = vshrl.u32 %v5754_v37, 16 }
  0x7f   : > { %10736 = vst [vmem:[#allocation83_spill] sm:$0xff] %v6412_v56  ;;  %v1629_v22 = vrot.slane %v1627_v23, 1  ;;  %v940_v27 = vshll.u32 %v5754_v37, 16  ;;  %v915_v0 = vshrl.u32 %v5751_v30, 16  ;;  %v922_v55 = vshrl.u32 %v5752_v21, 16 }
  0x80   : > { %10737 = vst [vmem:[#allocation84_spill] sm:$0xff] %v6421_v39  ;;  %v1634_v54 = vrot.slane %v1632_v18, 1  ;;  %v935_v19 = vor.u32 %v933_v60, %v932_v35  ;;  %v939_v41 = vrot.slane %v937_v7, 7  ;;  %v925_v56 = vshll.u32 %v5752_v21, 16 }
  0x81   : > { %v1630_v12 = vor.u32 %v1629_v22, %v1625_v9  ;;  %v917_v49 = vrot.slane %v915_v0, 7  ;;  %v924_v39 = vrot.slane %v922_v55, 7  ;;  %v918_v10 = vshll.u32 %v5751_v30, 16 }
  0x82   : > { %v1638_v40 = vor.u32 %v1636_v15, %v1634_v54  ;;  %v6428_v43 = vpop.permute.xlu2 %2146  ;;  %v6434_v61 = vsel %vm1243_vm3, %v1618_v32, %v1622_v11  ;;  %v942_v37 = vor.u32 %v940_v27, %v939_v41  ;;  %v6438_v60 = vsel %vm5865_vm2, 0, %v935_v19 }
  0x83   : > { %10738 = vst [vmem:[#allocation85_spill] sm:$0xff] %v6428_v43  ;;  %v6431_v29 = vsel %vm1243_vm3, %v1630_v12, %v1634_v54  ;;  %v1665_v22 = vshrl.u32 %v6438_v60, 16  ;;  %v1667_v28 = vshll.u32 %v6438_v60, 16  ;;  %v927_v21 = vor.u32 %v925_v56, %v924_v39  ;;  %v5756_v54 = vld [vmem:[%s5892_s17 + $0x158] sm:$0xff] }
  0x84   : > { %10739 = vst [vmem:[#allocation86_spill] sm:$0xff] %v6431_v29  ;;  %v6441_v7 = vsel %vm1243_vm3, %v1638_v40, %v1642_v13  ;;  %v6450_v27 = vsel %vm620_vm0, %v932_v35, %v942_v37  ;;  %v6456_v13 = vsel %vm5865_vm2, %v924_v39, 0  ;;  %v920_v19 = vor.u32 %v918_v10, %v917_v49 }
  0x85   : > { %10740 = vst [vmem:[#allocation87_spill] sm:$0xff] %v6434_v61  ;;  %2214 = vrot.lane.b32.xlu0 %v6441_v7, %s5825_s18  ;;  %2212 = vrot.lane.b32.xlu2 %v6431_v29, %s5825_s18  ;;  %v945_v30 = vshrl.u32 %v5755_v31, 16  ;;  %v1669_v56 = vrot.slane %v1667_v28, 1  ;;  %v1672_v9 = vshll.u32 %v6450_v27, 16  ;;  %v6463_v23 = vsel %vm620_vm0, %v917_v49, %v927_v21  ;;  %v5759_v28 = vld [vmem:[%s5892_s17 + $0x170] sm:$0xff] }
  0x86   : > { %10741 = vst [vmem:[#allocation88_spill] sm:$0xff] %v6438_v60  ;;  %2210 = vrot.lane.b32.xlu1 %v6434_v61, %s5825_s18  ;;  %v1652_v35 = vshll.u32 %v6463_v23, 16  ;;  %v1656_v32 = vshrl.u32 %v6463_v23, 16  ;;  %v1660_v39 = vshll.u32 %v6456_v13, 16  ;;  %v6470_v18 = vsel %vm5865_vm2, 0, %v920_v19 }
  0x87   : > { %10742 = vst [vmem:[#allocation89_spill] sm:$0xff] %v6441_v7  ;;  %v6452_v12 = vpop.permute.xlu0 %2138  ;;  %v1670_v15 = vor.u32 %v1669_v56, %v1665_v22  ;;  %v1674_v11 = vrot.slane %v1672_v9, 1  ;;  %v1645_v0 = vshrl.u32 %v6470_v18, 16  ;;  %v1647_v55 = vshll.u32 %v6470_v18, 16 }
  0x88   : > { %10743 = vst [vmem:[#allocation90_spill] sm:$0xff] %v6450_v27  ;;  %v1654_v40 = vrot.slane %v1652_v35, 1  ;;  %v1662_v10 = vrot.slane %v1660_v39, 1  ;;  %v947_v49 = vrot.slane %v945_v30, 7  ;;  %v952_v37 = vshrl.u32 %v5756_v54, 16 }
  0x89   : > { %10744 = vst [vmem:[#allocation91_spill] sm:$0xff] %v6452_v12  ;;  %v6476_v21 = vsel %vm1243_vm3, %v1670_v15, %v1674_v11  ;;  %v1649_v43 = vrot.slane %v1647_v55, 1  ;;  %v955_v19 = vshll.u32 %v5756_v54, 16  ;;  %v948_v61 = vshll.u32 %v5755_v31, 16 }
  0x8a   : > { %10745 = vst [vmem:[#allocation92_spill] sm:$0xff] %v6456_v13  ;;  %v6478_v12 = vpop.permute.xlu2 %2152  ;;  %v1658_v22 = vor.u32 %v1656_v32, %v1654_v40  ;;  %v954_v56 = vrot.slane %v952_v37, 7  ;;  %v6482_v9 = vsel %vm5865_vm2, %v939_v41, 0  ;;  %v1676_v39 = vshrl.u32 %v6450_v27, 16  ;;  %v5757_v37 = vld [vmem:[%s5892_s17 + $0x160] sm:$0xff] }
  0x8b   : > { %10746 = vst [vmem:[#allocation93_spill] sm:$0xff] %v6463_v23  ;;  %v1650_v35 = vor.u32 %v1649_v43, %v1645_v0  ;;  %v950_v30 = vor.u32 %v948_v61, %v947_v49  ;;  %v1680_v15 = vshll.u32 %v6482_v9, 16  ;;  %v5760_v43 = vld [vmem:[%s5892_s17 + $0x178] sm:$0xff]  ;;  %v975_v61 = vshrl.u32 %v5759_v28, 16 }
  0x8c   : > { %10747 = vst [vmem:[#allocation94_spill] sm:$0xff] %v6470_v18  ;;  %v6489_v54 = vsel %vm1243_vm3, %v1658_v22, %v1662_v10  ;;  %v957_v31 = vor.u32 %v955_v19, %v954_v56  ;;  %v6493_v32 = vsel %vm5865_vm2, %v954_v56, 0  ;;  %v978_v7 = vshll.u32 %v5759_v28, 16  ;;  %v5761_v28 = vld [vmem:[%s5892_s17 + $0x180] sm:$0xff] }
  0x8d   : > { %10748 = vst [vmem:[#allocation95_spill] sm:$0xff] %v6476_v21  ;;  %2220 = vrot.lane.b32.xlu0 %v6476_v21, %s5825_s18  ;;  %2218 = vrot.lane.b32.xlu2 %v6489_v54, %s5825_s18  ;;  %v6501_v0 = vsel %vm1243_vm3, %v1650_v35, %v1654_v40  ;;  %v1700_v55 = vshll.u32 %v6493_v32, 16  ;;  %v6506_v10 = vsel %vm5865_vm2, 0, %v950_v30  ;;  %v1682_v21 = vrot.slane %v1680_v15, 1 }
  0x8e   : > { %10749 = vst [vmem:[#allocation96_spill] sm:$0xff] %v6478_v12  ;;  %2216 = vrot.lane.b32.xlu1 %v6501_v0, %s5825_s18  ;;  %v6512_v19 = vsel %vm620_vm0, %v947_v49, %v957_v31  ;;  %v1685_v22 = vshrl.u32 %v6506_v10, 16  ;;  %v1687_v56 = vshll.u32 %v6506_v10, 16  ;;  %v5758_v12 = vld [vmem:[%s5892_s17 + $0x168] sm:$0xff]  ;;  %v982_v29 = vshrl.u32 %v5760_v43, 16 }
  0x8f   : > { %10750 = vst [vmem:[#allocation97_spill] sm:$0xff] %v6482_v9  ;;  %v6495_v41 = vpop.permute.xlu0 %2136  ;;  %v1692_v40 = vshll.u32 %v6512_v19, 16  ;;  %v1696_v35 = vshrl.u32 %v6512_v19, 16  ;;  %v1702_v9 = vrot.slane %v1700_v55, 1  ;;  %v985_v49 = vshll.u32 %v5760_v43, 16 }
  0x90   : > { %10751 = vst [vmem:[#allocation98_spill] sm:$0xff] %v6489_v54  ;;  %v1689_v30 = vrot.slane %v1687_v56, 1  ;;  %v977_v54 = vrot.slane %v975_v61, 7  ;;  %v960_v31 = vshrl.u32 %v5757_v37, 16  ;;  %v984_v60 = vrot.slane %v982_v29, 7  ;;  %v5762_v56 = vld [vmem:[%s5892_s17 + $0x188] sm:$0xff] }
  0x91   : > { %10752 = vst [vmem:[#allocation99_spill] sm:$0xff] %v6493_v32  ;;  %vm3418_vm9 = vcmask 72704   ;;  %vm3547_vm10 = vcmask 97280   ;;  %vm3676_vm11 = vcmask 121856   ;;  %vm3805_vm12 = vcmask 146432  }
  0x92   : > { %10753 = vst [vmem:[#allocation100_spill] sm:$0xff] %v6495_v41  ;;  %v1678_v41 = vor.u32 %v1676_v39, %v1674_v11  ;;  %v1690_v32 = vor.u32 %v1689_v30, %v1685_v22  ;;  %v980_v27 = vor.u32 %v978_v7, %v977_v54  ;;  %v962_v15 = vrot.slane %v960_v31, 7 }
  0x93   : > { %10754 = vst [vmem:[#allocation101_spill] sm:$0xff] %v6501_v0  ;;  %v1694_v0 = vrot.slane %v1692_v40, 1  ;;  %v6519_v18 = vpop.permute.xlu2 %2158  ;;  %v987_v43 = vor.u32 %v985_v49, %v984_v60  ;;  %v997_v31 = vshrl.u32 %v5762_v56, 16  ;;  %vm4063_vm13 = vcmask 195584  }
  0x94   : > { %10755 = vst [vmem:[#allocation102_spill] sm:$0xff] %v6506_v10  ;;  %v6521_v10 = vpop.permute.xlu1 %2140  ;;  %v6524_v39 = vsel %vm1243_vm3, %v1678_v41, %v1682_v21  ;;  %v6532_v55 = vsel %vm5865_vm2, 0, %v980_v27  ;;  %v970_v41 = vshll.u32 %v5758_v12, 16  ;;  %vm3934_vm14 = vcmask 171008  }
  0x95   : > { %10756 = vst [vmem:[#allocation103_spill] sm:$0xff] %v6512_v19  ;;  %v967_v19 = vshrl.u32 %v5758_v12, 16  ;;  %v1698_v11 = vor.u32 %v1696_v35, %v1694_v0  ;;  %v6528_v61 = vsel %vm1243_vm3, %v1690_v32, %v1694_v0  ;;  %v1725_v29 = vshrl.u32 %v6532_v55, 16 }
  0x96   : > { %10757 = vst [vmem:[#allocation104_spill] sm:$0xff] %v6519_v18  ;;  %2224 = vrot.lane.b32.xlu2 %v6528_v61, %s5825_s18  ;;  %v1727_v21 = vshll.u32 %v6532_v55, 16  ;;  %2222 = vrot.lane.b32.xlu1 %v6524_v39, %s5825_s18  ;;  %v6547_v27 = vsel %vm620_vm0, %v977_v54, %v987_v43  ;;  %v963_v0 = vshll.u32 %v5757_v37, 16  ;;  %v990_v35 = vshrl.u32 %v5761_v28, 16  ;;  %v5765_v43 = vld [vmem:[%s5892_s17 + $0x1a0] sm:$0xff] }
  0x97   : > { %10758 = vst [vmem:[#allocation105_spill] sm:$0xff] %v6521_v10  ;;  %v969_v22 = vrot.slane %v967_v19, 7  ;;  %v6536_v7 = vsel %vm1243_vm3, %v1698_v11, %v1702_v9  ;;  %v6549_v9 = vpop.permute.xlu0 %2148  ;;  %v1732_v12 = vshll.u32 %v6547_v27, 16  ;;  %vm4211_vm15 = vcmask 220160  }
  0x98   : > { %10759 = vst [vmem:[#allocation106_spill] sm:$0xff] %v6524_v39  ;;  %2226 = vrot.lane.b32.xlu0 %v6536_v7, %s5825_s18  ;;  %v1729_v19 = vrot.slane %v1727_v21, 1  ;;  %v965_v49 = vor.u32 %v963_v0, %v962_v15  ;;  %v999_v39 = vrot.slane %v997_v31, 7  ;;  %vm5188_vm1 = vcmask 125952  }
  0x99   : > { %10760 = vst [vmem:[#allocation107_spill] sm:$0xff] %v6528_v61  ;;  %v6553_v32 = vsel %vm5865_vm2, %v969_v22, 0  ;;  %v972_v40 = vor.u32 %v970_v41, %v969_v22  ;;  %v1734_v18 = vrot.slane %v1732_v12, 1  ;;  %v1000_v41 = vshll.u32 %v5762_v56, 16 }
  0x9a   : > { %10761 = vst [vmem:[#allocation108_spill] sm:$0xff] %v6532_v55  ;;  %v1720_v30 = vshll.u32 %v6553_v32, 16  ;;  %v1730_v11 = vor.u32 %v1729_v19, %v1725_v29  ;;  %v6565_v37 = vsel %vm5865_vm2, 0, %v965_v49  ;;  %v992_v19 = vrot.slane %v990_v35, 7 }
  0x9b   : > { %10762 = vst [vmem:[#allocation109_spill] sm:$0xff] %v6536_v7  ;;  %v6558_v54 = vsel %vm620_vm0, %v962_v15, %v972_v40  ;;  %v6567_v22 = vpop.permute.xlu2 %2164  ;;  %v1705_v15 = vshrl.u32 %v6565_v37, 16  ;;  %v1707_v0 = vshll.u32 %v6565_v37, 16  ;;  %v993_v7 = vshll.u32 %v5761_v28, 16 }
  0x9c   : > { %10763 = vst [vmem:[#allocation110_spill] sm:$0xff] %v6547_v27  ;;  %v1716_v10 = vshrl.u32 %v6558_v54, 16  ;;  %v6569_v21 = vpop.permute.xlu1 %2142  ;;  %v6572_v29 = vsel %vm1243_vm3, %v1730_v11, %v1734_v18  ;;  %v1722_v40 = vrot.slane %v1720_v30, 1  ;;  %v6578_v49 = vsel %vm5865_vm2, %v984_v60, 0 }
  0x9d   : > { %10764 = vst [vmem:[#allocation111_spill] sm:$0xff] %v6549_v9  ;;  %v1712_v9 = vshll.u32 %v6558_v54, 16  ;;  %v1709_v61 = vrot.slane %v1707_v0, 1  ;;  %v1736_v56 = vshrl.u32 %v6547_v27, 16  ;;  %v995_v28 = vor.u32 %v993_v7, %v992_v19  ;;  %v5766_v7 = vld [vmem:[%s5892_s17 + $0x1a8] sm:$0xff] }
  0x9e   : > { %10765 = vst [vmem:[#allocation112_spill] sm:$0xff] %v6553_v32  ;;  %v1740_v30 = vshll.u32 %v6578_v49, 16 }
  0x9f   : > { %10766 = vst [vmem:[#allocation113_spill] sm:$0xff] %v6558_v54  ;;  %v1714_v12 = vrot.slane %v1712_v9, 1  ;;  %v6585_v9 = vsel %vm5865_vm2, %v999_v39, 0  ;;  %v1710_v35 = vor.u32 %v1709_v61, %v1705_v15  ;;  %v5767_v54 = vld [vmem:[%s5892_s17 + $0x1b0] sm:$0xff] }
  0xa0   : > { %10767 = vst [vmem:[#allocation114_spill] sm:$0xff] %v6565_v37  ;;  %2232 = vrot.lane.b32.xlu0 %v6572_v29, %s5825_s18  ;;  %v1760_v60 = vshll.u32 %v6585_v9, 16 }
  0xa1   : > { %10768 = vst [vmem:[#allocation115_spill] sm:$0xff] %v6567_v22  ;;  %v1020_v22 = vshrl.u32 %v5765_v43, 16  ;;  %v1718_v11 = vor.u32 %v1716_v10, %v1714_v12  ;;  %v6595_v10 = vpop.permute.xlu0 %2154  ;;  %v6605_v61 = vsel %vm1243_vm3, %v1710_v35, %v1714_v12 }
  0xa2   : > { %10769 = vst [vmem:[#allocation116_spill] sm:$0xff] %v6569_v21  ;;  %v1002_v21 = vor.u32 %v1000_v41, %v999_v39  ;;  %v6599_v39 = vsel %vm5865_vm2, 0, %v995_v28  ;;  %v1738_v41 = vor.u32 %v1736_v56, %v1734_v18  ;;  %2228 = vrot.lane.b32.xlu1 %v6605_v61, %s5825_s18  ;;  %v1742_v56 = vrot.slane %v1740_v30, 1 }
  0xa3   : > { %10770 = vst [vmem:[#allocation117_spill] sm:$0xff] %v6572_v29  ;;  %v6590_v31 = vsel %vm1243_vm3, %v1718_v11, %v1722_v40  ;;  %v5764_v11 = vld [vmem:[%s5892_s17 + $0x198] sm:$0xff]  ;;  %v1745_v28 = vshrl.u32 %v6599_v39, 16  ;;  %v1747_v18 = vshll.u32 %v6599_v39, 16  ;;  %v1762_v35 = vrot.slane %v1760_v60, 1 }
  0xa4   : > { %10771 = vst [vmem:[#allocation118_spill] sm:$0xff] %v6578_v49  ;;  %v6593_v0 = vsel %vm620_vm0, %v992_v19, %v1002_v21  ;;  %2230 = vrot.lane.b32.xlu2 %v6590_v31, %s5825_s18  ;;  %v1022_v21 = vrot.slane %v1020_v22, 7  ;;  %v5763_v19 = vld [vmem:[%s5892_s17 + $0x190] sm:$0xff]  ;;  %v6617_v29 = vpop.permute.xlu1 %2150  ;;  %v6620_v22 = vsel %vm1243_vm3, %v1738_v41, %v1742_v56  ;;  %v1012_v55 = vshrl.u32 %v5764_v11, 16 }
  0xa5   : > { %10772 = vst [vmem:[#allocation119_spill] sm:$0xff] %v6585_v9  ;;  %v1752_v15 = vshll.u32 %v6593_v0, 16  ;;  %v1756_v40 = vshrl.u32 %v6593_v0, 16  ;;  %v1749_v49 = vrot.slane %v1747_v18, 1  ;;  %v1027_v9 = vshrl.u32 %v5766_v7, 16 }
  0xa6   : > { %10773 = vst [vmem:[#allocation120_spill] sm:$0xff] %v6590_v31  ;;  %v1023_v31 = vshll.u32 %v5765_v43, 16  ;;  %v1005_v27 = vshrl.u32 %v5763_v19, 16  ;;  %v1015_v32 = vshll.u32 %v5764_v11, 16  ;;  %v1014_v41 = vrot.slane %v1012_v55, 7  ;;  %v5768_v11 = vld [vmem:[%s5892_s17 + $0x1b8] sm:$0xff] }
  0xa7   : > { %10774 = vst [vmem:[#allocation121_spill] sm:$0xff] %v6593_v0  ;;  %v1754_v12 = vrot.slane %v1752_v15, 1  ;;  %v1030_v0 = vshll.u32 %v5766_v7, 16  ;;  %v1029_v30 = vrot.slane %v1027_v9, 7 }
  0xa8   : > { %10775 = vst [vmem:[#allocation122_spill] sm:$0xff] %v6595_v10  ;;  %v6615_v10 = vpop.permute.xlu2 %2170  ;;  %v1025_v37 = vor.u32 %v1023_v31, %v1022_v21  ;;  %v1007_v60 = vrot.slane %v1005_v27, 7  ;;  %v6643_v55 = vsel %vm5865_vm2, %v1014_v41, 0 }
  0xa9   : > { %10776 = vst [vmem:[#allocation123_spill] sm:$0xff] %v6599_v39  ;;  %v1750_v39 = vor.u32 %v1749_v49, %v1745_v28  ;;  %v1032_v49 = vor.u32 %v1030_v0, %v1029_v30  ;;  %v1780_v15 = vshll.u32 %v6643_v55, 16 }
  0xaa   : > { %10777 = vst [vmem:[#allocation124_spill] sm:$0xff] %v6605_v61  ;;  %v1758_v61 = vor.u32 %v1756_v40, %v1754_v12  ;;  %v6628_v43 = vsel %vm5865_vm2, 0, %v1025_v37  ;;  %v1017_v37 = vor.u32 %v1015_v32, %v1014_v41  ;;  %2234 = vrot.lane.b32.xlu1 %v6620_v22, %s5825_s18  ;;  %v1035_v32 = vshrl.u32 %v5767_v54, 16 }
  0xab   : > { %10778 = vst [vmem:[#allocation125_spill] sm:$0xff] %v6615_v10  ;;  %v1008_v10 = vshll.u32 %v5763_v19, 16  ;;  %v6633_v31 = vsel %vm1243_vm3, %v1750_v39, %v1754_v12  ;;  %v1785_v9 = vshrl.u32 %v6628_v43, 16  ;;  %v1787_v7 = vshll.u32 %v6628_v43, 16 }
  0xac   : > { %10779 = vst [vmem:[#allocation126_spill] sm:$0xff] %v6617_v29  ;;  %v6624_v29 = vsel %vm1243_vm3, %v1758_v61, %v1762_v35  ;;  %v6637_v61 = vpop.permute.xlu0 %2160  ;;  %2236 = vrot.lane.b32.xlu2 %v6633_v31, %s5825_s18  ;;  %v6648_v0 = vsel %vm620_vm0, %v1022_v21, %v1032_v49  ;;  %v6653_v19 = vpop.permute.xlu1 %2156  ;;  %v1782_v41 = vrot.slane %v1780_v15, 1 }
  0xad   : > { %10780 = vst [vmem:[#allocation127_spill] sm:$0xff] %v6620_v22  ;;  %2238 = vrot.lane.b32.xlu0 %v6624_v29, %s5825_s18  ;;  %v1010_v27 = vor.u32 %v1008_v10, %v1007_v60  ;;  %v1789_v39 = vrot.slane %v1787_v7, 1  ;;  %v1792_v28 = vshll.u32 %v6648_v0, 16  ;;  %v6658_v10 = vsel %vm620_vm0, %v1007_v60, %v1017_v37  ;;  %v5771_v37 = vld [vmem:[%s5892_s17 + $0x1d0] sm:$0xff] }
  0xae   : > { %10781 = vst [vmem:[#allocation128_spill] sm:$0xff] %v6624_v29  ;;  %v1772_v56 = vshll.u32 %v6658_v10, 16  ;;  %v1776_v12 = vshrl.u32 %v6658_v10, 16  ;;  %v1045_v60 = vshll.u32 %v5768_v11, 16 }
  0xaf   : > { %10782 = vst [vmem:[#allocation129_spill] sm:$0xff] %v6628_v43  ;;  %v6662_v18 = vsel %vm5865_vm2, 0, %v1010_v27  ;;  %v1790_v21 = vor.u32 %v1789_v39, %v1785_v9  ;;  %v1794_v35 = vrot.slane %v1792_v28, 1  ;;  %v1038_v9 = vshll.u32 %v5767_v54, 16 }
  0xb0   : > { %10783 = vst [vmem:[#allocation130_spill] sm:$0xff] %v6633_v31  ;;  %v6651_v40 = vpop.permute.xlu2 %2176  ;;  %v1765_v49 = vshrl.u32 %v6662_v18, 16  ;;  %v1767_v7 = vshll.u32 %v6662_v18, 16  ;;  %v6674_v39 = vsel %vm5865_vm2, %v1029_v30, 0 }
  0xb1   : > { %10784 = vst [vmem:[#allocation131_spill] sm:$0xff] %v6637_v61  ;;  %v1774_v61 = vrot.slane %v1772_v56, 1  ;;  %v6670_v22 = vsel %vm1243_vm3, %v1790_v21, %v1794_v35  ;;  %v1796_v21 = vshrl.u32 %v6648_v0, 16 }
  0xb2   : > { %10785 = vst [vmem:[#allocation132_spill] sm:$0xff] %v6643_v55  ;;  %v1769_v27 = vrot.slane %v1767_v7, 1  ;;  %v1800_v7 = vshll.u32 %v6674_v39, 16 }
  0xb3   : > { %10786 = vst [vmem:[#allocation133_spill] sm:$0xff] %v6648_v0  ;;  %v1778_v15 = vor.u32 %v1776_v12, %v1774_v61  ;;  %v1065_v12 = vshrl.u32 %v5771_v37, 16 }
  0xb4   : > { %10787 = vst [vmem:[#allocation134_spill] sm:$0xff] %v6651_v40  ;;  %v1042_v40 = vshrl.u32 %v5768_v11, 16  ;;  %v6678_v56 = vpop.permute.xlu0 %2166  ;;  %v1770_v11 = vor.u32 %v1769_v27, %v1765_v49  ;;  %v1802_v29 = vrot.slane %v1800_v7, 1 }
  0xb5   : > { %10788 = vst [vmem:[#allocation135_spill] sm:$0xff] %v6653_v19  ;;  %v1037_v19 = vrot.slane %v1035_v32, 7  ;;  %2244 = vrot.lane.b32.xlu0 %v6670_v22, %s5825_s18  ;;  %v6683_v54 = vsel %vm1243_vm3, %v1778_v15, %v1782_v41  ;;  %v5769_v15 = vld [vmem:[%s5892_s17 + $0x1c0] sm:$0xff] }
  0xb6   : > { %10789 = vst [vmem:[#allocation136_spill] sm:$0xff] %v6658_v10  ;;  %v1044_v28 = vrot.slane %v1042_v40, 7  ;;  %v6689_v40 = vpop.permute.xlu1 %2162  ;;  %2242 = vrot.lane.b32.xlu2 %v6683_v54, %s5825_s18  ;;  %v6694_v49 = vsel %vm1243_vm3, %v1770_v11, %v1774_v61  ;;  %v5770_v11 = vld [vmem:[%s5892_s17 + $0x1c8] sm:$0xff] }
  0xb7   : > { %10790 = vst [vmem:[#allocation137_spill] sm:$0xff] %v6662_v18  ;;  %v1040_v32 = vor.u32 %v1038_v9, %v1037_v19  ;;  %v5772_v9 = vld [vmem:[%s5892_s17 + $0x1d8] sm:$0xff]  ;;  %2240 = vrot.lane.b32.xlu1 %v6694_v49, %s5825_s18  ;;  %v1060_v10 = vshll.u32 %v5770_v11, 16 }
  0xb8   : > { %10791 = vst [vmem:[#allocation138_spill] sm:$0xff] %v6670_v22  ;;  %v1047_v30 = vor.u32 %v1045_v60, %v1044_v28  ;;  %v6687_v22 = vsel %vm5865_vm2, %v1044_v28, 0  ;;  %v6701_v60 = vpop.permute.xlu2 %2182 }
  0xb9   : > { %10792 = vst [vmem:[#allocation139_spill] sm:$0xff] %v6674_v39  ;;  %v1820_v27 = vshll.u32 %v6687_v22, 16  ;;  %v6699_v41 = vsel %vm5865_vm2, 0, %v1040_v32  ;;  %v1067_v39 = vrot.slane %v1065_v12, 7 }
  0xba   : > { %10793 = vst [vmem:[#allocation140_spill] sm:$0xff] %v6678_v56  ;;  %v6708_v28 = vsel %vm620_vm0, %v1037_v19, %v1047_v30  ;;  %v1805_v56 = vshrl.u32 %v6699_v41, 16  ;;  %v1807_v61 = vshll.u32 %v6699_v41, 16  ;;  %v1075_v19 = vshll.u32 %v5772_v9, 16 }
  0xbb   : > { %10794 = vst [vmem:[#allocation141_spill] sm:$0xff] %v6683_v54  ;;  %v1816_v32 = vshrl.u32 %v6708_v28, 16  ;;  %v1798_v54 = vor.u32 %v1796_v21, %v1794_v35  ;;  %v1050_v30 = vshrl.u32 %v5769_v15, 16 }
  0xbc   : > { %10795 = vst [vmem:[#allocation142_spill] sm:$0xff] %v6687_v22  ;;  %v1809_v31 = vrot.slane %v1807_v61, 1  ;;  %v1068_v22 = vshll.u32 %v5771_v37, 16  ;;  %v6715_v55 = vpop.permute.xlu0 %2172 }
  0xbd   : > { %10796 = vst [vmem:[#allocation143_spill] sm:$0xff] %v6689_v40  ;;  %v1812_v40 = vshll.u32 %v6708_v28, 16  ;;  %v1052_v21 = vrot.slane %v1050_v30, 7 }
  0xbe   : > { %10797 = vst [vmem:[#allocation144_spill] sm:$0xff] %v6694_v49  ;;  %v1072_v49 = vshrl.u32 %v5772_v9, 16  ;;  %v1810_v0 = vor.u32 %v1809_v31, %v1805_v56  ;;  %v1070_v43 = vor.u32 %v1068_v22, %v1067_v39  ;;  %v1053_v31 = vshll.u32 %v5769_v15, 16  ;;  %v5773_v22 = vld [vmem:[%s5892_s17 + $0x1e0] sm:$0xff]  ;;  %v6737_v12 = vpop.permute.xlu1 %2168  ;;  %v5774_v9 = vld [vmem:[%s5892_s17 + $0x1e8] sm:$0xff] }
  0xbf   : > { %10798 = vst [vmem:[#allocation145_spill] sm:$0xff] %v6699_v41  ;;  %v1814_v18 = vrot.slane %v1812_v40, 1  ;;  %v1057_v41 = vshrl.u32 %v5770_v11, 16  ;;  %v1080_v11 = vshrl.u32 %v5773_v22, 16 }
  0xc0   : > { %10799 = vst [vmem:[#allocation146_spill] sm:$0xff] %v6701_v60  ;;  %v1822_v60 = vrot.slane %v1820_v27, 1  ;;  %v1074_v35 = vrot.slane %v1072_v49, 7  ;;  %v6725_v37 = vsel %vm5865_vm2, 0, %v1070_v43  ;;  %v1055_v49 = vor.u32 %v1053_v31, %v1052_v21 }
  0xc1   : > { %10800 = vst [vmem:[#allocation147_spill] sm:$0xff] %v6708_v28  ;;  %v1818_v13 = vor.u32 %v1816_v32, %v1814_v18  ;;  %v6718_v28 = vsel %vm1243_vm3, %v1798_v54, %v1802_v29  ;;  %v6721_v7 = vsel %vm1243_vm3, %v1810_v0, %v1814_v18  ;;  %v1059_v40 = vrot.slane %v1057_v41, 7  ;;  %v6735_v18 = vpop.permute.xlu2 %2188 }
  0xc2   : > { %10801 = vst [vmem:[#allocation148_spill] sm:$0xff] %v6715_v55  ;;  %2248 = vrot.lane.b32.xlu2 %v6721_v7, %s5825_s18  ;;  %v1077_v29 = vor.u32 %v1075_v19, %v1074_v35  ;;  %v1845_v54 = vshrl.u32 %v6725_v37, 16  ;;  %v1847_v0 = vshll.u32 %v6725_v37, 16  ;;  %2246 = vrot.lane.b32.xlu1 %v6718_v28, %s5825_s18 }
  0xc3   : > { %10802 = vst [vmem:[#allocation149_spill] sm:$0xff] %v6718_v28  ;;  %v6729_v56 = vsel %vm1243_vm3, %v1818_v13, %v1822_v60  ;;  %v1062_v13 = vor.u32 %v1060_v10, %v1059_v40  ;;  %v6745_v43 = vsel %vm5865_vm2, %v1059_v40, 0  ;;  %v6758_v10 = vsel %vm5865_vm2, 0, %v1055_v49 }
  0xc4   : > { %10803 = vst [vmem:[#allocation150_spill] sm:$0xff] %v6721_v7  ;;  %2250 = vrot.lane.b32.xlu0 %v6729_v56, %s5825_s18  ;;  %v6748_v27 = vsel %vm620_vm0, %v1067_v39, %v1077_v29  ;;  %v1849_v41 = vrot.slane %v1847_v0, 1  ;;  %v1840_v60 = vshll.u32 %v6745_v43, 16  ;;  %v1825_v31 = vshrl.u32 %v6758_v10, 16  ;;  %v6764_v55 = vpop.permute.xlu0 %2178 }
  0xc5   : > { %10804 = vst [vmem:[#allocation151_spill] sm:$0xff] %v6725_v37  ;;  %v1852_v15 = vshll.u32 %v6748_v27, 16  ;;  %v6754_v61 = vsel %vm620_vm0, %v1052_v21, %v1062_v13  ;;  %v1827_v29 = vshll.u32 %v6758_v10, 16  ;;  %v1082_v0 = vrot.slane %v1080_v11, 7 }
  0xc6   : > { %10805 = vst [vmem:[#allocation152_spill] sm:$0xff] %v6729_v56  ;;  %v1850_v32 = vor.u32 %v1849_v41, %v1845_v54  ;;  %v1832_v19 = vshll.u32 %v6754_v61, 16  ;;  %v1836_v39 = vshrl.u32 %v6754_v61, 16  ;;  %v1842_v30 = vrot.slane %v1840_v60, 1  ;;  %v6774_v11 = vpop.permute.xlu1 %2174 }
  0xc7   : > { %10806 = vst [vmem:[#allocation153_spill] sm:$0xff] %v6735_v18  ;;  %v1854_v40 = vrot.slane %v1852_v15, 1  ;;  %v1087_v21 = vshrl.u32 %v5774_v9, 16  ;;  %v1090_v13 = vshll.u32 %v5774_v9, 16  ;;  %v1083_v49 = vshll.u32 %v5773_v22, 16 }
  0xc8   : > { %10807 = vst [vmem:[#allocation154_spill] sm:$0xff] %v6737_v12  ;;  %v1834_v18 = vrot.slane %v1832_v19, 1  ;;  %v1829_v54 = vrot.slane %v1827_v29, 1  ;;  %v6771_v41 = vsel %vm5865_vm2, %v1074_v35, 0  ;;  %v1856_v56 = vshrl.u32 %v6748_v27, 16 }
  0xc9   : > { %10808 = vst [vmem:[#allocation155_spill] sm:$0xff] %v6748_v27  ;;  %v6767_v12 = vsel %vm1243_vm3, %v1850_v32, %v1854_v40  ;;  %v1089_v15 = vrot.slane %v1087_v21, 7  ;;  %v1085_v28 = vor.u32 %v1083_v49, %v1082_v0  ;;  %v1860_v22 = vshll.u32 %v6771_v41, 16  ;;  %v6779_v32 = vpop.permute.xlu2 %2194 }
  0xca   : > { %10809 = vst [vmem:[#allocation156_spill] sm:$0xff] %v6754_v61  ;;  %v1838_v60 = vor.u32 %v1836_v39, %v1834_v18  ;;  %v1830_v9 = vor.u32 %v1829_v54, %v1825_v31 }
  0xcb   : > { %10810 = vst [vmem:[#allocation157_spill] sm:$0xff] %v6758_v10  ;;  %v1092_v35 = vor.u32 %v1090_v13, %v1089_v15  ;;  %v6786_v39 = vsel %vm5865_vm2, %v1089_v15, 0  ;;  %v6790_v29 = vsel %vm5865_vm2, 0, %v1085_v28  ;;  %v1858_v28 = vor.u32 %v1856_v56, %v1854_v40 }
  0xcc   : > { %10811 = vst [vmem:[#allocation158_spill] sm:$0xff] %v6764_v55  ;;  %2256 = vrot.lane.b32.xlu0 %v6767_v12, %s5825_s18  ;;  %v6782_v19 = vsel %vm1243_vm3, %v1838_v60, %v1842_v30  ;;  %v6795_v31 = vsel %vm1243_vm3, %v1830_v9, %v1834_v18  ;;  %v1880_v21 = vshll.u32 %v6786_v39, 16  ;;  %v1865_v30 = vshrl.u32 %v6790_v29, 16  ;;  %v6807_v9 = vpop.permute.xlu0 %2184 }
  0xcd   : > { %10812 = vst [vmem:[#allocation159_spill] sm:$0xff] %v6767_v12  ;;  %2254 = vrot.lane.b32.xlu2 %v6782_v19, %s5825_s18  ;;  %v1867_v13 = vshll.u32 %v6790_v29, 16  ;;  %2252 = vrot.lane.b32.xlu1 %v6795_v31, %s5825_s18  ;;  %v6803_v49 = vsel %vm620_vm0, %v1082_v0, %v1092_v35  ;;  %v1862_v54 = vrot.slane %v1860_v22, 1  ;;  %v1952_v12 = vrot.slane %v5872_v3, 1 }
  0xce   : > { %10813 = vst [vmem:[#allocation160_spill] sm:$0xff] %v6774_v11  ;;  %v1872_v60 = vshll.u32 %v6803_v49, 16  ;;  %v1876_v15 = vshrl.u32 %v6803_v49, 16  ;;  %v1882_v55 = vrot.slane %v1880_v21, 1  ;;  %v1949_v56 = vrot.slane %v5879_v6, 1  ;;  %v6820_v35 = vpop.permute.xlu1 %2180 }
  0xcf   : > { %10814 = vst [vmem:[#allocation161_spill] sm:$0xff] %v6779_v32  ;;  %v1869_v18 = vrot.slane %v1867_v13, 1  ;;  %v1950_v40 = vrot.slane %v5862_v1, 1  ;;  %v1954_v3 = vrot.slane %v5925_v52, 1 }
  0xd0   : > { %10815 = vst [vmem:[#allocation162_spill] sm:$0xff] %v6782_v19  ;;  %v1874_v32 = vrot.slane %v1872_v60, 1  ;;  %v6811_v19 = vsel %vm1243_vm3, %v1858_v28, %v1862_v54 }
  0xd1   : > { %10816 = vst [vmem:[#allocation163_spill] sm:$0xff] %v6790_v29  ;;  %v1870_v11 = vor.u32 %v1869_v18, %v1865_v30  ;;  %v6818_v22 = vpop.permute.xlu2 %2200  ;;  %v6835_v30 = vsel %vm1948_vm4, %v1949_v56, %v1950_v40  ;;  %v1964_v18 = vrot.slane %v5938_v63, 1  ;;  %v1965_v56 = vrot.slane %v5942_v8, 1 }
  0xd2   : > { %10817 = vst [vmem:[#allocation164_spill] sm:$0xff] %v6795_v31  ;;  %v1878_v31 = vor.u32 %v1876_v15, %v1874_v32  ;;  %v1962_v15 = vrot.slane %v5910_v44, 1 }
  0xd3   : > { %10818 = vst [vmem:[#allocation165_spill] sm:$0xff] %v6803_v49  ;;  %v6814_v0 = vsel %vm1243_vm3, %v1870_v11, %v1874_v32  ;;  %v1955_v11 = vrot.slane %v5928_v53, 1  ;;  %v1957_v32 = vrot.slane %v5953_v16, 1 }
  0xd4   : > { %10819 = vst [vmem:[#allocation166_spill] sm:$0xff] %v6807_v9  ;;  %v6823_v21 = vsel %vm1243_vm3, %v1878_v31, %v1882_v55  ;;  %v6838_v55 = vsel %vm1948_vm4, %v1950_v40, %v1952_v12  ;;  %v6840_v31 = vpop.permute.xlu0 %2190  ;;  %v1960_v12 = vrot.slane %v5913_v45, 1  ;;  %v1959_v40 = vrot.slane %v5917_v46, 1 }
  0xd5   : > { %10820 = vst [vmem:[#allocation167_spill] sm:$0xff] %v6811_v19  ;;  %2260 = vrot.lane.b32.xlu2 %v6814_v0, %s5825_s18  ;;  %2262 = vrot.lane.b32.xlu0 %v6823_v21, %s5825_s18  ;;  %v6843_v13 = vsel %vm1948_vm4, %v1954_v3, %v1955_v11  ;;  %v5803_v28 = vpack.i.bf16 %v6838_v55, %v6835_v30 }
  0xd6   : > { %10821 = vst [vmem:[#allocation168_spill] sm:$0xff] %v6814_v0  ;;  %2258 = vrot.lane.b32.xlu1 %v6811_v19, %s5825_s18  ;;  %v6848_v54 = vsel %vm1948_vm4, %v1955_v11, %v1957_v32  ;;  %v6850_v60 = vpop.permute.xlu1 %2186  ;;  %v6867_v11 = vsel %vm1948_vm4, %v1960_v12, %v1962_v15  ;;  %v6870_v32 = vsel %vm1948_vm4, %v1964_v18, %v1965_v56  ;;  %v1969_v15 = vrot.slane %v5990_v51, 1 }
  0xd7   : > { %10822 = vst [vmem:[#allocation169_spill] sm:$0xff] %v6818_v22  ;;  %v1970_v18 = vrot.slane %v5995_v58, 1 }
  0xd8   : > { %10823 = vst [vmem:[#allocation170_spill] sm:$0xff] %v6820_v35 }
  0xd9   : > { %10824 = vst [vmem:[#allocation171_spill] sm:$0xff] %v6823_v21  ;;  %v6854_v16 = vpop.permute.xlu2 %2206  ;;  %v10931_v21 = vld [vmem:[#allocation94_spill] sm:$0xff] }
  0xda   : > { %10825 = vst [vmem:[#allocation172_spill] sm:$0xff] %v6835_v30 }
  0xdb   : > { %10826 = vst [vmem:[#allocation173_spill] sm:$0xff] %v6838_v55 }
  0xdc   : > { %10827 = vst [vmem:[#allocation174_spill] sm:$0xff] %v6840_v31  ;;  %v6864_v3 = vpop.permute.xlu0 %2196 }
  0xdd   : > { %10828 = vst [vmem:[#allocation175_spill] sm:$0xff] %v6843_v13  ;;  %2268 = vrot.lane.b32.xlu2 %v6843_v13, %s5826_s19  ;;  %2270 = vrot.lane.b32.xlu0 %v6848_v54, %s5826_s19 }
  0xde   : > { %10829 = vst [vmem:[#allocation176_spill] sm:$0xff] %v6848_v54  ;;  %5804 = vrot.lane.b32.xlu1 %v5803_v28, %s5826_s19  ;;  %v6873_v28 = vsel %vm1948_vm4, %v1959_v40, %v1960_v12  ;;  %v1972_v12 = vrot.slane %v5985_v48, 1  ;;  %v1967_v40 = vrot.slane %v5970_v33, 1  ;;  %v1975_v33 = vrot.slane %v6042_v59, 1  ;;  %v10912_v54 = vld [vmem:[#allocation75_spill] sm:$0xff] }
  0xdf   : > { %10830 = vst [vmem:[#allocation177_spill] sm:$0xff] %v6850_v60  ;;  %v6879_v31 = vpop.permute.xlu1 %2192  ;;  %v1977_v48 = vrot.slane %v6030_v47, 1 }
  0xe0   : > { %10831 = vst [vmem:[#allocation178_spill] sm:$0xff] %v6854_v16  ;;  %v6898_v30 = vsel %vm1948_vm4, %v1965_v56, %v1967_v40  ;;  %v1979_v56 = vrot.slane %v6011_v24, 1 }
  0xe1   : > { %10832 = vst [vmem:[#allocation179_spill] sm:$0xff] %v6864_v3  ;;  %v6877_v44 = vpop.permute.xlu2 %2212  ;;  %v6890_v3 = vsel %vm1948_vm4, %v1969_v15, %v1970_v18  ;;  %v6916_v40 = vsel %vm1948_vm4, %v1975_v33, %v1977_v48  ;;  %v1984_v48 = vrot.slane %v6075_v50, 1 }
  0xe2   : > { %10833 = vst [vmem:[#allocation180_spill] sm:$0xff] %v6867_v11 }
  0xe3   : > { %10834 = vst [vmem:[#allocation181_spill] sm:$0xff] %v6870_v32 }
  0xe4   : > { %10835 = vst [vmem:[#allocation182_spill] sm:$0xff] %v6873_v28  ;;  %v6892_v55 = vpop.permute.xlu0 %2202 }
  0xe5   : > { %2274 = vrot.lane.b32.xlu2 %v6867_v11, %s5826_s19  ;;  %10836 = vst [vmem:[#allocation183_spill] sm:$0xff] %v6877_v44  ;;  %2276 = vrot.lane.b32.xlu0 %v6870_v32, %s5826_s19  ;;  %v10900_v32 = vld [vmem:[#allocation64_spill] sm:$0xff] }
  0xe6   : > { %10837 = vst [vmem:[#allocation184_spill] sm:$0xff] %v6879_v31  ;;  %2272 = vrot.lane.b32.xlu1 %v6873_v28, %s5826_s19  ;;  %v6895_v31 = vsel %vm1948_vm4, %v1970_v18, %v1972_v12  ;;  %v1980_v18 = vrot.slane %v6020_v34, 1  ;;  %v1974_v12 = vrot.slane %v6037_v57, 1  ;;  %v10920_v28 = vld [vmem:[#allocation84_spill] sm:$0xff] }
  0xe7   : > { %10838 = vst [vmem:[#allocation185_spill] sm:$0xff] %v6890_v3  ;;  %v6902_v60 = vpop.permute.xlu1 %2198 }
  0xe8   : > { %10839 = vst [vmem:[#allocation186_spill] sm:$0xff] %v6892_v55  ;;  %v6922_v9 = vsel %vm1948_vm4, %v1974_v12, %v1975_v33  ;;  %v1987_v33 = vrot.slane %v6054_v17, 1  ;;  %v1982_v12 = vrot.slane %v6059_v26, 1  ;;  %v1990_v17 = vrot.slane %v6122_v14, 1 }
  0xe9   : > { %10840 = vst [vmem:[#allocation187_spill] sm:$0xff] %v6895_v31  ;;  %v6910_v15 = vpop.permute.xlu2 %2218  ;;  %v1992_v26 = vrot.slane %v6110_v62, 1 }
  0xea   : > { %10841 = vst [vmem:[#allocation188_spill] sm:$0xff] %v6898_v30  ;;  %v6947_v16 = vsel %vm1948_vm4, %v1980_v18, %v1982_v12 }
  0xeb   : > { %10842 = vst [vmem:[#allocation189_spill] sm:$0xff] %v6902_v60  ;;  %v6919_v60 = vsel %vm1948_vm4, %v1979_v56, %v1980_v18  ;;  %v1985_v56 = vrot.slane %v6071_v42, 1  ;;  %v1994_v18 = vrot.slane %v6095_v38, 1  ;;  %v6965_v12 = vsel %vm1948_vm4, %v1990_v17, %v1992_v26 }
  0xec   : > { %10843 = vst [vmem:[#allocation190_spill] sm:$0xff] %v6910_v15  ;;  %v6924_v35 = vpop.permute.xlu0 %2208  ;;  %v1999_v26 = vrot.slane %v6159_v4, 1 }
  0xed   : > { %2280 = vrot.lane.b32.xlu2 %v6890_v3, %s5826_s19  ;;  %2282 = vrot.lane.b32.xlu0 %v6895_v31, %s5826_s19  ;;  %10844 = vst [vmem:[#allocation191_spill] sm:$0xff] %v6916_v40  ;;  %v6941_v44 = vsel %vm1948_vm4, %v1984_v48, %v1985_v56 }
  0xee   : > { %2278 = vrot.lane.b32.xlu1 %v6898_v30, %s5826_s19  ;;  %10845 = vst [vmem:[#allocation192_spill] sm:$0xff] %v6919_v60 }
  0xef   : > { %10846 = vst [vmem:[#allocation193_spill] sm:$0xff] %v6922_v9  ;;  %v6928_v47 = vpop.permute.xlu1 %2204 }
  0xf0   : > { %10847 = vst [vmem:[#allocation194_spill] sm:$0xff] %v6924_v35  ;;  %v6944_v35 = vsel %vm1948_vm4, %v1985_v56, %v1987_v33  ;;  %v1995_v56 = vrot.slane %v6113_v36, 1  ;;  %v1989_v33 = vrot.slane %v6126_v25, 1 }
  0xf1   : > { %10848 = vst [vmem:[#allocation195_spill] sm:$0xff] %v6928_v47  ;;  %v6938_v15 = vpop.permute.xlu2 %2224 }
  0xf2   : > { %10849 = vst [vmem:[#allocation196_spill] sm:$0xff] %v6938_v15  ;;  %v6973_v1 = vsel %vm1948_vm4, %v1989_v33, %v1990_v17 }
  0xf3   : > { %10850 = vst [vmem:[#allocation197_spill] sm:$0xff] %v6941_v44 }
  0xf4   : > { %10851 = vst [vmem:[#allocation198_spill] sm:$0xff] %v6944_v35 }
  0xf5   : > { %2286 = vrot.lane.b32.xlu2 %v6916_v40, %s5826_s19  ;;  %2288 = vrot.lane.b32.xlu0 %v6919_v60, %s5826_s19  ;;  %10852 = vst [vmem:[#allocation199_spill] sm:$0xff] %v6947_v16 }
  0xf6   : > { %2284 = vrot.lane.b32.xlu1 %v6922_v9, %s5826_s19  ;;  %10855 = vst [vmem:[#allocation202_spill] sm:$0xff] %v6965_v12 }
  0xf7   : > { %v6951_v47 = vpop.permute.xlu0 %2214  ;;  %10858 = vst [vmem:[#allocation205_spill] sm:$0xff] %v6973_v1 }
  0xf8   : > { %10853 = vst [vmem:[#allocation200_spill] sm:$0xff] %v6951_v47  ;;  %v6959_v48 = vpop.permute.xlu1 %2210  ;;  %v6970_v47 = vsel %vm1948_vm4, %v1994_v18, %v1995_v56  ;;  %v2002_v18 = vrot.slane %v6142_v20, 1  ;;  %v10866_v20 = vld [vmem:[#allocation45_spill] sm:$0xff] }
  0xf9   : > { %10854 = vst [vmem:[#allocation201_spill] sm:$0xff] %v6959_v48  ;;  %v10860_v48 = vld [vmem:[#allocation34_spill] sm:$0xff] }
  0xfa   : > { %10857 = vst [vmem:[#allocation204_spill] sm:$0xff] %v6970_v47  ;;  %v1997_v17 = vrot.slane %v10860_v48, 1  ;;  %v2005_v48 = vrot.slane %v10866_v20, 1 }
  0xfc   : > { %v6998_v22 = vsel %vm1948_vm4, %v1995_v56, %v1997_v17  ;;  %v10871_v56 = vld [vmem:[#allocation46_spill] sm:$0xff] }
  0xfd   : > { %2292 = vrot.lane.b32.xlu2 %v6941_v44, %s5826_s19  ;;  %2294 = vrot.lane.b32.xlu0 %v6944_v35, %s5826_s19  ;;  %10865 = vst [vmem:[#allocation210_spill] sm:$0xff] %v6998_v22  ;;  %v2004_v17 = vrot.slane %v10871_v56, 1 }
  0xfe   : > { %2290 = vrot.lane.b32.xlu1 %v6947_v16, %s5826_s19  ;;  %v6967_v15 = vpop.permute.xlu2 %2230 }
  0xff   : > { %10856 = vst [vmem:[#allocation203_spill] sm:$0xff] %v6967_v15  ;;  %v6977_v62 = vpop.permute.xlu0 %2220  ;;  %v2000_v15 = vrot.slane %v6155_v5, 1 }
 0x100   : > { %10859 = vst [vmem:[#allocation206_spill] sm:$0xff] %v6977_v62  ;;  %v6987_v33 = vpop.permute.xlu1 %2216 }
 0x101   : > { %10861 = vst [vmem:[#allocation34_spill] sm:$0xff] %v6987_v33  ;;  %v6990_v55 = vsel %vm1948_vm4, %v1999_v26, %v2000_v15  ;;  %v6995_v6 = vsel %vm1948_vm4, %v2000_v15, %v2002_v18  ;;  %v10867_v26 = vld [vmem:[#allocation43_spill] sm:$0xff]  ;;  %v10869_v15 = vld [vmem:[#allocation44_spill] sm:$0xff] }
 0x102   : > { %10862 = vst [vmem:[#allocation207_spill] sm:$0xff] %v6990_v55  ;;  %v2007_v33 = vrot.slane %v10867_v26, 1  ;;  %v2010_v18 = vrot.slane %v10869_v15, 1 }
 0x103   : > { %10864 = vst [vmem:[#allocation209_spill] sm:$0xff] %v6995_v6 }
 0x105   : > { %2298 = vrot.lane.b32.xlu2 %v6965_v12, %s5826_s19  ;;  %2300 = vrot.lane.b32.xlu0 %v6970_v47, %s5826_s19 }
 0x106   : > { %2296 = vrot.lane.b32.xlu1 %v6973_v1, %s5826_s19  ;;  %v6992_v62 = vpop.permute.xlu2 %2236 }
 0x107   : > { %10863 = vst [vmem:[#allocation208_spill] sm:$0xff] %v6992_v62  ;;  %v10868_v62 = vld [vmem:[#allocation40_spill] sm:$0xff] }
 0x108   : > { %v2009_v47 = vrot.slane %v10868_v62, 1  ;;  %v7013_v12 = vpop.permute.xlu1 %2222 }
 0x109   : > { %10872 = vst [vmem:[#allocation211_spill] sm:$0xff] %v7013_v12  ;;  %v10878_v12 = vld [vmem:[#allocation51_spill] sm:$0xff] }
 0x10a   : > { %v7010_v35 = vpop.permute.xlu0 %2226  ;;  %v2015_v1 = vrot.slane %v10878_v12, 1 }
 0x10b   : > { %10870 = vst [vmem:[#allocation43_spill] sm:$0xff] %v7010_v35  ;;  %v10877_v35 = vld [vmem:[#allocation52_spill] sm:$0xff] }
 0x10d   : > { %2304 = vrot.lane.b32.xlu2 %v6990_v55, %s5826_s19  ;;  %2306 = vrot.lane.b32.xlu0 %v6995_v6, %s5826_s19  ;;  %v7016_v55 = vsel %vm1948_vm4, %v2005_v48, %v2007_v33  ;;  %v7019_v6 = vsel %vm1948_vm4, %v2009_v47, %v2010_v18  ;;  %v2014_v33 = vrot.slane %v10877_v35, 1  ;;  %v10879_v47 = vld [vmem:[#allocation49_spill] sm:$0xff] }
 0x10e   : > { %2302 = vrot.lane.b32.xlu1 %v6998_v22, %s5826_s19  ;;  %10873 = vst [vmem:[#allocation212_spill] sm:$0xff] %v7016_v55  ;;  %v7022_v22 = vsel %vm1948_vm4, %v2004_v17, %v2005_v48  ;;  %v2017_v60 = vrot.slane %v10879_v47, 1  ;;  %v10881_v48 = vld [vmem:[#allocation48_spill] sm:$0xff] }
 0x10f   : > { %10874 = vst [vmem:[#allocation213_spill] sm:$0xff] %v7019_v6  ;;  %v2012_v17 = vrot.slane %v10881_v48, 1  ;;  %v10889_v48 = vld [vmem:[#allocation56_spill] sm:$0xff] }
 0x110   : > { %10875 = vst [vmem:[#allocation214_spill] sm:$0xff] %v7022_v22  ;;  %v7024_v26 = vpop.permute.xlu2 %2242 }
 0x111   : > { %10876 = vst [vmem:[#allocation215_spill] sm:$0xff] %v7024_v26  ;;  %v7039_v26 = vsel %vm1948_vm4, %v2014_v33, %v2015_v1  ;;  %v10887_v33 = vld [vmem:[#allocation60_spill] sm:$0xff] }
 0x112   : > { %v7035_v44 = vpop.permute.xlu0 %2232  ;;  %10882 = vst [vmem:[#allocation48_spill] sm:$0xff] %v7039_v26  ;;  %v2020_v47 = vrot.slane %v10887_v33, 1 }
 0x113   : > { %10880 = vst [vmem:[#allocation49_spill] sm:$0xff] %v7035_v44 }
 0x115   : > { %2310 = vrot.lane.b32.xlu2 %v7016_v55, %s5826_s19  ;;  %2312 = vrot.lane.b32.xlu0 %v7019_v6, %s5826_s19  ;;  %v7042_v55 = vsel %vm1948_vm4, %v2015_v1, %v2017_v60  ;;  %v7045_v6 = vsel %vm1948_vm4, %v2010_v18, %v2012_v17  ;;  %v10888_v1 = vld [vmem:[#allocation59_spill] sm:$0xff]  ;;  %v2024_v18 = vrot.slane %v10889_v48, 1  ;;  %v10890_v17 = vld [vmem:[#allocation58_spill] sm:$0xff] }
 0x116   : > { %2308 = vrot.lane.b32.xlu1 %v7022_v22, %s5826_s19  ;;  %10883 = vst [vmem:[#allocation216_spill] sm:$0xff] %v7042_v55  ;;  %v7047_v22 = vpop.permute.xlu1 %2228  ;;  %v2022_v60 = vrot.slane %v10888_v1, 1  ;;  %v2025_v44 = vrot.slane %v10890_v17, 1  ;;  %v10897_v1 = vld [vmem:[#allocation67_spill] sm:$0xff] }
 0x117   : > { %10884 = vst [vmem:[#allocation217_spill] sm:$0xff] %v7045_v6 }
 0x118   : > { %10885 = vst [vmem:[#allocation218_spill] sm:$0xff] %v7047_v22  ;;  %v10891_v22 = vld [vmem:[#allocation61_spill] sm:$0xff] }
 0x119   : > { %v2019_v31 = vrot.slane %v10891_v22, 1 }
 0x11c   : > { %v7051_v16 = vpop.permute.xlu2 %2248 }
 0x11d   : > { %2316 = vrot.lane.b32.xlu2 %v7039_v26, %s5826_s19  ;;  %10886 = vst [vmem:[#allocation219_spill] sm:$0xff] %v7051_v16  ;;  %2318 = vrot.lane.b32.xlu0 %v7042_v55, %s5826_s19  ;;  %v7065_v16 = vsel %vm1948_vm4, %v2020_v47, %v2022_v60  ;;  %v7068_v55 = vsel %vm1948_vm4, %v2024_v18, %v2025_v44  ;;  %v2029_v60 = vrot.slane %v10897_v1, 1  ;;  %v10899_v18 = vld [vmem:[#allocation66_spill] sm:$0xff] }
 0x11e   : > { %2314 = vrot.lane.b32.xlu1 %v7045_v6, %s5826_s19  ;;  %10893 = vst [vmem:[#allocation220_spill] sm:$0xff] %v7065_v16  ;;  %v7071_v26 = vsel %vm1948_vm4, %v2019_v31, %v2020_v47  ;;  %v7073_v6 = vpop.permute.xlu1 %2234  ;;  %v2030_v9 = vrot.slane %v10899_v18, 1  ;;  %v2032_v31 = vrot.slane %v10900_v32, 1  ;;  %v10901_v47 = vld [vmem:[#allocation63_spill] sm:$0xff]  ;;  %v10907_v32 = vld [vmem:[#allocation76_spill] sm:$0xff] }
 0x11f   : > { %v7062_v40 = vpop.permute.xlu0 %2238  ;;  %10894 = vst [vmem:[#allocation221_spill] sm:$0xff] %v7068_v55  ;;  %v2027_v3 = vrot.slane %v10901_v47, 1 }
 0x120   : > { %10892 = vst [vmem:[#allocation59_spill] sm:$0xff] %v7062_v40 }
 0x121   : > { %10895 = vst [vmem:[#allocation222_spill] sm:$0xff] %v7071_v26 }
 0x122   : > { %10896 = vst [vmem:[#allocation223_spill] sm:$0xff] %v7073_v6  ;;  %v7088_v6 = vsel %vm1948_vm4, %v2029_v60, %v2030_v9  ;;  %v2035_v60 = vrot.slane %v10907_v32, 1 }
 0x123   : > { %10902 = vst [vmem:[#allocation66_spill] sm:$0xff] %v7088_v6 }
 0x125   : > { %2322 = vrot.lane.b32.xlu2 %v7065_v16, %s5826_s19  ;;  %2324 = vrot.lane.b32.xlu0 %v7068_v55, %s5826_s19  ;;  %v7091_v16 = vsel %vm1948_vm4, %v2030_v9, %v2032_v31  ;;  %v10908_v9 = vld [vmem:[#allocation74_spill] sm:$0xff] }
 0x126   : > { %2320 = vrot.lane.b32.xlu1 %v7071_v26, %s5826_s19  ;;  %10903 = vst [vmem:[#allocation64_spill] sm:$0xff] %v7091_v16  ;;  %v7096_v26 = vsel %vm1948_vm4, %v2025_v44, %v2027_v3  ;;  %v2037_v31 = vrot.slane %v10908_v9, 1  ;;  %v10911_v44 = vld [vmem:[#allocation73_spill] sm:$0xff] }
 0x127   : > { %v7082_v40 = vpop.permute.xlu2 %2254  ;;  %v7093_v55 = vpop.permute.xlu0 %2244  ;;  %10905 = vst [vmem:[#allocation224_spill] sm:$0xff] %v7096_v26  ;;  %v2040_v30 = vrot.slane %v10911_v44, 1 }
 0x128   : > { %10898 = vst [vmem:[#allocation67_spill] sm:$0xff] %v7082_v40 }
 0x129   : > { %10904 = vst [vmem:[#allocation63_spill] sm:$0xff] %v7093_v55  ;;  %v7100_v40 = vpop.permute.xlu1 %2240  ;;  %v10910_v55 = vld [vmem:[#allocation71_spill] sm:$0xff] }
 0x12a   : > { %10906 = vst [vmem:[#allocation225_spill] sm:$0xff] %v7100_v40  ;;  %v2039_v3 = vrot.slane %v10910_v55, 1  ;;  %v7114_v40 = vsel %vm1948_vm4, %v2035_v60, %v2037_v31  ;;  %v10918_v31 = vld [vmem:[#allocation83_spill] sm:$0xff] }
 0x12b   : > { %10913 = vst [vmem:[#allocation74_spill] sm:$0xff] %v7114_v40 }
 0x12d   : > { %2328 = vrot.lane.b32.xlu2 %v7088_v6, %s5826_s19  ;;  %2330 = vrot.lane.b32.xlu0 %v7091_v16, %s5826_s19  ;;  %v2034_v6 = vrot.slane %v10912_v54, 1  ;;  %v7117_v16 = vsel %vm1948_vm4, %v2039_v3, %v2040_v30 }
 0x12e   : > { %2326 = vrot.lane.b32.xlu1 %v7096_v26, %s5826_s19  ;;  %10914 = vst [vmem:[#allocation71_spill] sm:$0xff] %v7117_v16 }
 0x12f   : > { %v7108_v47 = vpop.permute.xlu2 %2260  ;;  %v7120_v26 = vsel %vm1948_vm4, %v2034_v6, %v2035_v60  ;;  %v2045_v6 = vrot.slane %v10920_v28, 1  ;;  %v10921_v60 = vld [vmem:[#allocation81_spill] sm:$0xff] }
 0x130   : > { %10909 = vst [vmem:[#allocation76_spill] sm:$0xff] %v7108_v47  ;;  %v2044_v47 = vrot.slane %v10918_v31, 1  ;;  %v2047_v13 = vrot.slane %v10921_v60, 1 }
 0x131   : > { %10915 = vst [vmem:[#allocation73_spill] sm:$0xff] %v7120_v26 }
 0x134   : > { %v7130_v9 = vpop.permute.xlu1 %2246 }
 0x135   : > { %2334 = vrot.lane.b32.xlu2 %v7114_v40, %s5826_s19  ;;  %2336 = vrot.lane.b32.xlu0 %v7117_v16, %s5826_s19  ;;  %10917 = vst [vmem:[#allocation226_spill] sm:$0xff] %v7130_v9  ;;  %v7139_v40 = vsel %vm1948_vm4, %v2044_v47, %v2045_v6  ;;  %v7142_v16 = vsel %vm1948_vm4, %v2045_v6, %v2047_v13  ;;  %v10927_v47 = vld [vmem:[#allocation92_spill] sm:$0xff] }
 0x136   : > { %v7122_v11 = vpop.permute.xlu0 %2250  ;;  %2332 = vrot.lane.b32.xlu1 %v7120_v26, %s5826_s19  ;;  %10923 = vst [vmem:[#allocation81_spill] sm:$0xff] %v7139_v40  ;;  %v2052_v60 = vrot.slane %v10927_v47, 1  ;;  %v10929_v6 = vld [vmem:[#allocation88_spill] sm:$0xff]  ;;  %v10936_v47 = vld [vmem:[#allocation102_spill] sm:$0xff] }
 0x137   : > { %10916 = vst [vmem:[#allocation75_spill] sm:$0xff] %v7122_v11  ;;  %v7133_v3 = vpop.permute.xlu2 %2268  ;;  %v10922_v11 = vld [vmem:[#allocation78_spill] sm:$0xff] }
 0x138   : > { %10919 = vst [vmem:[#allocation227_spill] sm:$0xff] %v7133_v3  ;;  %v2042_v19 = vrot.slane %v10922_v11, 1  ;;  %v2050_v11 = vrot.slane %v6463_v23, 1  ;;  %v10940_v23 = vld [vmem:[#allocation97_spill] sm:$0xff] }
 0x139   : > { %10924 = vst [vmem:[#allocation78_spill] sm:$0xff] %v7142_v16 }
 0x13a   : > { %v7145_v26 = vsel %vm1948_vm4, %v2040_v30, %v2042_v19  ;;  %v2054_v19 = vrot.slane %v10929_v6, 1  ;;  %v10930_v30 = vld [vmem:[#allocation90_spill] sm:$0xff] }
 0x13b   : > { %10925 = vst [vmem:[#allocation228_spill] sm:$0xff] %v7145_v26  ;;  %v2055_v3 = vrot.slane %v10930_v30, 1 }
 0x13d   : > { %2340 = vrot.lane.b32.xlu2 %v7139_v40, %s5826_s19  ;;  %2342 = vrot.lane.b32.xlu0 %v7142_v16, %s5826_s19  ;;  %v2049_v40 = vrot.slane %v10931_v21, 1  ;;  %v7165_v16 = vsel %vm1948_vm4, %v2050_v11, %v2052_v60  ;;  %v10938_v60 = vld [vmem:[#allocation103_spill] sm:$0xff] }
 0x13e   : > { %v7151_v9 = vpop.permute.xlu0 %2256  ;;  %2338 = vrot.lane.b32.xlu1 %v7145_v26, %s5826_s19  ;;  %10933 = vst [vmem:[#allocation231_spill] sm:$0xff] %v7165_v16  ;;  %v2060_v7 = vrot.slane %v10938_v60, 1 }
 0x13f   : > { %10926 = vst [vmem:[#allocation229_spill] sm:$0xff] %v7151_v9  ;;  %v7157_v13 = vpop.permute.xlu2 %2274  ;;  %v7162_v0 = vpop.permute.xlu1 %2252  ;;  %v7168_v9 = vsel %vm1948_vm4, %v2054_v19, %v2055_v3  ;;  %v7171_v26 = vsel %vm1948_vm4, %v2049_v40, %v2050_v11  ;;  %v10939_v19 = vld [vmem:[#allocation99_spill] sm:$0xff]  ;;  %v2057_v40 = vrot.slane %v10940_v23, 1  ;;  %v10946_v23 = vld [vmem:[#allocation113_spill] sm:$0xff] }
 0x140   : > { %10928 = vst [vmem:[#allocation92_spill] sm:$0xff] %v7157_v13  ;;  %v2062_v2 = vrot.slane %v10939_v19, 1  ;;  %v2065_v19 = vrot.slane %v10946_v23, 1 }
 0x141   : > { %10932 = vst [vmem:[#allocation230_spill] sm:$0xff] %v7162_v0  ;;  %v2059_v0 = vrot.slane %v10936_v47, 1 }
 0x142   : > { %10934 = vst [vmem:[#allocation232_spill] sm:$0xff] %v7168_v9 }
 0x143   : > { %10935 = vst [vmem:[#allocation233_spill] sm:$0xff] %v7171_v26 }
 0x145   : > { %2346 = vrot.lane.b32.xlu2 %v7165_v16, %s5826_s19  ;;  %2348 = vrot.lane.b32.xlu0 %v7168_v9, %s5826_s19  ;;  %v7190_v16 = vsel %vm1948_vm4, %v2059_v0, %v2060_v7  ;;  %v7193_v9 = vsel %vm1948_vm4, %v2060_v7, %v2062_v2  ;;  %v10949_v2 = vld [vmem:[#allocation108_spill] sm:$0xff] }
 0x146   : > { %2344 = vrot.lane.b32.xlu1 %v7171_v26, %s5826_s19  ;;  %10943 = vst [vmem:[#allocation235_spill] sm:$0xff] %v7190_v16  ;;  %v7196_v26 = vsel %vm1948_vm4, %v2055_v3, %v2057_v40  ;;  %v2069_v7 = vrot.slane %v10949_v2, 1  ;;  %v10951_v40 = vld [vmem:[#allocation114_spill] sm:$0xff] }
 0x147   : > { %v7180_v13 = vpop.permute.xlu2 %2280  ;;  %v7185_v11 = vpop.permute.xlu0 %2262  ;;  %10944 = vst [vmem:[#allocation236_spill] sm:$0xff] %v7193_v9  ;;  %v2064_v47 = vrot.slane %v10951_v40, 1  ;;  %v10961_v2 = vld [vmem:[#allocation118_spill] sm:$0xff] }
 0x148   : > { %10937 = vst [vmem:[#allocation234_spill] sm:$0xff] %v7180_v13  ;;  %v7187_v30 = vpop.permute.xlu1 %2258  ;;  %v10950_v13 = vld [vmem:[#allocation110_spill] sm:$0xff] }
 0x149   : > { %10941 = vst [vmem:[#allocation99_spill] sm:$0xff] %v7185_v11  ;;  %v10947_v11 = vld [vmem:[#allocation112_spill] sm:$0xff]  ;;  %v2070_v3 = vrot.slane %v10950_v13, 1 }
 0x14a   : > { %10942 = vst [vmem:[#allocation97_spill] sm:$0xff] %v7187_v30  ;;  %v2067_v0 = vrot.slane %v10947_v11, 1  ;;  %v7222_v11 = vsel %vm1948_vm4, %v2064_v47, %v2065_v19  ;;  %v2072_v47 = vrot.slane %v10961_v2, 1  ;;  %v10967_v2 = vld [vmem:[#allocation136_spill] sm:$0xff] }
 0x14b   : > { %10945 = vst [vmem:[#allocation237_spill] sm:$0xff] %v7196_v26 }
 0x14c   : > { %10956 = vst [vmem:[#allocation242_spill] sm:$0xff] %v7222_v11 }
 0x14d   : > { %2352 = vrot.lane.b32.xlu2 %v7190_v16, %s5826_s19  ;;  %2354 = vrot.lane.b32.xlu0 %v7193_v9, %s5826_s19  ;;  %v7216_v9 = vsel %vm1948_vm4, %v2065_v19, %v2067_v0  ;;  %v10959_v0 = vld [vmem:[#allocation121_spill] sm:$0xff] }
 0x14e   : > { %2350 = vrot.lane.b32.xlu1 %v7196_v26, %s5826_s19  ;;  %10954 = vst [vmem:[#allocation240_spill] sm:$0xff] %v7216_v9  ;;  %v7219_v26 = vsel %vm1948_vm4, %v2069_v7, %v2070_v3  ;;  %v2075_v23 = vrot.slane %v10959_v0, 1  ;;  %v10960_v7 = vld [vmem:[#allocation119_spill] sm:$0xff] }
 0x14f   : > { %v7206_v30 = vpop.permute.xlu2 %2286  ;;  %v7211_v60 = vpop.permute.xlu0 %2270  ;;  %10955 = vst [vmem:[#allocation241_spill] sm:$0xff] %v7219_v26  ;;  %v2077_v13 = vrot.slane %v10960_v7, 1  ;;  %v2080_v7 = vrot.slane %v10967_v2, 1 }
 0x150   : > { %10948 = vst [vmem:[#allocation112_spill] sm:$0xff] %v7206_v30  ;;  %v7213_v16 = vpop.permute.xlu1 %5804  ;;  %v10957_v30 = vld [vmem:[#allocation123_spill] sm:$0xff] }
 0x151   : > { %10952 = vst [vmem:[#allocation238_spill] sm:$0xff] %v7211_v60  ;;  %v2074_v60 = vrot.slane %v10957_v30, 1 }
 0x152   : > { %10953 = vst [vmem:[#allocation239_spill] sm:$0xff] %v7213_v16 }
 0x155   : > { %2358 = vrot.lane.b32.xlu2 %v7216_v9, %s5826_s19  ;;  %2360 = vrot.lane.b32.xlu0 %v7219_v26, %s5826_s19  ;;  %v7241_v9 = vsel %vm1948_vm4, %v2074_v60, %v2075_v23  ;;  %v7244_v26 = vsel %vm1948_vm4, %v2075_v23, %v2077_v13  ;;  %v10970_v13 = vld [vmem:[#allocation129_spill] sm:$0xff] }
 0x156   : > { %2356 = vrot.lane.b32.xlu1 %v7222_v11, %s5826_s19  ;;  %10964 = vst [vmem:[#allocation244_spill] sm:$0xff] %v7241_v9  ;;  %v7247_v11 = vsel %vm1948_vm4, %v2070_v3, %v2072_v47  ;;  %v2084_v23 = vrot.slane %v10970_v13, 1  ;;  %v10972_v47 = vld [vmem:[#allocation137_spill] sm:$0xff]  ;;  %v10982_v13 = vld [vmem:[#allocation139_spill] sm:$0xff] }
 0x157   : > { %v7231_v16 = vpop.permute.xlu2 %2292  ;;  %v7236_v19 = vpop.permute.xlu0 %2276  ;;  %10965 = vst [vmem:[#allocation245_spill] sm:$0xff] %v7244_v26  ;;  %v2079_v30 = vrot.slane %v10972_v47, 1 }
 0x158   : > { %10958 = vst [vmem:[#allocation243_spill] sm:$0xff] %v7231_v16  ;;  %v7238_v40 = vpop.permute.xlu1 %2272  ;;  %v10968_v16 = vld [vmem:[#allocation132_spill] sm:$0xff] }
 0x159   : > { %10962 = vst [vmem:[#allocation119_spill] sm:$0xff] %v7236_v19  ;;  %v2082_v60 = vrot.slane %v10968_v16, 1  ;;  %v7273_v16 = vsel %vm1948_vm4, %v2079_v30, %v2080_v7  ;;  %v2087_v30 = vrot.slane %v10982_v13, 1  ;;  %v2095_v13 = vrot.slane %v6754_v61, 1 }
 0x15a   : > { %10963 = vst [vmem:[#allocation118_spill] sm:$0xff] %v7238_v40  ;;  %v10971_v40 = vld [vmem:[#allocation133_spill] sm:$0xff] }
 0x15b   : > { %10966 = vst [vmem:[#allocation246_spill] sm:$0xff] %v7247_v11  ;;  %v2085_v3 = vrot.slane %v10971_v40, 1 }
 0x15c   : > { %10977 = vst [vmem:[#allocation251_spill] sm:$0xff] %v7273_v16 }
 0x15d   : > { %2364 = vrot.lane.b32.xlu2 %v7241_v9, %s5826_s19  ;;  %2366 = vrot.lane.b32.xlu0 %v7244_v26, %s5826_s19  ;;  %v7267_v26 = vsel %vm1948_vm4, %v2080_v7, %v2082_v60  ;;  %v10980_v60 = vld [vmem:[#allocation147_spill] sm:$0xff] }
 0x15e   : > { %2362 = vrot.lane.b32.xlu1 %v7247_v11, %s5826_s19  ;;  %10975 = vst [vmem:[#allocation249_spill] sm:$0xff] %v7267_v26  ;;  %v7270_v11 = vsel %vm1948_vm4, %v2084_v23, %v2085_v3  ;;  %v2090_v2 = vrot.slane %v10980_v60, 1  ;;  %v10981_v23 = vld [vmem:[#allocation142_spill] sm:$0xff] }
 0x15f   : > { %v7257_v19 = vpop.permute.xlu2 %2298  ;;  %v7262_v0 = vpop.permute.xlu0 %2282  ;;  %10976 = vst [vmem:[#allocation250_spill] sm:$0xff] %v7270_v11  ;;  %v2092_v40 = vrot.slane %v10981_v23, 1 }
 0x160   : > { %10969 = vst [vmem:[#allocation132_spill] sm:$0xff] %v7257_v19  ;;  %v7264_v9 = vpop.permute.xlu1 %2278 }
 0x161   : > { %10973 = vst [vmem:[#allocation247_spill] sm:$0xff] %v7262_v0  ;;  %v10978_v0 = vld [vmem:[#allocation145_spill] sm:$0xff] }
 0x162   : > { %10974 = vst [vmem:[#allocation248_spill] sm:$0xff] %v7264_v9  ;;  %v2089_v9 = vrot.slane %v10978_v0, 1 }
 0x165   : > { %2370 = vrot.lane.b32.xlu2 %v7267_v26, %s5826_s19  ;;  %2372 = vrot.lane.b32.xlu0 %v7270_v11, %s5826_s19  ;;  %v7292_v26 = vsel %vm1948_vm4, %v2089_v9, %v2090_v2  ;;  %v7295_v11 = vsel %vm1948_vm4, %v2090_v2, %v2092_v40  ;;  %v2097_v9 = vrot.slane %v6745_v43, 1  ;;  %v2099_v40 = vrot.slane %v6725_v37, 1 }
 0x166   : > { %2368 = vrot.lane.b32.xlu1 %v7273_v16, %s5826_s19  ;;  %10985 = vst [vmem:[#allocation253_spill] sm:$0xff] %v7292_v26  ;;  %v7298_v16 = vsel %vm1948_vm4, %v2085_v3, %v2087_v30  ;;  %v2100_v2 = vrot.slane %v6748_v27, 1  ;;  %v2094_v3 = vrot.slane %v6758_v10, 1 }
 0x167   : > { %v7282_v19 = vpop.permute.xlu2 %2304  ;;  %v7287_v7 = vpop.permute.xlu0 %2288  ;;  %10986 = vst [vmem:[#allocation254_spill] sm:$0xff] %v7295_v11 }
 0x168   : > { %10979 = vst [vmem:[#allocation252_spill] sm:$0xff] %v7282_v19  ;;  %v7289_v47 = vpop.permute.xlu1 %2284  ;;  %v7321_v19 = vsel %vm1948_vm4, %v2099_v40, %v2100_v2  ;;  %v7324_v43 = vsel %vm1948_vm4, %v2094_v3, %v2095_v13  ;;  %v2107_v40 = vrot.slane %v6786_v39, 1 }
 0x169   : > { %10983 = vst [vmem:[#allocation142_spill] sm:$0xff] %v7287_v7 }
 0x16a   : > { %10984 = vst [vmem:[#allocation139_spill] sm:$0xff] %v7289_v47  ;;  %v7318_v47 = vsel %vm1948_vm4, %v2095_v13, %v2097_v9  ;;  %v2105_v9 = vrot.slane %v6803_v49, 1  ;;  %v2102_v13 = vrot.slane %v6771_v41, 1 }
 0x16b   : > { %10987 = vst [vmem:[#allocation255_spill] sm:$0xff] %v7298_v16 }
 0x16c   : > { %10991 = vst [vmem:[#allocation259_spill] sm:$0xff] %v7318_v47 }
 0x16d   : > { %2376 = vrot.lane.b32.xlu2 %v7292_v26, %s5826_s19  ;;  %2378 = vrot.lane.b32.xlu0 %v7295_v11, %s5826_s19  ;;  %10992 = vst [vmem:[#allocation260_spill] sm:$0xff] %v7321_v19 }
 0x16e   : > { %2374 = vrot.lane.b32.xlu1 %v7298_v16, %s5826_s19 }
 0x16f   : > { %v7308_v23 = vpop.permute.xlu2 %2310  ;;  %v7313_v30 = vpop.permute.xlu0 %2294 }
 0x170   : > { %10988 = vst [vmem:[#allocation256_spill] sm:$0xff] %v7308_v23  ;;  %v7315_v7 = vpop.permute.xlu1 %2290 }
 0x171   : > { %10989 = vst [vmem:[#allocation257_spill] sm:$0xff] %v7313_v30  ;;  %v2104_v30 = vrot.slane %v6790_v29, 1 }
 0x172   : > { %10990 = vst [vmem:[#allocation258_spill] sm:$0xff] %v7315_v7 }
 0x173   : > { %v7343_v11 = vsel %vm1948_vm4, %v2104_v30, %v2105_v9 }
 0x174   : > { %10996 = vst [vmem:[#allocation264_spill] sm:$0xff] %v7343_v11 }
 0x175   : > { %2382 = vrot.lane.b32.xlu2 %v7318_v47, %s5826_s19  ;;  %2384 = vrot.lane.b32.xlu0 %v7321_v19, %s5826_s19  ;;  %v7346_v19 = vsel %vm1948_vm4, %v2105_v9, %v2107_v40  ;;  %v7349_v47 = vsel %vm1948_vm4, %v2100_v2, %v2102_v13 }
 0x176   : > { %2380 = vrot.lane.b32.xlu1 %v7324_v43, %s5826_s19  ;;  %10997 = vst [vmem:[#allocation265_spill] sm:$0xff] %v7346_v19 }
 0x177   : > { %v7333_v7 = vpop.permute.xlu2 %2316  ;;  %v7338_v3 = vpop.permute.xlu0 %2300  ;;  %10998 = vst [vmem:[#allocation266_spill] sm:$0xff] %v7349_v47 }
 0x178   : > { %10993 = vst [vmem:[#allocation261_spill] sm:$0xff] %v7333_v7  ;;  %v7340_v23 = vpop.permute.xlu1 %2296 }
 0x179   : > { %10994 = vst [vmem:[#allocation262_spill] sm:$0xff] %v7338_v3 }
 0x17a   : > { %10995 = vst [vmem:[#allocation263_spill] sm:$0xff] %v7340_v23 }
 0x17d   : > { %2388 = vrot.lane.b32.xlu2 %v7343_v11, %s5826_s19  ;;  %2390 = vrot.lane.b32.xlu0 %v7346_v19, %s5826_s19 }
 0x17e   : > { %2386 = vrot.lane.b32.xlu1 %v7349_v47, %s5826_s19 }
 0x17f   : > { %v7357_v41 = vpop.permute.xlu2 %2322  ;;  %v7359_v39 = vpop.permute.xlu0 %2306 }
 0x180   : > { %10999 = vst [vmem:[#allocation267_spill] sm:$0xff] %v7357_v41  ;;  %v7361_v30 = vpop.permute.xlu1 %2302 }
 0x181   : > { %11000 = vst [vmem:[#allocation268_spill] sm:$0xff] %v7359_v39 }
 0x182   : > { %11001 = vst [vmem:[#allocation269_spill] sm:$0xff] %v7361_v30 }
 0x185   : > { %2394 = vrot.lane.b32.xlu2 %v5928_v53, %s5827_s20  ;;  %2396 = vrot.lane.b32.xlu0 %v5917_v46, %s5827_s20 }
 0x186   : > { %2392 = vrot.lane.b32.xlu1 %v5925_v52, %s5827_s20 }
 0x187   : > { %v7369_v2 = vpop.permute.xlu2 %2328  ;;  %v7371_v9 = vpop.permute.xlu0 %2312 }
 0x188   : > { %11002 = vst [vmem:[#allocation270_spill] sm:$0xff] %v7369_v2  ;;  %v7373_v40 = vpop.permute.xlu1 %2308 }
 0x189   : > { %11003 = vst [vmem:[#allocation271_spill] sm:$0xff] %v7371_v9 }
 0x18a   : > { %11004 = vst [vmem:[#allocation272_spill] sm:$0xff] %v7373_v40 }
 0x18d   : > { %2400 = vrot.lane.b32.xlu2 %v5938_v63, %s5827_s20  ;;  %2402 = vrot.lane.b32.xlu0 %v5942_v8, %s5827_s20 }
 0x18e   : > { %2398 = vrot.lane.b32.xlu1 %v5913_v45, %s5827_s20 }
 0x18f   : > { %v7381_v13 = vpop.permute.xlu2 %2334  ;;  %v7383_v41 = vpop.permute.xlu0 %2318 }
 0x190   : > { %11005 = vst [vmem:[#allocation273_spill] sm:$0xff] %v7381_v13  ;;  %v7385_v7 = vpop.permute.xlu1 %2314 }
 0x191   : > { %11006 = vst [vmem:[#allocation274_spill] sm:$0xff] %v7383_v41 }
 0x192   : > { %11007 = vst [vmem:[#allocation275_spill] sm:$0xff] %v7385_v7 }
 0x195   : > { %2406 = vrot.lane.b32.xlu2 %v5995_v58, %s5827_s20  ;;  %2408 = vrot.lane.b32.xlu0 %v6037_v57, %s5827_s20 }
 0x196   : > { %2404 = vrot.lane.b32.xlu1 %v5990_v51, %s5827_s20 }
 0x197   : > { %v7393_v9 = vpop.permute.xlu2 %2340  ;;  %v7395_v40 = vpop.permute.xlu0 %2324 }
 0x198   : > { %11008 = vst [vmem:[#allocation276_spill] sm:$0xff] %v7393_v9  ;;  %v7397_v39 = vpop.permute.xlu1 %2320 }
 0x199   : > { %11009 = vst [vmem:[#allocation277_spill] sm:$0xff] %v7395_v40 }
 0x19a   : > { %11010 = vst [vmem:[#allocation278_spill] sm:$0xff] %v7397_v39 }
 0x19d   : > { %2412 = vrot.lane.b32.xlu2 %v6011_v24, %s5827_s20  ;;  %2414 = vrot.lane.b32.xlu0 %v6020_v34, %s5827_s20 }
 0x19e   : > { %2410 = vrot.lane.b32.xlu1 %v6042_v59, %s5827_s20 }
 0x19f   : > { %v7405_v41 = vpop.permute.xlu2 %2346  ;;  %v7407_v7 = vpop.permute.xlu0 %2330 }
 0x1a0   : > { %11011 = vst [vmem:[#allocation279_spill] sm:$0xff] %v7405_v41  ;;  %v7409_v30 = vpop.permute.xlu1 %2326 }
 0x1a1   : > { %11012 = vst [vmem:[#allocation280_spill] sm:$0xff] %v7407_v7 }
 0x1a2   : > { %11013 = vst [vmem:[#allocation281_spill] sm:$0xff] %v7409_v30 }
 0x1a5   : > { %2418 = vrot.lane.b32.xlu2 %v6071_v42, %s5827_s20  ;;  %2420 = vrot.lane.b32.xlu0 %v6126_v25, %s5827_s20 }
 0x1a6   : > { %2416 = vrot.lane.b32.xlu1 %v6075_v50, %s5827_s20 }
 0x1a7   : > { %v7417_v40 = vpop.permute.xlu2 %2352  ;;  %v7419_v39 = vpop.permute.xlu0 %2336 }
 0x1a8   : > { %11014 = vst [vmem:[#allocation282_spill] sm:$0xff] %v7417_v40  ;;  %v7421_v9 = vpop.permute.xlu1 %2332 }
 0x1a9   : > { %11015 = vst [vmem:[#allocation283_spill] sm:$0xff] %v7419_v39 }
 0x1aa   : > { %11016 = vst [vmem:[#allocation284_spill] sm:$0xff] %v7421_v9 }
 0x1ad   : > { %2424 = vrot.lane.b32.xlu2 %v6095_v38, %s5827_s20  ;;  %2426 = vrot.lane.b32.xlu0 %v6113_v36, %s5827_s20 }
 0x1ae   : > { %2422 = vrot.lane.b32.xlu1 %v6122_v14, %s5827_s20 }
 0x1af   : > { %v7429_v30 = vpop.permute.xlu2 %2358  ;;  %v7431_v41 = vpop.permute.xlu0 %2342 }
 0x1b0   : > { %11017 = vst [vmem:[#allocation285_spill] sm:$0xff] %v7429_v30  ;;  %v7433_v13 = vpop.permute.xlu1 %2338 }
 0x1b1   : > { %11018 = vst [vmem:[#allocation286_spill] sm:$0xff] %v7431_v41 }
 0x1b2   : > { %11019 = vst [vmem:[#allocation287_spill] sm:$0xff] %v7433_v13 }
 0x1b5   : > { %2430 = vrot.lane.b32.xlu2 %v6155_v5, %s5827_s20  ;;  %2432 = vrot.lane.b32.xlu0 %v10871_v56, %s5827_s20 }
 0x1b6   : > { %2428 = vrot.lane.b32.xlu1 %v6159_v4, %s5827_s20 }
 0x1b7   : > { %v7441_v40 = vpop.permute.xlu2 %2364  ;;  %v7443_v39 = vpop.permute.xlu0 %2348 }
 0x1b8   : > { %11020 = vst [vmem:[#allocation288_spill] sm:$0xff] %v7441_v40  ;;  %v7445_v53 = vpop.permute.xlu1 %2344 }
 0x1b9   : > { %11021 = vst [vmem:[#allocation289_spill] sm:$0xff] %v7443_v39 }
 0x1ba   : > { %11022 = vst [vmem:[#allocation290_spill] sm:$0xff] %v7445_v53 }
 0x1bd   : > { %2436 = vrot.lane.b32.xlu2 %v10868_v62, %s5827_s20  ;;  %2438 = vrot.lane.b32.xlu0 %v10869_v15, %s5827_s20 }
 0x1be   : > { %2434 = vrot.lane.b32.xlu1 %v10866_v20, %s5827_s20 }
 0x1bf   : > { %v7453_v30 = vpop.permute.xlu2 %2370  ;;  %v7455_v41 = vpop.permute.xlu0 %2354 }
 0x1c0   : > { %11023 = vst [vmem:[#allocation291_spill] sm:$0xff] %v7453_v30  ;;  %v7457_v13 = vpop.permute.xlu1 %2350 }
 0x1c1   : > { %11024 = vst [vmem:[#allocation292_spill] sm:$0xff] %v7455_v41 }
 0x1c2   : > { %11025 = vst [vmem:[#allocation293_spill] sm:$0xff] %v7457_v13 }
 0x1c5   : > { %2442 = vrot.lane.b32.xlu2 %v10878_v12, %s5827_s20  ;;  %2444 = vrot.lane.b32.xlu0 %v10891_v22, %s5827_s20 }
 0x1c6   : > { %2440 = vrot.lane.b32.xlu1 %v10877_v35, %s5827_s20 }
 0x1c7   : > { %v7465_v39 = vpop.permute.xlu2 %2376  ;;  %v7467_v53 = vpop.permute.xlu0 %2360 }
 0x1c8   : > { %11026 = vst [vmem:[#allocation294_spill] sm:$0xff] %v7465_v39  ;;  %v7469_v3 = vpop.permute.xlu1 %2356 }
 0x1c9   : > { %11027 = vst [vmem:[#allocation295_spill] sm:$0xff] %v7467_v53 }
 0x1ca   : > { %11028 = vst [vmem:[#allocation296_spill] sm:$0xff] %v7469_v3 }
 0x1cd   : > { %2448 = vrot.lane.b32.xlu2 %v10889_v48, %s5827_s20  ;;  %2450 = vrot.lane.b32.xlu0 %v10890_v17, %s5827_s20 }
 0x1ce   : > { %2446 = vrot.lane.b32.xlu1 %v10887_v33, %s5827_s20 }
 0x1cf   : > { %v7477_v41 = vpop.permute.xlu2 %2382  ;;  %v7479_v13 = vpop.permute.xlu0 %2366 }
 0x1d0   : > { %11029 = vst [vmem:[#allocation297_spill] sm:$0xff] %v7477_v41  ;;  %v7481_v30 = vpop.permute.xlu1 %2362 }
 0x1d1   : > { %11030 = vst [vmem:[#allocation298_spill] sm:$0xff] %v7479_v13 }
 0x1d2   : > { %11031 = vst [vmem:[#allocation299_spill] sm:$0xff] %v7481_v30 }
 0x1d5   : > { %2454 = vrot.lane.b32.xlu2 %v10899_v18, %s5827_s20  ;;  %2456 = vrot.lane.b32.xlu0 %v10912_v54, %s5827_s20 }
 0x1d6   : > { %2452 = vrot.lane.b32.xlu1 %v10897_v1, %s5827_s20 }
 0x1d7   : > { %v7489_v3 = vpop.permute.xlu2 %2388  ;;  %v7491_v39 = vpop.permute.xlu0 %2372 }
 0x1d8   : > { %11032 = vst [vmem:[#allocation300_spill] sm:$0xff] %v7489_v3  ;;  %v7493_v9 = vpop.permute.xlu1 %2368 }
 0x1d9   : > { %11033 = vst [vmem:[#allocation301_spill] sm:$0xff] %v7491_v39 }
 0x1da   : > { %11034 = vst [vmem:[#allocation302_spill] sm:$0xff] %v7493_v9 }
 0x1dd   : > { %2460 = vrot.lane.b32.xlu2 %v10910_v55, %s5827_s20  ;;  %2462 = vrot.lane.b32.xlu0 %v10911_v44, %s5827_s20 }
 0x1de   : > { %2458 = vrot.lane.b32.xlu1 %v10907_v32, %s5827_s20 }
 0x1df   : > { %v7501_v41 = vpop.permute.xlu2 %2394  ;;  %v7503_v13 = vpop.permute.xlu0 %2378 }
 0x1e0   : > { %11035 = vst [vmem:[#allocation303_spill] sm:$0xff] %v7501_v41  ;;  %v7505_v52 = vpop.permute.xlu1 %2374 }
 0x1e1   : > { %11036 = vst [vmem:[#allocation304_spill] sm:$0xff] %v7503_v13  ;;  %v11041_v13 = vld [vmem:[#allocation90_spill] sm:$0xff] }
 0x1e2   : > { %11037 = vst [vmem:[#allocation305_spill] sm:$0xff] %v7505_v52  ;;  %v11042_v52 = vld [vmem:[#allocation93_spill] sm:$0xff] }
 0x1e5   : > { %2466 = vrot.lane.b32.xlu2 %v10920_v28, %s5827_s20  ;;  %2468 = vrot.lane.b32.xlu0 %v10931_v21, %s5827_s20 }
 0x1e6   : > { %2464 = vrot.lane.b32.xlu1 %v10918_v31, %s5827_s20 }
 0x1e7   : > { %v7513_v3 = vpop.permute.xlu2 %2400  ;;  %v7515_v39 = vpop.permute.xlu0 %2384 }
 0x1e8   : > { %11038 = vst [vmem:[#allocation306_spill] sm:$0xff] %v7513_v3  ;;  %v7517_v9 = vpop.permute.xlu1 %2380  ;;  %v11046_v3 = vld [vmem:[#allocation103_spill] sm:$0xff] }
 0x1e9   : > { %11039 = vst [vmem:[#allocation307_spill] sm:$0xff] %v7515_v39  ;;  %v11047_v39 = vld [vmem:[#allocation114_spill] sm:$0xff] }
 0x1ea   : > { %11040 = vst [vmem:[#allocation308_spill] sm:$0xff] %v7517_v9  ;;  %v11048_v9 = vld [vmem:[#allocation102_spill] sm:$0xff] }
 0x1ed   : > { %2472 = vrot.lane.b32.xlu2 %v10929_v6, %s5827_s20  ;;  %2474 = vrot.lane.b32.xlu0 %v11041_v13, %s5827_s20 }
 0x1ee   : > { %2470 = vrot.lane.b32.xlu1 %v11042_v52, %s5827_s20 }
 0x1ef   : > { %v7525_v40 = vpop.permute.xlu2 %2406  ;;  %v7527_v41 = vpop.permute.xlu0 %2390 }
 0x1f0   : > { %11043 = vst [vmem:[#allocation309_spill] sm:$0xff] %v7525_v40  ;;  %v7529_v7 = vpop.permute.xlu1 %2386  ;;  %v11052_v40 = vld [vmem:[#allocation108_spill] sm:$0xff] }
 0x1f1   : > { %11044 = vst [vmem:[#allocation310_spill] sm:$0xff] %v7527_v41  ;;  %v11053_v41 = vld [vmem:[#allocation110_spill] sm:$0xff] }
 0x1f2   : > { %11045 = vst [vmem:[#allocation311_spill] sm:$0xff] %v7529_v7  ;;  %v11054_v7 = vld [vmem:[#allocation113_spill] sm:$0xff] }
 0x1f5   : > { %2478 = vrot.lane.b32.xlu2 %v11046_v3, %s5827_s20  ;;  %2480 = vrot.lane.b32.xlu0 %v11047_v39, %s5827_s20 }
 0x1f6   : > { %2476 = vrot.lane.b32.xlu1 %v11048_v9, %s5827_s20 }
 0x1f7   : > { %v7537_v30 = vpop.permute.xlu2 %2412  ;;  %v7539_v23 = vpop.permute.xlu0 %2396 }
 0x1f8   : > { %11049 = vst [vmem:[#allocation312_spill] sm:$0xff] %v7537_v30  ;;  %v7541_v53 = vpop.permute.xlu1 %2392  ;;  %v11058_v30 = vld [vmem:[#allocation121_spill] sm:$0xff] }
 0x1f9   : > { %11050 = vst [vmem:[#allocation313_spill] sm:$0xff] %v7539_v23  ;;  %v11059_v23 = vld [vmem:[#allocation137_spill] sm:$0xff] }
 0x1fa   : > { %11051 = vst [vmem:[#allocation314_spill] sm:$0xff] %v7541_v53  ;;  %v11060_v53 = vld [vmem:[#allocation123_spill] sm:$0xff] }
 0x1fd   : > { %2484 = vrot.lane.b32.xlu2 %v11052_v40, %s5827_s20  ;;  %2486 = vrot.lane.b32.xlu0 %v11053_v41, %s5827_s20 }
 0x1fe   : > { %2482 = vrot.lane.b32.xlu1 %v11054_v7, %s5827_s20 }
 0x1ff   : > { %v7549_v2 = vpop.permute.xlu2 %2418  ;;  %v7551_v39 = vpop.permute.xlu0 %2402 }
 0x200   : > { %11055 = vst [vmem:[#allocation315_spill] sm:$0xff] %v7549_v2  ;;  %v7553_v13 = vpop.permute.xlu1 %2398  ;;  %v11064_v2 = vld [vmem:[#allocation129_spill] sm:$0xff] }
 0x201   : > { %11056 = vst [vmem:[#allocation316_spill] sm:$0xff] %v7551_v39  ;;  %v11065_v39 = vld [vmem:[#allocation133_spill] sm:$0xff] }
 0x202   : > { %11057 = vst [vmem:[#allocation317_spill] sm:$0xff] %v7553_v13  ;;  %v11066_v13 = vld [vmem:[#allocation136_spill] sm:$0xff] }
 0x205   : > { %2490 = vrot.lane.b32.xlu2 %v11058_v30, %s5827_s20  ;;  %2492 = vrot.lane.b32.xlu0 %v11059_v23, %s5827_s20 }
 0x206   : > { %2488 = vrot.lane.b32.xlu1 %v11060_v53, %s5827_s20 }
 0x207   : > { %v7561_v41 = vpop.permute.xlu2 %2424  ;;  %v7563_v40 = vpop.permute.xlu0 %2408 }
 0x208   : > { %11061 = vst [vmem:[#allocation318_spill] sm:$0xff] %v7561_v41  ;;  %v7565_v7 = vpop.permute.xlu1 %2404  ;;  %v5775_v41 = vld [vmem:[%s5892_s17 + $0x1f0] sm:$0xff] }
 0x209   : > { %11062 = vst [vmem:[#allocation319_spill] sm:$0xff] %v7563_v40 }
 0x20a   : > { %11063 = vst [vmem:[#allocation320_spill] sm:$0xff] %v7565_v7  ;;  %v1095_v7 = vshrl.u32 %v5775_v41, 16 }
 0x20d   : > { %2496 = vrot.lane.b32.xlu2 %v11064_v2, %s5827_s20  ;;  %2498 = vrot.lane.b32.xlu0 %v11065_v39, %s5827_s20  ;;  %v1098_v2 = vshll.u32 %v5775_v41, 16 }
 0x20e   : > { %2494 = vrot.lane.b32.xlu1 %v11066_v13, %s5827_s20 }
 0x20f   : > { %v7573_v23 = vpop.permute.xlu2 %2430  ;;  %v7575_v30 = vpop.permute.xlu0 %2414 }
 0x210   : > { %11067 = vst [vmem:[#allocation321_spill] sm:$0xff] %v7573_v23  ;;  %v7577_v53 = vpop.permute.xlu1 %2410 }
 0x211   : > { %11068 = vst [vmem:[#allocation322_spill] sm:$0xff] %v7575_v30  ;;  %v1097_v30 = vrot.slane %v1095_v7, 7  ;;  %v11203_v7 = vld [vmem:[#allocation167_spill] sm:$0xff] }
 0x212   : > { %11069 = vst [vmem:[#allocation323_spill] sm:$0xff] %v7577_v53  ;;  %v5776_v53 = vld [vmem:[%s5892_s17 + $0x1f8] sm:$0xff] }
 0x215   : > { %2502 = vrot.lane.b32.xlu2 %v10980_v60, %s5827_s20  ;;  %2504 = vrot.lane.b32.xlu0 %v6758_v10, %s5827_s20  ;;  %v1102_v60 = vshrl.u32 %v5776_v53, 16 }
 0x216   : > { %2500 = vrot.lane.b32.xlu1 %v10978_v0, %s5827_s20 }
 0x217   : > { %v7586_v40 = vpop.permute.xlu2 %2436  ;;  %v7588_v39 = vpop.permute.xlu0 %2420 }
 0x218   : > { %11070 = vst [vmem:[#allocation324_spill] sm:$0xff] %v7586_v40  ;;  %v7590_v23 = vpop.permute.xlu1 %2416  ;;  %v1100_v40 = vor.u32 %v1098_v2, %v1097_v30 }
 0x219   : > { %11071 = vst [vmem:[#allocation325_spill] sm:$0xff] %v7588_v39 }
 0x21a   : > { %11072 = vst [vmem:[#allocation326_spill] sm:$0xff] %v7590_v23  ;;  %v7607_v41 = vsel %vm5865_vm2, 0, %v1100_v40  ;;  %v7609_v23 = vrot.slane %v1102_v60, 7 }
 0x21b   : > { %11077 = vst [vmem:[#allocation3_spill] sm:$0xff] %v7607_v41 }
 0x21d   : > { %2508 = vrot.lane.b32.xlu2 %v6725_v37, %s5827_s20  ;;  %2510 = vrot.lane.b32.xlu0 %v6748_v27, %s5827_s20  ;;  %v1105_v37 = vshll.u32 %v5776_v53, 16  ;;  %v11082_v53 = vld [vmem:[#allocation13_spill] sm:$0xff] }
 0x21e   : > { %2506 = vrot.lane.b32.xlu1 %v6754_v61, %s5827_s20 }
 0x21f   : > { %v7599_v10 = vpop.permute.xlu2 %2442  ;;  %v7601_v0 = vpop.permute.xlu0 %2426 }
 0x220   : > { %11073 = vst [vmem:[#allocation327_spill] sm:$0xff] %v7599_v10  ;;  %v7603_v39 = vpop.permute.xlu1 %2422 }
 0x221   : > { %11074 = vst [vmem:[#allocation328_spill] sm:$0xff] %v7601_v0 }
 0x222   : > { %11075 = vst [vmem:[#allocation329_spill] sm:$0xff] %v7603_v39  ;;  %v1107_v39 = vor.u32 %v1105_v37, %v7609_v23 }
 0x224   : > { %v7625_v60 = vsel %vm620_vm0, %v1097_v30, %v1107_v39  ;;  %v11088_v39 = vld [vmem:[#allocation15_spill] sm:$0xff]  ;;  %v11089_v30 = vld [vmem:[#allocation12_spill] sm:$0xff] }
 0x225   : > { %2514 = vrot.lane.b32.xlu2 %v6803_v49, %s5827_s20  ;;  %2516 = vrot.lane.b32.xlu0 %v7607_v41, %s5827_s20  ;;  %11081 = vst [vmem:[#allocation333_spill] sm:$0xff] %v7625_v60  ;;  %v11083_v49 = vld [vmem:[#allocation16_spill] sm:$0xff] }
 0x226   : > { %2512 = vrot.lane.b32.xlu1 %v6790_v29, %s5827_s20 }
 0x227   : > { %v7617_v2 = vpop.permute.xlu2 %2448  ;;  %v7620_v10 = vpop.permute.xlu0 %2432 }
 0x228   : > { %11078 = vst [vmem:[#allocation330_spill] sm:$0xff] %v7617_v2  ;;  %v7622_v40 = vpop.permute.xlu1 %2428 }
 0x229   : > { %11079 = vst [vmem:[#allocation331_spill] sm:$0xff] %v7620_v10  ;;  %v11087_v10 = vld [vmem:[#allocation14_spill] sm:$0xff] }
 0x22a   : > { %11080 = vst [vmem:[#allocation332_spill] sm:$0xff] %v7622_v40 }
 0x22d   : > { %2520 = vrot.lane.b32.xlu2 %v11082_v53, %s5828_s21  ;;  %2522 = vrot.lane.b32.xlu0 %v11083_v49, %s5828_s21 }
 0x22e   : > { %2518 = vrot.lane.b32.xlu1 %v7625_v60, %s5827_s20 }
 0x22f   : > { %v7633_v2 = vpop.permute.xlu2 %2454  ;;  %v7635_v37 = vpop.permute.xlu0 %2438 }
 0x230   : > { %11084 = vst [vmem:[#allocation13_spill] sm:$0xff] %v7633_v2  ;;  %v7637_v29 = vpop.permute.xlu1 %2434  ;;  %v11093_v2 = vld [vmem:[#allocation21_spill] sm:$0xff] }
 0x231   : > { %11085 = vst [vmem:[#allocation16_spill] sm:$0xff] %v7635_v37  ;;  %v11094_v37 = vld [vmem:[#allocation23_spill] sm:$0xff] }
 0x232   : > { %11086 = vst [vmem:[#allocation334_spill] sm:$0xff] %v7637_v29  ;;  %v11095_v29 = vld [vmem:[#allocation19_spill] sm:$0xff] }
 0x235   : > { %2526 = vrot.lane.b32.xlu2 %v11087_v10, %s5828_s21  ;;  %2528 = vrot.lane.b32.xlu0 %v11088_v39, %s5828_s21 }
 0x236   : > { %2524 = vrot.lane.b32.xlu1 %v11089_v30, %s5828_s21 }
 0x237   : > { %v7645_v53 = vpop.permute.xlu2 %2460  ;;  %v7647_v49 = vpop.permute.xlu0 %2444 }
 0x238   : > { %11090 = vst [vmem:[#allocation335_spill] sm:$0xff] %v7645_v53  ;;  %v7649_v27 = vpop.permute.xlu1 %2440  ;;  %v11099_v53 = vld [vmem:[#allocation30_spill] sm:$0xff] }
 0x239   : > { %11091 = vst [vmem:[#allocation336_spill] sm:$0xff] %v7647_v49  ;;  %v11100_v49 = vld [vmem:[#allocation26_spill] sm:$0xff] }
 0x23a   : > { %11092 = vst [vmem:[#allocation337_spill] sm:$0xff] %v7649_v27  ;;  %v11101_v27 = vld [vmem:[#allocation27_spill] sm:$0xff] }
 0x23d   : > { %2532 = vrot.lane.b32.xlu2 %v11093_v2, %s5828_s21  ;;  %2534 = vrot.lane.b32.xlu0 %v11094_v37, %s5828_s21 }
 0x23e   : > { %2530 = vrot.lane.b32.xlu1 %v11095_v29, %s5828_s21 }
 0x23f   : > { %v7657_v40 = vpop.permute.xlu2 %2466  ;;  %v7659_v61 = vpop.permute.xlu0 %2450 }
 0x240   : > { %11096 = vst [vmem:[#allocation338_spill] sm:$0xff] %v7657_v40  ;;  %v7661_v0 = vpop.permute.xlu1 %2446  ;;  %v11105_v40 = vld [vmem:[#allocation33_spill] sm:$0xff] }
 0x241   : > { %11097 = vst [vmem:[#allocation339_spill] sm:$0xff] %v7659_v61  ;;  %v11106_v61 = vld [vmem:[#allocation32_spill] sm:$0xff] }
 0x242   : > { %11098 = vst [vmem:[#allocation340_spill] sm:$0xff] %v7661_v0  ;;  %v11107_v0 = vld [vmem:[#allocation31_spill] sm:$0xff] }
 0x245   : > { %2538 = vrot.lane.b32.xlu2 %v11099_v53, %s5828_s21  ;;  %2540 = vrot.lane.b32.xlu0 %v11100_v49, %s5828_s21 }
 0x246   : > { %2536 = vrot.lane.b32.xlu1 %v11101_v27, %s5828_s21 }
 0x247   : > { %v7669_v2 = vpop.permute.xlu2 %2472  ;;  %v7671_v37 = vpop.permute.xlu0 %2456 }
 0x248   : > { %11102 = vst [vmem:[#allocation341_spill] sm:$0xff] %v7669_v2  ;;  %v7673_v29 = vpop.permute.xlu1 %2452  ;;  %v11111_v2 = vld [vmem:[#allocation36_spill] sm:$0xff] }
 0x249   : > { %11103 = vst [vmem:[#allocation342_spill] sm:$0xff] %v7671_v37 }
 0x24a   : > { %11104 = vst [vmem:[#allocation343_spill] sm:$0xff] %v7673_v29  ;;  %v11112_v29 = vld [vmem:[#allocation35_spill] sm:$0xff] }
 0x24d   : > { %2544 = vrot.lane.b32.xlu2 %v11105_v40, %s5828_s21  ;;  %2546 = vrot.lane.b32.xlu0 %v11106_v61, %s5828_s21  ;;  %v11113_v40 = vld [vmem:[#allocation38_spill] sm:$0xff] }
 0x24e   : > { %2542 = vrot.lane.b32.xlu1 %v11107_v0, %s5828_s21 }
 0x24f   : > { %v7681_v53 = vpop.permute.xlu2 %2478  ;;  %v7683_v49 = vpop.permute.xlu0 %2462 }
 0x250   : > { %11108 = vst [vmem:[#allocation344_spill] sm:$0xff] %v7681_v53  ;;  %v7685_v27 = vpop.permute.xlu1 %2458  ;;  %v11117_v53 = vld [vmem:[#allocation42_spill] sm:$0xff] }
 0x251   : > { %11109 = vst [vmem:[#allocation345_spill] sm:$0xff] %v7683_v49  ;;  %v11118_v49 = vld [vmem:[#allocation41_spill] sm:$0xff] }
 0x252   : > { %11110 = vst [vmem:[#allocation346_spill] sm:$0xff] %v7685_v27 }
 0x255   : > { %2550 = vrot.lane.b32.xlu2 %v11111_v2, %s5828_s21  ;;  %2552 = vrot.lane.b32.xlu0 %v11112_v29, %s5828_s21  ;;  %v11119_v2 = vld [vmem:[#allocation39_spill] sm:$0xff] }
 0x256   : > { %2548 = vrot.lane.b32.xlu1 %v11113_v40, %s5828_s21 }
 0x257   : > { %v7693_v37 = vpop.permute.xlu2 %2484  ;;  %v7695_v61 = vpop.permute.xlu0 %2468 }
 0x258   : > { %11114 = vst [vmem:[#allocation347_spill] sm:$0xff] %v7693_v37  ;;  %v7697_v0 = vpop.permute.xlu1 %2464  ;;  %v11123_v37 = vld [vmem:[#allocation50_spill] sm:$0xff] }
 0x259   : > { %11115 = vst [vmem:[#allocation348_spill] sm:$0xff] %v7695_v61  ;;  %v11124_v61 = vld [vmem:[#allocation47_spill] sm:$0xff] }
 0x25a   : > { %11116 = vst [vmem:[#allocation349_spill] sm:$0xff] %v7697_v0  ;;  %v11125_v0 = vld [vmem:[#allocation53_spill] sm:$0xff] }
 0x25d   : > { %2556 = vrot.lane.b32.xlu2 %v11117_v53, %s5828_s21  ;;  %2558 = vrot.lane.b32.xlu0 %v11118_v49, %s5828_s21  ;;  %v2110_v53 = vshrl.u32 %v7607_v41, 16 }
 0x25e   : > { %2554 = vrot.lane.b32.xlu1 %v11119_v2, %s5828_s21 }
 0x25f   : > { %v7705_v27 = vpop.permute.xlu2 %2490  ;;  %v7707_v29 = vpop.permute.xlu0 %2474 }
 0x260   : > { %11120 = vst [vmem:[#allocation350_spill] sm:$0xff] %v7705_v27  ;;  %v7709_v40 = vpop.permute.xlu1 %2470  ;;  %v11129_v27 = vld [vmem:[#allocation57_spill] sm:$0xff] }
 0x261   : > { %11121 = vst [vmem:[#allocation351_spill] sm:$0xff] %v7707_v29  ;;  %v11130_v29 = vld [vmem:[#allocation55_spill] sm:$0xff] }
 0x262   : > { %11122 = vst [vmem:[#allocation352_spill] sm:$0xff] %v7709_v40  ;;  %v11131_v40 = vld [vmem:[#allocation54_spill] sm:$0xff] }
 0x265   : > { %2562 = vrot.lane.b32.xlu2 %v11123_v37, %s5828_s21  ;;  %2564 = vrot.lane.b32.xlu0 %v11124_v61, %s5828_s21 }
 0x266   : > { %2560 = vrot.lane.b32.xlu1 %v11125_v0, %s5828_s21 }
 0x267   : > { %v7717_v39 = vpop.permute.xlu2 %2496  ;;  %v7719_v49 = vpop.permute.xlu0 %2480 }
 0x268   : > { %11126 = vst [vmem:[#allocation353_spill] sm:$0xff] %v7717_v39  ;;  %v7721_v2 = vpop.permute.xlu1 %2476  ;;  %v11135_v39 = vld [vmem:[#allocation65_spill] sm:$0xff] }
 0x269   : > { %11127 = vst [vmem:[#allocation354_spill] sm:$0xff] %v7719_v49  ;;  %v11136_v49 = vld [vmem:[#allocation62_spill] sm:$0xff] }
 0x26a   : > { %11128 = vst [vmem:[#allocation355_spill] sm:$0xff] %v7721_v2  ;;  %v11137_v2 = vld [vmem:[#allocation68_spill] sm:$0xff] }
 0x26d   : > { %2568 = vrot.lane.b32.xlu2 %v11129_v27, %s5828_s21  ;;  %2570 = vrot.lane.b32.xlu0 %v11130_v29, %s5828_s21 }
 0x26e   : > { %2566 = vrot.lane.b32.xlu1 %v11131_v40, %s5828_s21 }
 0x26f   : > { %v7729_v37 = vpop.permute.xlu2 %2502  ;;  %v7731_v61 = vpop.permute.xlu0 %2486 }
 0x270   : > { %11132 = vst [vmem:[#allocation356_spill] sm:$0xff] %v7729_v37  ;;  %v7733_v0 = vpop.permute.xlu1 %2482  ;;  %v11141_v37 = vld [vmem:[#allocation72_spill] sm:$0xff] }
 0x271   : > { %11133 = vst [vmem:[#allocation357_spill] sm:$0xff] %v7731_v61  ;;  %v11142_v61 = vld [vmem:[#allocation70_spill] sm:$0xff] }
 0x272   : > { %11134 = vst [vmem:[#allocation358_spill] sm:$0xff] %v7733_v0  ;;  %v11143_v0 = vld [vmem:[#allocation69_spill] sm:$0xff] }
 0x275   : > { %2574 = vrot.lane.b32.xlu2 %v11135_v39, %s5828_s21  ;;  %2576 = vrot.lane.b32.xlu0 %v11136_v49, %s5828_s21 }
 0x276   : > { %2572 = vrot.lane.b32.xlu1 %v11137_v2, %s5828_s21 }
 0x277   : > { %v7741_v27 = vpop.permute.xlu2 %2508  ;;  %v7743_v29 = vpop.permute.xlu0 %2492 }
 0x278   : > { %11138 = vst [vmem:[#allocation359_spill] sm:$0xff] %v7741_v27  ;;  %v7745_v40 = vpop.permute.xlu1 %2488  ;;  %v11147_v27 = vld [vmem:[#allocation82_spill] sm:$0xff] }
 0x279   : > { %11139 = vst [vmem:[#allocation360_spill] sm:$0xff] %v7743_v29  ;;  %v11148_v29 = vld [vmem:[#allocation77_spill] sm:$0xff] }
 0x27a   : > { %11140 = vst [vmem:[#allocation361_spill] sm:$0xff] %v7745_v40 }
 0x27d   : > { %2580 = vrot.lane.b32.xlu2 %v11141_v37, %s5828_s21  ;;  %2582 = vrot.lane.b32.xlu0 %v11142_v61, %s5828_s21  ;;  %v11149_v37 = vld [vmem:[#allocation80_spill] sm:$0xff] }
 0x27e   : > { %2578 = vrot.lane.b32.xlu1 %v11143_v0, %s5828_s21 }
 0x27f   : > { %v7753_v39 = vpop.permute.xlu2 %2514  ;;  %v7755_v49 = vpop.permute.xlu0 %2498 }
 0x280   : > { %11144 = vst [vmem:[#allocation362_spill] sm:$0xff] %v7753_v39  ;;  %v7757_v2 = vpop.permute.xlu1 %2494  ;;  %v11153_v39 = vld [vmem:[#allocation86_spill] sm:$0xff] }
 0x281   : > { %11145 = vst [vmem:[#allocation363_spill] sm:$0xff] %v7755_v49  ;;  %v11154_v49 = vld [vmem:[#allocation89_spill] sm:$0xff] }
 0x282   : > { %11146 = vst [vmem:[#allocation364_spill] sm:$0xff] %v7757_v2 }
 0x285   : > { %2586 = vrot.lane.b32.xlu2 %v11147_v27, %s5828_s21  ;;  %2588 = vrot.lane.b32.xlu0 %v11148_v29, %s5828_s21  ;;  %v11155_v27 = vld [vmem:[#allocation87_spill] sm:$0xff] }
 0x286   : > { %2584 = vrot.lane.b32.xlu1 %v11149_v37, %s5828_s21 }
 0x287   : > { %v7765_v40 = vpop.permute.xlu2 %2520  ;;  %v7767_v61 = vpop.permute.xlu0 %2504 }
 0x288   : > { %11150 = vst [vmem:[#allocation365_spill] sm:$0xff] %v7765_v40  ;;  %v7769_v0 = vpop.permute.xlu1 %2500  ;;  %v11159_v40 = vld [vmem:[#allocation98_spill] sm:$0xff] }
 0x289   : > { %11151 = vst [vmem:[#allocation366_spill] sm:$0xff] %v7767_v61  ;;  %v11160_v61 = vld [vmem:[#allocation95_spill] sm:$0xff] }
 0x28a   : > { %11152 = vst [vmem:[#allocation367_spill] sm:$0xff] %v7769_v0  ;;  %v11161_v0 = vld [vmem:[#allocation101_spill] sm:$0xff] }
 0x28d   : > { %2592 = vrot.lane.b32.xlu2 %v11153_v39, %s5828_s21  ;;  %2594 = vrot.lane.b32.xlu0 %v11154_v49, %s5828_s21 }
 0x28e   : > { %2590 = vrot.lane.b32.xlu1 %v11155_v27, %s5828_s21 }
 0x28f   : > { %v7777_v2 = vpop.permute.xlu2 %2526  ;;  %v7779_v10 = vpop.permute.xlu0 %2510 }
 0x290   : > { %11156 = vst [vmem:[#allocation368_spill] sm:$0xff] %v7777_v2  ;;  %v7781_v37 = vpop.permute.xlu1 %2506  ;;  %v11165_v2 = vld [vmem:[#allocation107_spill] sm:$0xff] }
 0x291   : > { %11157 = vst [vmem:[#allocation369_spill] sm:$0xff] %v7779_v10  ;;  %v11166_v10 = vld [vmem:[#allocation109_spill] sm:$0xff] }
 0x292   : > { %11158 = vst [vmem:[#allocation370_spill] sm:$0xff] %v7781_v37  ;;  %v11167_v37 = vld [vmem:[#allocation106_spill] sm:$0xff] }
 0x295   : > { %2598 = vrot.lane.b32.xlu2 %v11159_v40, %s5828_s21  ;;  %2600 = vrot.lane.b32.xlu0 %v11160_v61, %s5828_s21 }
 0x296   : > { %2596 = vrot.lane.b32.xlu1 %v11161_v0, %s5828_s21 }
 0x297   : > { %v7789_v39 = vpop.permute.xlu2 %2532  ;;  %v7791_v49 = vpop.permute.xlu0 %2516 }
 0x298   : > { %11162 = vst [vmem:[#allocation371_spill] sm:$0xff] %v7789_v39  ;;  %v7793_v27 = vpop.permute.xlu1 %2512  ;;  %v11171_v39 = vld [vmem:[#allocation120_spill] sm:$0xff] }
 0x299   : > { %11163 = vst [vmem:[#allocation372_spill] sm:$0xff] %v7791_v49  ;;  %v11172_v49 = vld [vmem:[#allocation117_spill] sm:$0xff] }
 0x29a   : > { %11164 = vst [vmem:[#allocation373_spill] sm:$0xff] %v7793_v27  ;;  %v11173_v27 = vld [vmem:[#allocation124_spill] sm:$0xff] }
 0x29d   : > { %2604 = vrot.lane.b32.xlu2 %v11165_v2, %s5828_s21  ;;  %2606 = vrot.lane.b32.xlu0 %v11166_v10, %s5828_s21 }
 0x29e   : > { %2602 = vrot.lane.b32.xlu1 %v11167_v37, %s5828_s21 }
 0x29f   : > { %v7801_v40 = vpop.permute.xlu2 %2538  ;;  %v7803_v61 = vpop.permute.xlu0 %2522 }
 0x2a0   : > { %11168 = vst [vmem:[#allocation374_spill] sm:$0xff] %v7801_v40  ;;  %v7805_v0 = vpop.permute.xlu1 %2518  ;;  %v11177_v40 = vld [vmem:[#allocation130_spill] sm:$0xff] }
 0x2a1   : > { %11169 = vst [vmem:[#allocation375_spill] sm:$0xff] %v7803_v61 }
 0x2a2   : > { %11170 = vst [vmem:[#allocation376_spill] sm:$0xff] %v7805_v0  ;;  %v11178_v0 = vld [vmem:[#allocation128_spill] sm:$0xff] }
 0x2a5   : > { %2610 = vrot.lane.b32.xlu2 %v11171_v39, %s5828_s21  ;;  %2612 = vrot.lane.b32.xlu0 %v11172_v49, %s5828_s21  ;;  %v11179_v39 = vld [vmem:[#allocation127_spill] sm:$0xff] }
 0x2a6   : > { %2608 = vrot.lane.b32.xlu1 %v11173_v27, %s5828_s21 }
 0x2a7   : > { %v7813_v2 = vpop.permute.xlu2 %2544  ;;  %v7815_v10 = vpop.permute.xlu0 %2528 }
 0x2a8   : > { %11174 = vst [vmem:[#allocation377_spill] sm:$0xff] %v7813_v2  ;;  %v7817_v37 = vpop.permute.xlu1 %2524  ;;  %v11183_v2 = vld [vmem:[#allocation141_spill] sm:$0xff] }
 0x2a9   : > { %11175 = vst [vmem:[#allocation378_spill] sm:$0xff] %v7815_v10  ;;  %v11184_v10 = vld [vmem:[#allocation138_spill] sm:$0xff] }
 0x2aa   : > { %11176 = vst [vmem:[#allocation379_spill] sm:$0xff] %v7817_v37 }
 0x2ad   : > { %2616 = vrot.lane.b32.xlu2 %v11177_v40, %s5828_s21  ;;  %2618 = vrot.lane.b32.xlu0 %v11178_v0, %s5828_s21  ;;  %v11185_v40 = vld [vmem:[#allocation144_spill] sm:$0xff] }
 0x2ae   : > { %2614 = vrot.lane.b32.xlu1 %v11179_v39, %s5828_s21 }
 0x2af   : > { %v7825_v61 = vpop.permute.xlu2 %2550  ;;  %v7827_v49 = vpop.permute.xlu0 %2534 }
 0x2b0   : > { %11180 = vst [vmem:[#allocation380_spill] sm:$0xff] %v7825_v61  ;;  %v7829_v27 = vpop.permute.xlu1 %2530  ;;  %v11189_v61 = vld [vmem:[#allocation150_spill] sm:$0xff] }
 0x2b1   : > { %11181 = vst [vmem:[#allocation381_spill] sm:$0xff] %v7827_v49  ;;  %v11190_v49 = vld [vmem:[#allocation152_spill] sm:$0xff] }
 0x2b2   : > { %11182 = vst [vmem:[#allocation382_spill] sm:$0xff] %v7829_v27  ;;  %v11191_v27 = vld [vmem:[#allocation149_spill] sm:$0xff] }
 0x2b5   : > { %2622 = vrot.lane.b32.xlu2 %v11183_v2, %s5828_s21  ;;  %2624 = vrot.lane.b32.xlu0 %v11184_v10, %s5828_s21 }
 0x2b6   : > { %2620 = vrot.lane.b32.xlu1 %v11185_v40, %s5828_s21 }
 0x2b7   : > { %v7837_v37 = vpop.permute.xlu2 %2556  ;;  %v7839_v0 = vpop.permute.xlu0 %2540 }
 0x2b8   : > { %11186 = vst [vmem:[#allocation383_spill] sm:$0xff] %v7837_v37  ;;  %v7841_v39 = vpop.permute.xlu1 %2536  ;;  %v11195_v37 = vld [vmem:[#allocation162_spill] sm:$0xff] }
 0x2b9   : > { %11187 = vst [vmem:[#allocation384_spill] sm:$0xff] %v7839_v0  ;;  %v11196_v0 = vld [vmem:[#allocation159_spill] sm:$0xff] }
 0x2ba   : > { %11188 = vst [vmem:[#allocation385_spill] sm:$0xff] %v7841_v39  ;;  %v11197_v39 = vld [vmem:[#allocation164_spill] sm:$0xff] }
 0x2bd   : > { %2628 = vrot.lane.b32.xlu2 %v11189_v61, %s5828_s21  ;;  %2630 = vrot.lane.b32.xlu0 %v11190_v49, %s5828_s21  ;;  %v2117_v49 = vshll.u32 %v7625_v60, 16 }
 0x2be   : > { %2626 = vrot.lane.b32.xlu1 %v11191_v27, %s5828_s21 }
 0x2bf   : > { %v7849_v2 = vpop.permute.xlu2 %2562  ;;  %v7851_v10 = vpop.permute.xlu0 %2546  ;;  %v2119_v27 = vrot.slane %v2117_v49, 1 }
 0x2c0   : > { %11192 = vst [vmem:[#allocation386_spill] sm:$0xff] %v7849_v2  ;;  %v7853_v30 = vpop.permute.xlu1 %2542  ;;  %v7867_v2 = vsel %vm5865_vm2, %v7609_v23, 0  ;;  %v11202_v23 = vld [vmem:[#allocation171_spill] sm:$0xff] }
 0x2c1   : > { %11193 = vst [vmem:[#allocation387_spill] sm:$0xff] %v7851_v10  ;;  %v2112_v10 = vshll.u32 %v7607_v41, 16 }
 0x2c2   : > { %11194 = vst [vmem:[#allocation388_spill] sm:$0xff] %v7853_v30 }
 0x2c3   : > { %v2114_v40 = vrot.slane %v2112_v10, 1 }
 0x2c5   : > { %2634 = vrot.lane.b32.xlu2 %v11195_v37, %s5828_s21  ;;  %2636 = vrot.lane.b32.xlu0 %v11196_v0, %s5828_s21  ;;  %v2121_v0 = vshrl.u32 %v7625_v60, 16  ;;  %v2115_v49 = vor.u32 %v2114_v40, %v2110_v53 }
 0x2c6   : > { %2632 = vrot.lane.b32.xlu1 %v11197_v39, %s5828_s21  ;;  %v2125_v39 = vshll.u32 %v7867_v2, 16 }
 0x2c7   : > { %v7862_v61 = vpop.permute.xlu2 %2568  ;;  %v7870_v30 = vpop.permute.xlu0 %2552 }
 0x2c8   : > { %11198 = vst [vmem:[#allocation389_spill] sm:$0xff] %v7862_v61  ;;  %v7872_v37 = vpop.permute.xlu1 %2548  ;;  %v11201_v61 = vld [vmem:[#allocation168_spill] sm:$0xff]  ;;  %v2127_v29 = vrot.slane %v2125_v39, 1 }
 0x2c9   : > { %11199 = vst [vmem:[#allocation390_spill] sm:$0xff] %v7870_v30  ;;  %v2123_v30 = vor.u32 %v2121_v0, %v2119_v27  ;;  %v11209_v0 = vld [vmem:[#allocation175_spill] sm:$0xff] }
 0x2ca   : > { %11200 = vst [vmem:[#allocation391_spill] sm:$0xff] %v7872_v37 }
 0x2cb   : > { %v7890_v10 = vsel %vm1243_vm3, %v2123_v30, %v2127_v29  ;;  %v11213_v29 = vld [vmem:[#allocation182_spill] sm:$0xff]  ;;  %v11215_v30 = vld [vmem:[#allocation176_spill] sm:$0xff] }
 0x2cc   : > { %11207 = vst [vmem:[#allocation395_spill] sm:$0xff] %v7890_v10 }
 0x2cd   : > { %2640 = vrot.lane.b32.xlu2 %v11201_v61, %s5828_s21  ;;  %2642 = vrot.lane.b32.xlu0 %v11202_v23, %s5828_s21  ;;  %v7893_v61 = vsel %vm1243_vm3, %v2115_v49, %v2119_v27  ;;  %v11214_v27 = vld [vmem:[#allocation180_spill] sm:$0xff] }
 0x2ce   : > { %2638 = vrot.lane.b32.xlu1 %v11203_v7, %s5828_s21  ;;  %11208 = vst [vmem:[#allocation396_spill] sm:$0xff] %v7893_v61 }
 0x2cf   : > { %v7883_v37 = vpop.permute.xlu2 %2574  ;;  %v7885_v13 = vpop.permute.xlu0 %2558 }
 0x2d0   : > { %11204 = vst [vmem:[#allocation392_spill] sm:$0xff] %v7883_v37  ;;  %v7887_v3 = vpop.permute.xlu1 %2554 }
 0x2d1   : > { %11205 = vst [vmem:[#allocation393_spill] sm:$0xff] %v7885_v13 }
 0x2d2   : > { %11206 = vst [vmem:[#allocation394_spill] sm:$0xff] %v7887_v3 }
 0x2d5   : > { %2646 = vrot.lane.b32.xlu2 %v7890_v10, %s5828_s21  ;;  %2648 = vrot.lane.b32.xlu0 %v11209_v0, %s5829_s22  ;;  %v11220_v10 = vld [vmem:[#allocation185_spill] sm:$0xff] }
 0x2d6   : > { %2644 = vrot.lane.b32.xlu1 %v7893_v61, %s5828_s21  ;;  %v11221_v61 = vld [vmem:[#allocation181_spill] sm:$0xff] }
 0x2d7   : > { %v7901_v40 = vpop.permute.xlu2 %2580  ;;  %v7903_v39 = vpop.permute.xlu0 %2564 }
 0x2d8   : > { %11210 = vst [vmem:[#allocation175_spill] sm:$0xff] %v7901_v40  ;;  %v7905_v53 = vpop.permute.xlu1 %2560  ;;  %v11219_v40 = vld [vmem:[#allocation188_spill] sm:$0xff] }
 0x2d9   : > { %11211 = vst [vmem:[#allocation397_spill] sm:$0xff] %v7903_v39 }
 0x2da   : > { %11212 = vst [vmem:[#allocation398_spill] sm:$0xff] %v7905_v53  ;;  %v11225_v53 = vld [vmem:[#allocation193_spill] sm:$0xff] }
 0x2dd   : > { %2652 = vrot.lane.b32.xlu2 %v11213_v29, %s5829_s22  ;;  %2654 = vrot.lane.b32.xlu0 %v11214_v27, %s5829_s22 }
 0x2de   : > { %2650 = vrot.lane.b32.xlu1 %v11215_v30, %s5829_s22 }
 0x2df   : > { %v7913_v49 = vpop.permute.xlu2 %2586  ;;  %v7915_v0 = vpop.permute.xlu0 %2570 }
 0x2e0   : > { %11216 = vst [vmem:[#allocation182_spill] sm:$0xff] %v7913_v49  ;;  %v7917_v37 = vpop.permute.xlu1 %2566 }
 0x2e1   : > { %11217 = vst [vmem:[#allocation180_spill] sm:$0xff] %v7915_v0  ;;  %v11226_v0 = vld [vmem:[#allocation191_spill] sm:$0xff] }
 0x2e2   : > { %11218 = vst [vmem:[#allocation176_spill] sm:$0xff] %v7917_v37  ;;  %v11227_v37 = vld [vmem:[#allocation187_spill] sm:$0xff] }
 0x2e5   : > { %2658 = vrot.lane.b32.xlu2 %v11219_v40, %s5829_s22  ;;  %2660 = vrot.lane.b32.xlu0 %v11220_v10, %s5829_s22 }
 0x2e6   : > { %2656 = vrot.lane.b32.xlu1 %v11221_v61, %s5829_s22 }
 0x2e7   : > { %v7925_v39 = vpop.permute.xlu2 %2592  ;;  %v7927_v23 = vpop.permute.xlu0 %2576 }
 0x2e8   : > { %11222 = vst [vmem:[#allocation399_spill] sm:$0xff] %v7925_v39  ;;  %v7929_v30 = vpop.permute.xlu1 %2572  ;;  %v11231_v39 = vld [vmem:[#allocation199_spill] sm:$0xff] }
 0x2e9   : > { %11223 = vst [vmem:[#allocation400_spill] sm:$0xff] %v7927_v23  ;;  %v11232_v23 = vld [vmem:[#allocation197_spill] sm:$0xff] }
 0x2ea   : > { %11224 = vst [vmem:[#allocation401_spill] sm:$0xff] %v7929_v30  ;;  %v11233_v30 = vld [vmem:[#allocation192_spill] sm:$0xff] }
 0x2ed   : > { %2664 = vrot.lane.b32.xlu2 %v11225_v53, %s5829_s22  ;;  %2666 = vrot.lane.b32.xlu0 %v11226_v0, %s5829_s22 }
 0x2ee   : > { %2662 = vrot.lane.b32.xlu1 %v11227_v37, %s5829_s22 }
 0x2ef   : > { %v7937_v7 = vpop.permute.xlu2 %2598  ;;  %v7939_v13 = vpop.permute.xlu0 %2582 }
 0x2f0   : > { %11228 = vst [vmem:[#allocation402_spill] sm:$0xff] %v7937_v7  ;;  %v7941_v3 = vpop.permute.xlu1 %2578  ;;  %v11237_v7 = vld [vmem:[#allocation205_spill] sm:$0xff] }
 0x2f1   : > { %11229 = vst [vmem:[#allocation403_spill] sm:$0xff] %v7939_v13  ;;  %v11238_v13 = vld [vmem:[#allocation202_spill] sm:$0xff] }
 0x2f2   : > { %11230 = vst [vmem:[#allocation404_spill] sm:$0xff] %v7941_v3  ;;  %v11239_v3 = vld [vmem:[#allocation198_spill] sm:$0xff] }
 0x2f5   : > { %2670 = vrot.lane.b32.xlu2 %v11231_v39, %s5829_s22  ;;  %2672 = vrot.lane.b32.xlu0 %v11232_v23, %s5829_s22 }
 0x2f6   : > { %2668 = vrot.lane.b32.xlu1 %v11233_v30, %s5829_s22 }
 0x2f7   : > { %v7949_v53 = vpop.permute.xlu2 %2604  ;;  %v7951_v0 = vpop.permute.xlu0 %2588 }
 0x2f8   : > { %11234 = vst [vmem:[#allocation405_spill] sm:$0xff] %v7949_v53  ;;  %v7953_v49 = vpop.permute.xlu1 %2584  ;;  %v11243_v53 = vld [vmem:[#allocation210_spill] sm:$0xff] }
 0x2f9   : > { %11235 = vst [vmem:[#allocation406_spill] sm:$0xff] %v7951_v0  ;;  %v11244_v0 = vld [vmem:[#allocation207_spill] sm:$0xff] }
 0x2fa   : > { %11236 = vst [vmem:[#allocation407_spill] sm:$0xff] %v7953_v49 }
 0x2fd   : > { %2676 = vrot.lane.b32.xlu2 %v11237_v7, %s5829_s22  ;;  %2678 = vrot.lane.b32.xlu0 %v11238_v13, %s5829_s22  ;;  %v11245_v7 = vld [vmem:[#allocation204_spill] sm:$0xff] }
 0x2fe   : > { %2674 = vrot.lane.b32.xlu1 %v11239_v3, %s5829_s22 }
 0x2ff   : > { %v7961_v39 = vpop.permute.xlu2 %2610  ;;  %v7963_v23 = vpop.permute.xlu0 %2594 }
 0x300   : > { %11240 = vst [vmem:[#allocation408_spill] sm:$0xff] %v7961_v39  ;;  %v7965_v30 = vpop.permute.xlu1 %2590  ;;  %v11249_v39 = vld [vmem:[#allocation214_spill] sm:$0xff] }
 0x301   : > { %11241 = vst [vmem:[#allocation409_spill] sm:$0xff] %v7963_v23  ;;  %v11250_v23 = vld [vmem:[#allocation212_spill] sm:$0xff] }
 0x302   : > { %11242 = vst [vmem:[#allocation410_spill] sm:$0xff] %v7965_v30 }
 0x305   : > { %2682 = vrot.lane.b32.xlu2 %v11243_v53, %s5829_s22  ;;  %2684 = vrot.lane.b32.xlu0 %v11244_v0, %s5829_s22  ;;  %v11251_v53 = vld [vmem:[#allocation209_spill] sm:$0xff] }
 0x306   : > { %2680 = vrot.lane.b32.xlu1 %v11245_v7, %s5829_s22 }
 0x307   : > { %v7973_v37 = vpop.permute.xlu2 %2616  ;;  %v7975_v13 = vpop.permute.xlu0 %2600 }
 0x308   : > { %11246 = vst [vmem:[#allocation207_spill] sm:$0xff] %v7973_v37  ;;  %v7977_v3 = vpop.permute.xlu1 %2596  ;;  %v11255_v37 = vld [vmem:[#allocation217_spill] sm:$0xff] }
 0x309   : > { %11247 = vst [vmem:[#allocation411_spill] sm:$0xff] %v7975_v13  ;;  %v11256_v13 = vld [vmem:[#allocation48_spill] sm:$0xff] }
 0x30a   : > { %11248 = vst [vmem:[#allocation412_spill] sm:$0xff] %v7977_v3  ;;  %v11257_v3 = vld [vmem:[#allocation213_spill] sm:$0xff] }
 0x30d   : > { %2688 = vrot.lane.b32.xlu2 %v11249_v39, %s5829_s22  ;;  %2690 = vrot.lane.b32.xlu0 %v11250_v23, %s5829_s22 }
 0x30e   : > { %2686 = vrot.lane.b32.xlu1 %v11251_v53, %s5829_s22 }
 0x30f   : > { %v7985_v30 = vpop.permute.xlu2 %2622  ;;  %v7987_v49 = vpop.permute.xlu0 %2606 }
 0x310   : > { %11252 = vst [vmem:[#allocation209_spill] sm:$0xff] %v7985_v30  ;;  %v7989_v7 = vpop.permute.xlu1 %2602  ;;  %v11261_v30 = vld [vmem:[#allocation222_spill] sm:$0xff] }
 0x311   : > { %11253 = vst [vmem:[#allocation413_spill] sm:$0xff] %v7987_v49  ;;  %v11262_v49 = vld [vmem:[#allocation220_spill] sm:$0xff] }
 0x312   : > { %11254 = vst [vmem:[#allocation414_spill] sm:$0xff] %v7989_v7  ;;  %v11263_v7 = vld [vmem:[#allocation216_spill] sm:$0xff] }
 0x315   : > { %2694 = vrot.lane.b32.xlu2 %v11255_v37, %s5829_s22  ;;  %2696 = vrot.lane.b32.xlu0 %v11256_v13, %s5829_s22 }
 0x316   : > { %2692 = vrot.lane.b32.xlu1 %v11257_v3, %s5829_s22 }
 0x317   : > { %v7997_v10 = vpop.permute.xlu2 %2628  ;;  %v7999_v23 = vpop.permute.xlu0 %2612 }
 0x318   : > { %11258 = vst [vmem:[#allocation415_spill] sm:$0xff] %v7997_v10  ;;  %v8001_v40 = vpop.permute.xlu1 %2608  ;;  %v11267_v10 = vld [vmem:[#allocation224_spill] sm:$0xff] }
 0x319   : > { %11259 = vst [vmem:[#allocation416_spill] sm:$0xff] %v7999_v23  ;;  %v11268_v23 = vld [vmem:[#allocation66_spill] sm:$0xff] }
 0x31a   : > { %11260 = vst [vmem:[#allocation417_spill] sm:$0xff] %v8001_v40  ;;  %v11269_v40 = vld [vmem:[#allocation221_spill] sm:$0xff] }
 0x31d   : > { %2700 = vrot.lane.b32.xlu2 %v11261_v30, %s5829_s22  ;;  %2702 = vrot.lane.b32.xlu0 %v11262_v49, %s5829_s22 }
 0x31e   : > { %2698 = vrot.lane.b32.xlu1 %v11263_v7, %s5829_s22 }
 0x31f   : > { %v8009_v37 = vpop.permute.xlu2 %2634  ;;  %v8011_v13 = vpop.permute.xlu0 %2618 }
 0x320   : > { %11264 = vst [vmem:[#allocation418_spill] sm:$0xff] %v8009_v37  ;;  %v8013_v3 = vpop.permute.xlu1 %2614  ;;  %v11273_v37 = vld [vmem:[#allocation73_spill] sm:$0xff] }
 0x321   : > { %11265 = vst [vmem:[#allocation419_spill] sm:$0xff] %v8011_v13 }
 0x322   : > { %11266 = vst [vmem:[#allocation420_spill] sm:$0xff] %v8013_v3  ;;  %v11274_v3 = vld [vmem:[#allocation74_spill] sm:$0xff] }
 0x325   : > { %2706 = vrot.lane.b32.xlu2 %v11267_v10, %s5829_s22  ;;  %2708 = vrot.lane.b32.xlu0 %v11268_v23, %s5829_s22  ;;  %v11275_v10 = vld [vmem:[#allocation64_spill] sm:$0xff] }
 0x326   : > { %2704 = vrot.lane.b32.xlu1 %v11269_v40, %s5829_s22 }
 0x327   : > { %v8021_v30 = vpop.permute.xlu2 %2640  ;;  %v8023_v49 = vpop.permute.xlu0 %2624 }
 0x328   : > { %11270 = vst [vmem:[#allocation421_spill] sm:$0xff] %v8021_v30  ;;  %v8025_v7 = vpop.permute.xlu1 %2620  ;;  %v11279_v30 = vld [vmem:[#allocation228_spill] sm:$0xff] }
 0x329   : > { %11271 = vst [vmem:[#allocation422_spill] sm:$0xff] %v8023_v49  ;;  %v11280_v49 = vld [vmem:[#allocation81_spill] sm:$0xff] }
 0x32a   : > { %11272 = vst [vmem:[#allocation423_spill] sm:$0xff] %v8025_v7 }
 0x32d   : > { %2712 = vrot.lane.b32.xlu2 %v11273_v37, %s5829_s22  ;;  %2714 = vrot.lane.b32.xlu0 %v11274_v3, %s5829_s22  ;;  %v11281_v37 = vld [vmem:[#allocation71_spill] sm:$0xff] }
 0x32e   : > { %2710 = vrot.lane.b32.xlu1 %v11275_v10, %s5829_s22 }
 0x32f   : > { %v8033_v13 = vpop.permute.xlu2 %2646  ;;  %v8035_v23 = vpop.permute.xlu0 %2630 }
 0x330   : > { %11276 = vst [vmem:[#allocation424_spill] sm:$0xff] %v8033_v13  ;;  %v8037_v40 = vpop.permute.xlu1 %2626  ;;  %v11285_v13 = vld [vmem:[#allocation233_spill] sm:$0xff] }
 0x331   : > { %11277 = vst [vmem:[#allocation425_spill] sm:$0xff] %v8035_v23  ;;  %v11286_v23 = vld [vmem:[#allocation231_spill] sm:$0xff] }
 0x332   : > { %11278 = vst [vmem:[#allocation426_spill] sm:$0xff] %v8037_v40  ;;  %v11287_v40 = vld [vmem:[#allocation78_spill] sm:$0xff] }
 0x335   : > { %2718 = vrot.lane.b32.xlu2 %v11279_v30, %s5829_s22  ;;  %2720 = vrot.lane.b32.xlu0 %v11280_v49, %s5829_s22 }
 0x336   : > { %2716 = vrot.lane.b32.xlu1 %v11281_v37, %s5829_s22 }
 0x337   : > { %v8045_v7 = vpop.permute.xlu2 %2652  ;;  %v8047_v3 = vpop.permute.xlu0 %2636 }
 0x338   : > { %11282 = vst [vmem:[#allocation228_spill] sm:$0xff] %v8045_v7  ;;  %v8049_v10 = vpop.permute.xlu1 %2632  ;;  %v11291_v7 = vld [vmem:[#allocation237_spill] sm:$0xff] }
 0x339   : > { %11283 = vst [vmem:[#allocation71_spill] sm:$0xff] %v8047_v3  ;;  %v11292_v3 = vld [vmem:[#allocation235_spill] sm:$0xff] }
 0x33a   : > { %11284 = vst [vmem:[#allocation427_spill] sm:$0xff] %v8049_v10  ;;  %v11293_v10 = vld [vmem:[#allocation232_spill] sm:$0xff] }
 0x33d   : > { %2724 = vrot.lane.b32.xlu2 %v11285_v13, %s5829_s22  ;;  %2726 = vrot.lane.b32.xlu0 %v11286_v23, %s5829_s22 }
 0x33e   : > { %2722 = vrot.lane.b32.xlu1 %v11287_v40, %s5829_s22 }
 0x33f   : > { %v8057_v39 = vpop.permute.xlu2 %2658  ;;  %v8059_v61 = vpop.permute.xlu0 %2642 }
 0x340   : > { %11288 = vst [vmem:[#allocation428_spill] sm:$0xff] %v8057_v39  ;;  %v8061_v49 = vpop.permute.xlu1 %2638  ;;  %v11297_v39 = vld [vmem:[#allocation242_spill] sm:$0xff] }
 0x341   : > { %11289 = vst [vmem:[#allocation429_spill] sm:$0xff] %v8059_v61  ;;  %v11298_v61 = vld [vmem:[#allocation240_spill] sm:$0xff] }
 0x342   : > { %11290 = vst [vmem:[#allocation430_spill] sm:$0xff] %v8061_v49  ;;  %v11299_v49 = vld [vmem:[#allocation236_spill] sm:$0xff] }
 0x345   : > { %2730 = vrot.lane.b32.xlu2 %v11291_v7, %s5829_s22  ;;  %2732 = vrot.lane.b32.xlu0 %v11292_v3, %s5829_s22 }
 0x346   : > { %2728 = vrot.lane.b32.xlu1 %v11293_v10, %s5829_s22 }
 0x347   : > { %v8069_v13 = vpop.permute.xlu2 %2664  ;;  %v8071_v23 = vpop.permute.xlu0 %2648 }
 0x348   : > { %11294 = vst [vmem:[#allocation431_spill] sm:$0xff] %v8069_v13  ;;  %v8073_v40 = vpop.permute.xlu1 %2644  ;;  %v11303_v13 = vld [vmem:[#allocation246_spill] sm:$0xff] }
 0x349   : > { %11295 = vst [vmem:[#allocation432_spill] sm:$0xff] %v8071_v23 }
 0x34a   : > { %11296 = vst [vmem:[#allocation433_spill] sm:$0xff] %v8073_v40  ;;  %v11304_v40 = vld [vmem:[#allocation244_spill] sm:$0xff] }
 0x34d   : > { %2736 = vrot.lane.b32.xlu2 %v11297_v39, %s5829_s22  ;;  %2738 = vrot.lane.b32.xlu0 %v11298_v61, %s5829_s22  ;;  %v11305_v39 = vld [vmem:[#allocation241_spill] sm:$0xff] }
 0x34e   : > { %2734 = vrot.lane.b32.xlu1 %v11299_v49, %s5829_s22 }
 0x34f   : > { %v8081_v7 = vpop.permute.xlu2 %2670  ;;  %v8083_v3 = vpop.permute.xlu0 %2654 }
 0x350   : > { %11300 = vst [vmem:[#allocation434_spill] sm:$0xff] %v8081_v7  ;;  %v8085_v10 = vpop.permute.xlu1 %2650  ;;  %v11309_v7 = vld [vmem:[#allocation251_spill] sm:$0xff] }
 0x351   : > { %11301 = vst [vmem:[#allocation435_spill] sm:$0xff] %v8083_v3  ;;  %v11310_v3 = vld [vmem:[#allocation249_spill] sm:$0xff] }
 0x352   : > { %11302 = vst [vmem:[#allocation436_spill] sm:$0xff] %v8085_v10 }
 0x355   : > { %2742 = vrot.lane.b32.xlu2 %v11303_v13, %s5829_s22  ;;  %2744 = vrot.lane.b32.xlu0 %v11304_v40, %s5829_s22  ;;  %v11311_v13 = vld [vmem:[#allocation245_spill] sm:$0xff] }
 0x356   : > { %2740 = vrot.lane.b32.xlu1 %v11305_v39, %s5829_s22 }
 0x357   : > { %v8093_v23 = vpop.permute.xlu2 %2676  ;;  %v8095_v61 = vpop.permute.xlu0 %2660 }
 0x358   : > { %11306 = vst [vmem:[#allocation437_spill] sm:$0xff] %v8093_v23  ;;  %v8097_v49 = vpop.permute.xlu1 %2656  ;;  %v11315_v23 = vld [vmem:[#allocation250_spill] sm:$0xff] }
 0x359   : > { %11307 = vst [vmem:[#allocation438_spill] sm:$0xff] %v8095_v61 }
 0x35a   : > { %11308 = vst [vmem:[#allocation439_spill] sm:$0xff] %v8097_v49 }
 0x35d   : > { %2748 = vrot.lane.b32.xlu2 %v11309_v7, %s5829_s22  ;;  %2750 = vrot.lane.b32.xlu0 %v11310_v3, %s5829_s22 }
 0x35e   : > { %2746 = vrot.lane.b32.xlu1 %v11311_v13, %s5829_s22 }
 0x35f   : > { %v8105_v10 = vpop.permute.xlu2 %2682  ;;  %v8107_v40 = vpop.permute.xlu0 %2666 }
 0x360   : > { %11312 = vst [vmem:[#allocation251_spill] sm:$0xff] %v8105_v10  ;;  %v8109_v39 = vpop.permute.xlu1 %2662 }
 0x361   : > { %11313 = vst [vmem:[#allocation249_spill] sm:$0xff] %v8107_v40  ;;  %v11319_v40 = vld [vmem:[#allocation259_spill] sm:$0xff] }
 0x362   : > { %11314 = vst [vmem:[#allocation440_spill] sm:$0xff] %v8109_v39  ;;  %v11320_v39 = vld [vmem:[#allocation254_spill] sm:$0xff] }
 0x365   : > { %2754 = vrot.lane.b32.xlu2 %v7298_v16, %s5829_s22  ;;  %2756 = vrot.lane.b32.xlu0 %v7292_v26, %s5829_s22 }
 0x366   : > { %2752 = vrot.lane.b32.xlu1 %v11315_v23, %s5829_s22 }
 0x367   : > { %v8117_v61 = vpop.permute.xlu2 %2688  ;;  %v8119_v49 = vpop.permute.xlu0 %2672 }
 0x368   : > { %11316 = vst [vmem:[#allocation250_spill] sm:$0xff] %v8117_v61  ;;  %v8121_v13 = vpop.permute.xlu1 %2668 }
 0x369   : > { %11317 = vst [vmem:[#allocation441_spill] sm:$0xff] %v8119_v49  ;;  %v11324_v49 = vld [vmem:[#allocation260_spill] sm:$0xff] }
 0x36a   : > { %11318 = vst [vmem:[#allocation442_spill] sm:$0xff] %v8121_v13  ;;  %v2131_v13 = vrot.slane %v7607_v41, 1  ;;  %v11361_v41 = vld [vmem:[#allocation113_spill] sm:$0xff] }
 0x36d   : > { %2760 = vrot.lane.b32.xlu2 %v7324_v43, %s5829_s22  ;;  %2762 = vrot.lane.b32.xlu0 %v11319_v40, %s5829_s22  ;;  %v2132_v40 = vrot.slane %v7625_v60, 1 }
 0x36e   : > { %2758 = vrot.lane.b32.xlu1 %v11320_v39, %s5829_s22 }
 0x36f   : > { %v8129_v10 = vpop.permute.xlu2 %2694  ;;  %v8131_v26 = vpop.permute.xlu0 %2678 }
 0x370   : > { %11321 = vst [vmem:[#allocation254_spill] sm:$0xff] %v8129_v10  ;;  %v8133_v16 = vpop.permute.xlu1 %2674  ;;  %v2134_v10 = vrot.slane %v7867_v2, 1 }
 0x371   : > { %11322 = vst [vmem:[#allocation443_spill] sm:$0xff] %v8131_v26 }
 0x372   : > { %11323 = vst [vmem:[#allocation444_spill] sm:$0xff] %v8133_v16 }
 0x375   : > { %2766 = vrot.lane.b32.xlu2 %v7349_v47, %s5829_s22  ;;  %2768 = vrot.lane.b32.xlu0 %v7343_v11, %s5829_s22  ;;  %v8151_v47 = vsel %vm1948_vm4, %v2131_v13, %v2132_v40  ;;  %v8154_v11 = vsel %vm1948_vm4, %v2132_v40, %v2134_v10 }
 0x376   : > { %2764 = vrot.lane.b32.xlu1 %v11324_v49, %s5829_s22  ;;  %11326 = vst [vmem:[#allocation445_spill] sm:$0xff] %v8151_v47 }
 0x377   : > { %v8142_v61 = vpop.permute.xlu2 %2700  ;;  %v8146_v26 = vpop.permute.xlu0 %2684  ;;  %11327 = vst [vmem:[#allocation446_spill] sm:$0xff] %v8154_v11 }
 0x378   : > { %11325 = vst [vmem:[#allocation260_spill] sm:$0xff] %v8142_v61  ;;  %v8148_v16 = vpop.permute.xlu1 %2680 }
 0x37d   : > { %2772 = vrot.lane.b32.xlu2 %v8151_v47, %s5829_s22  ;;  %2774 = vrot.lane.b32.xlu0 %v8154_v11, %s5829_s22 }
 0x37e   : > { %2770 = vrot.lane.b32.xlu1 %v7346_v19, %s5829_s22 }
 0x37f   : > { %v8162_v2 = vpop.permute.xlu2 %2706  ;;  %v8164_v61 = vpop.permute.xlu0 %2690 }
 0x380   : > { %11328 = vst [vmem:[#allocation447_spill] sm:$0xff] %v8162_v2  ;;  %v8166_v60 = vpop.permute.xlu1 %2686 }
 0x381   : > { %11329 = vst [vmem:[#allocation448_spill] sm:$0xff] %v8164_v61  ;;  %v11414_v61 = vld [vmem:[#allocation78_spill] sm:$0xff] }
 0x385   : > { %2778 = vrot.lane.b32.xlu2 %v5913_v45, %s5830_s23  ;;  %2780 = vrot.lane.b32.xlu0 %v5938_v63, %s5830_s23  ;;  %v11443_v45 = vld [vmem:[#allocation207_spill] sm:$0xff] }
 0x386   : > { %2776 = vrot.lane.b32.xlu1 %v5917_v46, %s5830_s23 }
 0x387   : > { %v8174_v13 = vpop.permute.xlu2 %2712  ;;  %v8176_v10 = vpop.permute.xlu0 %2696 }
 0x388   : > { %11330 = vst [vmem:[#allocation449_spill] sm:$0xff] %v8176_v10  ;;  %v8178_v40 = vpop.permute.xlu1 %2692 }
 0x389   : > { %11331 = vst [vmem:[#allocation450_spill] sm:$0xff] %v8178_v40 }
 0x38d   : > { %2784 = vrot.lane.b32.xlu2 %v5990_v51, %s5830_s23  ;;  %2786 = vrot.lane.b32.xlu0 %v5995_v58, %s5830_s23 }
 0x38e   : > { %2782 = vrot.lane.b32.xlu1 %v5942_v8, %s5830_s23 }
 0x38f   : > { %v8186_v2 = vpop.permute.xlu2 %2718  ;;  %v8188_v11 = vpop.permute.xlu0 %2702 }
 0x390   : > { %11332 = vst [vmem:[#allocation451_spill] sm:$0xff] %v8188_v11  ;;  %v8190_v47 = vpop.permute.xlu1 %2698 }
 0x391   : > { %11333 = vst [vmem:[#allocation452_spill] sm:$0xff] %v8190_v47 }
 0x395   : > { %2790 = vrot.lane.b32.xlu2 %v6042_v59, %s5830_s23  ;;  %2792 = vrot.lane.b32.xlu0 %v6011_v24, %s5830_s23 }
 0x396   : > { %2788 = vrot.lane.b32.xlu1 %v6037_v57, %s5830_s23 }
 0x397   : > { %v8198_v10 = vpop.permute.xlu2 %2724  ;;  %v8200_v58 = vpop.permute.xlu0 %2708 }
 0x398   : > { %11334 = vst [vmem:[#allocation453_spill] sm:$0xff] %v8198_v10  ;;  %v8202_v51 = vpop.permute.xlu1 %2704 }
 0x399   : > { %11335 = vst [vmem:[#allocation454_spill] sm:$0xff] %v8200_v58 }
 0x39a   : > { %11336 = vst [vmem:[#allocation455_spill] sm:$0xff] %v8202_v51 }
 0x39d   : > { %2796 = vrot.lane.b32.xlu2 %v6075_v50, %s5830_s23  ;;  %2798 = vrot.lane.b32.xlu0 %v6071_v42, %s5830_s23 }
 0x39e   : > { %2794 = vrot.lane.b32.xlu1 %v6020_v34, %s5830_s23 }
 0x39f   : > { %v8210_v11 = vpop.permute.xlu2 %2730  ;;  %v8212_v24 = vpop.permute.xlu0 %2714 }
 0x3a0   : > { %11337 = vst [vmem:[#allocation456_spill] sm:$0xff] %v8210_v11  ;;  %v8214_v59 = vpop.permute.xlu1 %2710 }
 0x3a1   : > { %11338 = vst [vmem:[#allocation457_spill] sm:$0xff] %v8214_v59 }
 0x3a5   : > { %2802 = vrot.lane.b32.xlu2 %v6122_v14, %s5830_s23  ;;  %2804 = vrot.lane.b32.xlu0 %v6095_v38, %s5830_s23 }
 0x3a6   : > { %2800 = vrot.lane.b32.xlu1 %v6126_v25, %s5830_s23 }
 0x3a7   : > { %v8222_v58 = vpop.permute.xlu2 %2736  ;;  %v8224_v42 = vpop.permute.xlu0 %2720 }
 0x3a8   : > { %11339 = vst [vmem:[#allocation458_spill] sm:$0xff] %v8222_v58  ;;  %v8226_v50 = vpop.permute.xlu1 %2716 }
 0x3ad   : > { %2808 = vrot.lane.b32.xlu2 %v6159_v4, %s5830_s23  ;;  %2810 = vrot.lane.b32.xlu0 %v6155_v5, %s5830_s23 }
 0x3ae   : > { %2806 = vrot.lane.b32.xlu1 %v6113_v36, %s5830_s23 }
 0x3af   : > { %v8234_v59 = vpop.permute.xlu2 %2742  ;;  %v8236_v34 = vpop.permute.xlu0 %2726 }
 0x3b0   : > { %11340 = vst [vmem:[#allocation459_spill] sm:$0xff] %v8234_v59  ;;  %v8238_v51 = vpop.permute.xlu1 %2722 }
 0x3b1   : > { %11341 = vst [vmem:[#allocation460_spill] sm:$0xff] %v8236_v34 }
 0x3b2   : > { %11342 = vst [vmem:[#allocation461_spill] sm:$0xff] %v8238_v51  ;;  %v11437_v51 = vld [vmem:[#allocation213_spill] sm:$0xff] }
 0x3b5   : > { %2814 = vrot.lane.b32.xlu2 %v10866_v20, %s5830_s23  ;;  %2816 = vrot.lane.b32.xlu0 %v10868_v62, %s5830_s23 }
 0x3b6   : > { %2812 = vrot.lane.b32.xlu1 %v10871_v56, %s5830_s23 }
 0x3b7   : > { %v8246_v58 = vpop.permute.xlu2 %2748  ;;  %v8248_v57 = vpop.permute.xlu0 %2732 }
 0x3b8   : > { %11343 = vst [vmem:[#allocation462_spill] sm:$0xff] %v8248_v57  ;;  %v8250_v47 = vpop.permute.xlu1 %2728 }
 0x3b9   : > { %11344 = vst [vmem:[#allocation463_spill] sm:$0xff] %v8250_v47 }
 0x3bd   : > { %2820 = vrot.lane.b32.xlu2 %v10877_v35, %s5830_s23  ;;  %2822 = vrot.lane.b32.xlu0 %v10878_v12, %s5830_s23 }
 0x3be   : > { %2818 = vrot.lane.b32.xlu1 %v10869_v15, %s5830_s23 }
 0x3bf   : > { %v8258_v59 = vpop.permute.xlu2 %2754  ;;  %v8260_v11 = vpop.permute.xlu0 %2738 }
 0x3c0   : > { %11345 = vst [vmem:[#allocation464_spill] sm:$0xff] %v8260_v11  ;;  %v8262_v62 = vpop.permute.xlu1 %2734 }
 0x3c1   : > { %11346 = vst [vmem:[#allocation465_spill] sm:$0xff] %v8262_v62 }
 0x3c5   : > { %2826 = vrot.lane.b32.xlu2 %v10887_v33, %s5830_s23  ;;  %2828 = vrot.lane.b32.xlu0 %v10889_v48, %s5830_s23 }
 0x3c6   : > { %2824 = vrot.lane.b32.xlu1 %v10891_v22, %s5830_s23 }
 0x3c7   : > { %v8270_v35 = vpop.permute.xlu2 %2760  ;;  %v8272_v12 = vpop.permute.xlu0 %2744 }
 0x3c8   : > { %11347 = vst [vmem:[#allocation466_spill] sm:$0xff] %v8270_v35  ;;  %v8274_v57 = vpop.permute.xlu1 %2740 }
 0x3c9   : > { %11348 = vst [vmem:[#allocation467_spill] sm:$0xff] %v8274_v57 }
 0x3cd   : > { %2832 = vrot.lane.b32.xlu2 %v10897_v1, %s5830_s23  ;;  %2834 = vrot.lane.b32.xlu0 %v10899_v18, %s5830_s23 }
 0x3ce   : > { %2830 = vrot.lane.b32.xlu1 %v10890_v17, %s5830_s23 }
 0x3cf   : > { %v8282_v33 = vpop.permute.xlu2 %2766  ;;  %v8284_v48 = vpop.permute.xlu0 %2750 }
 0x3d0   : > { %11349 = vst [vmem:[#allocation468_spill] sm:$0xff] %v8282_v33  ;;  %v8286_v11 = vpop.permute.xlu1 %2746 }
 0x3d5   : > { %2838 = vrot.lane.b32.xlu2 %v10907_v32, %s5830_s23  ;;  %2840 = vrot.lane.b32.xlu0 %v10910_v55, %s5830_s23 }
 0x3d6   : > { %2836 = vrot.lane.b32.xlu1 %v10912_v54, %s5830_s23 }
 0x3d7   : > { %v8294_v57 = vpop.permute.xlu2 %2772  ;;  %v8296_v22 = vpop.permute.xlu0 %2756 }
 0x3d8   : > { %11350 = vst [vmem:[#allocation469_spill] sm:$0xff] %v8294_v57  ;;  %v8298_v17 = vpop.permute.xlu1 %2752 }
 0x3d9   : > { %11351 = vst [vmem:[#allocation470_spill] sm:$0xff] %v8296_v22  ;;  %v11383_v22 = vld [vmem:[#allocation87_spill] sm:$0xff] }
 0x3dd   : > { %2844 = vrot.lane.b32.xlu2 %v10918_v31, %s5830_s23  ;;  %2846 = vrot.lane.b32.xlu0 %v10920_v28, %s5830_s23  ;;  %v11372_v28 = vld [vmem:[#allocation137_spill] sm:$0xff] }
 0x3de   : > { %2842 = vrot.lane.b32.xlu1 %v10911_v44, %s5830_s23  ;;  %v11408_v31 = vld [vmem:[#allocation89_spill] sm:$0xff] }
 0x3df   : > { %v8306_v62 = vpop.permute.xlu2 %2778  ;;  %v8308_v33 = vpop.permute.xlu0 %2762 }
 0x3e0   : > { %11352 = vst [vmem:[#allocation471_spill] sm:$0xff] %v8308_v33  ;;  %v8310_v15 = vpop.permute.xlu1 %2758  ;;  %v11356_v33 = vld [vmem:[#allocation103_spill] sm:$0xff] }
 0x3e1   : > { %11353 = vst [vmem:[#allocation472_spill] sm:$0xff] %v8310_v15  ;;  %v11371_v15 = vld [vmem:[#allocation77_spill] sm:$0xff] }
 0x3e5   : > { %2850 = vrot.lane.b32.xlu2 %v11042_v52, %s5830_s23  ;;  %2852 = vrot.lane.b32.xlu0 %v10929_v6, %s5830_s23  ;;  %v11357_v52 = vld [vmem:[#allocation90_spill] sm:$0xff] }
 0x3e6   : > { %2848 = vrot.lane.b32.xlu1 %v10931_v21, %s5830_s23 }
 0x3e7   : > { %v8318_v57 = vpop.permute.xlu2 %2784  ;;  %v8320_v47 = vpop.permute.xlu0 %2768 }
 0x3e8   : > { %11354 = vst [vmem:[#allocation473_spill] sm:$0xff] %v8320_v47  ;;  %v8322_v35 = vpop.permute.xlu1 %2764  ;;  %v11362_v47 = vld [vmem:[#allocation108_spill] sm:$0xff] }
 0x3e9   : > { %11355 = vst [vmem:[#allocation474_spill] sm:$0xff] %v8322_v35 }
 0x3ed   : > { %2856 = vrot.lane.b32.xlu2 %v11048_v9, %s5830_s23  ;;  %2858 = vrot.lane.b32.xlu0 %v11356_v33, %s5830_s23  ;;  %v11363_v9 = vld [vmem:[#allocation114_spill] sm:$0xff] }
 0x3ee   : > { %2854 = vrot.lane.b32.xlu1 %v11357_v52, %s5830_s23 }
 0x3ef   : > { %v8330_v20 = vpop.permute.xlu2 %2790  ;;  %v8332_v6 = vpop.permute.xlu0 %2774 }
 0x3f0   : > { %11358 = vst [vmem:[#allocation475_spill] sm:$0xff] %v8330_v20  ;;  %v8334_v21 = vpop.permute.xlu1 %2770  ;;  %v11365_v20 = vld [vmem:[#allocation123_spill] sm:$0xff] }
 0x3f1   : > { %11359 = vst [vmem:[#allocation476_spill] sm:$0xff] %v8332_v6  ;;  %v11366_v6 = vld [vmem:[#allocation121_spill] sm:$0xff] }
 0x3f2   : > { %11360 = vst [vmem:[#allocation477_spill] sm:$0xff] %v8334_v21 }
 0x3f5   : > { %2862 = vrot.lane.b32.xlu2 %v11361_v41, %s5830_s23  ;;  %2864 = vrot.lane.b32.xlu0 %v11362_v47, %s5830_s23  ;;  %v11367_v41 = vld [vmem:[#allocation110_spill] sm:$0xff] }
 0x3f6   : > { %2860 = vrot.lane.b32.xlu1 %v11363_v9, %s5830_s23 }
 0x3f7   : > { %v8342_v35 = vpop.permute.xlu2 %2796  ;;  %v8344_v33 = vpop.permute.xlu0 %2780 }
 0x3f8   : > { %11364 = vst [vmem:[#allocation108_spill] sm:$0xff] %v8342_v35  ;;  %v8346_v52 = vpop.permute.xlu1 %2776  ;;  %v11370_v35 = vld [vmem:[#allocation136_spill] sm:$0xff] }
 0x3fd   : > { %2868 = vrot.lane.b32.xlu2 %v11365_v20, %s5830_s23  ;;  %2870 = vrot.lane.b32.xlu0 %v11366_v6, %s5830_s23 }
 0x3fe   : > { %2866 = vrot.lane.b32.xlu1 %v11367_v41, %s5830_s23 }
 0x3ff   : > { %v8354_v21 = vpop.permute.xlu2 %2802  ;;  %v8356_v34 = vpop.permute.xlu0 %2786 }
 0x400   : > { %11368 = vst [vmem:[#allocation123_spill] sm:$0xff] %v8354_v21  ;;  %v8358_v9 = vpop.permute.xlu1 %2782  ;;  %v11375_v21 = vld [vmem:[#allocation144_spill] sm:$0xff] }
 0x401   : > { %11369 = vst [vmem:[#allocation121_spill] sm:$0xff] %v8356_v34 }
 0x405   : > { %2874 = vrot.lane.b32.xlu2 %v11370_v35, %s5830_s23  ;;  %2968 = vrot.lane.b32.xlu0 %v11371_v15, %s5831_s24 }
 0x406   : > { %2872 = vrot.lane.b32.xlu1 %v11372_v28, %s5830_s23 }
 0x407   : > { %v8366_v8 = vpop.permute.xlu2 %2808  ;;  %v8368_v40 = vpop.permute.xlu0 %2792 }
 0x408   : > { %11373 = vst [vmem:[#allocation110_spill] sm:$0xff] %v8368_v40  ;;  %v8370_v19 = vpop.permute.xlu1 %2788  ;;  %v11378_v40 = vld [vmem:[#allocation42_spill] sm:$0xff] }
 0x409   : > { %11374 = vst [vmem:[#allocation136_spill] sm:$0xff] %v8370_v19 }
 0x40d   : > { %3096 = vrot.lane.b32.xlu2 %v11281_v37, %s5832_s25  ;;  %3128 = vrot.lane.b32.xlu0 %v11309_v7, %s5832_s25  ;;  %v11379_v37 = vld [vmem:[#allocation12_spill] sm:$0xff] }
 0x40e   : > { %3000 = vrot.lane.b32.xlu1 %v11375_v21, %s5831_s24 }
 0x40f   : > { %v8378_v15 = vpop.permute.xlu2 %2814  ;;  %v8380_v56 = vpop.permute.xlu0 %2798 }
 0x410   : > { %11376 = vst [vmem:[#allocation77_spill] sm:$0xff] %v8380_v56  ;;  %v8382_v10 = vpop.permute.xlu1 %2794  ;;  %v11384_v56 = vld [vmem:[#allocation141_spill] sm:$0xff] }
 0x411   : > { %11377 = vst [vmem:[#allocation137_spill] sm:$0xff] %v8382_v10 }
 0x415   : > { %2936 = vrot.lane.b32.xlu2 %v11378_v40, %s5831_s24  ;;  %3032 = vrot.lane.b32.xlu0 %v11213_v29, %s5832_s25 }
 0x416   : > { %2904 = vrot.lane.b32.xlu1 %v11379_v37, %s5831_s24 }
 0x417   : > { %v8390_v19 = vpop.permute.xlu2 %2820  ;;  %v8392_v7 = vpop.permute.xlu0 %2804 }
 0x418   : > { %11380 = vst [vmem:[#allocation144_spill] sm:$0xff] %v8390_v19  ;;  %v8394_v21 = vpop.permute.xlu1 %2800  ;;  %v11403_v19 = vld [vmem:[#allocation181_spill] sm:$0xff] }
 0x419   : > { %11381 = vst [vmem:[#allocation42_spill] sm:$0xff] %v8392_v7  ;;  %v11387_v7 = vld [vmem:[#allocation14_spill] sm:$0xff] }
 0x41a   : > { %11382 = vst [vmem:[#allocation12_spill] sm:$0xff] %v8394_v21  ;;  %v11394_v21 = vld [vmem:[#allocation138_spill] sm:$0xff] }
 0x41d   : > { %2970 = vrot.lane.b32.xlu2 %v11383_v22, %s5831_s24  ;;  %3002 = vrot.lane.b32.xlu0 %v11384_v56, %s5831_s24 }
 0x41e   : > { %3064 = vrot.lane.b32.xlu1 %v11244_v0, %s5832_s25 }
 0x41f   : > { %v8402_v40 = vpop.permute.xlu2 %2826  ;;  %v8404_v29 = vpop.permute.xlu0 %2810 }
 0x420   : > { %11385 = vst [vmem:[#allocation87_spill] sm:$0xff] %v8402_v40  ;;  %v8406_v37 = vpop.permute.xlu1 %2806 }
 0x421   : > { %11386 = vst [vmem:[#allocation141_spill] sm:$0xff] %v8406_v37 }
 0x425   : > { %3130 = vrot.lane.b32.xlu2 %v11310_v3, %s5832_s25  ;;  %2906 = vrot.lane.b32.xlu0 %v11387_v7, %s5831_s24  ;;  %v11389_v3 = vld [vmem:[#allocation41_spill] sm:$0xff] }
 0x426   : > { %3098 = vrot.lane.b32.xlu1 %v11279_v30, %s5832_s25 }
 0x427   : > { %v8414_v22 = vpop.permute.xlu2 %2832  ;;  %v8416_v56 = vpop.permute.xlu0 %2816 }
 0x428   : > { %11388 = vst [vmem:[#allocation14_spill] sm:$0xff] %v8414_v22  ;;  %v8418_v0 = vpop.permute.xlu1 %2812  ;;  %v11393_v22 = vld [vmem:[#allocation86_spill] sm:$0xff] }
 0x42d   : > { %3034 = vrot.lane.b32.xlu2 %v11214_v27, %s5832_s25  ;;  %3066 = vrot.lane.b32.xlu0 %v11251_v53, %s5832_s25  ;;  %v11395_v27 = vld [vmem:[#allocation129_spill] sm:$0xff] }
 0x42e   : > { %2938 = vrot.lane.b32.xlu1 %v11389_v3, %s5831_s24 }
 0x42f   : > { %v8426_v37 = vpop.permute.xlu2 %2838  ;;  %v8428_v7 = vpop.permute.xlu0 %2822 }
 0x430   : > { %11390 = vst [vmem:[#allocation41_spill] sm:$0xff] %v8426_v37  ;;  %v8430_v30 = vpop.permute.xlu1 %2818  ;;  %v11398_v37 = vld [vmem:[#allocation15_spill] sm:$0xff] }
 0x431   : > { %11391 = vst [vmem:[#allocation478_spill] sm:$0xff] %v8428_v7 }
 0x432   : > { %11392 = vst [vmem:[#allocation479_spill] sm:$0xff] %v8430_v30  ;;  %v11413_v30 = vld [vmem:[#allocation19_spill] sm:$0xff] }
 0x435   : > { %2972 = vrot.lane.b32.xlu2 %v11393_v22, %s5831_s24  ;;  %3004 = vrot.lane.b32.xlu0 %v11394_v21, %s5831_s24  ;;  %v11399_v22 = vld [vmem:[#allocation81_spill] sm:$0xff] }
 0x436   : > { %2876 = vrot.lane.b32.xlu1 %v11395_v27, %s5830_s23 }
 0x437   : > { %v8438_v40 = vpop.permute.xlu2 %2844  ;;  %v8440_v53 = vpop.permute.xlu0 %2828 }
 0x438   : > { %11396 = vst [vmem:[#allocation86_spill] sm:$0xff] %v8440_v53  ;;  %v8442_v3 = vpop.permute.xlu1 %2824  ;;  %v11404_v53 = vld [vmem:[#allocation214_spill] sm:$0xff] }
 0x439   : > { %11397 = vst [vmem:[#allocation138_spill] sm:$0xff] %v8442_v3 }
 0x43d   : > { %3132 = vrot.lane.b32.xlu2 %v11315_v23, %s5832_s25  ;;  %2908 = vrot.lane.b32.xlu0 %v11398_v37, %s5831_s24  ;;  %v11405_v23 = vld [vmem:[#allocation53_spill] sm:$0xff] }
 0x43e   : > { %3100 = vrot.lane.b32.xlu1 %v11399_v22, %s5832_s25 }
 0x43f   : > { %v8450_v10 = vpop.permute.xlu2 %2850  ;;  %v8452_v21 = vpop.permute.xlu0 %2834 }
 0x440   : > { %11400 = vst [vmem:[#allocation15_spill] sm:$0xff] %v8450_v10  ;;  %v8454_v7 = vpop.permute.xlu1 %2830 }
 0x441   : > { %11401 = vst [vmem:[#allocation81_spill] sm:$0xff] %v8452_v21  ;;  %v11409_v21 = vld [vmem:[#allocation149_spill] sm:$0xff] }
 0x442   : > { %11402 = vst [vmem:[#allocation480_spill] sm:$0xff] %v8454_v7 }
 0x445   : > { %3036 = vrot.lane.b32.xlu2 %v11403_v19, %s5832_s25  ;;  %3068 = vrot.lane.b32.xlu0 %v11404_v53, %s5832_s25  ;;  %v11410_v19 = vld [vmem:[#allocation133_spill] sm:$0xff]  ;;  %v5643_v53 = vld [vmem:[%s10261_s1 + $0x8] sm:$0xf] }
 0x446   : > { %2940 = vrot.lane.b32.xlu1 %v11405_v23, %s5831_s24  ;;  %v5778_v23 = vld [vmem:[%s10261_s1 + $0x8] sm:$0x30] }
 0x447   : > { %v8462_v3 = vpop.permute.xlu2 %2856  ;;  %v8464_v37 = vpop.permute.xlu0 %2840 }
 0x448   : > { %11406 = vst [vmem:[#allocation181_spill] sm:$0xff] %v8462_v3  ;;  %v8466_v22 = vpop.permute.xlu1 %2836  ;;  %v5644_v3 = vor.u32 %v5778_v23, %v5643_v53  ;;  %v5777_v53 = vld [vmem:[%s10261_s1] sm:$0xff] }
 0x449   : > { %11407 = vst [vmem:[#allocation214_spill] sm:$0xff] %v8466_v22 }
 0x44d   : > { %2974 = vrot.lane.b32.xlu2 %v11408_v31, %s5831_s24  ;;  %3006 = vrot.lane.b32.xlu0 %v11409_v21, %s5831_s24  ;;  %v5833_v21 = vmov 65535  }
 0x44e   : > { %2878 = vrot.lane.b32.xlu1 %v11410_v19, %s5830_s23  ;;  %v4342_v63 = vsel %vm4340_vm5, 4294967295, %v5833_v21 }
 0x44f   : > { %v8474_v7 = vpop.permute.xlu2 %2862  ;;  %v8482_v22 = vpop.permute.xlu0 %2846  ;;  %v4343_v19 = vsel %vm4341_vm6, %v4342_v63, 0 }
 0x450   : > { %11411 = vst [vmem:[#allocation53_spill] sm:$0xff] %v8474_v7  ;;  %v8484_v31 = vpop.permute.xlu1 %2842  ;;  %v4345_v27 = vand.u32 %v5644_v3, %v4343_v19  ;;  %v11412_v7 = vld [vmem:[#allocation255_spill] sm:$0xff] }
 0x452   : > { %5780 = vmatpush.bf16.msra.mxu2 %v4345_v27  ;;  %5781 = vmatpush.bf16.msra.mxu3 %v4345_v27 }
 0x453   : > { %4353 = vmatpush.bf16.msra.mxu0 %v4345_v27  ;;  %5779 = vmatpush.bf16.msra.mxu1 %v4345_v27 }
 0x455   : > { %3134 = vrot.lane.b32.xlu2 %v11412_v7, %s5832_s25  ;;  %2910 = vrot.lane.b32.xlu0 %v11413_v30, %s5831_s24  ;;  %v11417_v7 = vld [vmem:[#allocation188_spill] sm:$0xff]  ;;  %v11419_v30 = vld [vmem:[#allocation50_spill] sm:$0xff] }
 0x456   : > { %3102 = vrot.lane.b32.xlu1 %v11414_v61, %s5832_s25  ;;  %5783 = vmatpush.bf16.msra.mxu2 %v5777_v53  ;;  %v11418_v61 = vld [vmem:[#allocation212_spill] sm:$0xff] }
 0x457   : > { %v8495_v23 = vpop.permute.xlu2 %2868  ;;  %v8497_v63 = vpop.permute.xlu0 %2852  ;;  %5784 = vmatpush.bf16.msra.mxu3 %v5777_v53  ;;  %4354 = vmatpush.bf16.msra.mxu0 %v5777_v53 }
 0x458   : > { %11415 = vst [vmem:[#allocation89_spill] sm:$0xff] %v8495_v23  ;;  %v8499_v3 = vpop.permute.xlu1 %2848  ;;  %5782 = vmatpush.bf16.msra.mxu1 %v5777_v53  ;;  %v11422_v23 = vld [vmem:[#allocation101_spill] sm:$0xff]  ;;  %v11423_v53 = vld [vmem:[#allocation150_spill] sm:$0xff] }
 0x459   : > { %11416 = vst [vmem:[#allocation149_spill] sm:$0xff] %v8497_v63 }
 0x45d   : > { %3038 = vrot.lane.b32.xlu2 %v11417_v7, %s5832_s25  ;;  %3070 = vrot.lane.b32.xlu0 %v11418_v61, %s5832_s25  ;;  %v11424_v7 = vld [vmem:[#allocation145_spill] sm:$0xff] }
 0x45e   : > { %2942 = vrot.lane.b32.xlu1 %v11419_v30, %s5831_s24  ;;  %v11427_v30 = vld [vmem:[#allocation253_spill] sm:$0xff] }
 0x45f   : > { %v8507_v19 = vpop.permute.xlu2 %2874  ;;  %v8509_v27 = vpop.permute.xlu0 %2858 }
 0x460   : > { %11420 = vst [vmem:[#allocation255_spill] sm:$0xff] %v8509_v27  ;;  %v8511_v21 = vpop.permute.xlu1 %2854  ;;  %v11428_v27 = vld [vmem:[#allocation21_spill] sm:$0xff] }
 0x461   : > { %11421 = vst [vmem:[#allocation19_spill] sm:$0xff] %v8511_v21  ;;  %v11429_v21 = vld [vmem:[#allocation233_spill] sm:$0xff] }
 0x465   : > { %2976 = vrot.lane.b32.xlu2 %v11422_v23, %s5831_s24  ;;  %3008 = vrot.lane.b32.xlu0 %v11423_v53, %s5831_s24 }
 0x466   : > { %2880 = vrot.lane.b32.xlu1 %v11424_v7, %s5830_s23  ;;  %v11432_v7 = vld [vmem:[#allocation169_spill] sm:$0xff] }
 0x467   : > { %v3097_v63 = vpop.permute.xlu2 %3096  ;;  %v8519_v61 = vpop.permute.xlu0 %2864 }
 0x468   : > { %11425 = vst [vmem:[#allocation78_spill] sm:$0xff] %v8519_v61  ;;  %v8521_v5 = vpop.permute.xlu1 %2860  ;;  %v3226_v61 = vsel %vm3160_vm7, %v10897_v1, %v11432_v7  ;;  %v11438_v1 = vld [vmem:[#allocation47_spill] sm:$0xff] }
 0x469   : > { %11426 = vst [vmem:[#allocation188_spill] sm:$0xff] %v8521_v5  ;;  %v11433_v5 = vld [vmem:[#allocation270_spill] sm:$0xff] }
 0x46d   : > { %3136 = vrot.lane.b32.xlu2 %v11427_v30, %s5832_s25  ;;  %2912 = vrot.lane.b32.xlu0 %v11428_v27, %s5831_s24  ;;  %v3355_v30 = vsel %vm3289_vm8, %v3226_v61, %v11433_v5  ;;  %v11434_v27 = vld [vmem:[#allocation342_spill] sm:$0xff] }
 0x46e   : > { %3104 = vrot.lane.b32.xlu1 %v11429_v21, %s5832_s25  ;;  %v3484_v10 = vsel %vm3418_vm9, %v3355_v30, %v11434_v27  ;;  %v11435_v21 = vld [vmem:[#allocation185_spill] sm:$0xff] }
 0x46f   : > { %v8529_v23 = vpop.permute.xlu2 %2936  ;;  %v8531_v53 = vpop.permute.xlu0 %2870  ;;  %v11439_v27 = vld [vmem:[#allocation49_spill] sm:$0xff] }
 0x470   : > { %11430 = vst [vmem:[#allocation212_spill] sm:$0xff] %v8531_v53  ;;  %v8533_v34 = vpop.permute.xlu1 %2866  ;;  %v11436_v53 = vld [vmem:[#allocation407_spill] sm:$0xff] }
 0x471   : > { %11431 = vst [vmem:[#allocation50_spill] sm:$0xff] %v8533_v34  ;;  %v3613_v34 = vsel %vm3547_vm10, %v3484_v10, %v11436_v53 }
 0x472   : > { %v3742_v5 = vsel %vm3676_vm11, %v3613_v34, %v8174_v13  ;;  %v11440_v34 = vld [vmem:[#allocation295_spill] sm:$0xff] }
 0x473   : > { %v3871_v61 = vsel %vm3805_vm12, %v3742_v5, %v8464_v37  ;;  %v11442_v5 = vld [vmem:[#allocation98_spill] sm:$0xff] }
 0x475   : > { %3040 = vrot.lane.b32.xlu2 %v11435_v21, %s5832_s25  ;;  %3072 = vrot.lane.b32.xlu0 %v11437_v51, %s5832_s25  ;;  %v3258_v21 = vsel %vm3160_vm7, %v11362_v47, %v11439_v27 }
 0x476   : > { %2944 = vrot.lane.b32.xlu1 %v11438_v1, %s5831_s24  ;;  %v3387_v13 = vsel %vm3289_vm8, %v3258_v21, %v11440_v34  ;;  %v11441_v1 = vld [vmem:[#allocation361_spill] sm:$0xff] }
 0x477   : > { %v8552_v7 = vpop.permute.xlu2 %2970  ;;  %v2969_v30 = vpop.permute.xlu0 %2968  ;;  %v3516_v37 = vsel %vm3418_vm9, %v3387_v13, %v11441_v1 }
 0x478   : > { %v2873_v10 = vpop.permute.xlu1 %2872  ;;  %v4000_v53 = vsel %vm3934_vm14, %v3871_v61, %v2969_v30  ;;  %v3645_v61 = vsel %vm3547_vm10, %v3516_v37, %v11443_v45  ;;  %v11445_v30 = vld [vmem:[#allocation147_spill] sm:$0xff]  ;;  %v11447_v37 = vld [vmem:[#allocation100_spill] sm:$0xff] }
 0x479   : > { %v4129_v51 = vsel %vm4063_vm13, %v4000_v53, %v3097_v63  ;;  %v11444_v63 = vld [vmem:[#allocation152_spill] sm:$0xff]  ;;  %v3774_v47 = vsel %vm3676_vm11, %v3645_v61, %v8272_v12  ;;  %v11449_v12 = vld [vmem:[#allocation314_spill] sm:$0xff] }
 0x47a   : > { %5677 = vmatmul.msk.bf16.vlgmr.msra.gmra.mxu2 %vm4211_vm15, %v4129_v51  ;;  %v11446_v51 = vld [vmem:[#allocation239_spill] sm:$0xff]  ;;  %v3903_v21 = vsel %vm3805_vm12, %v3774_v47, %v2873_v10  ;;  %v11450_v10 = vld [vmem:[#allocation365_spill] sm:$0xff] }
 0x47b   : > { %v5806_v27 = vunpack.i.l.bf16 %v11446_v51 }
 0x47d   : > { %2978 = vrot.lane.b32.xlu2 %v11442_v5, %s5831_s24  ;;  %3010 = vrot.lane.b32.xlu0 %v11444_v63, %s5831_s24  ;;  %v11448_v5 = vld [vmem:[#allocation4_spill] sm:$0xff] }
 0x47e   : > { %2882 = vrot.lane.b32.xlu1 %v11445_v30, %s5830_s23  ;;  %v3162_v63 = vsel %vm3160_vm7, %v11448_v5, %v11447_v37 }
 0x47f   : > { %v3131_v53 = vpop.permute.xlu2 %3130  ;;  %v3129_v34 = vpop.permute.xlu0 %3128  ;;  %v3291_v30 = vsel %vm3289_vm8, %v3162_v63, %v5806_v27  ;;  %v11454_v63 = vld [vmem:[#allocation154_spill] sm:$0xff] }
 0x480   : > { %v3001_v13 = vpop.permute.xlu1 %3000  ;;  %v3420_v61 = vsel %vm3418_vm9, %v3291_v30, %v11449_v12  ;;  %v3194_v12 = vsel %vm3160_vm7, %v6126_v25, %v11454_v63  ;;  %v11460_v63 = vld [vmem:[#allocation390_spill] sm:$0xff] }
 0x481   : > { %v4032_v1 = vsel %vm3934_vm14, %v3903_v21, %v3001_v13  ;;  %v3549_v47 = vsel %vm3547_vm10, %v3420_v61, %v11450_v10  ;;  %v11451_v21 = vld [vmem:[#allocation23_spill] sm:$0xff]  ;;  %v11453_v13 = vld [vmem:[#allocation432_spill] sm:$0xff] }
 0x482   : > { %v4161_v45 = vsel %vm4063_vm13, %v4032_v1, %v3129_v34  ;;  %v11452_v34 = vld [vmem:[#allocation231_spill] sm:$0xff]  ;;  %v3678_v1 = vsel %vm3676_vm11, %v3549_v47, %v11453_v13 }
 0x483   : > { %5693 = vmatmul.msk.bf16.vlgmr.msra.gmra.mxu3 %vm4211_vm15, %v4161_v45  ;;  %v3807_v27 = vsel %vm3805_vm12, %v3678_v1, %v8346_v52  ;;  %v11455_v10 = vld [vmem:[#allocation223_spill] sm:$0xff]  ;;  %v11458_v1 = vld [vmem:[#allocation318_spill] sm:$0xff] }
 0x484   : > { %v11457_v52 = vld [vmem:[#allocation299_spill] sm:$0xff] }
 0x485   : > { %3138 = vrot.lane.b32.xlu2 %v11320_v39, %s5832_s25  ;;  %2914 = vrot.lane.b32.xlu0 %v11451_v21, %s5831_s24  ;;  %v3260_v21 = vsel %vm3160_vm7, %v11367_v41, %v11455_v10  ;;  %v11462_v41 = vld [vmem:[#allocation419_spill] sm:$0xff]  ;;  %v11463_v10 = vld [vmem:[#allocation217_spill] sm:$0xff] }
 0x486   : > { %3106 = vrot.lane.b32.xlu1 %v11452_v34, %s5832_s25  ;;  %v11456_v34 = vld [vmem:[#allocation263_spill] sm:$0xff]  ;;  %v3389_v13 = vsel %vm3289_vm8, %v3260_v21, %v11457_v52  ;;  %v11464_v21 = vld [vmem:[#allocation54_spill] sm:$0xff] }
 0x487   : > { %v3035_v45 = vpop.permute.xlu2 %3034  ;;  %v3033_v30 = vpop.permute.xlu0 %3032  ;;  %v3323_v47 = vsel %vm3289_vm8, %v3194_v12, %v11456_v34 }
 0x488   : > { %v2905_v37 = vpop.permute.xlu1 %2904 }
 0x489   : > { %v3936_v39 = vsel %vm3934_vm14, %v3807_v27, %v2905_v37  ;;  %v3452_v27 = vsel %vm3418_vm9, %v3323_v47, %v11458_v1  ;;  %v11459_v37 = vld [vmem:[#allocation350_spill] sm:$0xff] }
 0x48a   : > { %v4065_v61 = vsel %vm4063_vm13, %v3936_v39, %v3033_v30  ;;  %v3518_v25 = vsel %vm3418_vm9, %v3389_v13, %v11459_v37  ;;  %v3581_v30 = vsel %vm3547_vm10, %v3452_v27, %v11460_v63  ;;  %v11461_v39 = vld [vmem:[#allocation187_spill] sm:$0xff]  ;;  %v5807_v13 = vunpack.i.h.bf16 %v11446_v51 }
 0x48b   : > { %5645 = vmatmul.msk.bf16.vlgmr.msra.gmra.mxu0 %vm4211_vm15, %v4065_v61  ;;  %v3647_v12 = vsel %vm3547_vm10, %v3518_v25, %v11462_v41  ;;  %v3710_v61 = vsel %vm3676_vm11, %v3581_v30, %v8148_v16  ;;  %v11466_v30 = vld [vmem:[#allocation91_spill] sm:$0xff]  ;;  %v11468_v41 = vld [vmem:[#allocation280_spill] sm:$0xff] }
 0x48c   : > { %v3776_v34 = vsel %vm3676_vm11, %v3647_v12, %v8286_v11  ;;  %v3839_v47 = vsel %vm3805_vm12, %v3710_v61, %v8366_v8  ;;  %v11465_v11 = vld [vmem:[#allocation186_spill] sm:$0xff] }
 0x48d   : > { %3042 = vrot.lane.b32.xlu2 %v11461_v39, %s5832_s25  ;;  %3074 = vrot.lane.b32.xlu0 %v11463_v10, %s5832_s25  ;;  %v3905_v1 = vsel %vm3805_vm12, %v3776_v34, %v8507_v19  ;;  %v3968_v16 = vsel %vm3934_vm14, %v3839_v47, %v8529_v23  ;;  %v3228_v8 = vsel %vm3160_vm7, %v10899_v18, %v11465_v11  ;;  %v11467_v39 = vld [vmem:[#allocation2_spill] sm:$0xff]  ;;  %v11472_v47 = vld [vmem:[#allocation95_spill] sm:$0xff] }
 0x48e   : > { %2946 = vrot.lane.b32.xlu1 %v11464_v21, %s5831_s24  ;;  %v3164_v19 = vsel %vm3160_vm7, %v11467_v39, %v11466_v30  ;;  %v3357_v23 = vsel %vm3289_vm8, %v3228_v8, %v11468_v41  ;;  %v11469_v61 = vld [vmem:[#allocation346_spill] sm:$0xff]  ;;  %v11470_v21 = vld [vmem:[#allocation303_spill] sm:$0xff] }
 0x48f   : > { %v8632_v52 = vpop.permute.xlu2 %2972  ;;  %v3003_v27 = vpop.permute.xlu0 %3002  ;;  %v3293_v12 = vsel %vm3289_vm8, %v3164_v19, %v5807_v13  ;;  %v3486_v10 = vsel %vm3418_vm9, %v3357_v23, %v11469_v61  ;;  %v11471_v34 = vld [vmem:[#allocation182_spill] sm:$0xff]  ;;  %v11474_v13 = vld [vmem:[#allocation164_spill] sm:$0xff]  ;;  %v11477_v61 = vld [vmem:[#allocation125_spill] sm:$0xff] }
 0x490   : > { %v3065_v37 = vpop.permute.xlu1 %3064  ;;  %v4034_v25 = vsel %vm3934_vm14, %v3905_v1, %v3003_v27  ;;  %v3422_v18 = vsel %vm3418_vm9, %v3293_v12, %v11470_v21  ;;  %v11473_v1 = vld [vmem:[#allocation375_spill] sm:$0xff] }
 0x491   : > { %v4097_v63 = vsel %vm4063_vm13, %v3968_v16, %v3065_v37  ;;  %v4163_v51 = vsel %vm4063_vm13, %v4034_v25, %v3131_v53  ;;  %v3615_v53 = vsel %vm3547_vm10, %v3486_v10, %v11471_v34  ;;  %v3551_v16 = vsel %vm3547_vm10, %v3422_v18, %v11473_v1  ;;  %v11475_v37 = vld [vmem:[#allocation157_spill] sm:$0xff]  ;;  %v11476_v25 = vld [vmem:[#allocation436_spill] sm:$0xff]  ;;  %v11480_v18 = vld [vmem:[#allocation394_spill] sm:$0xff] }
 0x492   : > { %5661 = vmatmul.msk.bf16.vlgmr.msra.gmra.mxu1 %vm4211_vm15, %v4097_v63  ;;  %v3744_v27 = vsel %vm3676_vm11, %v3615_v53, %v8212_v24  ;;  %v3680_v63 = vsel %vm3676_vm11, %v3551_v16, %v11476_v25  ;;  %v11482_v53 = vld [vmem:[#allocation232_spill] sm:$0xff] }
 0x493   : > { %5694 = vmatmul.msk.bf16.gmra.mxu3 %vm4211_vm15, %v4163_v51  ;;  %v3873_v11 = vsel %vm3805_vm12, %v3744_v27, %v8484_v31  ;;  %v3809_v51 = vsel %vm3805_vm12, %v3680_v63, %v8306_v62  ;;  %v3196_v31 = vsel %vm3160_vm7, %v6122_v14, %v11477_v61  ;;  %v11478_v62 = vld [vmem:[#allocation132_spill] sm:$0xff]  ;;  %v11483_v14 = vld [vmem:[#allocation251_spill] sm:$0xff] }
 0x494   : > { %v4002_v30 = vsel %vm3934_vm14, %v3873_v11, %v8552_v7  ;;  %v3325_v10 = vsel %vm3289_vm8, %v3196_v31, %v11478_v62  ;;  %v11479_v7 = vld [vmem:[#allocation328_spill] sm:$0xff] }
 0x495   : > { %2980 = vrot.lane.b32.xlu2 %v11472_v47, %s5831_s24  ;;  %3012 = vrot.lane.b32.xlu0 %v11474_v13, %s5831_s24  ;;  %v3454_v21 = vsel %vm3418_vm9, %v3325_v10, %v11479_v7  ;;  %v11484_v63 = vld [vmem:[#allocation208_spill] sm:$0xff] }
 0x496   : > { %2884 = vrot.lane.b32.xlu1 %v11475_v37, %s5830_s23  ;;  %v3583_v34 = vsel %vm3547_vm10, %v3454_v21, %v11480_v18  ;;  %v3262_v11 = vsel %vm3160_vm7, %v11365_v20, %v11484_v63  ;;  %v11491_v21 = vld [vmem:[#allocation195_spill] sm:$0xff] }
 0x497   : > { %v3133_v8 = vpop.permute.xlu2 %3132  ;;  %v2907_v24 = vpop.permute.xlu0 %2906  ;;  %v3712_v47 = vsel %vm3676_vm11, %v3583_v34, %v11483_v14  ;;  %v3230_v18 = vsel %vm3160_vm7, %v10912_v54, %v11491_v21  ;;  %v11497_v54 = vld [vmem:[#allocation313_spill] sm:$0xff] }
 0x498   : > { %v3099_v19 = vpop.permute.xlu1 %3098  ;;  %v3938_v41 = vsel %vm3934_vm14, %v3809_v51, %v2907_v24  ;;  %v3841_v16 = vsel %vm3805_vm12, %v3712_v47, %v8404_v29  ;;  %v11485_v51 = vld [vmem:[#allocation288_spill] sm:$0xff]  ;;  %v11486_v24 = vld [vmem:[#allocation193_spill] sm:$0xff] }
 0x499   : > { %v4131_v23 = vsel %vm4063_vm13, %v4002_v30, %v3099_v19  ;;  %v4067_v12 = vsel %vm4063_vm13, %v3938_v41, %v3035_v45  ;;  %v11481_v45 = vld [vmem:[#allocation27_spill] sm:$0xff]  ;;  %v3391_v30 = vsel %vm3289_vm8, %v3262_v11, %v11485_v51  ;;  %v11487_v19 = vld [vmem:[#allocation360_spill] sm:$0xff]  ;;  %v11498_v11 = vld [vmem:[#allocation406_spill] sm:$0xff] }
 0x49a   : > { %5678 = vmatmul.msk.bf16.gmra.mxu2 %vm4211_vm15, %v4131_v23  ;;  %v3520_v29 = vsel %vm3418_vm9, %v3391_v30, %v11487_v19  ;;  %v11488_v41 = vld [vmem:[#allocation48_spill] sm:$0xff]  ;;  %v11489_v23 = vld [vmem:[#allocation57_spill] sm:$0xff]  ;;  %v11499_v30 = vld [vmem:[#allocation106_spill] sm:$0xff] }
 0x49b   : > { %5646 = vmatmul.msk.bf16.gmra.mxu0 %vm4211_vm15, %v4067_v12  ;;  %v11490_v12 = vld [vmem:[#allocation423_spill] sm:$0xff]  ;;  %v11494_v47 = vld [vmem:[#allocation284_spill] sm:$0xff] }
 0x49c   : > { %v3649_v61 = vsel %vm3547_vm10, %v3520_v29, %v11490_v12  ;;  %v11501_v29 = vld [vmem:[#allocation162_spill] sm:$0xff] }
 0x49d   : > { %3140 = vrot.lane.b32.xlu2 %v7324_v43, %s5832_s25  ;;  %2916 = vrot.lane.b32.xlu0 %v11481_v45, %s5831_s24  ;;  %v3778_v20 = vsel %vm3676_vm11, %v3649_v61, %v8246_v58  ;;  %v11492_v45 = vld [vmem:[#allocation105_spill] sm:$0xff]  ;;  %v11495_v58 = vld [vmem:[#allocation227_spill] sm:$0xff] }
 0x49e   : > { %3108 = vrot.lane.b32.xlu1 %v11482_v53, %s5832_s25  ;;  %v11493_v53 = vld [vmem:[#allocation8_spill] sm:$0xff] }
 0x49f   : > { %v3037_v1 = vpop.permute.xlu2 %3036  ;;  %v3067_v27 = vpop.permute.xlu0 %3066  ;;  %v3166_v14 = vsel %vm3160_vm7, %v11493_v53, %v11492_v45  ;;  %v11504_v45 = vld [vmem:[#allocation148_spill] sm:$0xff] }
 0x4a0   : > { %v2939_v13 = vpop.permute.xlu1 %2938 }
 0x4a1   : > { %v3970_v43 = vsel %vm3934_vm14, %v3841_v16, %v2939_v13  ;;  %v3359_v16 = vsel %vm3289_vm8, %v3230_v18, %v11494_v47  ;;  %v3295_v13 = vsel %vm3289_vm8, %v3166_v14, %v11495_v58  ;;  %v11507_v47 = vld [vmem:[#allocation259_spill] sm:$0xff]  ;;  %v11510_v58 = vld [vmem:[#allocation237_spill] sm:$0xff] }
 0x4a2   : > { %v4099_v25 = vsel %vm4063_vm13, %v3970_v43, %v3067_v27  ;;  %v11496_v43 = vld [vmem:[#allocation335_spill] sm:$0xff]  ;;  %v3424_v63 = vsel %vm3418_vm9, %v3295_v13, %v11497_v54 }
 0x4a3   : > { %5662 = vmatmul.msk.bf16.gmra.mxu1 %vm4211_vm15, %v4099_v25  ;;  %v3488_v25 = vsel %vm3418_vm9, %v3359_v16, %v11496_v43  ;;  %v11508_v16 = vld [vmem:[#allocation383_spill] sm:$0xff] }
 0x4a4   : > { %v3617_v51 = vsel %vm3547_vm10, %v3488_v25, %v11498_v11 }
 0x4a5   : > { %3044 = vrot.lane.b32.xlu2 %v11486_v24, %s5832_s25  ;;  %3076 = vrot.lane.b32.xlu0 %v11488_v41, %s5832_s25  ;;  %v11500_v24 = vld [vmem:[#allocation379_spill] sm:$0xff]  ;;  %v3746_v19 = vsel %vm3676_vm11, %v3617_v51, %v8226_v50  ;;  %v11502_v41 = vld [vmem:[#allocation156_spill] sm:$0xff] }
 0x4a6   : > { %2948 = vrot.lane.b32.xlu1 %v11489_v23, %s5831_s24  ;;  %v11503_v23 = vld [vmem:[#allocation228_spill] sm:$0xff]  ;;  %v3875_v61 = vsel %vm3805_vm12, %v3746_v19, %v8438_v40  ;;  %v3198_v40 = vsel %vm3160_vm7, %v6095_v38, %v11504_v45  ;;  %v11511_v51 = vld [vmem:[#allocation59_spill] sm:$0xff] }
 0x4a7   : > { %v8719_v31 = vpop.permute.xlu2 %2974  ;;  %v3005_v62 = vpop.permute.xlu0 %3004  ;;  %v11514_v19 = vld [vmem:[#allocation364_spill] sm:$0xff] }
 0x4a8   : > { %v2877_v10 = vpop.permute.xlu1 %2876  ;;  %v11519_v45 = vld [vmem:[#allocation116_spill] sm:$0xff] }
 0x4a9   : > { %v3907_v7 = vsel %vm3805_vm12, %v3778_v20, %v2877_v10  ;;  %v4004_v10 = vsel %vm3934_vm14, %v3875_v61, %v8632_v52  ;;  %v11506_v52 = vld [vmem:[#allocation332_spill] sm:$0xff] }
 0x4aa   : > { %v4036_v34 = vsel %vm3934_vm14, %v3907_v7, %v3005_v62 }
 0x4ab   : > { %v4165_v27 = vsel %vm4063_vm13, %v4036_v34, %v3133_v8  ;;  %v3553_v8 = vsel %vm3547_vm10, %v3424_v63, %v11500_v24  ;;  %v11512_v24 = vld [vmem:[#allocation298_spill] sm:$0xff] }
 0x4ac   : > { %5695 = vmatmul.msk.bf16.gmra.mxu3 %vm4211_vm15, %v4165_v27  ;;  %v3682_v12 = vsel %vm3676_vm11, %v3553_v8, %v11503_v23  ;;  %v11509_v27 = vld [vmem:[#allocation30_spill] sm:$0xff]  ;;  %v11516_v23 = vld [vmem:[#allocation55_spill] sm:$0xff] }
 0x4ad   : > { %2982 = vrot.lane.b32.xlu2 %v11499_v30, %s5831_s24  ;;  %3014 = vrot.lane.b32.xlu0 %v11501_v29, %s5831_s24  ;;  %v3811_v62 = vsel %vm3805_vm12, %v3682_v12, %v8344_v33  ;;  %v11505_v33 = vld [vmem:[#allocation262_spill] sm:$0xff]  ;;  %v3264_v30 = vsel %vm3160_vm7, %v11366_v6, %v11511_v51  ;;  %v11515_v29 = vld [vmem:[#allocation216_spill] sm:$0xff]  ;;  %v11517_v12 = vld [vmem:[#allocation209_spill] sm:$0xff] }
 0x4ae   : > { %2886 = vrot.lane.b32.xlu1 %v11502_v41, %s5830_s23  ;;  %v3327_v53 = vsel %vm3289_vm8, %v3198_v40, %v11505_v33  ;;  %v3393_v8 = vsel %vm3289_vm8, %v3264_v30, %v11512_v24  ;;  %v11520_v40 = vld [vmem:[#allocation9_spill] sm:$0xff]  ;;  %v11530_v51 = vld [vmem:[#allocation435_spill] sm:$0xff] }
 0x4af   : > { %v3135_v20 = vpop.permute.xlu2 %3134  ;;  %v2909_v50 = vpop.permute.xlu0 %2908  ;;  %v3456_v14 = vsel %vm3418_vm9, %v3327_v53, %v11506_v52  ;;  %v3168_v33 = vsel %vm3160_vm7, %v11520_v40, %v11519_v45  ;;  %v11521_v53 = vld [vmem:[#allocation273_spill] sm:$0xff] }
 0x4b0   : > { %v3101_v7 = vpop.permute.xlu1 %3100  ;;  %v3940_v21 = vsel %vm3934_vm14, %v3811_v62, %v2909_v50 }
 0x4b1   : > { %v4133_v18 = vsel %vm4063_vm13, %v4004_v10, %v3101_v7  ;;  %v4069_v34 = vsel %vm4063_vm13, %v3940_v21, %v3037_v1  ;;  %v3585_v1 = vsel %vm3547_vm10, %v3456_v14, %v11508_v16  ;;  %v11518_v21 = vld [vmem:[#allocation178_spill] sm:$0xff]  ;;  %v11523_v16 = vld [vmem:[#allocation345_spill] sm:$0xff] }
 0x4b2   : > { %5679 = vmatmul.msk.bf16.gmra.mxu2 %vm4211_vm15, %v4133_v18  ;;  %5647 = vmatmul.msk.bf16.gmra.mxu0 %vm4211_vm15, %v4069_v34  ;;  %v3714_v38 = vsel %vm3676_vm11, %v3585_v1, %v8146_v26  ;;  %v11513_v26 = vld [vmem:[#allocation191_spill] sm:$0xff]  ;;  %v3232_v18 = vsel %vm3160_vm7, %v10907_v32, %v11518_v21  ;;  %v11524_v32 = vld [vmem:[#allocation317_spill] sm:$0xff] }
 0x4b3   : > { %v3843_v43 = vsel %vm3805_vm12, %v3714_v38, %v8418_v0  ;;  %v3522_v0 = vsel %vm3418_vm9, %v3393_v8, %v11514_v19  ;;  %v3361_v52 = vsel %vm3289_vm8, %v3232_v18, %v11521_v53  ;;  %v11536_v21 = vld [vmem:[#allocation235_spill] sm:$0xff]  ;;  %v11537_v53 = vld [vmem:[#allocation225_spill] sm:$0xff] }
 0x4b4   : > { %v3651_v61 = vsel %vm3547_vm10, %v3522_v0, %v11517_v12  ;;  %v3490_v1 = vsel %vm3418_vm9, %v3361_v52, %v11523_v16  ;;  %v3266_v52 = vsel %vm3160_vm7, %v11372_v28, %v11537_v53  ;;  %v11541_v16 = vld [vmem:[#allocation222_spill] sm:$0xff] }
 0x4b5   : > { %3142 = vrot.lane.b32.xlu2 %v11507_v47, %s5832_s25  ;;  %2918 = vrot.lane.b32.xlu0 %v11509_v27, %s5831_s24  ;;  %v3780_v6 = vsel %vm3676_vm11, %v3651_v61, %v8284_v48  ;;  %v11522_v48 = vld [vmem:[#allocation238_spill] sm:$0xff]  ;;  %v11531_v61 = vld [vmem:[#allocation160_spill] sm:$0xff] }
 0x4b6   : > { %3110 = vrot.lane.b32.xlu1 %v11510_v58, %s5832_s25  ;;  %v3297_v47 = vsel %vm3289_vm8, %v3168_v33, %v11522_v48  ;;  %v11525_v58 = vld [vmem:[#allocation410_spill] sm:$0xff] }
 0x4b7   : > { %v3039_v13 = vpop.permute.xlu2 %3038  ;;  %v3069_v25 = vpop.permute.xlu0 %3068  ;;  %v3426_v27 = vsel %vm3418_vm9, %v3297_v47, %v11524_v32  ;;  %v3619_v38 = vsel %vm3547_vm10, %v3490_v1, %v11525_v58  ;;  %v11540_v47 = vld [vmem:[#allocation353_spill] sm:$0xff]  ;;  %v11542_v1 = vld [vmem:[#allocation68_spill] sm:$0xff]  ;;  %v11543_v32 = vld [vmem:[#allocation422_spill] sm:$0xff] }
 0x4b8   : > { %v2941_v54 = vpop.permute.xlu1 %2940 }
 0x4b9   : > { %v3972_v63 = vsel %vm3934_vm14, %v3843_v43, %v2941_v54  ;;  %v11526_v43 = vld [vmem:[#allocation107_spill] sm:$0xff]  ;;  %v3748_v54 = vsel %vm3676_vm11, %v3619_v38, %v8186_v2 }
 0x4ba   : > { %v4101_v11 = vsel %vm4063_vm13, %v3972_v63, %v3069_v25  ;;  %v11527_v25 = vld [vmem:[#allocation368_spill] sm:$0xff]  ;;  %v11528_v63 = vld [vmem:[#allocation159_spill] sm:$0xff]  ;;  %v3877_v24 = vsel %vm3805_vm12, %v3748_v54, %v8482_v22  ;;  %v3200_v22 = vsel %vm3160_vm7, %v6113_v36, %v11531_v61 }
 0x4bb   : > { %5663 = vmatmul.msk.bf16.gmra.mxu1 %vm4211_vm15, %v4101_v11  ;;  %v11529_v11 = vld [vmem:[#allocation151_spill] sm:$0xff]  ;;  %v4006_v19 = vsel %vm3934_vm14, %v3877_v24, %v8719_v31  ;;  %v11533_v31 = vld [vmem:[#allocation321_spill] sm:$0xff] }
 0x4bc   : > { %v11546_v24 = vld [vmem:[#allocation283_spill] sm:$0xff] }
 0x4bd   : > { %3046 = vrot.lane.b32.xlu2 %v11513_v26, %s5832_s25  ;;  %3078 = vrot.lane.b32.xlu0 %v11515_v29, %s5832_s25 }
 0x4be   : > { %2950 = vrot.lane.b32.xlu1 %v11516_v23, %s5831_s24 }
 0x4bf   : > { %v8803_v62 = vpop.permute.xlu2 %2976  ;;  %v3007_v10 = vpop.permute.xlu0 %3006 }
 0x4c0   : > { %v2879_v50 = vpop.permute.xlu1 %2878 }
 0x4c1   : > { %v3909_v7 = vsel %vm3805_vm12, %v3780_v6, %v2879_v50  ;;  %v11534_v50 = vld [vmem:[#allocation393_spill] sm:$0xff] }
 0x4c2   : > { %v4038_v34 = vsel %vm3934_vm14, %v3909_v7, %v3007_v10  ;;  %v11535_v7 = vld [vmem:[#allocation26_spill] sm:$0xff] }
 0x4c3   : > { %v4167_v14 = vsel %vm4063_vm13, %v4038_v34, %v3135_v20  ;;  %v3555_v20 = vsel %vm3547_vm10, %v3426_v27, %v11527_v25 }
 0x4c4   : > { %5696 = vmatmul.msk.bf16.gmra.mxu3 %vm4211_vm15, %v4167_v14  ;;  %v3684_v30 = vsel %vm3676_vm11, %v3555_v20, %v11530_v51  ;;  %v11538_v14 = vld [vmem:[#allocation302_spill] sm:$0xff]  ;;  %v11545_v51 = vld [vmem:[#allocation79_spill] sm:$0xff] }
 0x4c5   : > { %2984 = vrot.lane.b32.xlu2 %v11526_v43, %s5831_s24  ;;  %3016 = vrot.lane.b32.xlu0 %v11528_v63, %s5831_s24  ;;  %v3813_v26 = vsel %vm3805_vm12, %v3684_v30, %v8358_v9  ;;  %v11532_v9 = vld [vmem:[#allocation269_spill] sm:$0xff]  ;;  %v3395_v48 = vsel %vm3289_vm8, %v3266_v52, %v11538_v14  ;;  %v11544_v20 = vld [vmem:[#allocation194_spill] sm:$0xff]  ;;  %v3170_v30 = vsel %vm3160_vm7, %v5917_v46, %v11545_v51  ;;  %v11567_v51 = vld [vmem:[#allocation363_spill] sm:$0xff] }
 0x4c6   : > { %2888 = vrot.lane.b32.xlu1 %v11529_v11, %s5830_s23  ;;  %v3329_v6 = vsel %vm3289_vm8, %v3200_v22, %v11532_v9  ;;  %v3234_v54 = vsel %vm3160_vm7, %v10910_v55, %v11544_v20  ;;  %v11549_v55 = vld [vmem:[#allocation306_spill] sm:$0xff]  ;;  %v11551_v46 = vld [vmem:[#allocation109_spill] sm:$0xff]  ;;  %v11565_v20 = vld [vmem:[#allocation291_spill] sm:$0xff] }
 0x4c7   : > { %v3137_v8 = vpop.permute.xlu2 %3136  ;;  %v2911_v2 = vpop.permute.xlu0 %2910  ;;  %v3458_v10 = vsel %vm3418_vm9, %v3329_v6, %v11533_v31  ;;  %v11552_v22 = vld [vmem:[#allocation378_spill] sm:$0xff]  ;;  %v11553_v6 = vld [vmem:[#allocation167_spill] sm:$0xff] }
 0x4c8   : > { %v3103_v0 = vpop.permute.xlu1 %3102  ;;  %v3942_v29 = vsel %vm3934_vm14, %v3813_v26, %v2911_v2  ;;  %v3363_v26 = vsel %vm3289_vm8, %v3234_v54, %v11546_v24  ;;  %v11554_v31 = vld [vmem:[#allocation155_spill] sm:$0xff]  ;;  %v11559_v14 = vld [vmem:[#allocation266_spill] sm:$0xff]  ;;  %v11569_v24 = vld [vmem:[#allocation65_spill] sm:$0xff] }
 0x4c9   : > { %v4135_v23 = vsel %vm4063_vm13, %v4006_v19, %v3103_v0  ;;  %v4071_v12 = vsel %vm4063_vm13, %v3942_v29, %v3039_v13  ;;  %v3587_v13 = vsel %vm3547_vm10, %v3458_v10, %v11534_v50  ;;  %v11548_v0 = vld [vmem:[#allocation349_spill] sm:$0xff]  ;;  %v11555_v10 = vld [vmem:[#allocation439_spill] sm:$0xff] }
 0x4ca   : > { %5680 = vmatmul.msk.bf16.gmra.mxu2 %vm4211_vm15, %v4135_v23  ;;  %5648 = vmatmul.msk.bf16.gmra.mxu0 %vm4211_vm15, %v4071_v12  ;;  %v3716_v36 = vsel %vm3676_vm11, %v3587_v13, %v8166_v60  ;;  %v11539_v60 = vld [vmem:[#allocation192_spill] sm:$0xff]  ;;  %v3492_v29 = vsel %vm3418_vm9, %v3363_v26, %v11548_v0  ;;  %v11550_v12 = vld [vmem:[#allocation399_spill] sm:$0xff]  ;;  %v11570_v26 = vld [vmem:[#allocation426_spill] sm:$0xff] }
 0x4cb   : > { %v3845_v34 = vsel %vm3805_vm12, %v3716_v36, %v8378_v15  ;;  %v3524_v15 = vsel %vm3418_vm9, %v3395_v48, %v11540_v47  ;;  %v3621_v61 = vsel %vm3547_vm10, %v3492_v29, %v11550_v12  ;;  %v11560_v48 = vld [vmem:[#allocation398_spill] sm:$0xff]  ;;  %v11562_v47 = vld [vmem:[#allocation236_spill] sm:$0xff] }
 0x4cc   : > { %v3653_v27 = vsel %vm3547_vm10, %v3524_v15, %v11543_v32  ;;  %v3750_v9 = vsel %vm3676_vm11, %v3621_v61, %v8224_v42  ;;  %v11572_v61 = vld [vmem:[#allocation85_spill] sm:$0xff] }
 0x4cd   : > { %3144 = vrot.lane.b32.xlu2 %v11324_v49, %s5832_s25  ;;  %2920 = vrot.lane.b32.xlu0 %v11535_v7, %s5831_s24  ;;  %v3782_v28 = vsel %vm3676_vm11, %v3653_v27, %v8298_v17  ;;  %v11547_v17 = vld [vmem:[#allocation118_spill] sm:$0xff]  ;;  %v3879_v13 = vsel %vm3805_vm12, %v3750_v9, %v8499_v3 }
 0x4ce   : > { %3112 = vrot.lane.b32.xlu1 %v11536_v21, %s5832_s25  ;;  %v3299_v2 = vsel %vm3289_vm8, %v3170_v30, %v11547_v17  ;;  %v4008_v36 = vsel %vm3934_vm14, %v3879_v13, %v8803_v62  ;;  %v11558_v62 = vld [vmem:[#allocation331_spill] sm:$0xff]  ;;  %v11568_v30 = vld [vmem:[#allocation220_spill] sm:$0xff] }
 0x4cf   : > { %v3041_v18 = vpop.permute.xlu2 %3040  ;;  %v3071_v45 = vpop.permute.xlu0 %3070  ;;  %v3428_v23 = vsel %vm3418_vm9, %v3299_v2, %v11549_v55  ;;  %v11571_v55 = vld [vmem:[#allocation201_spill] sm:$0xff] }
 0x4d0   : > { %v2943_v40 = vpop.permute.xlu1 %2942 }
 0x4d1   : > { %v3974_v49 = vsel %vm3934_vm14, %v3845_v34, %v2943_v40 }
 0x4d2   : > { %v4103_v33 = vsel %vm4063_vm13, %v3974_v49, %v3071_v45 }
 0x4d3   : > { %5664 = vmatmul.msk.bf16.gmra.mxu1 %vm4211_vm15, %v4103_v33  ;;  %v11556_v33 = vld [vmem:[#allocation134_spill] sm:$0xff] }
 0x4d4   : > { %v3202_v3 = vsel %vm3160_vm7, %v6159_v4, %v11556_v33  ;;  %v11563_v4 = vld [vmem:[#allocation250_spill] sm:$0xff]  ;;  %v11582_v33 = vld [vmem:[#allocation168_spill] sm:$0xff] }
 0x4d5   : > { %3048 = vrot.lane.b32.xlu2 %v11539_v60, %s5832_s25  ;;  %3080 = vrot.lane.b32.xlu0 %v11541_v16, %s5832_s25  ;;  %v11561_v60 = vld [vmem:[#allocation31_spill] sm:$0xff] }
 0x4d6   : > { %2952 = vrot.lane.b32.xlu1 %v11542_v1, %s5831_s24 }
 0x4d7   : > { %v8887_v58 = vpop.permute.xlu2 %2978  ;;  %v3009_v38 = vpop.permute.xlu0 %3008 }
 0x4d8   : > { %v2881_v43 = vpop.permute.xlu1 %2880 }
 0x4d9   : > { %v3911_v25 = vsel %vm3805_vm12, %v3782_v28, %v2881_v43  ;;  %v11564_v43 = vld [vmem:[#allocation215_spill] sm:$0xff] }
 0x4da   : > { %v4040_v63 = vsel %vm3934_vm14, %v3911_v25, %v3009_v38  ;;  %v3268_v25 = vsel %vm3160_vm7, %v11370_v35, %v11564_v43  ;;  %v11589_v43 = vld [vmem:[#allocation268_spill] sm:$0xff] }
 0x4db   : > { %v4169_v19 = vsel %vm4063_vm13, %v4040_v63, %v3137_v8  ;;  %v3557_v8 = vsel %vm3547_vm10, %v3428_v23, %v11552_v22  ;;  %v3397_v54 = vsel %vm3289_vm8, %v3268_v25, %v11565_v20  ;;  %v11566_v63 = vld [vmem:[#allocation199_spill] sm:$0xff]  ;;  %v3236_v23 = vsel %vm3160_vm7, %v10911_v44, %v11571_v55  ;;  %v11577_v44 = vld [vmem:[#allocation316_spill] sm:$0xff]  ;;  %v11590_v20 = vld [vmem:[#allocation334_spill] sm:$0xff] }
 0x4dc   : > { %5697 = vmatmul.msk.bf16.gmra.mxu3 %vm4211_vm15, %v4169_v19  ;;  %v3686_v50 = vsel %vm3676_vm11, %v3557_v8, %v11555_v10  ;;  %v11574_v8 = vld [vmem:[#allocation287_spill] sm:$0xff] }
 0x4dd   : > { %2986 = vrot.lane.b32.xlu2 %v11551_v46, %s5831_s24  ;;  %3018 = vrot.lane.b32.xlu0 %v11553_v6, %s5831_s24  ;;  %v3815_v21 = vsel %vm3805_vm12, %v3686_v50, %v8318_v57  ;;  %v11557_v57 = vld [vmem:[#allocation252_spill] sm:$0xff]  ;;  %v11573_v46 = vld [vmem:[#allocation7_spill] sm:$0xff]  ;;  %v3365_v9 = vsel %vm3289_vm8, %v3236_v23, %v11574_v8  ;;  %v11576_v50 = vld [vmem:[#allocation338_spill] sm:$0xff] }
 0x4de   : > { %2890 = vrot.lane.b32.xlu1 %v11554_v31, %s5830_s23  ;;  %v3331_v53 = vsel %vm3289_vm8, %v3202_v3, %v11557_v57  ;;  %v3172_v22 = vsel %vm3160_vm7, %v11573_v46, %v11572_v61  ;;  %v3494_v13 = vsel %vm3418_vm9, %v3365_v9, %v11576_v50  ;;  %v11583_v3 = vld [vmem:[#allocation163_spill] sm:$0xff]  ;;  %v11584_v57 = vld [vmem:[#allocation428_spill] sm:$0xff]  ;;  %v11598_v9 = vld [vmem:[#allocation129_spill] sm:$0xff] }
 0x4df   : > { %v3139_v7 = vpop.permute.xlu2 %3138  ;;  %v2913_v42 = vpop.permute.xlu0 %2912  ;;  %v3460_v52 = vsel %vm3418_vm9, %v3331_v53, %v11558_v62  ;;  %v11585_v62 = vld [vmem:[#allocation15_spill] sm:$0xff] }
 0x4e0   : > { %v3105_v34 = vpop.permute.xlu1 %3104  ;;  %v3944_v45 = vsel %vm3934_vm14, %v3815_v21, %v2913_v42  ;;  %v11597_v8 = vld [vmem:[#allocation63_spill] sm:$0xff] }
 0x4e1   : > { %v4137_v40 = vsel %vm4063_vm13, %v4008_v36, %v3105_v34  ;;  %v4073_v49 = vsel %vm4063_vm13, %v3944_v45, %v3041_v18  ;;  %v3589_v18 = vsel %vm3547_vm10, %v3460_v52, %v11560_v48  ;;  %v11578_v36 = vld [vmem:[#allocation409_spill] sm:$0xff]  ;;  %v11579_v34 = vld [vmem:[#allocation124_spill] sm:$0xff]  ;;  %v11580_v45 = vld [vmem:[#allocation382_spill] sm:$0xff] }
 0x4e2   : > { %5681 = vmatmul.msk.bf16.gmra.mxu2 %vm4211_vm15, %v4137_v40  ;;  %5649 = vmatmul.msk.bf16.gmra.mxu0 %vm4211_vm15, %v4073_v49  ;;  %v3718_v15 = vsel %vm3676_vm11, %v3589_v18, %v11563_v4  ;;  %v3623_v42 = vsel %vm3547_vm10, %v3494_v13, %v11578_v36  ;;  %v11581_v40 = vld [vmem:[#allocation461_spill] sm:$0xff] }
 0x4e3   : > { %v3847_v1 = vsel %vm3805_vm12, %v3718_v15, %v8416_v56  ;;  %v3526_v56 = vsel %vm3418_vm9, %v3397_v54, %v11567_v51  ;;  %v3752_v49 = vsel %vm3676_vm11, %v3623_v42, %v11581_v40  ;;  %v11586_v48 = vld [vmem:[#allocation121_spill] sm:$0xff]  ;;  %v11605_v40 = vld [vmem:[#allocation10_spill] sm:$0xff] }
 0x4e4   : > { %v3655_v19 = vsel %vm3547_vm10, %v3526_v56, %v11570_v26  ;;  %v3881_v52 = vsel %vm3805_vm12, %v3752_v49, %v11585_v62  ;;  %v11593_v56 = vld [vmem:[#allocation33_spill] sm:$0xff]  ;;  %v11595_v26 = vld [vmem:[#allocation448_spill] sm:$0xff] }
 0x4e5   : > { %3146 = vrot.lane.b32.xlu2 %v11559_v14, %s5832_s25  ;;  %2922 = vrot.lane.b32.xlu0 %v11561_v60, %s5831_s24  ;;  %v3784_v35 = vsel %vm3676_vm11, %v3655_v19, %v8258_v59  ;;  %v11575_v59 = vld [vmem:[#allocation92_spill] sm:$0xff]  ;;  %v4010_v60 = vsel %vm3934_vm14, %v3881_v52, %v8887_v58  ;;  %v9026_v58 = vld [vmem:[%s10262_s2] ss:$0 sm:$0xff]  ;;  %v11600_v13 = vld [vmem:[#allocation197_spill] sm:$0xff] }
 0x4e6   : > { %3114 = vrot.lane.b32.xlu1 %v11562_v47, %s5832_s25  ;;  %v3301_v10 = vsel %vm3289_vm8, %v3172_v22, %v11575_v59  ;;  %v11602_v36 = vld [vmem:[#allocation221_spill] sm:$0xff] }
 0x4e7   : > { %v3043_v16 = vpop.permute.xlu2 %3042  ;;  %v3073_v32 = vpop.permute.xlu0 %3072  ;;  %v3430_v21 = vsel %vm3418_vm9, %v3301_v10, %v11577_v44  ;;  %v11599_v10 = vld [vmem:[#allocation301_spill] sm:$0xff]  ;;  %v11601_v44 = vld [vmem:[#allocation367_spill] sm:$0xff] }
 0x4e8   : > { %v2945_v27 = vpop.permute.xlu1 %2944 }
 0x4e9   : > { %v3976_v28 = vsel %vm3934_vm14, %v3847_v1, %v2945_v27  ;;  %v11587_v27 = vld [vmem:[#allocation158_spill] sm:$0xff] }
 0x4ea   : > { %v4105_v38 = vsel %vm4063_vm13, %v3976_v28, %v3073_v32  ;;  %v11588_v28 = vld [vmem:[#allocation37_spill] sm:$0xff] }
 0x4eb   : > { %5665 = vmatmul.msk.bf16.gmra.mxu1 %vm4211_vm15, %v4105_v38  ;;  %v3204_v38 = vsel %vm3160_vm7, %v11588_v28, %v11587_v27 }
 0x4ec   : > { %v3333_v25 = vsel %vm3289_vm8, %v3204_v38, %v11589_v43 }
 0x4ed   : > { %3050 = vrot.lane.b32.xlu2 %v11566_v63, %s5832_s25  ;;  %3082 = vrot.lane.b32.xlu0 %v11568_v30, %s5832_s25  ;;  %v3462_v54 = vsel %vm3418_vm9, %v3333_v25, %v11590_v20  ;;  %v11592_v63 = vld [vmem:[#allocation386_spill] sm:$0xff]  ;;  %v11611_v25 = vld [vmem:[#allocation276_spill] sm:$0xff] }
 0x4ee   : > { %2954 = vrot.lane.b32.xlu1 %v11569_v24, %s5831_s24  ;;  %v3591_v51 = vsel %vm3547_vm10, %v3462_v54, %v11592_v63  ;;  %v11594_v24 = vld [vmem:[#allocation242_spill] sm:$0xff]  ;;  %v11612_v54 = vld [vmem:[#allocation320_spill] sm:$0xff] }
 0x4ef   : > { %v8971_v17 = vpop.permute.xlu2 %2980  ;;  %v3011_v2 = vpop.permute.xlu0 %3010  ;;  %v3720_v19 = vsel %vm3676_vm11, %v3591_v51, %v11595_v26 }
 0x4f0   : > { %v2883_v0 = vpop.permute.xlu1 %2882 }
 0x4f1   : > { %v3913_v29 = vsel %vm3805_vm12, %v3784_v35, %v2883_v0  ;;  %v11596_v0 = vld [vmem:[#allocation479_spill] sm:$0xff] }
 0x4f2   : > { %v4042_v12 = vsel %vm3934_vm14, %v3913_v29, %v3011_v2  ;;  %v3849_v29 = vsel %vm3805_vm12, %v3720_v19, %v11596_v0 }
 0x4f3   : > { %v4171_v6 = vsel %vm4063_vm13, %v4042_v12, %v3139_v7  ;;  %v3559_v7 = vsel %vm3547_vm10, %v3430_v21, %v11580_v45 }
 0x4f4   : > { %5698 = vmatmul.msk.bf16.gmra.mxu3 %vm4211_vm15, %v4171_v6  ;;  %v3688_v53 = vsel %vm3676_vm11, %v3559_v7, %v11584_v57  ;;  %v3270_v6 = vsel %vm3160_vm7, %v11598_v9, %v11597_v8  ;;  %v11604_v7 = vld [vmem:[#allocation111_spill] sm:$0xff]  ;;  %v11617_v8 = vld [vmem:[#allocation438_spill] sm:$0xff] }
 0x4f5   : > { %2988 = vrot.lane.b32.xlu2 %v11579_v34, %s5831_s24  ;;  %3020 = vrot.lane.b32.xlu0 %v11582_v33, %s5831_s24  ;;  %v3817_v18 = vsel %vm3805_vm12, %v3688_v53, %v11586_v48  ;;  %v3399_v50 = vsel %vm3289_vm8, %v3270_v6, %v11599_v10  ;;  %v11603_v34 = vld [vmem:[#allocation62_spill] sm:$0xff]  ;;  %v3174_v49 = vsel %vm3160_vm7, %v11605_v40, %v11604_v7  ;;  %v11606_v33 = vld [vmem:[#allocation415_spill] sm:$0xff]  ;;  %v11618_v6 = vld [vmem:[#allocation453_spill] sm:$0xff] }
 0x4f6   : > { %2892 = vrot.lane.b32.xlu1 %v11583_v3, %s5830_s23  ;;  %v3528_v21 = vsel %vm3418_vm9, %v3399_v50, %v11601_v44  ;;  %v11607_v48 = vld [vmem:[#allocation183_spill] sm:$0xff]  ;;  %v11622_v7 = vld [vmem:[#allocation170_spill] sm:$0xff] }
 0x4f7   : > { %v9009_v14 = vpop.permute.xlu2 %3140  ;;  %v2915_v47 = vpop.permute.xlu0 %2914  ;;  %v3657_v57 = vsel %vm3547_vm10, %v3528_v21, %v11606_v33  ;;  %v11619_v50 = vld [vmem:[#allocation171_spill] sm:$0xff]  ;;  %v11623_v40 = vld [vmem:[#allocation46_spill] sm:$0xff]  ;;  %v11624_v33 = vld [vmem:[#allocation136_spill] sm:$0xff] }
 0x4f8   : > { %v3107_v4 = vpop.permute.xlu1 %3106  ;;  %v3946_v15 = vsel %vm3934_vm14, %v3817_v18, %v2915_v47  ;;  %v11608_v18 = vld [vmem:[#allocation83_spill] sm:$0xff] }
 0x4f9   : > { %v4139_v1 = vsel %vm4063_vm13, %v4010_v60, %v3107_v4  ;;  %v4075_v32 = vsel %vm4063_vm13, %v3946_v15, %v3043_v16  ;;  %v11591_v16 = vld [vmem:[#allocation264_spill] sm:$0xff]  ;;  %v3238_v60 = vsel %vm3160_vm7, %v11608_v18, %v11607_v48  ;;  %v11609_v47 = vld [vmem:[#allocation119_spill] sm:$0xff]  ;;  %v11610_v15 = vld [vmem:[#allocation470_spill] sm:$0xff] }
 0x4fa   : > { %5682 = vmatmul.msk.bf16.gmra.mxu2 %vm4211_vm15, %v4139_v1  ;;  %5650 = vmatmul.msk.bf16.gmra.mxu0 %vm4211_vm15, %v4075_v32  ;;  %v3303_v4 = vsel %vm3289_vm8, %v3174_v49, %v11609_v47  ;;  %v3786_v1 = vsel %vm3676_vm11, %v3657_v57, %v11610_v15  ;;  %v3367_v20 = vsel %vm3289_vm8, %v3238_v60, %v11611_v25 }
 0x4fb   : > { %v3206_v49 = vsel %vm3160_vm7, %v11623_v40, %v11622_v7  ;;  %v11636_v7 = vld [vmem:[#allocation84_spill] sm:$0xff] }
 0x4fd   : > { %3148 = vrot.lane.b32.xlu2 %v11591_v16, %s5832_s25  ;;  %2924 = vrot.lane.b32.xlu0 %v11593_v56, %s5831_s24  ;;  %v4516_v30 = vpop.f32.mrf.mxu2  ;;  %v3432_v16 = vsel %vm3418_vm9, %v3303_v4, %v11612_v54  ;;  %v11613_v56 = vld [vmem:[#allocation348_spill] sm:$0xff] }
 0x4fe   : > { %3116 = vrot.lane.b32.xlu1 %v11594_v24, %s5832_s25  ;;  %v4517_v35 = vadd.f32 %v9026_v58, %v4516_v30  ;;  %v3496_v30 = vsel %vm3418_vm9, %v3367_v20, %v11613_v56  ;;  %v11626_v54 = vld [vmem:[#allocation324_spill] sm:$0xff] }
 0x4ff   : > { %v9043_v2 = vpop.permute.xlu2 %3044  ;;  %v3075_v55 = vpop.permute.xlu0 %3074 }
 0x500   : > { %v2947_v23 = vpop.permute.xlu1 %2946  ;;  %vm4740_vm0 = vcmp.ge.f32.partialorder %v4517_v35, 0.0  ;;  %v4868_v12 = vmul.f32 0.01, %v4517_v35 }
 0x501   : > { %v3978_v61 = vsel %vm3934_vm14, %v3849_v29, %v2947_v23 }
 0x502   : > { %v4107_v46 = vsel %vm4063_vm13, %v3978_v61, %v3075_v55  ;;  %v4996_v22 = vsel %vm4740_vm0, %v4517_v35, %v4868_v12  ;;  %v11614_v55 = vld [vmem:[#allocation371_spill] sm:$0xff]  ;;  %v11615_v12 = vld [vmem:[#allocation412_spill] sm:$0xff] }
 0x503   : > { %5666 = vmatmul.msk.bf16.gmra.mxu1 %vm4211_vm15, %v4107_v46  ;;  %v5124_v59 = vpack.c.bf16 %v4996_v22, %v4996_v22  ;;  %v3561_v23 = vsel %vm3547_vm10, %v3432_v16, %v11614_v55  ;;  %v3625_v61 = vsel %vm3547_vm10, %v3496_v30, %v11615_v12  ;;  %v11616_v22 = vld [vmem:[#allocation120_spill] sm:$0xff] }
 0x504   : > { %v3690_v9 = vsel %vm3676_vm11, %v3561_v23, %v11617_v8 }
 0x505   : > { %3052 = vrot.lane.b32.xlu2 %v11600_v13, %s5832_s25  ;;  %5253 = vst.msk [vmem:[%s9054_s9 + $0x100] sm:$0xf] %vm5188_vm1, %v5124_v59  ;;  %3084 = vrot.lane.b32.xlu0 %v11602_v36, %s5832_s25  ;;  %v4518_v42 = vpop.f32.mrf.mxu2  ;;  %v3754_v59 = vsel %vm3676_vm11, %v3625_v61, %v11618_v6  ;;  %v11621_v36 = vld [vmem:[#allocation165_spill] sm:$0xff]  ;;  %v3819_v57 = vsel %vm3805_vm12, %v3690_v9, %v11624_v33  ;;  %v11632_v61 = vld [vmem:[#allocation144_spill] sm:$0xff] }
 0x506   : > { %2956 = vrot.lane.b32.xlu1 %v11603_v34, %s5831_s24  ;;  %v4596_v45 = vpop.f32.mrf.mxu3  ;;  %v4519_v53 = vadd.f32 %v9026_v58, %v4518_v42  ;;  %v11638_v33 = vld [vmem:[#allocation133_spill] sm:$0xff] }
 0x507   : > { %v4597_v62 = vadd.f32 %v9026_v58, %v4596_v45  ;;  %v9079_v52 = vpop.permute.xlu2 %2982  ;;  %v3013_v32 = vpop.permute.xlu0 %3012 }
 0x508   : > { %v2885_v27 = vpop.permute.xlu1 %2884  ;;  %vm4741_vm2 = vcmp.ge.f32.partialorder %v4519_v53, 0.0  ;;  %v4869_v28 = vmul.f32 0.01, %v4519_v53  ;;  %v4356_v43 = vpop.f32.mrf.mxu0 }
 0x509   : > { %vm4772_vm3 = vcmp.ge.f32.partialorder %v4597_v62, 0.0  ;;  %v4900_v38 = vmul.f32 0.01, %v4597_v62  ;;  %v3915_v63 = vsel %vm3805_vm12, %v3786_v1, %v2885_v27  ;;  %v4357_v51 = vadd.f32 %v9026_v58, %v4356_v43  ;;  %v11625_v27 = vld [vmem:[#allocation272_spill] sm:$0xff] }
 0x50a   : > { %v4997_v24 = vsel %vm4741_vm2, %v4519_v53, %v4869_v28  ;;  %v4044_v19 = vsel %vm3934_vm14, %v3915_v63, %v3013_v32  ;;  %v3335_v28 = vsel %vm3289_vm8, %v3206_v49, %v11625_v27  ;;  %v11627_v63 = vld [vmem:[#allocation265_spill] sm:$0xff]  ;;  %v11637_v49 = vld [vmem:[#allocation226_spill] sm:$0xff] }
 0x50b   : > { %v5028_v26 = vsel %vm4772_vm3, %v4597_v62, %v4900_v38  ;;  %v5125_v35 = vpack.c.bf16 %v4997_v24, %v4997_v24  ;;  %vm4676_vm4 = vcmp.ge.f32.partialorder %v4357_v51, 0.0  ;;  %v4804_v29 = vmul.f32 0.01, %v4357_v51  ;;  %v11629_v24 = vld [vmem:[#allocation32_spill] sm:$0xff] }
 0x50c   : > { %v5156_v0 = vpack.c.bf16 %v5028_v26, %v5028_v26  ;;  %v4173_v46 = vsel %vm4063_vm13, %v4044_v19, %v9009_v14  ;;  %v11620_v14 = vld [vmem:[#allocation149_spill] sm:$0xff]  ;;  %v11630_v19 = vld [vmem:[#allocation450_spill] sm:$0xff] }
 0x50d   : > { %2990 = vrot.lane.b32.xlu2 %v11616_v22, %s5831_s24  ;;  %5254 = vst.msk [vmem:[%s9054_s9 + $0x104] sm:$0xf] %vm5188_vm1, %v5125_v35  ;;  %v4932_v10 = vsel %vm4676_vm4, %v4357_v51, %v4804_v29  ;;  %3022 = vrot.lane.b32.xlu0 %v11619_v50, %s5831_s24  ;;  %v3883_v44 = vsel %vm3805_vm12, %v3754_v59, %v11620_v14  ;;  %v11628_v51 = vld [vmem:[#allocation397_spill] sm:$0xff]  ;;  %v11631_v29 = vld [vmem:[#allocation240_spill] sm:$0xff] }
 0x50e   : > { %5699 = vmatmul.msk.bf16.gmra.mxu3 %vm4211_vm15, %v4173_v46  ;;  %v4598_v13 = vpop.f32.mrf.mxu3  ;;  %5285 = vst.msk [vmem:[%s9054_s9 + $0x180] sm:$0xf] %vm5188_vm1, %v5156_v0  ;;  %v5060_v21 = vpack.c.bf16 %v4932_v10, %v4932_v10  ;;  %2894 = vrot.lane.b32.xlu1 %v11621_v36, %s5830_s23  ;;  %v4012_v53 = vsel %vm3934_vm14, %v3883_v44, %v8971_v17  ;;  %v11633_v44 = vld [vmem:[#allocation126_spill] sm:$0xff] }
 0x50f   : > { %v4599_v42 = vadd.f32 %v9026_v58, %v4598_v13  ;;  %v4436_v34 = vpop.f32.mrf.mxu1  ;;  %v9121_v45 = vpop.permute.xlu2 %3142 }
 0x510   : > { %v2917_v62 = vpop.permute.xlu0 %2916  ;;  %v4437_v48 = vadd.f32 %v9026_v58, %v4436_v34  ;;  %v3109_v18 = vpop.permute.xlu1 %3108  ;;  %5189 = vst.msk [vmem:[%s9054_s9] sm:$0xf] %vm5188_vm1, %v5060_v21  ;;  %v11634_v21 = vld [vmem:[#allocation11_spill] sm:$0xff]  ;;  %v11635_v34 = vld [vmem:[#allocation200_spill] sm:$0xff] }
 0x511   : > { %v3948_v60 = vsel %vm3934_vm14, %v3819_v57, %v2917_v62  ;;  %vm4773_vm5 = vcmp.ge.f32.partialorder %v4599_v42, 0.0  ;;  %v4901_v47 = vmul.f32 0.01, %v4599_v42  ;;  %v4358_v4 = vpop.f32.mrf.mxu0  ;;  %v4141_v15 = vsel %vm4063_vm13, %v4012_v53, %v3109_v18 }
 0x512   : > { %v4077_v1 = vsel %vm4063_vm13, %v3948_v60, %v9043_v2  ;;  %vm4708_vm6 = vcmp.ge.f32.partialorder %v4437_v48, 0.0  ;;  %v4836_v32 = vmul.f32 0.01, %v4437_v48  ;;  %v4359_v17 = vadd.f32 %v9026_v58, %v4358_v4  ;;  %5683 = vmatmul.msk.bf16.gmra.mxu2 %vm4211_vm15, %v4141_v15  ;;  %v11639_v60 = vld [vmem:[#allocation248_spill] sm:$0xff]  ;;  %v11640_v4 = vld [vmem:[#allocation286_spill] sm:$0xff] }
 0x513   : > { %5651 = vmatmul.msk.bf16.gmra.mxu0 %vm4211_vm15, %v4077_v1  ;;  %v5029_v38 = vsel %vm4773_vm5, %v4599_v42, %v4901_v47  ;;  %v3464_v2 = vsel %vm3418_vm9, %v3335_v28, %v11626_v54  ;;  %v3176_v42 = vsel %vm3160_vm7, %v11634_v21, %v11633_v44  ;;  %v3240_v40 = vsel %vm3160_vm7, %v11636_v7, %v11635_v34  ;;  %v11641_v1 = vld [vmem:[#allocation305_spill] sm:$0xff]  ;;  %v11642_v28 = vld [vmem:[#allocation198_spill] sm:$0xff] }
 0x514   : > { %v5157_v43 = vpack.c.bf16 %v5029_v38, %v5029_v38  ;;  %v4964_v25 = vsel %vm4708_vm6, %v4437_v48, %v4836_v32  ;;  %vm4677_vm0 = vcmp.ge.f32.partialorder %v4359_v17, 0.0  ;;  %v4805_v20 = vmul.f32 0.01, %v4359_v17  ;;  %v11643_v38 = vld [vmem:[#allocation309_spill] sm:$0xff] }
 0x515   : > { %v5092_v16 = vpack.c.bf16 %v4964_v25, %v4964_v25  ;;  %3150 = vrot.lane.b32.xlu2 %v11627_v63, %s5832_s25  ;;  %v3593_v56 = vsel %vm3547_vm10, %v3464_v2, %v11628_v51  ;;  %2926 = vrot.lane.b32.xlu0 %v11629_v24, %s5831_s24  ;;  %v3272_v57 = vsel %vm3160_vm7, %v11638_v33, %v11637_v49  ;;  %v11651_v49 = vld [vmem:[#allocation402_spill] sm:$0xff] }
 0x516   : > { %5286 = vst.msk [vmem:[%s9054_s9 + $0x184] sm:$0xf] %vm5188_vm1, %v5157_v43  ;;  %v4933_v30 = vsel %vm4677_vm0, %v4359_v17, %v4805_v20  ;;  %v4601_v26 = vpop.f32.mrf.mxu3  ;;  %v3722_v35 = vsel %vm3676_vm11, %v3593_v56, %v11630_v19  ;;  %3118 = vrot.lane.b32.xlu1 %v11631_v29, %s5832_s25  ;;  %v3305_v47 = vsel %vm3289_vm8, %v3176_v42, %v11639_v60  ;;  %v11644_v20 = vld [vmem:[#allocation224_spill] sm:$0xff]  ;;  %v11646_v56 = vld [vmem:[#allocation69_spill] sm:$0xff] }
 0x517   : > { %5221 = vst.msk [vmem:[%s9054_s9 + $0x80] sm:$0xf] %vm5188_vm1, %v5092_v16  ;;  %v5061_v0 = vpack.c.bf16 %v4933_v30, %v4933_v30  ;;  %v4602_v55 = vadd.f32 %v9026_v58, %v4601_v26  ;;  %v4438_v23 = vpop.f32.mrf.mxu1  ;;  %v9159_v12 = vpop.permute.xlu2 %3046  ;;  %v3851_v46 = vsel %vm3805_vm12, %v3722_v35, %v11632_v61  ;;  %v3369_v15 = vsel %vm3289_vm8, %v3240_v40, %v11640_v4  ;;  %v11645_v16 = vld [vmem:[#allocation356_spill] sm:$0xff]  ;;  %v11648_v35 = vld [vmem:[#allocation425_spill] sm:$0xff] }
 0x518   : > { %v3077_v22 = vpop.permute.xlu0 %3076  ;;  %v4439_v8 = vadd.f32 %v9026_v58, %v4438_v23  ;;  %v2949_v9 = vpop.permute.xlu1 %2948  ;;  %v3401_v32 = vsel %vm3289_vm8, %v3272_v57, %v11641_v1  ;;  %v3434_v43 = vsel %vm3418_vm9, %v3305_v47, %v11643_v38  ;;  %v11647_v26 = vld [vmem:[#allocation352_spill] sm:$0xff]  ;;  %v11657_v38 = vld [vmem:[#allocation475_spill] sm:$0xff] }
 0x519   : > { %5190 = vst.msk [vmem:[%s9054_s9 + $0x4] sm:$0xf] %vm5188_vm1, %v5061_v0  ;;  %vm4774_vm2 = vcmp.ge.f32.partialorder %v4602_v55, 0.0  ;;  %v4902_v6 = vmul.f32 0.01, %v4602_v55  ;;  %v3980_v59 = vsel %vm3934_vm14, %v3851_v46, %v2949_v9  ;;  %v4361_v10 = vpop.f32.mrf.mxu0  ;;  %v3530_v63 = vsel %vm3418_vm9, %v3401_v32, %v11645_v16  ;;  %v11649_v61 = vld [vmem:[#allocation472_spill] sm:$0xff] }
 0x51a   : > { %vm4709_vm3 = vcmp.ge.f32.partialorder %v4439_v8, 0.0  ;;  %v4837_v50 = vmul.f32 0.01, %v4439_v8  ;;  %v4362_v13 = vadd.f32 %v9026_v58, %v4361_v10  ;;  %v4109_v14 = vsel %vm4063_vm13, %v3980_v59, %v3077_v22  ;;  %v11650_v59 = vld [vmem:[#allocation381_spill] sm:$0xff]  ;;  %v11653_v47 = vld [vmem:[#allocation396_spill] sm:$0xff] }
 0x51b   : > { %v5030_v53 = vsel %vm4774_vm2, %v4602_v55, %v4902_v6  ;;  %5667 = vmatmul.msk.bf16.gmra.mxu1 %vm4211_vm15, %v4109_v14  ;;  %v3498_v19 = vsel %vm3418_vm9, %v3369_v15, %v11647_v26  ;;  %v3659_v0 = vsel %vm3547_vm10, %v3530_v63, %v11648_v35  ;;  %v3563_v10 = vsel %vm3547_vm10, %v3434_v43, %v11650_v59  ;;  %v11654_v15 = vld [vmem:[#allocation440_spill] sm:$0xff]  ;;  %v11664_v59 = vld [vmem:[#allocation38_spill] sm:$0xff] }
 0x51c   : > { %v5158_v62 = vpack.c.bf16 %v5030_v53, %v5030_v53  ;;  %v4965_v48 = vsel %vm4709_vm3, %v4439_v8, %v4837_v50  ;;  %vm4678_vm4 = vcmp.ge.f32.partialorder %v4362_v13, 0.0  ;;  %v4806_v18 = vmul.f32 0.01, %v4362_v13  ;;  %v11655_v1 = vld [vmem:[#allocation460_spill] sm:$0xff] }
 0x51d   : > { %v5093_v17 = vpack.c.bf16 %v4965_v48, %v4965_v48  ;;  %v4521_v27 = vpop.f32.mrf.mxu2  ;;  %3054 = vrot.lane.b32.xlu2 %v11642_v28, %s5832_s25  ;;  %3086 = vrot.lane.b32.xlu0 %v11644_v20, %s5832_s25  ;;  %v3788_v46 = vsel %vm3676_vm11, %v3659_v0, %v11649_v61  ;;  %v3627_v33 = vsel %vm3547_vm10, %v3498_v19, %v11651_v49  ;;  %v11652_v48 = vld [vmem:[#allocation117_spill] sm:$0xff]  ;;  %v11661_v61 = vld [vmem:[#allocation256_spill] sm:$0xff]  ;;  %v11668_v49 = vld [vmem:[#allocation478_spill] sm:$0xff] }
 0x51e   : > { %5287 = vst.msk [vmem:[%s9054_s9 + $0x188] sm:$0xf] %vm5188_vm1, %v5158_v62  ;;  %v4934_v25 = vsel %vm4678_vm4, %v4362_v13, %v4806_v18  ;;  %v4522_v54 = vadd.f32 %v9026_v58, %v4521_v27  ;;  %v4603_v2 = vpop.f32.mrf.mxu3  ;;  %2958 = vrot.lane.b32.xlu1 %v11646_v56, %s5831_s24  ;;  %v3756_v32 = vsel %vm3676_vm11, %v3627_v33, %v11655_v1  ;;  %v11656_v27 = vld [vmem:[#allocation3_spill] sm:$0xff]  ;;  %v11672_v1 = vld [vmem:[#allocation94_spill] sm:$0xff] }
 0x51f   : > { %5222 = vst.msk [vmem:[%s9054_s9 + $0x84] sm:$0xf] %vm5188_vm1, %v5093_v17  ;;  %v5062_v51 = vpack.c.bf16 %v4934_v25, %v4934_v25  ;;  %v4604_v30 = vadd.f32 %v9026_v58, %v4603_v2  ;;  %v9201_v24 = vpop.permute.xlu2 %2984  ;;  %v11658_v25 = vld [vmem:[#allocation19_spill] sm:$0xff] }
 0x520   : > { %v3015_v29 = vpop.permute.xlu0 %3014  ;;  %vm4742_vm5 = vcmp.ge.f32.partialorder %v4522_v54, 0.0  ;;  %v4870_v55 = vmul.f32 0.01, %v4522_v54  ;;  %v4441_v23 = vpop.f32.mrf.mxu1  ;;  %v3885_v20 = vsel %vm3805_vm12, %v3756_v32, %v11658_v25  ;;  %v11675_v25 = vld [vmem:[#allocation234_spill] sm:$0xff] }
 0x521   : > { %5191 = vst.msk [vmem:[%s9054_s9 + $0x8] sm:$0xf] %vm5188_vm1, %v5062_v51  ;;  %vm4775_vm6 = vcmp.ge.f32.partialorder %v4604_v30, 0.0  ;;  %v4903_v22 = vmul.f32 0.01, %v4604_v30  ;;  %v4442_v8 = vadd.f32 %v9026_v58, %v4441_v23  ;;  %v2887_v9 = vpop.permute.xlu1 %2886  ;;  %v4363_v6 = vpop.f32.mrf.mxu0  ;;  %v4014_v63 = vsel %vm3934_vm14, %v3885_v20, %v9079_v52  ;;  %v11659_v52 = vld [vmem:[#allocation146_spill] sm:$0xff] }
 0x522   : > { %v4998_v50 = vsel %vm4742_vm5, %v4522_v54, %v4870_v55  ;;  %v3917_v13 = vsel %vm3805_vm12, %v3788_v46, %v2887_v9  ;;  %v4364_v14 = vadd.f32 %v9026_v58, %v4363_v6  ;;  %v11660_v55 = vld [vmem:[#allocation45_spill] sm:$0xff] }
 0x523   : > { %v5126_v44 = vpack.c.bf16 %v4998_v50, %v4998_v50  ;;  %v5031_v21 = vsel %vm4775_vm6, %v4604_v30, %v4903_v22  ;;  %vm4710_vm0 = vcmp.ge.f32.partialorder %v4442_v8, 0.0  ;;  %v4838_v42 = vmul.f32 0.01, %v4442_v8  ;;  %v11662_v22 = vld [vmem:[#allocation445_spill] sm:$0xff] }
 0x524   : > { %v5159_v34 = vpack.c.bf16 %v5031_v21, %v5031_v21  ;;  %vm4679_vm2 = vcmp.ge.f32.partialorder %v4364_v14, 0.0  ;;  %v4807_v7 = vmul.f32 0.01, %v4364_v14  ;;  %v4046_v40 = vsel %vm3934_vm14, %v3917_v13, %v3015_v29  ;;  %v11666_v13 = vld [vmem:[#allocation241_spill] sm:$0xff]  ;;  %v11667_v21 = vld [vmem:[#allocation254_spill] sm:$0xff] }
 0x525   : > { %5255 = vst.msk [vmem:[%s9054_s9 + $0x108] sm:$0xf] %vm5188_vm1, %v5126_v44  ;;  %v4966_v57 = vsel %vm4710_vm0, %v4442_v8, %v4838_v42  ;;  %v4175_v53 = vsel %vm4063_vm13, %v4046_v40, %v9121_v45  ;;  %v4523_v62 = vpop.f32.mrf.mxu2  ;;  %2992 = vrot.lane.b32.xlu2 %v11652_v48, %s5831_s24  ;;  %3024 = vrot.lane.b32.xlu0 %v11653_v47, %s5831_s24  ;;  %v11663_v8 = vld [vmem:[#allocation16_spill] sm:$0xff] }
 0x526   : > { %5288 = vst.msk [vmem:[%s9054_s9 + $0x18c] sm:$0xf] %vm5188_vm1, %v5159_v34  ;;  %v5094_v18 = vpack.c.bf16 %v4966_v57, %v4966_v57  ;;  %v4935_v60 = vsel %vm4679_vm2, %v4364_v14, %v4807_v7  ;;  %5700 = vmatmul.msk.bf16.gmra.mxu3 %vm4211_vm15, %v4175_v53  ;;  %v4524_v4 = vadd.f32 %v9026_v58, %v4523_v62  ;;  %v11669_v47 = vld [vmem:[#allocation96_spill] sm:$0xff] }
 0x527   : > { %v3692_v45 = vsel %vm3676_vm11, %v3563_v10, %v11654_v15  ;;  %v5063_v17 = vpack.c.bf16 %v4935_v60, %v4935_v60  ;;  %2896 = vrot.lane.b32.xlu1 %v11656_v27, %s5830_s23  ;;  %v9237_v28 = vpop.permute.xlu2 %3144  ;;  %v3208_v23 = vsel %vm3160_vm7, %v11660_v55, %v11659_v52  ;;  %v11665_v10 = vld [vmem:[#allocation176_spill] sm:$0xff]  ;;  %v11673_v27 = vld [vmem:[#allocation219_spill] sm:$0xff]  ;;  %v11681_v55 = vld [vmem:[#allocation341_spill] sm:$0xff] }
 0x528   : > { %v3821_v43 = vsel %vm3805_vm12, %v3692_v45, %v11657_v38  ;;  %5223 = vst.msk [vmem:[%s9054_s9 + $0x88] sm:$0xf] %vm5188_vm1, %v5094_v18  ;;  %v2919_v54 = vpop.permute.xlu0 %2918  ;;  %vm4743_vm3 = vcmp.ge.f32.partialorder %v4524_v4, 0.0  ;;  %v4871_v2 = vmul.f32 0.01, %v4524_v4  ;;  %v4443_v16 = vpop.f32.mrf.mxu1  ;;  %v3337_v46 = vsel %vm3289_vm8, %v3208_v23, %v11661_v61  ;;  %v11671_v45 = vld [vmem:[#allocation34_spill] sm:$0xff] }
 0x529   : > { %5192 = vst.msk [vmem:[%s9054_s9 + $0xc] sm:$0xf] %vm5188_vm1, %v5063_v17  ;;  %v3950_v51 = vsel %vm3934_vm14, %v3821_v43, %v2919_v54  ;;  %v4444_v56 = vadd.f32 %v9026_v58, %v4443_v16  ;;  %v3111_v30 = vpop.permute.xlu1 %3110  ;;  %v3466_v9 = vsel %vm3418_vm9, %v3337_v46, %v11663_v8  ;;  %v3242_v32 = vsel %vm3160_vm7, %v11672_v1, %v11671_v45  ;;  %v11674_v38 = vld [vmem:[#allocation145_spill] sm:$0xff]  ;;  %v11682_v61 = vld [vmem:[#allocation366_spill] sm:$0xff] }
 0x52a   : > { %v4999_v26 = vsel %vm4743_vm3, %v4524_v4, %v4871_v2  ;;  %v4079_v19 = vsel %vm4063_vm13, %v3950_v51, %v9159_v12  ;;  %v4143_v35 = vsel %vm4063_vm13, %v4014_v63, %v3111_v30  ;;  %v3595_v50 = vsel %vm3547_vm10, %v3466_v9, %v11665_v10  ;;  %v11670_v4 = vld [vmem:[#allocation17_spill] sm:$0xff]  ;;  %v11677_v51 = vld [vmem:[#allocation290_spill] sm:$0xff]  ;;  %v11684_v9 = vld [vmem:[#allocation427_spill] sm:$0xff] }
 0x52b   : > { %v5127_v0 = vpack.c.bf16 %v4999_v26, %v4999_v26  ;;  %5652 = vmatmul.msk.bf16.gmra.mxu0 %vm4211_vm15, %v4079_v19  ;;  %vm4711_vm4 = vcmp.ge.f32.partialorder %v4444_v56, 0.0  ;;  %v4839_v29 = vmul.f32 0.01, %v4444_v56  ;;  %5684 = vmatmul.msk.bf16.gmra.mxu2 %vm4211_vm15, %v4143_v35  ;;  %v3724_v42 = vsel %vm3676_vm11, %v3595_v50, %v11667_v21  ;;  %v11676_v63 = vld [vmem:[#allocation205_spill] sm:$0xff]  ;;  %v11678_v30 = vld [vmem:[#allocation294_spill] sm:$0xff] }
 0x52c   : > { %v3853_v33 = vsel %vm3805_vm12, %v3724_v42, %v11668_v49  ;;  %v3178_v15 = vsel %vm3160_vm7, %v11670_v4, %v11669_v47  ;;  %v3274_v43 = vsel %vm3160_vm7, %v11674_v38, %v11673_v27  ;;  %v11679_v35 = vld [vmem:[#allocation66_spill] sm:$0xff]  ;;  %v11686_v42 = vld [vmem:[#allocation411_spill] sm:$0xff] }
 0x52d   : > { %5256 = vst.msk [vmem:[%s9054_s9 + $0x10c] sm:$0xf] %vm5188_vm1, %v5127_v0  ;;  %v4967_v12 = vsel %vm4711_vm4, %v4444_v56, %v4839_v29  ;;  %3152 = vrot.lane.b32.xlu2 %v11662_v22, %s5832_s25  ;;  %2928 = vrot.lane.b32.xlu0 %v11664_v59, %s5831_s24  ;;  %v3307_v20 = vsel %vm3289_vm8, %v3178_v15, %v11675_v25  ;;  %v11680_v29 = vld [vmem:[#allocation319_spill] sm:$0xff] }
 0x52e   : > { %v5095_v6 = vpack.c.bf16 %v4967_v12, %v4967_v12  ;;  %v3371_v56 = vsel %vm3289_vm8, %v3242_v32, %v11677_v51  ;;  %v3403_v26 = vsel %vm3289_vm8, %v3274_v43, %v11678_v30  ;;  %v3436_v52 = vsel %vm3418_vm9, %v3307_v20, %v11680_v29  ;;  %v11683_v12 = vld [vmem:[#allocation72_spill] sm:$0xff]  ;;  %v11688_v38 = vld [vmem:[#allocation127_spill] sm:$0xff] }
 0x52f   : > { %3120 = vrot.lane.b32.xlu1 %v11666_v13, %s5832_s25  ;;  %v4606_v14 = vpop.f32.mrf.mxu3  ;;  %v9273_v44 = vpop.permute.xlu2 %3048  ;;  %v3500_v23 = vsel %vm3418_vm9, %v3371_v56, %v11681_v55  ;;  %v3532_v46 = vsel %vm3418_vm9, %v3403_v26, %v11682_v61  ;;  %v11689_v20 = vld [vmem:[#allocation395_spill] sm:$0xff]  ;;  %v11692_v56 = vld [vmem:[#allocation333_spill] sm:$0xff]  ;;  %v11693_v26 = vld [vmem:[#allocation110_spill] sm:$0xff] }
 0x530   : > { %5224 = vst.msk [vmem:[%s9054_s9 + $0x8c] sm:$0xf] %vm5188_vm1, %v5095_v6  ;;  %v3079_v34 = vpop.permute.xlu0 %3078  ;;  %v4366_v7 = vpop.f32.mrf.mxu0  ;;  %v4607_v40 = vadd.f32 %v9026_v58, %v4606_v14  ;;  %v3661_v6 = vsel %vm3547_vm10, %v3532_v46, %v11684_v9  ;;  %v11685_v14 = vld [vmem:[#allocation385_spill] sm:$0xff] }
 0x531   : > { %v4367_v57 = vadd.f32 %v9026_v58, %v4366_v7  ;;  %v2951_v53 = vpop.permute.xlu1 %2950  ;;  %v3565_v21 = vsel %vm3547_vm10, %v3436_v52, %v11685_v14  ;;  %v11687_v7 = vld [vmem:[#allocation466_spill] sm:$0xff]  ;;  %v11697_v14 = vld [vmem:[#allocation271_spill] sm:$0xff] }
 0x532   : > { %vm4776_vm5 = vcmp.ge.f32.partialorder %v4607_v40, 0.0  ;;  %v4904_v62 = vmul.f32 0.01, %v4607_v40  ;;  %v3982_v48 = vsel %vm3934_vm14, %v3853_v33, %v2951_v53 }
 0x533   : > { %vm4680_vm6 = vcmp.ge.f32.partialorder %v4367_v57, 0.0  ;;  %v4808_v18 = vmul.f32 0.01, %v4367_v57  ;;  %v4111_v60 = vsel %vm4063_vm13, %v3982_v48, %v3079_v34  ;;  %v3629_v34 = vsel %vm3547_vm10, %v3500_v23, %v11686_v42  ;;  %v11699_v42 = vld [vmem:[#allocation337_spill] sm:$0xff] }
 0x534   : > { %v5032_v17 = vsel %vm4776_vm5, %v4607_v40, %v4904_v62  ;;  %5668 = vmatmul.msk.bf16.gmra.mxu1 %vm4211_vm15, %v4111_v60  ;;  %v3790_v40 = vsel %vm3676_vm11, %v3661_v6, %v11687_v7 }
 0x535   : > { %v4936_v54 = vsel %vm4680_vm6, %v4367_v57, %v4808_v18  ;;  %v5160_v2 = vpack.c.bf16 %v5032_v17, %v5032_v17  ;;  %v4526_v16 = vpop.f32.mrf.mxu2  ;;  %3056 = vrot.lane.b32.xlu2 %v11676_v63, %s5832_s25  ;;  %3088 = vrot.lane.b32.xlu0 %v11679_v35, %s5832_s25  ;;  %v11691_v63 = vld [vmem:[#allocation463_spill] sm:$0xff]  ;;  %v11694_v35 = vld [vmem:[#allocation181_spill] sm:$0xff] }
 0x536   : > { %v5064_v19 = vpack.c.bf16 %v4936_v54, %v4936_v54  ;;  %v4527_v0 = vadd.f32 %v9026_v58, %v4526_v16 }
 0x537   : > { %5289 = vst.msk [vmem:[%s9054_s9 + $0x190] sm:$0xf] %vm5188_vm1, %v5160_v2  ;;  %2960 = vrot.lane.b32.xlu1 %v11683_v12, %s5831_s24  ;;  %v4608_v22 = vpop.f32.mrf.mxu3  ;;  %v9316_v8 = vpop.permute.xlu2 %2986  ;;  %v11690_v2 = vld [vmem:[#allocation431_spill] sm:$0xff] }
 0x538   : > { %5193 = vst.msk [vmem:[%s9054_s9 + $0x10] sm:$0xf] %vm5188_vm1, %v5064_v19  ;;  %v3017_v59 = vpop.permute.xlu0 %3016  ;;  %v4368_v10 = vpop.f32.mrf.mxu0  ;;  %vm4744_vm0 = vcmp.ge.f32.partialorder %v4527_v0, 0.0  ;;  %v4872_v50 = vmul.f32 0.01, %v4527_v0  ;;  %v4609_v13 = vadd.f32 %v9026_v58, %v4608_v22  ;;  %v3694_v16 = vsel %vm3676_vm11, %v3565_v21, %v11690_v2 }
 0x539   : > { %v4369_v49 = vadd.f32 %v9026_v58, %v4368_v10  ;;  %v4446_v33 = vpop.f32.mrf.mxu1  ;;  %v2889_v57 = vpop.permute.xlu1 %2888  ;;  %v3823_v19 = vsel %vm3805_vm12, %v3694_v16, %v11693_v26  ;;  %v11696_v10 = vld [vmem:[#allocation40_spill] sm:$0xff]  ;;  %v11707_v16 = vld [vmem:[#allocation190_spill] sm:$0xff] }
 0x53a   : > { %v5000_v53 = vsel %vm4744_vm0, %v4527_v0, %v4872_v50  ;;  %vm4777_vm2 = vcmp.ge.f32.partialorder %v4609_v13, 0.0  ;;  %v4905_v62 = vmul.f32 0.01, %v4609_v13  ;;  %v4447_v48 = vadd.f32 %v9026_v58, %v4446_v33 }
 0x53b   : > { %vm4681_vm3 = vcmp.ge.f32.partialorder %v4369_v49, 0.0  ;;  %v4809_v18 = vmul.f32 0.01, %v4369_v49  ;;  %v5128_v60 = vpack.c.bf16 %v5000_v53, %v5000_v53  ;;  %v3919_v47 = vsel %vm3805_vm12, %v3790_v40, %v2889_v57  ;;  %v11700_v40 = vld [vmem:[#allocation36_spill] sm:$0xff]  ;;  %v11702_v53 = vld [vmem:[#allocation246_spill] sm:$0xff] }
 0x53c   : > { %v5033_v4 = vsel %vm4777_vm2, %v4609_v13, %v4905_v62  ;;  %vm4712_vm4 = vcmp.ge.f32.partialorder %v4447_v48, 0.0  ;;  %v4840_v15 = vmul.f32 0.01, %v4447_v48  ;;  %v4048_v45 = vsel %vm3934_vm14, %v3919_v47, %v3017_v59 }
 0x53d   : > { %v4937_v1 = vsel %vm4681_vm3, %v4369_v49, %v4809_v18  ;;  %5257 = vst.msk [vmem:[%s9054_s9 + $0x110] sm:$0xf] %vm5188_vm1, %v5128_v60  ;;  %v5161_v32 = vpack.c.bf16 %v5033_v4, %v5033_v4  ;;  %v4177_v17 = vsel %vm4063_vm13, %v4048_v45, %v9237_v28  ;;  %v4528_v27 = vpop.f32.mrf.mxu2  ;;  %2994 = vrot.lane.b32.xlu2 %v11688_v38, %s5831_s24  ;;  %v11701_v49 = vld [vmem:[#allocation389_spill] sm:$0xff]  ;;  %v11704_v45 = vld [vmem:[#allocation138_spill] sm:$0xff] }
 0x53e   : > { %v5065_v43 = vpack.c.bf16 %v4937_v1, %v4937_v1  ;;  %v4968_v25 = vsel %vm4712_vm4, %v4447_v48, %v4840_v15  ;;  %3026 = vrot.lane.b32.xlu0 %v11689_v20, %s5831_s24  ;;  %5701 = vmatmul.msk.bf16.gmra.mxu3 %vm4211_vm15, %v4177_v17  ;;  %v4529_v54 = vadd.f32 %v9026_v58, %v4528_v27  ;;  %v11703_v18 = vld [vmem:[#allocation449_spill] sm:$0xff]  ;;  %v11705_v20 = vld [vmem:[#allocation122_spill] sm:$0xff] }
 0x53f   : > { %v3758_v28 = vsel %vm3676_vm11, %v3629_v34, %v11691_v63  ;;  %5290 = vst.msk [vmem:[%s9054_s9 + $0x194] sm:$0xf] %vm5188_vm1, %v5161_v32  ;;  %v5096_v51 = vpack.c.bf16 %v4968_v25, %v4968_v25  ;;  %2898 = vrot.lane.b32.xlu1 %v11692_v56, %s5830_s23  ;;  %v9351_v30 = vpop.permute.xlu2 %3146  ;;  %v11708_v63 = vld [vmem:[#allocation93_spill] sm:$0xff]  ;;  %v11710_v56 = vld [vmem:[#allocation147_spill] sm:$0xff] }
 0x540   : > { %v3887_v0 = vsel %vm3805_vm12, %v3758_v28, %v11694_v35  ;;  %5194 = vst.msk [vmem:[%s9054_s9 + $0x14] sm:$0xf] %vm5188_vm1, %v5065_v43  ;;  %v2921_v29 = vpop.permute.xlu0 %2920  ;;  %vm4745_vm5 = vcmp.ge.f32.partialorder %v4529_v54, 0.0  ;;  %v4873_v52 = vmul.f32 0.01, %v4529_v54  ;;  %v3244_v28 = vsel %vm3160_vm7, %v11708_v63, %v11707_v16  ;;  %v11711_v35 = vld [vmem:[#allocation247_spill] sm:$0xff] }
 0x541   : > { %v4016_v55 = vsel %vm3934_vm14, %v3887_v0, %v9201_v24  ;;  %5225 = vst.msk [vmem:[%s9054_s9 + $0x90] sm:$0xf] %vm5188_vm1, %v5096_v51  ;;  %v3952_v23 = vsel %vm3934_vm14, %v3823_v19, %v2921_v29  ;;  %v4448_v61 = vpop.f32.mrf.mxu1  ;;  %v3113_v46 = vpop.permute.xlu1 %3112  ;;  %v11695_v24 = vld [vmem:[#allocation166_spill] sm:$0xff]  ;;  %v11709_v51 = vld [vmem:[#allocation75_spill] sm:$0xff] }
 0x542   : > { %v5001_v12 = vsel %vm4745_vm5, %v4529_v54, %v4873_v52  ;;  %v4081_v22 = vsel %vm4063_vm13, %v3952_v23, %v9273_v44  ;;  %v4449_v9 = vadd.f32 %v9026_v58, %v4448_v61  ;;  %v4145_v6 = vsel %vm4063_vm13, %v4016_v55, %v3113_v46  ;;  %v11698_v44 = vld [vmem:[#allocation446_spill] sm:$0xff]  ;;  %v11712_v29 = vld [vmem:[#allocation279_spill] sm:$0xff] }
 0x543   : > { %v5129_v59 = vpack.c.bf16 %v5001_v12, %v5001_v12  ;;  %5653 = vmatmul.msk.bf16.gmra.mxu0 %vm4211_vm15, %v4081_v22  ;;  %5685 = vmatmul.msk.bf16.gmra.mxu2 %vm4211_vm15, %v4145_v6  ;;  %v3210_v50 = vsel %vm3160_vm7, %v11696_v10, %v11695_v24  ;;  %v11706_v54 = vld [vmem:[#allocation18_spill] sm:$0xff]  ;;  %v3276_v26 = vsel %vm3160_vm7, %v11710_v56, %v11709_v51  ;;  %v11714_v12 = vld [vmem:[#allocation304_spill] sm:$0xff] }
 0x544   : > { %vm4713_vm6 = vcmp.ge.f32.partialorder %v4449_v9, 0.0  ;;  %v4841_v13 = vmul.f32 0.01, %v4449_v9  ;;  %v3339_v21 = vsel %vm3289_vm8, %v3210_v50, %v11697_v14  ;;  %v3180_v2 = vsel %vm3160_vm7, %v11706_v54, %v11705_v20  ;;  %v11713_v46 = vld [vmem:[#allocation202_spill] sm:$0xff]  ;;  %v11716_v24 = vld [vmem:[#allocation64_spill] sm:$0xff]  ;;  %v11717_v50 = vld [vmem:[#allocation351_spill] sm:$0xff] }
 0x545   : > { %5258 = vst.msk [vmem:[%s9054_s9 + $0x114] sm:$0xf] %vm5188_vm1, %v5129_v59  ;;  %3154 = vrot.lane.b32.xlu2 %v11698_v44, %s5832_s25  ;;  %v3468_v34 = vsel %vm3418_vm9, %v3339_v21, %v11699_v42  ;;  %v3309_v0 = vsel %vm3289_vm8, %v3180_v2, %v11711_v35  ;;  %v3373_v52 = vsel %vm3289_vm8, %v3244_v28, %v11712_v29  ;;  %v11718_v14 = vld [vmem:[#allocation370_spill] sm:$0xff]  ;;  %v11726_v29 = vld [vmem:[#allocation249_spill] sm:$0xff] }
 0x546   : > { %v4969_v7 = vsel %vm4713_vm6, %v4449_v9, %v4841_v13  ;;  %2930 = vrot.lane.b32.xlu0 %v11700_v40, %s5831_s24  ;;  %v3597_v33 = vsel %vm3547_vm10, %v3468_v34, %v11701_v49  ;;  %v3405_v22 = vsel %vm3289_vm8, %v3276_v26, %v11714_v12  ;;  %v11715_v9 = vld [vmem:[#allocation323_spill] sm:$0xff]  ;;  %v3502_v13 = vsel %vm3418_vm9, %v3373_v52, %v11717_v50  ;;  %v11719_v44 = vld [vmem:[#allocation374_spill] sm:$0xff] }
 0x547   : > { %v5097_v57 = vpack.c.bf16 %v4969_v7, %v4969_v7  ;;  %3122 = vrot.lane.b32.xlu1 %v11702_v53, %s5832_s25  ;;  %v4611_v62 = vpop.f32.mrf.mxu3  ;;  %v9387_v48 = vpop.permute.xlu2 %3050  ;;  %v3726_v60 = vsel %vm3676_vm11, %v3597_v33, %v11703_v18  ;;  %v3438_v6 = vsel %vm3418_vm9, %v3309_v0, %v11715_v9  ;;  %v3534_v21 = vsel %vm3418_vm9, %v3405_v22, %v11718_v14  ;;  %v11720_v34 = vld [vmem:[#allocation70_spill] sm:$0xff]  ;;  %v11729_v22 = vld [vmem:[#allocation255_spill] sm:$0xff] }
 0x548   : > { %v3081_v47 = vpop.permute.xlu0 %3080  ;;  %v4371_v4 = vpop.f32.mrf.mxu0  ;;  %v4612_v15 = vadd.f32 %v9026_v58, %v4611_v62  ;;  %v3855_v1 = vsel %vm3805_vm12, %v3726_v60, %v11704_v45  ;;  %v3567_v42 = vsel %vm3547_vm10, %v3438_v6, %v11719_v44  ;;  %v11721_v49 = vld [vmem:[#allocation418_spill] sm:$0xff] }
 0x549   : > { %5226 = vst.msk [vmem:[%s9054_s9 + $0x94] sm:$0xf] %vm5188_vm1, %v5097_v57  ;;  %v4372_v32 = vadd.f32 %v9026_v58, %v4371_v4  ;;  %v2953_v17 = vpop.permute.xlu1 %2952  ;;  %v3663_v33 = vsel %vm3547_vm10, %v3534_v21, %v11721_v49  ;;  %v11722_v60 = vld [vmem:[#allocation414_spill] sm:$0xff]  ;;  %v11723_v4 = vld [vmem:[#allocation471_spill] sm:$0xff]  ;;  %v3696_v52 = vsel %vm3676_vm11, %v3567_v42, %v11726_v29 }
 0x54a   : > { %vm4778_vm0 = vcmp.ge.f32.partialorder %v4612_v15, 0.0  ;;  %v4906_v27 = vmul.f32 0.01, %v4612_v15  ;;  %v3984_v38 = vsel %vm3934_vm14, %v3855_v1, %v2953_v17  ;;  %v5808_v17 = vpack.i.bf16 %v11467_v39, %v11448_v5  ;;  %v11724_v56 = vld [vmem:[#allocation130_spill] sm:$0xff] }
 0x54b   : > { %vm4682_vm2 = vcmp.ge.f32.partialorder %v4372_v32, 0.0  ;;  %v4810_v43 = vmul.f32 0.01, %v4372_v32  ;;  %v4113_v25 = vsel %vm4063_vm13, %v3984_v38, %v3081_v47  ;;  %v3631_v47 = vsel %vm3547_vm10, %v3502_v13, %v11722_v60  ;;  %v11725_v35 = vld [vmem:[#allocation6_spill] sm:$0xff] }
 0x54c   : > { %v5034_v19 = vsel %vm4778_vm0, %v4612_v15, %v4906_v27  ;;  %5669 = vmatmul.msk.bf16.gmra.mxu1 %vm4211_vm15, %v4113_v25  ;;  %v3792_v15 = vsel %vm3676_vm11, %v3663_v33, %v11723_v4  ;;  %v11736_v4 = vld [vmem:[#allocation180_spill] sm:$0xff] }
 0x54d   : > { %v4938_v55 = vsel %vm4682_vm2, %v4372_v32, %v4810_v43  ;;  %v5162_v23 = vpack.c.bf16 %v5034_v19, %v5034_v19  ;;  %v4531_v61 = vpop.f32.mrf.mxu2  ;;  %3058 = vrot.lane.b32.xlu2 %v11713_v46, %s5832_s25  ;;  %v11728_v46 = vld [vmem:[#allocation137_spill] sm:$0xff] }
 0x54e   : > { %v5066_v59 = vpack.c.bf16 %v4938_v55, %v4938_v55  ;;  %3090 = vrot.lane.b32.xlu0 %v11716_v24, %s5832_s25  ;;  %v4532_v10 = vadd.f32 %v9026_v58, %v4531_v61  ;;  %v11727_v55 = vld [vmem:[#allocation456_spill] sm:$0xff]  ;;  %v3825_v12 = vsel %vm3805_vm12, %v3696_v52, %v11728_v46 }
 0x54f   : > { %5291 = vst.msk [vmem:[%s9054_s9 + $0x198] sm:$0xf] %vm5188_vm1, %v5162_v23  ;;  %2962 = vrot.lane.b32.xlu1 %v11720_v34, %s5831_s24  ;;  %v4613_v7 = vpop.f32.mrf.mxu3  ;;  %v9432_v40 = vpop.permute.xlu2 %2988 }
 0x550   : > { %5195 = vst.msk [vmem:[%s9054_s9 + $0x18] sm:$0xf] %vm5188_vm1, %v5066_v59  ;;  %v3019_v57 = vpop.permute.xlu0 %3018  ;;  %v4373_v53 = vpop.f32.mrf.mxu0  ;;  %vm4746_vm3 = vcmp.ge.f32.partialorder %v4532_v10, 0.0  ;;  %v4874_v62 = vmul.f32 0.01, %v4532_v10  ;;  %v4614_v18 = vadd.f32 %v9026_v58, %v4613_v7  ;;  %v11731_v7 = vld [vmem:[#allocation44_spill] sm:$0xff] }
 0x551   : > { %v4374_v45 = vadd.f32 %v9026_v58, %v4373_v53  ;;  %v4451_v1 = vpop.f32.mrf.mxu1  ;;  %v2891_v32 = vpop.permute.xlu1 %2890 }
 0x552   : > { %v5002_v27 = vsel %vm4746_vm3, %v4532_v10, %v4874_v62  ;;  %vm4779_vm4 = vcmp.ge.f32.partialorder %v4614_v18, 0.0  ;;  %v4907_v38 = vmul.f32 0.01, %v4614_v18  ;;  %v4452_v43 = vadd.f32 %v9026_v58, %v4451_v1  ;;  %v11734_v62 = vld [vmem:[#allocation327_spill] sm:$0xff]  ;;  %v11737_v1 = vld [vmem:[#allocation244_spill] sm:$0xff] }
 0x553   : > { %vm4683_vm5 = vcmp.ge.f32.partialorder %v4374_v45, 0.0  ;;  %v4811_v25 = vmul.f32 0.01, %v4374_v45  ;;  %v5130_v20 = vpack.c.bf16 %v5002_v27, %v5002_v27  ;;  %v3921_v54 = vsel %vm3805_vm12, %v3792_v15, %v2891_v32  ;;  %v11738_v27 = vld [vmem:[#allocation452_spill] sm:$0xff] }
 0x554   : > { %v5035_v2 = vsel %vm4779_vm4, %v4614_v18, %v4907_v38  ;;  %vm4714_vm6 = vcmp.ge.f32.partialorder %v4452_v43, 0.0  ;;  %v4842_v16 = vmul.f32 0.01, %v4452_v43  ;;  %v4050_v63 = vsel %vm3934_vm14, %v3921_v54, %v3019_v57  ;;  %v11732_v57 = vld [vmem:[#allocation275_spill] sm:$0xff] }
 0x555   : > { %v4939_v28 = vsel %vm4683_vm5, %v4374_v45, %v4811_v25  ;;  %5259 = vst.msk [vmem:[%s9054_s9 + $0x118] sm:$0xf] %vm5188_vm1, %v5130_v20  ;;  %v5163_v5 = vpack.c.bf16 %v5035_v2, %v5035_v2  ;;  %v4179_v39 = vsel %vm4063_vm13, %v4050_v63, %v9351_v30  ;;  %v4533_v51 = vpop.f32.mrf.mxu2  ;;  %2996 = vrot.lane.b32.xlu2 %v11724_v56, %s5831_s24  ;;  %v11739_v54 = vld [vmem:[#allocation87_spill] sm:$0xff] }
 0x556   : > { %v5067_v26 = vpack.c.bf16 %v4939_v28, %v4939_v28  ;;  %v4970_v19 = vsel %vm4714_vm6, %v4452_v43, %v4842_v16  ;;  %3028 = vrot.lane.b32.xlu0 %v11725_v35, %s5831_s24  ;;  %5702 = vmatmul.msk.bf16.gmra.mxu3 %vm4211_vm15, %v4179_v39  ;;  %v4534_v0 = vadd.f32 %v9026_v58, %v4533_v51  ;;  %v11740_v56 = vld [vmem:[#allocation135_spill] sm:$0xff]  ;;  %v11742_v35 = vld [vmem:[#allocation206_spill] sm:$0xff] }
 0x557   : > { %v3760_v30 = vsel %vm3676_vm11, %v3631_v47, %v11727_v55  ;;  %5292 = vst.msk [vmem:[%s9054_s9 + $0x19c] sm:$0xf] %vm5188_vm1, %v5163_v5  ;;  %v5098_v23 = vpack.c.bf16 %v4970_v19, %v4970_v19  ;;  %5809 = vrot.lane.b32.xlu1 %v5808_v17, %s5830_s23  ;;  %v9466_v61 = vpop.permute.xlu2 %3148  ;;  %v11735_v47 = vld [vmem:[#allocation35_spill] sm:$0xff]  ;;  %v11744_v55 = vld [vmem:[#allocation230_spill] sm:$0xff] }
 0x558   : > { %v3889_v9 = vsel %vm3805_vm12, %v3760_v30, %v11729_v22  ;;  %5196 = vst.msk [vmem:[%s9054_s9 + $0x1c] sm:$0xf] %vm5188_vm1, %v5067_v26  ;;  %v2923_v6 = vpop.permute.xlu0 %2922  ;;  %vm4747_vm0 = vcmp.ge.f32.partialorder %v4534_v0, 0.0  ;;  %v4875_v59 = vmul.f32 0.01, %v4534_v0  ;;  %v11741_v26 = vld [vmem:[#allocation24_spill] sm:$0xff]  ;;  %v3278_v30 = vsel %vm3160_vm7, %v11475_v37, %v11744_v55 }
 0x559   : > { %v4018_v24 = vsel %vm3934_vm14, %v3889_v9, %v9316_v8  ;;  %5227 = vst.msk [vmem:[%s9054_s9 + $0x98] sm:$0xf] %vm5188_vm1, %v5098_v23  ;;  %v3954_v10 = vsel %vm3934_vm14, %v3825_v12, %v2923_v6  ;;  %v4453_v50 = vpop.f32.mrf.mxu1  ;;  %v3115_v13 = vpop.permute.xlu1 %3114  ;;  %v11730_v8 = vld [vmem:[#allocation177_spill] sm:$0xff]  ;;  %v3182_v19 = vsel %vm3160_vm7, %v11741_v26, %v11740_v56  ;;  %v11745_v23 = vld [vmem:[#allocation139_spill] sm:$0xff]  ;;  %v11746_v6 = vld [vmem:[#allocation204_spill] sm:$0xff] }
 0x55a   : > { %v5003_v14 = vsel %vm4747_vm0, %v4534_v0, %v4875_v59  ;;  %v4083_v21 = vsel %vm4063_vm13, %v3954_v10, %v9387_v48  ;;  %v4454_v44 = vadd.f32 %v9026_v58, %v4453_v50  ;;  %v4147_v42 = vsel %vm4063_vm13, %v4018_v24, %v3115_v13  ;;  %v11733_v48 = vld [vmem:[#allocation172_spill] sm:$0xff]  ;;  %v11747_v59 = vld [vmem:[#allocation289_spill] sm:$0xff]  ;;  %v9574_v55 = vld [vmem:[%s10262_s2] ss:$0 sm:$0xff] }
 0x55b   : > { %v5131_v34 = vpack.c.bf16 %v5003_v14, %v5003_v14  ;;  %5654 = vmatmul.msk.bf16.gmra.mxu0 %vm4211_vm15, %v4083_v21  ;;  %5686 = vmatmul.msk.bf16.gmra.mxu2 %vm4211_vm15, %v4147_v42  ;;  %v3212_v49 = vsel %vm3160_vm7, %v11731_v7, %v11730_v8  ;;  %v11743_v0 = vld [vmem:[#allocation88_spill] sm:$0xff]  ;;  %v3311_v46 = vsel %vm3289_vm8, %v3182_v19, %v11745_v23  ;;  %v11749_v14 = vld [vmem:[#allocation73_spill] sm:$0xff]  ;;  %v11751_v42 = vld [vmem:[#allocation355_spill] sm:$0xff] }
 0x55c   : > { %vm4715_vm2 = vcmp.ge.f32.partialorder %v4454_v44, 0.0  ;;  %v4843_v33 = vmul.f32 0.01, %v4454_v44  ;;  %v3341_v53 = vsel %vm3289_vm8, %v3212_v49, %v11732_v57  ;;  %v3246_v29 = vsel %vm3160_vm7, %v11743_v0, %v11742_v35  ;;  %v11748_v10 = vld [vmem:[#allocation308_spill] sm:$0xff]  ;;  %v11752_v8 = vld [vmem:[#allocation359_spill] sm:$0xff] }
 0x55d   : > { %5260 = vst.msk [vmem:[%s9054_s9 + $0x11c] sm:$0xf] %vm5188_vm1, %v5131_v34  ;;  %3156 = vrot.lane.b32.xlu2 %v11733_v48, %s5832_s25  ;;  %v3470_v18 = vsel %vm3418_vm9, %v3341_v53, %v11734_v62  ;;  %v3375_v24 = vsel %vm3289_vm8, %v3246_v29, %v11747_v59  ;;  %v3407_v50 = vsel %vm3289_vm8, %v3278_v30, %v11748_v10  ;;  %v11750_v21 = vld [vmem:[#allocation312_spill] sm:$0xff]  ;;  %v11754_v53 = vld [vmem:[#allocation71_spill] sm:$0xff]  ;;  %v11760_v30 = vld [vmem:[#allocation442_spill] sm:$0xff] }
 0x55e   : > { %v4971_v60 = vsel %vm4715_vm2, %v4454_v44, %v4843_v33  ;;  %2932 = vrot.lane.b32.xlu0 %v11735_v47, %s5831_s24  ;;  %v3599_v15 = vsel %vm3547_vm10, %v3470_v18, %v11736_v4  ;;  %v3440_v44 = vsel %vm3418_vm9, %v3311_v46, %v11750_v21  ;;  %v3504_v34 = vsel %vm3418_vm9, %v3375_v24, %v11751_v42  ;;  %v11753_v49 = vld [vmem:[#allocation80_spill] sm:$0xff]  ;;  %v11761_v46 = vld [vmem:[#allocation462_spill] sm:$0xff] }
 0x55f   : > { %v5099_v45 = vpack.c.bf16 %v4971_v60, %v4971_v60  ;;  %3124 = vrot.lane.b32.xlu1 %v11737_v1, %s5832_s25  ;;  %v4616_v32 = vpop.f32.mrf.mxu3  ;;  %v9502_v17 = vpop.permute.xlu2 %3052  ;;  %v3728_v38 = vsel %vm3676_vm11, %v3599_v15, %v11738_v27  ;;  %v3536_v7 = vsel %vm3418_vm9, %v3407_v50, %v11752_v8  ;;  %v11755_v4 = vld [vmem:[#allocation384_spill] sm:$0xff] }
 0x560   : > { %v3083_v43 = vpop.permute.xlu0 %3082  ;;  %v4376_v25 = vpop.f32.mrf.mxu0  ;;  %v4617_v20 = vadd.f32 %v9026_v58, %v4616_v32  ;;  %v3857_v2 = vsel %vm3805_vm12, %v3728_v38, %v11739_v54  ;;  %v3665_v48 = vsel %vm3547_vm10, %v3536_v7, %v11754_v53  ;;  %v3569_v15 = vsel %vm3547_vm10, %v3440_v44, %v11755_v4  ;;  %v11757_v32 = vld [vmem:[#allocation474_spill] sm:$0xff]  ;;  %v11763_v59 = vld [vmem:[#allocation108_spill] sm:$0xff] }
 0x561   : > { %5228 = vst.msk [vmem:[%s9054_s9 + $0x9c] sm:$0xf] %vm5188_vm1, %v5099_v45  ;;  %v4377_v16 = vadd.f32 %v9026_v58, %v4376_v25  ;;  %v2955_v63 = vpop.permute.xlu1 %2954  ;;  %v11756_v45 = vld [vmem:[#allocation405_spill] sm:$0xff]  ;;  %v3794_v27 = vsel %vm3676_vm11, %v3665_v48, %v11757_v32  ;;  %v3698_v23 = vsel %vm3676_vm11, %v3569_v15, %v11760_v30  ;;  %v11764_v10 = vld [vmem:[#allocation188_spill] sm:$0xff] }
 0x562   : > { %vm4780_vm3 = vcmp.ge.f32.partialorder %v4617_v20, 0.0  ;;  %v4908_v28 = vmul.f32 0.01, %v4617_v20  ;;  %v3986_v5 = vsel %vm3934_vm14, %v3857_v2, %v2955_v63  ;;  %v3633_v1 = vsel %vm3547_vm10, %v3504_v34, %v11756_v45  ;;  %v11766_v53 = vld [vmem:[#allocation52_spill] sm:$0xff]  ;;  %v11770_v45 = vld [vmem:[#allocation82_spill] sm:$0xff] }
 0x563   : > { %vm4684_vm4 = vcmp.ge.f32.partialorder %v4377_v16, 0.0  ;;  %v4812_v39 = vmul.f32 0.01, %v4377_v16  ;;  %v4115_v51 = vsel %vm4063_vm13, %v3986_v5, %v3083_v43  ;;  %v3827_v24 = vsel %vm3805_vm12, %v3698_v23, %v11763_v59  ;;  %v11780_v59 = vld [vmem:[#allocation90_spill] sm:$0xff] }
 0x564   : > { %v5036_v52 = vsel %vm4780_vm3, %v4617_v20, %v4908_v28  ;;  %5670 = vmatmul.msk.bf16.gmra.mxu1 %vm4211_vm15, %v4115_v51 }
 0x565   : > { %v4940_v12 = vsel %vm4684_vm4, %v4377_v16, %v4812_v39  ;;  %v5164_v22 = vpack.c.bf16 %v5036_v52, %v5036_v52  ;;  %v4536_v9 = vpop.f32.mrf.mxu2  ;;  %3060 = vrot.lane.b32.xlu2 %v11746_v6, %s5832_s25  ;;  %v11759_v52 = vld [vmem:[#allocation245_spill] sm:$0xff] }
 0x566   : > { %v5068_v13 = vpack.c.bf16 %v4940_v12, %v4940_v12  ;;  %3092 = vrot.lane.b32.xlu0 %v11749_v14, %s5832_s25  ;;  %v4537_v37 = vadd.f32 %v9026_v58, %v4536_v9  ;;  %v3762_v12 = vsel %vm3676_vm11, %v3633_v1, %v11761_v46  ;;  %v11762_v9 = vld [vmem:[#allocation128_spill] sm:$0xff]  ;;  %v11771_v1 = vld [vmem:[#allocation401_spill] sm:$0xff] }
 0x567   : > { %5293 = vst.msk [vmem:[%s9054_s9 + $0x1a0] sm:$0xf] %vm5188_vm1, %v5164_v22  ;;  %2964 = vrot.lane.b32.xlu1 %v11753_v49, %s5831_s24  ;;  %v4618_v33 = vpop.f32.mrf.mxu3  ;;  %v9545_v57 = vpop.permute.xlu2 %2990  ;;  %v3891_v50 = vsel %vm3805_vm12, %v3762_v12, %v11764_v10  ;;  %v11781_v10 = vld [vmem:[#allocation297_spill] sm:$0xff] }
 0x568   : > { %5197 = vst.msk [vmem:[%s9054_s9 + $0x20] sm:$0xf] %vm5188_vm1, %v5068_v13  ;;  %v3021_v62 = vpop.permute.xlu0 %3020  ;;  %v4378_v18 = vpop.f32.mrf.mxu0  ;;  %vm4748_vm5 = vcmp.ge.f32.partialorder %v4537_v37, 0.0  ;;  %v4876_v60 = vmul.f32 0.01, %v4537_v37  ;;  %v4619_v47 = vadd.f32 %v9026_v58, %v4618_v33 }
 0x569   : > { %v4379_v38 = vadd.f32 %v9026_v58, %v4378_v18  ;;  %v4456_v43 = vpop.f32.mrf.mxu1  ;;  %v2893_v25 = vpop.permute.xlu1 %2892  ;;  %v11767_v18 = vld [vmem:[#allocation261_spill] sm:$0xff] }
 0x56a   : > { %v5004_v20 = vsel %vm4748_vm5, %v4537_v37, %v4876_v60  ;;  %vm4781_vm6 = vcmp.ge.f32.partialorder %v4619_v47, 0.0  ;;  %v4909_v54 = vmul.f32 0.01, %v4619_v47  ;;  %v4457_v2 = vadd.f32 %v9026_v58, %v4456_v43  ;;  %v11758_v58 = vld [vmem:[#allocation5_spill] sm:$0xff] }
 0x56b   : > { %vm4685_vm0 = vcmp.ge.f32.partialorder %v4379_v38, 0.0  ;;  %v4813_v16 = vmul.f32 0.01, %v4379_v38  ;;  %v5132_v63 = vpack.c.bf16 %v5004_v20, %v5004_v20  ;;  %v3923_v28 = vsel %vm3805_vm12, %v3794_v27, %v2893_v25  ;;  %v11773_v20 = vld [vmem:[#allocation260_spill] sm:$0xff] }
 0x56c   : > { %v5037_v5 = vsel %vm4781_vm6, %v4619_v47, %v4909_v54  ;;  %vm4716_vm2 = vcmp.ge.f32.partialorder %v4457_v2, 0.0  ;;  %v4844_v39 = vmul.f32 0.01, %v4457_v2  ;;  %v4052_v51 = vsel %vm3934_vm14, %v3923_v28, %v3021_v62  ;;  %v11769_v47 = vld [vmem:[#allocation336_spill] sm:$0xff]  ;;  %v11774_v28 = vld [vmem:[#allocation86_spill] sm:$0xff] }
 0x56d   : > { %v4941_v56 = vsel %vm4685_vm0, %v4379_v38, %v4813_v16  ;;  %5261 = vst.msk [vmem:[%s9054_s9 + $0x120] sm:$0xf] %vm5188_vm1, %v5132_v63  ;;  %v5165_v26 = vpack.c.bf16 %v5037_v5, %v5037_v5  ;;  %v4181_v19 = vsel %vm4063_vm13, %v4052_v51, %v9466_v61  ;;  %v4538_v35 = vpop.f32.mrf.mxu2  ;;  %3030 = vrot.lane.b32.xlu2 %v11758_v58, %s5831_s24  ;;  %v11772_v38 = vld [vmem:[#allocation173_spill] sm:$0xff] }
 0x56e   : > { %v5069_v0 = vpack.c.bf16 %v4941_v56, %v4941_v56  ;;  %v4972_v29 = vsel %vm4716_vm2, %v4457_v2, %v4844_v39  ;;  %3126 = vrot.lane.b32.xlu0 %v11759_v52, %s5832_s25  ;;  %5703 = vmatmul.msk.bf16.gmra.mxu3 %vm4211_vm15, %v4181_v19  ;;  %v4539_v61 = vadd.f32 %v9574_v55, %v4538_v35 }
 0x56f   : > { %5294 = vst.msk [vmem:[%s9054_s9 + $0x1a4] sm:$0xf] %vm5188_vm1, %v5165_v26  ;;  %v5100_v22 = vpack.c.bf16 %v4972_v29, %v4972_v29  ;;  %2998 = vrot.lane.b32.xlu1 %v11762_v9, %s5831_s24  ;;  %v9585_v6 = vpop.permute.xlu2 %3150  ;;  %v4020_v37 = vsel %vm3934_vm14, %v3891_v50, %v9432_v40  ;;  %v11765_v40 = vld [vmem:[#allocation153_spill] sm:$0xff]  ;;  %v11779_v9 = vld [vmem:[#allocation211_spill] sm:$0xff] }
 0x570   : > { %5198 = vst.msk [vmem:[%s9054_s9 + $0x24] sm:$0xf] %vm5188_vm1, %v5069_v0  ;;  %v2925_v13 = vpop.permute.xlu0 %2924  ;;  %vm4749_vm3 = vcmp.ge.f32.partialorder %v4539_v61, 0.0  ;;  %v4877_v14 = vmul.f32 0.01, %v4539_v61  ;;  %v3214_v48 = vsel %vm3160_vm7, %v11766_v53, %v11765_v40  ;;  %v11775_v0 = vld [vmem:[#allocation104_spill] sm:$0xff] }
 0x571   : > { %5229 = vst.msk [vmem:[%s9054_s9 + $0xa0] sm:$0xf] %vm5188_vm1, %v5100_v22  ;;  %v3956_v21 = vsel %vm3934_vm14, %v3827_v24, %v2925_v13  ;;  %v4458_v44 = vpop.f32.mrf.mxu1  ;;  %v3117_v42 = vpop.permute.xlu1 %3116  ;;  %v3343_v60 = vsel %vm3289_vm8, %v3214_v48, %v11767_v18  ;;  %v11776_v29 = vld [vmem:[#allocation25_spill] sm:$0xff]  ;;  %v11778_v22 = vld [vmem:[#allocation74_spill] sm:$0xff]  ;;  %v3248_v24 = vsel %vm3160_vm7, %v11780_v59, %v11779_v9 }
 0x572   : > { %v5005_v34 = vsel %vm4749_vm3, %v4539_v61, %v4877_v14  ;;  %v4085_v8 = vsel %vm4063_vm13, %v3956_v21, %v9502_v17  ;;  %v4459_v7 = vadd.f32 %v9574_v55, %v4458_v44  ;;  %v4149_v49 = vsel %vm4063_vm13, %v4020_v37, %v3117_v42  ;;  %v11768_v17 = vld [vmem:[#allocation39_spill] sm:$0xff]  ;;  %v11782_v37 = vld [vmem:[#allocation112_spill] sm:$0xff]  ;;  %v11783_v21 = vld [vmem:[#allocation293_spill] sm:$0xff] }
 0x573   : > { %v5133_v33 = vpack.c.bf16 %v5005_v34, %v5005_v34  ;;  %5655 = vmatmul.msk.bf16.gmra.mxu0 %vm4211_vm15, %v4085_v8  ;;  %5687 = vmatmul.msk.bf16.gmra.mxu2 %vm4211_vm15, %v4149_v49  ;;  %v3472_v4 = vsel %vm3418_vm9, %v3343_v60, %v11769_v47  ;;  %v3184_v52 = vsel %vm3160_vm7, %v11776_v29, %v11775_v0  ;;  %v11777_v61 = vld [vmem:[#allocation67_spill] sm:$0xff]  ;;  %v11784_v42 = vld [vmem:[#allocation369_spill] sm:$0xff]  ;;  %v11785_v8 = vld [vmem:[#allocation210_spill] sm:$0xff] }
 0x574   : > { %vm4717_vm4 = vcmp.ge.f32.partialorder %v4459_v7, 0.0  ;;  %v4845_v62 = vmul.f32 0.01, %v4459_v7  ;;  %v3601_v32 = vsel %vm3547_vm10, %v3472_v4, %v11771_v1  ;;  %v3280_v30 = vsel %vm3160_vm7, %v11502_v41, %v11777_v61  ;;  %v11787_v60 = vld [vmem:[#allocation322_spill] sm:$0xff]  ;;  %v11788_v47 = vld [vmem:[#allocation344_spill] sm:$0xff]  ;;  %v11794_v9 = vld [vmem:[#allocation77_spill] sm:$0xff] }
 0x575   : > { %5262 = vst.msk [vmem:[%s9054_s9 + $0x124] sm:$0xf] %vm5188_vm1, %v5133_v33  ;;  %2934 = vrot.lane.b32.xlu2 %v11768_v17, %s5831_s24  ;;  %v3730_v54 = vsel %vm3676_vm11, %v3601_v32, %v11773_v20  ;;  %v3409_v50 = vsel %vm3289_vm8, %v3280_v30, %v11781_v10  ;;  %v3313_v41 = vsel %vm3289_vm8, %v3184_v52, %v11782_v37  ;;  %v11786_v33 = vld [vmem:[#allocation430_spill] sm:$0xff] }
 0x576   : > { %v4973_v15 = vsel %vm4717_vm4, %v4459_v7, %v4845_v62  ;;  %2966 = vrot.lane.b32.xlu0 %v11770_v45, %s5831_s24  ;;  %v3859_v5 = vsel %vm3805_vm12, %v3730_v54, %v11774_v28  ;;  %v3377_v44 = vsel %vm3289_vm8, %v3248_v24, %v11783_v21  ;;  %v3538_v34 = vsel %vm3418_vm9, %v3409_v50, %v11784_v42  ;;  %v11792_v30 = vld [vmem:[#allocation434_spill] sm:$0xff]  ;;  %v11795_v24 = vld [vmem:[#allocation53_spill] sm:$0xff] }
 0x577   : > { %v5101_v27 = vpack.c.bf16 %v4973_v15, %v4973_v15  ;;  %3158 = vrot.lane.b32.xlu1 %v11772_v38, %s5832_s25  ;;  %v4621_v43 = vpop.f32.mrf.mxu3  ;;  %v9621_v25 = vpop.permute.xlu2 %3054  ;;  %v3667_v40 = vsel %vm3547_vm10, %v3538_v34, %v11786_v33  ;;  %v3442_v17 = vsel %vm3418_vm9, %v3313_v41, %v11787_v60  ;;  %v3506_v4 = vsel %vm3418_vm9, %v3377_v44, %v11788_v47  ;;  %v11789_v15 = vld [vmem:[#allocation468_spill] sm:$0xff]  ;;  %v11797_v33 = vld [vmem:[#allocation51_spill] sm:$0xff] }
 0x578   : > { %v3085_v2 = vpop.permute.xlu0 %3084  ;;  %v4381_v16 = vpop.f32.mrf.mxu0  ;;  %v4622_v63 = vadd.f32 %v9574_v55, %v4621_v43  ;;  %v3796_v45 = vsel %vm3676_vm11, %v3667_v40, %v11789_v15 }
 0x579   : > { %5230 = vst.msk [vmem:[%s9054_s9 + $0xa4] sm:$0xf] %vm5188_vm1, %v5101_v27  ;;  %v4382_v39 = vadd.f32 %v9574_v55, %v4381_v16  ;;  %v2957_v51 = vpop.permute.xlu1 %2956 }
 0x57a   : > { %vm4782_vm5 = vcmp.ge.f32.partialorder %v4622_v63, 0.0  ;;  %v4910_v56 = vmul.f32 0.01, %v4622_v63  ;;  %v3988_v26 = vsel %vm3934_vm14, %v3859_v5, %v2957_v51 }
 0x57b   : > { %vm4686_vm6 = vcmp.ge.f32.partialorder %v4382_v39, 0.0  ;;  %v4814_v19 = vmul.f32 0.01, %v4382_v39  ;;  %v4117_v35 = vsel %vm4063_vm13, %v3988_v26, %v3085_v2 }
 0x57c   : > { %v5038_v58 = vsel %vm4782_vm5, %v4622_v63, %v4910_v56  ;;  %5671 = vmatmul.msk.bf16.gmra.mxu1 %vm4211_vm15, %v4117_v35 }
 0x57d   : > { %v4942_v23 = vsel %vm4686_vm6, %v4382_v39, %v4814_v19  ;;  %v5166_v46 = vpack.c.bf16 %v5038_v58, %v5038_v58  ;;  %v4541_v12 = vpop.f32.mrf.mxu2  ;;  %3094 = vrot.lane.b32.xlu2 %v11778_v22, %s5832_s25  ;;  %v11790_v39 = vld [vmem:[#allocation388_spill] sm:$0xff]  ;;  %v11791_v58 = vld [vmem:[#allocation413_spill] sm:$0xff] }
 0x57e   : > { %v5070_v13 = vpack.c.bf16 %v4942_v23, %v4942_v23  ;;  %v4542_v14 = vadd.f32 %v9574_v55, %v4541_v12  ;;  %v3571_v51 = vsel %vm3547_vm10, %v3442_v17, %v11790_v39  ;;  %v3635_v0 = vsel %vm3547_vm10, %v3506_v4, %v11791_v58  ;;  %v11800_v17 = vld [vmem:[#allocation392_spill] sm:$0xff]  ;;  %v11805_v58 = vld [vmem:[#allocation229_spill] sm:$0xff] }
 0x57f   : > { %5295 = vst.msk [vmem:[%s9054_s9 + $0x1a8] sm:$0xf] %vm5188_vm1, %v5166_v46  ;;  %3062 = vrot.lane.b32.xlu1 %v11785_v8, %s5832_s25  ;;  %v4623_v7 = vpop.f32.mrf.mxu3  ;;  %v9658_v49 = vpop.permute.xlu2 %2992  ;;  %v3700_v23 = vsel %vm3676_vm11, %v3571_v51, %v11792_v30  ;;  %v11793_v46 = vld [vmem:[#allocation465_spill] sm:$0xff]  ;;  %v11803_v51 = vld [vmem:[#allocation131_spill] sm:$0xff]  ;;  %v11806_v30 = vld [vmem:[#allocation196_spill] sm:$0xff] }
 0x580   : > { %5199 = vst.msk [vmem:[%s9054_s9 + $0x28] sm:$0xf] %vm5188_vm1, %v5070_v13  ;;  %v3023_v53 = vpop.permute.xlu0 %3022  ;;  %v4383_v48 = vpop.f32.mrf.mxu0  ;;  %vm4750_vm0 = vcmp.ge.f32.partialorder %v4542_v14, 0.0  ;;  %v4878_v62 = vmul.f32 0.01, %v4542_v14  ;;  %v4624_v18 = vadd.f32 %v9574_v55, %v4623_v7  ;;  %v3764_v12 = vsel %vm3676_vm11, %v3635_v0, %v11793_v46 }
 0x581   : > { %v4384_v1 = vadd.f32 %v9574_v55, %v4383_v48  ;;  %v4461_v32 = vpop.f32.mrf.mxu1  ;;  %v2895_v27 = vpop.permute.xlu1 %2894  ;;  %v3829_v59 = vsel %vm3805_vm12, %v3700_v23, %v11794_v9  ;;  %v3893_v10 = vsel %vm3805_vm12, %v3764_v12, %v11795_v24  ;;  %v11798_v48 = vld [vmem:[#allocation274_spill] sm:$0xff]  ;;  %v3282_v0 = vsel %vm3160_vm7, %v11529_v11, %v11805_v58  ;;  %v11809_v9 = vld [vmem:[#allocation307_spill] sm:$0xff] }
 0x582   : > { %v5006_v38 = vsel %vm4750_vm0, %v4542_v14, %v4878_v62  ;;  %vm4783_vm2 = vcmp.ge.f32.partialorder %v4624_v18, 0.0  ;;  %v4911_v43 = vmul.f32 0.01, %v4624_v18  ;;  %v4462_v20 = vadd.f32 %v9574_v55, %v4461_v32  ;;  %v11807_v23 = vld [vmem:[#allocation102_spill] sm:$0xff] }
 0x583   : > { %vm4687_vm3 = vcmp.ge.f32.partialorder %v4384_v1, 0.0  ;;  %v4815_v54 = vmul.f32 0.01, %v4384_v1  ;;  %v5134_v2 = vpack.c.bf16 %v5006_v38, %v5006_v38  ;;  %v3925_v16 = vsel %vm3805_vm12, %v3796_v45, %v2895_v27  ;;  %v11801_v45 = vld [vmem:[#allocation451_spill] sm:$0xff]  ;;  %v11802_v38 = vld [vmem:[#allocation480_spill] sm:$0xff]  ;;  %v11808_v12 = vld [vmem:[#allocation142_spill] sm:$0xff] }
 0x584   : > { %v5039_v63 = vsel %vm4783_vm2, %v4624_v18, %v4911_v43  ;;  %vm4718_vm4 = vcmp.ge.f32.partialorder %v4462_v20, 0.0  ;;  %v4846_v28 = vmul.f32 0.01, %v4462_v20  ;;  %v4054_v5 = vsel %vm3934_vm14, %v3925_v16, %v3023_v53  ;;  %v11819_v58 = vld [vmem:[#allocation458_spill] sm:$0xff] }
 0x585   : > { %v4943_v56 = vsel %vm4687_vm3, %v4384_v1, %v4815_v54  ;;  %5263 = vst.msk [vmem:[%s9054_s9 + $0x128] sm:$0xf] %vm5188_vm1, %v5134_v2  ;;  %v5167_v26 = vpack.c.bf16 %v5039_v63, %v5039_v63  ;;  %v4183_v19 = vsel %vm4063_vm13, %v4054_v5, %v9585_v6  ;;  %v4543_v35 = vpop.f32.mrf.mxu2  ;;  %v4022_v14 = vsel %vm3934_vm14, %v3893_v10, %v9545_v57  ;;  %v11796_v57 = vld [vmem:[#allocation174_spill] sm:$0xff] }
 0x586   : > { %v5071_v29 = vpack.c.bf16 %v4943_v56, %v4943_v56  ;;  %v4974_v52 = vsel %vm4718_vm4, %v4462_v20, %v4846_v28  ;;  %5704 = vmatmul.msk.bf16.gmra.mxu3 %vm4211_vm15, %v4183_v19  ;;  %v4544_v61 = vadd.f32 %v9574_v55, %v4543_v35  ;;  %v3216_v40 = vsel %vm3160_vm7, %v11797_v33, %v11796_v57  ;;  %v11804_v56 = vld [vmem:[#allocation20_spill] sm:$0xff] }
 0x587   : > { %5296 = vst.msk [vmem:[%s9054_s9 + $0x1ac] sm:$0xf] %vm5188_vm1, %v5167_v26  ;;  %v5102_v6 = vpack.c.bf16 %v4974_v52, %v4974_v52  ;;  %v9691_v22 = vpop.permute.xlu2 %3152  ;;  %v3345_v62 = vsel %vm3289_vm8, %v3216_v40, %v11798_v48  ;;  %v3186_v26 = vsel %vm3160_vm7, %v11804_v56, %v11803_v51  ;;  %v3250_v46 = vsel %vm3160_vm7, %v11807_v23, %v11806_v30  ;;  %v11815_v48 = vld [vmem:[#allocation473_spill] sm:$0xff] }
 0x588   : > { %5200 = vst.msk [vmem:[%s9054_s9 + $0x2c] sm:$0xf] %vm5188_vm1, %v5071_v29  ;;  %v2927_v50 = vpop.permute.xlu0 %2926  ;;  %vm4751_vm5 = vcmp.ge.f32.partialorder %v4544_v61, 0.0  ;;  %v4879_v13 = vmul.f32 0.01, %v4544_v61  ;;  %v11818_v51 = vld [vmem:[#allocation441_spill] sm:$0xff] }
 0x589   : > { %5231 = vst.msk [vmem:[%s9054_s9 + $0xa8] sm:$0xf] %vm5188_vm1, %v5102_v6  ;;  %v3958_v37 = vsel %vm3934_vm14, %v3829_v59, %v2927_v50  ;;  %v4463_v41 = vpop.f32.mrf.mxu1  ;;  %v3119_v21 = vpop.permute.xlu1 %3118  ;;  %v3315_v6 = vsel %vm3289_vm8, %v3186_v26, %v11808_v12  ;;  %v3411_v59 = vsel %vm3289_vm8, %v3282_v0, %v11809_v9  ;;  %v11810_v50 = vld [vmem:[#allocation282_spill] sm:$0xff] }
 0x58a   : > { %v5007_v44 = vsel %vm4751_vm5, %v4544_v61, %v4879_v13  ;;  %v4087_v42 = vsel %vm4063_vm13, %v3958_v37, %v9621_v25  ;;  %v4464_v34 = vadd.f32 %v9574_v55, %v4463_v41  ;;  %v4151_v8 = vsel %vm4063_vm13, %v4022_v14, %v3119_v21  ;;  %v11799_v25 = vld [vmem:[#allocation340_spill] sm:$0xff]  ;;  %v11811_v13 = vld [vmem:[#allocation373_spill] sm:$0xff] }
 0x58b   : > { %v5135_v7 = vpack.c.bf16 %v5007_v44, %v5007_v44  ;;  %5656 = vmatmul.msk.bf16.gmra.mxu0 %vm4211_vm15, %v4087_v42  ;;  %5688 = vmatmul.msk.bf16.gmra.mxu2 %vm4211_vm15, %v4151_v8  ;;  %v3474_v18 = vsel %vm3418_vm9, %v3345_v62, %v11799_v25  ;;  %v3379_v11 = vsel %vm3289_vm8, %v3250_v46, %v11810_v50  ;;  %v11812_v44 = vld [vmem:[#allocation326_spill] sm:$0xff] }
 0x58c   : > { %vm4719_vm6 = vcmp.ge.f32.partialorder %v4464_v34, 0.0  ;;  %v4847_v53 = vmul.f32 0.01, %v4464_v34  ;;  %v3603_v47 = vsel %vm3547_vm10, %v3474_v18, %v11800_v17  ;;  %v3540_v14 = vsel %vm3418_vm9, %v3411_v59, %v11811_v13 }
 0x58d   : > { %5264 = vst.msk [vmem:[%s9054_s9 + $0x12c] sm:$0xf] %vm5188_vm1, %v5135_v7  ;;  %v3732_v1 = vsel %vm3676_vm11, %v3603_v47, %v11801_v45  ;;  %v3444_v42 = vsel %vm3418_vm9, %v3315_v6, %v11812_v44  ;;  %v11814_v7 = vld [vmem:[#allocation421_spill] sm:$0xff] }
 0x58e   : > { %v4975_v60 = vsel %vm4719_vm6, %v4464_v34, %v4847_v53  ;;  %v3861_v43 = vsel %vm3805_vm12, %v3732_v1, %v11802_v38  ;;  %v11813_v34 = vld [vmem:[#allocation354_spill] sm:$0xff]  ;;  %v3669_v57 = vsel %vm3547_vm10, %v3540_v14, %v11814_v7 }
 0x58f   : > { %v5103_v4 = vpack.c.bf16 %v4975_v60, %v4975_v60  ;;  %v9721_v15 = vpop.permute.xlu2 %3056  ;;  %v3508_v8 = vsel %vm3418_vm9, %v3379_v11, %v11813_v34  ;;  %v3798_v62 = vsel %vm3676_vm11, %v3669_v57, %v11815_v48  ;;  %v11825_v34 = vld [vmem:[#allocation330_spill] sm:$0xff]  ;;  %v11826_v57 = vld [vmem:[#allocation400_spill] sm:$0xff]  ;;  %v11827_v48 = vld [vmem:[#allocation455_spill] sm:$0xff] }
 0x590   : > { %v3087_v32 = vpop.permute.xlu0 %3086  ;;  %v4386_v27 = vpop.f32.mrf.mxu0 }
 0x591   : > { %5232 = vst.msk [vmem:[%s9054_s9 + $0xac] sm:$0xf] %vm5188_vm1, %v5103_v4  ;;  %v4387_v20 = vadd.f32 %v9574_v55, %v4386_v27  ;;  %v4626_v54 = vpop.f32.mrf.mxu3  ;;  %v2959_v2 = vpop.permute.xlu1 %2958  ;;  %v11816_v27 = vld [vmem:[#allocation377_spill] sm:$0xff] }
 0x592   : > { %v4627_v16 = vadd.f32 %v9574_v55, %v4626_v54  ;;  %v3990_v63 = vsel %vm3934_vm14, %v3861_v43, %v2959_v2  ;;  %v3573_v38 = vsel %vm3547_vm10, %v3444_v42, %v11816_v27  ;;  %v11817_v43 = vld [vmem:[#allocation417_spill] sm:$0xff] }
 0x593   : > { %vm4688_vm0 = vcmp.ge.f32.partialorder %v4387_v20, 0.0  ;;  %v4816_v28 = vmul.f32 0.01, %v4387_v20  ;;  %v4119_v5 = vsel %vm4063_vm13, %v3990_v63, %v3087_v32  ;;  %v3702_v56 = vsel %vm3676_vm11, %v3573_v38, %v11818_v51  ;;  %v11829_v38 = vld [vmem:[#allocation143_spill] sm:$0xff] }
 0x594   : > { %vm4784_vm2 = vcmp.ge.f32.partialorder %v4627_v16, 0.0  ;;  %v4912_v39 = vmul.f32 0.01, %v4627_v16  ;;  %5672 = vmatmul.msk.bf16.gmra.mxu1 %vm4211_vm15, %v4119_v5 }
 0x595   : > { %v4944_v19 = vsel %vm4688_vm0, %v4387_v20, %v4816_v28  ;;  %v4546_v35 = vpop.f32.mrf.mxu2  ;;  %v3637_v20 = vsel %vm3547_vm10, %v3508_v8, %v11817_v43  ;;  %v11830_v43 = vld [vmem:[#allocation22_spill] sm:$0xff] }
 0x596   : > { %v5072_v29 = vpack.c.bf16 %v4944_v19, %v4944_v19  ;;  %v5040_v52 = vsel %vm4784_vm2, %v4627_v16, %v4912_v39  ;;  %v4547_v61 = vadd.f32 %v9574_v55, %v4546_v35  ;;  %v3766_v0 = vsel %vm3676_vm11, %v3637_v20, %v11819_v58  ;;  %v11835_v58 = vld [vmem:[#allocation311_spill] sm:$0xff] }
 0x597   : > { %v5168_v24 = vpack.c.bf16 %v5040_v52, %v5040_v52  ;;  %v9748_v10 = vpop.permute.xlu2 %2994  ;;  %v3188_v20 = vsel %vm3160_vm7, %v11830_v43, %v11829_v38 }
 0x598   : > { %5201 = vst.msk [vmem:[%s9054_s9 + $0x30] sm:$0xf] %vm5188_vm1, %v5072_v29  ;;  %v3025_v37 = vpop.permute.xlu0 %3024  ;;  %v4388_v41 = vpop.f32.mrf.mxu0  ;;  %vm4752_vm3 = vcmp.ge.f32.partialorder %v4547_v61, 0.0  ;;  %v4880_v21 = vmul.f32 0.01, %v4547_v61  ;;  %v11820_v29 = vld [vmem:[#allocation12_spill] sm:$0xff] }
 0x599   : > { %5297 = vst.msk [vmem:[%s9054_s9 + $0x1b0] sm:$0xf] %vm5188_vm1, %v5168_v24  ;;  %v4389_v33 = vadd.f32 %v9574_v55, %v4388_v41  ;;  %v4628_v40 = vpop.f32.mrf.mxu3  ;;  %v4466_v53 = vpop.f32.mrf.mxu1  ;;  %v3831_v52 = vsel %vm3805_vm12, %v3702_v56, %v11820_v29  ;;  %v11823_v41 = vld [vmem:[#allocation61_spill] sm:$0xff] }
 0x59a   : > { %v5008_v25 = vsel %vm4752_vm3, %v4547_v61, %v4880_v21  ;;  %v4629_v18 = vadd.f32 %v9574_v55, %v4628_v40  ;;  %v4467_v60 = vadd.f32 %v9574_v55, %v4466_v53  ;;  %v2897_v17 = vpop.permute.xlu1 %2896  ;;  %v11824_v21 = vld [vmem:[#allocation278_spill] sm:$0xff] }
 0x59b   : > { %vm4689_vm4 = vcmp.ge.f32.partialorder %v4389_v33, 0.0  ;;  %v4817_v47 = vmul.f32 0.01, %v4389_v33  ;;  %v5136_v4 = vpack.c.bf16 %v5008_v25, %v5008_v25  ;;  %v3927_v45 = vsel %vm3805_vm12, %v3798_v62, %v2897_v17 }
 0x59c   : > { %vm4785_vm5 = vcmp.ge.f32.partialorder %v4629_v18, 0.0  ;;  %v4913_v1 = vmul.f32 0.01, %v4629_v18  ;;  %vm4720_vm6 = vcmp.ge.f32.partialorder %v4467_v60, 0.0  ;;  %v4848_v32 = vmul.f32 0.01, %v4467_v60 }
 0x59d   : > { %v4945_v54 = vsel %vm4689_vm4, %v4389_v33, %v4817_v47  ;;  %5265 = vst.msk [vmem:[%s9054_s9 + $0x130] sm:$0xf] %vm5188_vm1, %v5136_v4  ;;  %v4056_v2 = vsel %vm3934_vm14, %v3927_v45, %v3025_v37  ;;  %v4548_v16 = vpop.f32.mrf.mxu2 }
 0x59e   : > { %v5073_v63 = vpack.c.bf16 %v4945_v54, %v4945_v54  ;;  %v5041_v28 = vsel %vm4785_vm5, %v4629_v18, %v4913_v1  ;;  %v4976_v5 = vsel %vm4720_vm6, %v4467_v60, %v4848_v32  ;;  %v4185_v39 = vsel %vm4063_vm13, %v4056_v2, %v9691_v22  ;;  %v11821_v22 = vld [vmem:[#allocation78_spill] sm:$0xff] }
 0x59f   : > { %v5169_v26 = vpack.c.bf16 %v5041_v28, %v5041_v28  ;;  %v5104_v19 = vpack.c.bf16 %v4976_v5, %v4976_v5  ;;  %5705 = vmatmul.msk.bf16.gmra.mxu3 %vm4211_vm15, %v4185_v39  ;;  %v4549_v35 = vadd.f32 %v9574_v55, %v4548_v16  ;;  %v3895_v30 = vsel %vm3805_vm12, %v3766_v0, %v11821_v22  ;;  %v9802_v11 = vpop.permute.xlu2 %3154  ;;  %v11828_v60 = vld [vmem:[#allocation14_spill] sm:$0xff]  ;;  %v11831_v16 = vld [vmem:[#allocation43_spill] sm:$0xff]  ;;  %v11833_v5 = vld [vmem:[#allocation97_spill] sm:$0xff] }
 0x5a0   : > { %5202 = vst.msk [vmem:[%s9054_s9 + $0x34] sm:$0xf] %vm5188_vm1, %v5073_v63  ;;  %v2929_v61 = vpop.permute.xlu0 %2928  ;;  %v4024_v6 = vsel %vm3934_vm14, %v3895_v30, %v9658_v49  ;;  %v11822_v49 = vld [vmem:[#allocation184_spill] sm:$0xff]  ;;  %v11832_v63 = vld [vmem:[#allocation103_spill] sm:$0xff]  ;;  %v3284_v39 = vsel %vm3160_vm7, %v11554_v31, %v11833_v5 }
 0x5a1   : > { %5298 = vst.msk [vmem:[%s9054_s9 + $0x1b4] sm:$0xf] %vm5188_vm1, %v5169_v26  ;;  %v3960_v23 = vsel %vm3934_vm14, %v3831_v52, %v2929_v61  ;;  %vm4753_vm0 = vcmp.ge.f32.partialorder %v4549_v35, 0.0  ;;  %v4881_v46 = vmul.f32 0.01, %v4549_v35  ;;  %v4468_v12 = vpop.f32.mrf.mxu1  ;;  %v3252_v28 = vsel %vm3160_vm7, %v11832_v63, %v11831_v16  ;;  %v11836_v61 = vld [vmem:[#allocation292_spill] sm:$0xff] }
 0x5a2   : > { %5233 = vst.msk [vmem:[%s9054_s9 + $0xb0] sm:$0xf] %vm5188_vm1, %v5104_v19  ;;  %v4089_v9 = vsel %vm4063_vm13, %v3960_v23, %v9721_v15  ;;  %v4469_v59 = vadd.f32 %v9574_v55, %v4468_v12  ;;  %v3121_v24 = vpop.permute.xlu1 %3120  ;;  %v3218_v15 = vsel %vm3160_vm7, %v11823_v41, %v11822_v49  ;;  %v11834_v19 = vld [vmem:[#allocation258_spill] sm:$0xff]  ;;  %v3413_v0 = vsel %vm3289_vm8, %v3284_v39, %v11835_v58  ;;  %v11837_v30 = vld [vmem:[#allocation315_spill] sm:$0xff]  ;;  %v11841_v41 = vld [vmem:[#allocation477_spill] sm:$0xff] }
 0x5a3   : > { %v5009_v50 = vsel %vm4753_vm0, %v4549_v35, %v4881_v46  ;;  %5657 = vmatmul.msk.bf16.gmra.mxu0 %vm4211_vm15, %v4089_v9  ;;  %v4153_v13 = vsel %vm4063_vm13, %v4024_v6, %v3121_v24  ;;  %v3347_v44 = vsel %vm3289_vm8, %v3218_v15, %v11824_v21  ;;  %v3317_v35 = vsel %vm3289_vm8, %v3188_v20, %v11834_v19  ;;  %v11838_v46 = vld [vmem:[#allocation362_spill] sm:$0xff]  ;;  %v11839_v9 = vld [vmem:[#allocation429_spill] sm:$0xff]  ;;  %v11846_v63 = vld [vmem:[#allocation123_spill] sm:$0xff] }
 0x5a4   : > { %v5137_v14 = vpack.c.bf16 %v5009_v50, %v5009_v50  ;;  %vm4721_vm2 = vcmp.ge.f32.partialorder %v4469_v59, 0.0  ;;  %v4849_v37 = vmul.f32 0.01, %v4469_v59  ;;  %5689 = vmatmul.msk.bf16.gmra.mxu2 %vm4211_vm15, %v4153_v13  ;;  %v3476_v8 = vsel %vm3418_vm9, %v3347_v44, %v11825_v34  ;;  %v11847_v39 = vld [vmem:[#allocation50_spill] sm:$0xff] }
 0x5a5   : > { %v3605_v33 = vsel %vm3547_vm10, %v3476_v8, %v11826_v57  ;;  %v3381_v22 = vsel %vm3289_vm8, %v3252_v28, %v11836_v61  ;;  %v3446_v23 = vsel %vm3418_vm9, %v3317_v35, %v11837_v30  ;;  %v3542_v31 = vsel %vm3418_vm9, %v3413_v0, %v11838_v46 }
 0x5a6   : > { %5266 = vst.msk [vmem:[%s9054_s9 + $0x134] sm:$0xf] %vm5188_vm1, %v5137_v14  ;;  %v4977_v42 = vsel %vm4721_vm2, %v4469_v59, %v4849_v37  ;;  %v3734_v62 = vsel %vm3676_vm11, %v3605_v33, %v11827_v48  ;;  %v3671_v59 = vsel %vm3547_vm10, %v3542_v31, %v11839_v9  ;;  %v11840_v37 = vld [vmem:[#allocation358_spill] sm:$0xff]  ;;  %v11850_v31 = vld [vmem:[#allocation267_spill] sm:$0xff] }
 0x5a7   : > { %v5105_v7 = vpack.c.bf16 %v4977_v42, %v4977_v42  ;;  %v3863_v17 = vsel %vm3805_vm12, %v3734_v62, %v11828_v60  ;;  %v9830_v2 = vpop.permute.xlu2 %3058  ;;  %v3510_v49 = vsel %vm3418_vm9, %v3381_v22, %v11840_v37  ;;  %v3800_v15 = vsel %vm3676_vm11, %v3671_v59, %v11841_v41  ;;  %v11853_v37 = vld [vmem:[#allocation447_spill] sm:$0xff] }
 0x5a8   : > { %v3089_v40 = vpop.permute.xlu0 %3088  ;;  %v4391_v53 = vpop.f32.mrf.mxu0 }
 0x5a9   : > { %5234 = vst.msk [vmem:[%s9054_s9 + $0xb4] sm:$0xf] %vm5188_vm1, %v5105_v7  ;;  %v4392_v25 = vadd.f32 %v9574_v55, %v4391_v53  ;;  %v4631_v18 = vpop.f32.mrf.mxu3 }
 0x5aa   : > { %v4632_v47 = vadd.f32 %v9574_v55, %v4631_v18  ;;  %v2961_v4 = vpop.permute.xlu1 %2960  ;;  %v11843_v18 = vld [vmem:[#allocation408_spill] sm:$0xff] }
 0x5ab   : > { %vm4690_vm3 = vcmp.ge.f32.partialorder %v4392_v25, 0.0  ;;  %v4818_v45 = vmul.f32 0.01, %v4392_v25  ;;  %v3992_v1 = vsel %vm3934_vm14, %v3863_v17, %v2961_v4  ;;  %v3639_v60 = vsel %vm3547_vm10, %v3510_v49, %v11843_v18  ;;  %v11857_v18 = vld [vmem:[#allocation218_spill] sm:$0xff] }
 0x5ac   : > { %vm4786_vm4 = vcmp.ge.f32.partialorder %v4632_v47, 0.0  ;;  %v4914_v32 = vmul.f32 0.01, %v4632_v47  ;;  %v4121_v27 = vsel %vm4063_vm13, %v3992_v1, %v3089_v40  ;;  %v11842_v40 = vld [vmem:[#allocation387_spill] sm:$0xff]  ;;  %v11844_v1 = vld [vmem:[#allocation444_spill] sm:$0xff] }
 0x5ad   : > { %v4946_v54 = vsel %vm4690_vm3, %v4392_v25, %v4818_v45  ;;  %5673 = vmatmul.msk.bf16.gmra.mxu1 %vm4211_vm15, %v4121_v27  ;;  %v3575_v53 = vsel %vm3547_vm10, %v3446_v23, %v11842_v40  ;;  %v11849_v23 = vld [vmem:[#allocation60_spill] sm:$0xff] }
 0x5ae   : > { %v5074_v51 = vpack.c.bf16 %v4946_v54, %v4946_v54  ;;  %v5042_v56 = vsel %vm4786_vm4, %v4632_v47, %v4914_v32  ;;  %v4551_v26 = vpop.f32.mrf.mxu2  ;;  %v3704_v32 = vsel %vm3676_vm11, %v3575_v53, %v11844_v1  ;;  %v11845_v54 = vld [vmem:[#allocation464_spill] sm:$0xff]  ;;  %v11855_v53 = vld [vmem:[#allocation115_spill] sm:$0xff] }
 0x5af   : > { %v5170_v29 = vpack.c.bf16 %v5042_v56, %v5042_v56  ;;  %v4552_v52 = vadd.f32 %v9574_v55, %v4551_v26  ;;  %v9875_v38 = vpop.permute.xlu2 %2996  ;;  %v3768_v16 = vsel %vm3676_vm11, %v3639_v60, %v11845_v54  ;;  %v3833_v28 = vsel %vm3805_vm12, %v3704_v32, %v11846_v63  ;;  %v11858_v60 = vld [vmem:[#allocation114_spill] sm:$0xff] }
 0x5b0   : > { %5203 = vst.msk [vmem:[%s9054_s9 + $0x38] sm:$0xf] %vm5188_vm1, %v5074_v51  ;;  %v3027_v12 = vpop.permute.xlu0 %3026  ;;  %v4393_v6 = vpop.f32.mrf.mxu0  ;;  %v3897_v51 = vsel %vm3805_vm12, %v3768_v16, %v11847_v39 }
 0x5b1   : > { %5299 = vst.msk [vmem:[%s9054_s9 + $0x1b8] sm:$0xf] %vm5188_vm1, %v5170_v29  ;;  %v4394_v24 = vadd.f32 %v9574_v55, %v4393_v6  ;;  %vm4754_vm5 = vcmp.ge.f32.partialorder %v4552_v52, 0.0  ;;  %v4882_v50 = vmul.f32 0.01, %v4552_v52  ;;  %v4633_v13 = vpop.f32.mrf.mxu3  ;;  %v4471_v14 = vpop.f32.mrf.mxu1  ;;  %v4026_v35 = vsel %vm3934_vm14, %v3897_v51, %v9748_v10  ;;  %v11848_v10 = vld [vmem:[#allocation161_spill] sm:$0xff] }
 0x5b2   : > { %v4634_v21 = vadd.f32 %v9574_v55, %v4633_v13  ;;  %v4472_v44 = vadd.f32 %v9574_v55, %v4471_v14  ;;  %v2899_v42 = vpop.permute.xlu1 %2898  ;;  %v3220_v46 = vsel %vm3160_vm7, %v11849_v23, %v11848_v10  ;;  %v11851_v6 = vld [vmem:[#allocation339_spill] sm:$0xff] }
 0x5b3   : > { %vm4691_vm6 = vcmp.ge.f32.partialorder %v4394_v24, 0.0  ;;  %v4819_v34 = vmul.f32 0.01, %v4394_v24  ;;  %v5010_v8 = vsel %vm4754_vm5, %v4552_v52, %v4882_v50  ;;  %v3929_v7 = vsel %vm3805_vm12, %v3800_v15, %v2899_v42  ;;  %v11864_v51 = vld [vmem:[#allocation347_spill] sm:$0xff] }
 0x5b4   : > { %v5138_v57 = vpack.c.bf16 %v5010_v8, %v5010_v8  ;;  %vm4787_vm0 = vcmp.ge.f32.partialorder %v4634_v21, 0.0  ;;  %v4915_v33 = vmul.f32 0.01, %v4634_v21  ;;  %vm4722_vm2 = vcmp.ge.f32.partialorder %v4472_v44, 0.0 }
 0x5b5   : > { %v4947_v48 = vsel %vm4691_vm6, %v4394_v24, %v4819_v34  ;;  %v4850_v62 = vmul.f32 0.01, %v4472_v44  ;;  %v4058_v25 = vsel %vm3934_vm14, %v3929_v7, %v3027_v12  ;;  %v11852_v24 = vld [vmem:[#allocation404_spill] sm:$0xff] }
 0x5b6   : > { %v5075_v17 = vpack.c.bf16 %v4947_v48, %v4947_v48  ;;  %5267 = vst.msk [vmem:[%s9054_s9 + $0x138] sm:$0xf] %vm5188_vm1, %v5138_v57  ;;  %v5043_v47 = vsel %vm4787_vm0, %v4634_v21, %v4915_v33  ;;  %v4187_v4 = vsel %vm4063_vm13, %v4058_v25, %v9802_v11  ;;  %v4553_v45 = vpop.f32.mrf.mxu2  ;;  %v11856_v48 = vld [vmem:[#allocation29_spill] sm:$0xff] }
 0x5b7   : > { %v5171_v27 = vpack.c.bf16 %v5043_v47, %v5043_v47  ;;  %v4978_v43 = vsel %vm4722_vm2, %v4472_v44, %v4850_v62  ;;  %5706 = vmatmul.msk.bf16.gmra.mxu3 %vm4211_vm15, %v4187_v4  ;;  %v4554_v20 = vadd.f32 %v9574_v55, %v4553_v45  ;;  %v9913_v41 = vpop.permute.xlu2 %3156  ;;  %v11854_v44 = vld [vmem:[#allocation81_spill] sm:$0xff]  ;;  %v3190_v62 = vsel %vm3160_vm7, %v11856_v48, %v11855_v53  ;;  %v11859_v47 = vld [vmem:[#allocation76_spill] sm:$0xff] }
 0x5b8   : > { %5204 = vst.msk [vmem:[%s9054_s9 + $0x3c] sm:$0xf] %vm5188_vm1, %v5075_v17  ;;  %v5106_v11 = vpack.c.bf16 %v4978_v43, %v4978_v43  ;;  %v2931_v5 = vpop.permute.xlu0 %2930  ;;  %v3254_v17 = vsel %vm3160_vm7, %v11858_v60, %v11857_v18  ;;  %v3286_v4 = vsel %vm3160_vm7, %v11583_v3, %v11859_v47  ;;  %v11873_v18 = vld [vmem:[#allocation89_spill] sm:$0xff] }
 0x5b9   : > { %5300 = vst.msk [vmem:[%s9054_s9 + $0x1bc] sm:$0xf] %vm5188_vm1, %v5171_v27  ;;  %v3962_v56 = vsel %vm3934_vm14, %v3833_v28, %v2931_v5  ;;  %vm4755_vm3 = vcmp.ge.f32.partialorder %v4554_v20, 0.0  ;;  %v4883_v26 = vmul.f32 0.01, %v4554_v20  ;;  %v4473_v19 = vpop.f32.mrf.mxu1  ;;  %v11860_v27 = vld [vmem:[#allocation243_spill] sm:$0xff] }
 0x5ba   : > { %5235 = vst.msk [vmem:[%s9054_s9 + $0xb8] sm:$0xf] %vm5188_vm1, %v5106_v11  ;;  %v4091_v58 = vsel %vm4063_vm13, %v3962_v56, %v9830_v2  ;;  %v4474_v0 = vadd.f32 %v9574_v55, %v4473_v19  ;;  %v3123_v29 = vpop.permute.xlu1 %3122  ;;  %v3349_v2 = vsel %vm3289_vm8, %v3220_v46, %v11850_v31  ;;  %v3319_v43 = vsel %vm3289_vm8, %v3190_v62, %v11860_v27  ;;  %v11862_v28 = vld [vmem:[#allocation300_spill] sm:$0xff]  ;;  %v11863_v5 = vld [vmem:[#allocation325_spill] sm:$0xff]  ;;  %v11872_v62 = vld [vmem:[#allocation42_spill] sm:$0xff] }
 0x5bb   : > { %v5011_v52 = vsel %vm4755_vm3, %v4554_v20, %v4883_v26  ;;  %5658 = vmatmul.msk.bf16.gmra.mxu0 %vm4211_vm15, %v4091_v58  ;;  %v4155_v61 = vsel %vm4063_vm13, %v4026_v35, %v3123_v29  ;;  %v3478_v9 = vsel %vm3418_vm9, %v3349_v2, %v11851_v6  ;;  %v11861_v20 = vld [vmem:[#allocation296_spill] sm:$0xff]  ;;  %v3415_v11 = vsel %vm3289_vm8, %v3286_v4, %v11862_v28  ;;  %v11868_v2 = vld [vmem:[#allocation433_spill] sm:$0xff] }
 0x5bc   : > { %v5139_v22 = vpack.c.bf16 %v5011_v52, %v5011_v52  ;;  %vm4723_vm4 = vcmp.ge.f32.partialorder %v4474_v0, 0.0  ;;  %v4851_v30 = vmul.f32 0.01, %v4474_v0  ;;  %5690 = vmatmul.msk.bf16.gmra.mxu2 %vm4211_vm15, %v4155_v61  ;;  %v3607_v50 = vsel %vm3547_vm10, %v3478_v9, %v11852_v24  ;;  %v11865_v19 = vld [vmem:[#allocation372_spill] sm:$0xff]  ;;  %v11866_v61 = vld [vmem:[#allocation391_spill] sm:$0xff] }
 0x5bd   : > { %v3736_v49 = vsel %vm3676_vm11, %v3607_v50, %v11853_v37  ;;  %v3383_v54 = vsel %vm3289_vm8, %v3254_v17, %v11861_v20  ;;  %v3448_v39 = vsel %vm3418_vm9, %v3319_v43, %v11863_v5  ;;  %v3544_v35 = vsel %vm3418_vm9, %v3415_v11, %v11865_v19  ;;  %v11875_v5 = vld [vmem:[#allocation56_spill] sm:$0xff]  ;;  %v11877_v19 = vld [vmem:[#allocation343_spill] sm:$0xff] }
 0x5be   : > { %5268 = vst.msk [vmem:[%s9054_s9 + $0x13c] sm:$0xf] %vm5188_vm1, %v5139_v22  ;;  %v4979_v12 = vsel %vm4723_vm4, %v4474_v0, %v4851_v30  ;;  %v3865_v42 = vsel %vm3805_vm12, %v3736_v49, %v11854_v44  ;;  %v3512_v3 = vsel %vm3418_vm9, %v3383_v54, %v11864_v51  ;;  %v3577_v22 = vsel %vm3547_vm10, %v3448_v39, %v11866_v61  ;;  %v11867_v30 = vld [vmem:[#allocation416_spill] sm:$0xff] }
 0x5bf   : > { %v5107_v59 = vpack.c.bf16 %v4979_v12, %v4979_v12  ;;  %v3641_v10 = vsel %vm3547_vm10, %v3512_v3, %v11867_v30  ;;  %v3673_v12 = vsel %vm3547_vm10, %v3544_v35, %v11868_v2  ;;  %v3061_v6 = vpop.permute.xlu2 %3060  ;;  %v11876_v3 = vld [vmem:[#allocation277_spill] sm:$0xff] }
 0x5c0   : > { %v3091_v13 = vpop.permute.xlu0 %3090  ;;  %v4396_v14 = vpop.f32.mrf.mxu0 }
 0x5c1   : > { %5236 = vst.msk [vmem:[%s9054_s9 + $0xbc] sm:$0xf] %vm5188_vm1, %v5107_v59  ;;  %v4397_v15 = vadd.f32 %v9574_v55, %v4396_v14  ;;  %v4636_v21 = vpop.f32.mrf.mxu3 }
 0x5c2   : > { %v4637_v34 = vadd.f32 %v9574_v55, %v4636_v21  ;;  %v2963_v8 = vpop.permute.xlu1 %2962  ;;  %v11870_v21 = vld [vmem:[#allocation467_spill] sm:$0xff] }
 0x5c3   : > { %vm4692_vm5 = vcmp.ge.f32.partialorder %v4397_v15, 0.0  ;;  %v4820_v7 = vmul.f32 0.01, %v4397_v15  ;;  %v3994_v57 = vsel %vm3934_vm14, %v3865_v42, %v2963_v8  ;;  %v3770_v44 = vsel %vm3676_vm11, %v3641_v10, %v11870_v21  ;;  %v11871_v42 = vld [vmem:[#allocation469_spill] sm:$0xff] }
 0x5c4   : > { %vm4788_vm6 = vcmp.ge.f32.partialorder %v4637_v34, 0.0  ;;  %v4916_v33 = vmul.f32 0.01, %v4637_v34  ;;  %v4123_v40 = vsel %vm4063_vm13, %v3994_v57, %v3091_v13  ;;  %v11869_v13 = vld [vmem:[#allocation437_spill] sm:$0xff]  ;;  %v3899_v60 = vsel %vm3805_vm12, %v3770_v44, %v11873_v18  ;;  %v11885_v44 = vld [vmem:[#allocation99_spill] sm:$0xff] }
 0x5c5   : > { %v4948_v25 = vsel %vm4692_vm5, %v4397_v15, %v4820_v7  ;;  %5674 = vmatmul.msk.bf16.gmra.mxu1 %vm4211_vm15, %v4123_v40  ;;  %v3706_v14 = vsel %vm3676_vm11, %v3577_v22, %v11869_v13  ;;  %v4028_v43 = vsel %vm3934_vm14, %v3899_v60, %v9875_v38  ;;  %v11874_v38 = vld [vmem:[#allocation179_spill] sm:$0xff]  ;;  %v11879_v22 = vld [vmem:[#allocation454_spill] sm:$0xff]  ;;  %v11890_v60 = vld [vmem:[#allocation357_spill] sm:$0xff] }
 0x5c6   : > { %v5076_v45 = vpack.c.bf16 %v4948_v25, %v4948_v25  ;;  %v5044_v1 = vsel %vm4788_vm6, %v4637_v34, %v4916_v33  ;;  %v4556_v32 = vpop.f32.mrf.mxu2  ;;  %v3802_v34 = vsel %vm3676_vm11, %v3673_v12, %v11871_v42  ;;  %v3835_v25 = vsel %vm3805_vm12, %v3706_v14, %v11872_v62  ;;  %v11883_v14 = vld [vmem:[#allocation203_spill] sm:$0xff] }
 0x5c7   : > { %v5172_v16 = vpack.c.bf16 %v5044_v1, %v5044_v1  ;;  %v4557_v63 = vadd.f32 %v9574_v55, %v4556_v32  ;;  %v3222_v39 = vsel %vm3160_vm7, %v11875_v5, %v11874_v38  ;;  %v9997_v51 = vpop.permute.xlu2 %3030  ;;  %v3288_v42 = vsel %vm3160_vm7, %v11621_v36, %v11885_v44 }
 0x5c8   : > { %5205 = vst.msk [vmem:[%s9054_s9 + $0x40] sm:$0xf] %vm5188_vm1, %v5076_v45  ;;  %v3029_v56 = vpop.permute.xlu0 %3028  ;;  %v4398_v26 = vpop.f32.mrf.mxu0 }
 0x5c9   : > { %5301 = vst.msk [vmem:[%s9054_s9 + $0x1c0] sm:$0xf] %vm5188_vm1, %v5172_v16  ;;  %v4399_v58 = vadd.f32 %v9574_v55, %v4398_v26  ;;  %vm4756_vm0 = vcmp.ge.f32.partialorder %v4557_v63, 0.0  ;;  %v4884_v0 = vmul.f32 0.01, %v4557_v63  ;;  %v4638_v29 = vpop.f32.mrf.mxu3  ;;  %v4476_v52 = vpop.f32.mrf.mxu1 }
 0x5ca   : > { %v4639_v23 = vadd.f32 %v9574_v55, %v4638_v29  ;;  %v4477_v46 = vadd.f32 %v9574_v55, %v4476_v52  ;;  %v9957_v31 = vpop.permute.xlu1 %5809 }
 0x5cb   : > { %vm4693_vm2 = vcmp.ge.f32.partialorder %v4399_v58, 0.0  ;;  %v4821_v9 = vmul.f32 0.01, %v4399_v58  ;;  %v5012_v59 = vsel %vm4756_vm0, %v4557_v63, %v4884_v0  ;;  %v5811_v15 = vunpack.i.l.bf16 %v9957_v31  ;;  %v11878_v0 = vld [vmem:[#allocation175_spill] sm:$0xff] }
 0x5cc   : > { %v5140_v24 = vpack.c.bf16 %v5012_v59, %v5012_v59  ;;  %vm4789_vm3 = vcmp.ge.f32.partialorder %v4639_v23, 0.0  ;;  %v4917_v50 = vmul.f32 0.01, %v4639_v23  ;;  %vm4724_vm4 = vcmp.ge.f32.partialorder %v4477_v46, 0.0  ;;  %v11882_v59 = vld [vmem:[#allocation58_spill] sm:$0xff] }
 0x5cd   : > { %v4949_v37 = vsel %vm4693_vm2, %v4399_v58, %v4821_v9  ;;  %v4852_v49 = vmul.f32 0.01, %v4477_v46  ;;  %v3931_v53 = vsel %vm3805_vm12, %v3802_v34, %v5811_v15  ;;  %v11881_v9 = vld [vmem:[#allocation189_spill] sm:$0xff] }
 0x5ce   : > { %v5077_v8 = vpack.c.bf16 %v4949_v37, %v4949_v37  ;;  %5269 = vst.msk [vmem:[%s9054_s9 + $0x140] sm:$0xf] %vm5188_vm1, %v5140_v24  ;;  %v5045_v7 = vsel %vm4789_vm3, %v4639_v23, %v4917_v50  ;;  %v4558_v57 = vpop.f32.mrf.mxu2  ;;  %v4060_v4 = vsel %vm3934_vm14, %v3931_v53, %v3029_v56  ;;  %v3351_v56 = vsel %vm3289_vm8, %v3222_v39, %v11876_v3  ;;  %v11884_v37 = vld [vmem:[#allocation113_spill] sm:$0xff] }
 0x5cf   : > { %v5173_v33 = vpack.c.bf16 %v5045_v7, %v5045_v7  ;;  %v4980_v40 = vsel %vm4724_vm4, %v4477_v46, %v4852_v49  ;;  %v4559_v48 = vadd.f32 %v9574_v55, %v4558_v57  ;;  %v4189_v32 = vsel %vm4063_vm13, %v4060_v4, %v9913_v41  ;;  %v11880_v46 = vld [vmem:[#allocation214_spill] sm:$0xff]  ;;  %v11886_v34 = vld [vmem:[#allocation281_spill] sm:$0xff] }
 0x5d0   : > { %5206 = vst.msk [vmem:[%s9054_s9 + $0x44] sm:$0xf] %vm5188_vm1, %v5077_v8  ;;  %v5108_v17 = vpack.c.bf16 %v4980_v40, %v4980_v40  ;;  %v2933_v47 = vpop.permute.xlu0 %2932  ;;  %5707 = vmatmul.msk.bf16.gmra.mxu3 %vm4211_vm15, %v4189_v32  ;;  %v3480_v35 = vsel %vm3418_vm9, %v3351_v56, %v11877_v19  ;;  %v3224_v24 = vsel %vm3160_vm7, %v11882_v59, %v11881_v9  ;;  %v11887_v7 = vld [vmem:[#allocation285_spill] sm:$0xff]  ;;  %v11888_v40 = vld [vmem:[#allocation310_spill] sm:$0xff] }
 0x5d1   : > { %5302 = vst.msk [vmem:[%s9054_s9 + $0x1c4] sm:$0xf] %vm5188_vm1, %v5173_v33  ;;  %v3964_v45 = vsel %vm3934_vm14, %v3835_v25, %v2933_v47  ;;  %vm4757_vm5 = vcmp.ge.f32.partialorder %v4559_v48, 0.0  ;;  %v4885_v1 = vmul.f32 0.01, %v4559_v48  ;;  %v4478_v27 = vpop.f32.mrf.mxu1  ;;  %v3609_v29 = vsel %vm3547_vm10, %v3480_v35, %v11878_v0  ;;  %v11891_v47 = vld [vmem:[#allocation376_spill] sm:$0xff] }
 0x5d2   : > { %5237 = vst.msk [vmem:[%s9054_s9 + $0xc0] sm:$0xf] %vm5188_vm1, %v5108_v17  ;;  %v4093_v20 = vsel %vm4063_vm13, %v3964_v45, %v3061_v6  ;;  %v4479_v54 = vadd.f32 %v9574_v55, %v4478_v27  ;;  %v3125_v16 = vpop.permute.xlu1 %3124  ;;  %v3738_v30 = vsel %vm3676_vm11, %v3609_v29, %v11879_v22  ;;  %v3256_v49 = vsel %vm3160_vm7, %v11884_v37, %v11883_v14  ;;  %v10039_v45 = vpop.permute.xlu2 %2934  ;;  %v11892_v27 = vld [vmem:[#allocation403_spill] sm:$0xff]  ;;  %v10072_v14 = vld [vmem:[%s10262_s2] ss:$0 sm:$0xff] }
 0x5d3   : > { %v5013_v63 = vsel %vm4757_vm5, %v4559_v48, %v4885_v1  ;;  %5659 = vmatmul.msk.bf16.gmra.mxu0 %vm4211_vm15, %v4093_v20  ;;  %v4157_v28 = vsel %vm4063_vm13, %v4028_v43, %v3125_v16  ;;  %v3867_v2 = vsel %vm3805_vm12, %v3738_v30, %v11880_v46  ;;  %v3353_v8 = vsel %vm3289_vm8, %v3224_v24, %v11886_v34  ;;  %v11889_v48 = vld [vmem:[#allocation13_spill] sm:$0xff]  ;;  %v11893_v20 = vld [vmem:[#allocation420_spill] sm:$0xff] }
 0x5d4   : > { %v5141_v41 = vpack.c.bf16 %v5013_v63, %v5013_v63  ;;  %vm4725_vm6 = vcmp.ge.f32.partialorder %v4479_v54, 0.0  ;;  %v4853_v11 = vmul.f32 0.01, %v4479_v54  ;;  %5691 = vmatmul.msk.bf16.gmra.mxu2 %vm4211_vm15, %v4157_v28  ;;  %v3385_v57 = vsel %vm3289_vm8, %v3256_v49, %v11887_v7  ;;  %v11894_v16 = vld [vmem:[#allocation424_spill] sm:$0xff] }
 0x5d5   : > { %v3417_v53 = vsel %vm3289_vm8, %v3288_v42, %v11888_v40  ;;  %v3482_v62 = vsel %vm3418_vm9, %v3353_v8, %v11889_v48  ;;  %v3514_v17 = vsel %vm3418_vm9, %v3385_v57, %v11890_v60  ;;  %v5812_v35 = vunpack.i.h.bf16 %v9957_v31  ;;  %v11900_v48 = vld [vmem:[#allocation140_spill] sm:$0xff] }
 0x5d6   : > { %5270 = vst.msk [vmem:[%s9054_s9 + $0x144] sm:$0xf] %vm5188_vm1, %v5141_v41  ;;  %v4981_v26 = vsel %vm4725_vm6, %v4479_v54, %v4853_v11  ;;  %v3546_v4 = vsel %vm3418_vm9, %v3417_v53, %v11891_v47  ;;  %v3611_v43 = vsel %vm3547_vm10, %v3482_v62, %v11892_v27  ;;  %v3643_v54 = vsel %vm3547_vm10, %v3514_v17, %v11893_v20  ;;  %v11895_v11 = vld [vmem:[#allocation459_spill] sm:$0xff]  ;;  %v11901_v62 = vld [vmem:[#allocation28_spill] sm:$0xff] }
 0x5d7   : > { %v5109_v58 = vpack.c.bf16 %v4981_v26, %v4981_v26  ;;  %v3675_v63 = vsel %vm3547_vm10, %v3546_v4, %v11894_v16  ;;  %v3772_v38 = vsel %vm3676_vm11, %v3643_v54, %v11895_v11  ;;  %v11896_v26 = vld [vmem:[#allocation212_spill] sm:$0xff]  ;;  %v11902_v4 = vld [vmem:[#allocation257_spill] sm:$0xff]  ;;  %v11905_v16 = vld [vmem:[#allocation443_spill] sm:$0xff] }
 0x5d8   : > { %v3093_v52 = vpop.permute.xlu0 %3092  ;;  %v4401_v61 = vpop.f32.mrf.mxu0  ;;  %v3901_v19 = vsel %vm3805_vm12, %v3772_v38, %v11896_v26 }
 0x5d9   : > { %5238 = vst.msk [vmem:[%s9054_s9 + $0xc4] sm:$0xf] %vm5188_vm1, %v5109_v58  ;;  %v4402_v10 = vadd.f32 %v9574_v55, %v4401_v61  ;;  %v4641_v23 = vpop.f32.mrf.mxu3 }
 0x5da   : > { %v4642_v12 = vadd.f32 %v9574_v55, %v4641_v23  ;;  %v2965_v6 = vpop.permute.xlu1 %2964  ;;  %v11897_v23 = vld [vmem:[#allocation457_spill] sm:$0xff]  ;;  %v3095_v8 = vpop.permute.xlu2 %3094 }
 0x5db   : > { %vm4694_vm0 = vcmp.ge.f32.partialorder %v4402_v10, 0.0  ;;  %v4822_v50 = vmul.f32 0.01, %v4402_v10  ;;  %v3996_v13 = vsel %vm3934_vm14, %v3867_v2, %v2965_v6  ;;  %v3740_v46 = vsel %vm3676_vm11, %v3611_v43, %v11897_v23  ;;  %v11904_v43 = vld [vmem:[#allocation380_spill] sm:$0xff] }
 0x5dc   : > { %vm4790_vm2 = vcmp.ge.f32.partialorder %v4642_v12, 0.0  ;;  %v4918_v15 = vmul.f32 0.01, %v4642_v12  ;;  %v4125_v21 = vsel %vm4063_vm13, %v3996_v13, %v3093_v52 }
 0x5dd   : > { %v4950_v33 = vsel %vm4694_vm0, %v4402_v10, %v4822_v50  ;;  %5675 = vmatmul.msk.bf16.gmra.mxu1 %vm4211_vm15, %v4125_v21 }
 0x5de   : > { %v5078_v25 = vpack.c.bf16 %v4950_v33, %v4950_v33  ;;  %v5046_v18 = vsel %vm4790_vm2, %v4642_v12, %v4918_v15  ;;  %v4561_v36 = vpop.f32.mrf.mxu2  ;;  %v11899_v15 = vld [vmem:[#allocation41_spill] sm:$0xff] }
 0x5df   : > { %v5174_v1 = vpack.c.bf16 %v5046_v18, %v5046_v18  ;;  %v4562_v32 = vadd.f32 %v9574_v55, %v4561_v36  ;;  %v3869_v21 = vsel %vm3805_vm12, %v3740_v46, %v11899_v15 }
 0x5e0   : > { %5207 = vst.msk [vmem:[%s9054_s9 + $0x48] sm:$0xf] %vm5188_vm1, %v5078_v25  ;;  %v3127_v28 = vpop.permute.xlu0 %3126  ;;  %v4403_v41 = vpop.f32.mrf.mxu0  ;;  %v3192_v25 = vsel %vm3160_vm7, %v11901_v62, %v11900_v48 }
 0x5e1   : > { %5303 = vst.msk [vmem:[%s9054_s9 + $0x1c8] sm:$0xf] %vm5188_vm1, %v5174_v1  ;;  %v4404_v5 = vadd.f32 %v9574_v55, %v4403_v41  ;;  %vm4758_vm3 = vcmp.ge.f32.partialorder %v4562_v32, 0.0  ;;  %v4886_v39 = vmul.f32 0.01, %v4562_v32  ;;  %v4643_v3 = vpop.f32.mrf.mxu3  ;;  %v4481_v56 = vpop.f32.mrf.mxu1  ;;  %v3321_v1 = vsel %vm3289_vm8, %v3192_v25, %v11902_v4  ;;  %v11906_v41 = vld [vmem:[#allocation141_spill] sm:$0xff] }
 0x5e2   : > { %v4644_v58 = vadd.f32 %v9574_v55, %v4643_v3  ;;  %v4482_v0 = vadd.f32 %v9574_v55, %v4481_v56  ;;  %v2999_v29 = vpop.permute.xlu1 %2998  ;;  %v11898_v55 = vld [vmem:[#allocation476_spill] sm:$0xff] }
 0x5e3   : > { %vm4695_vm4 = vcmp.ge.f32.partialorder %v4404_v5, 0.0  ;;  %v4823_v52 = vmul.f32 0.01, %v4404_v5  ;;  %v5014_v61 = vsel %vm4758_vm3, %v4562_v32, %v4886_v39  ;;  %v4030_v22 = vsel %vm3934_vm14, %v3901_v19, %v2999_v29 }
 0x5e4   : > { %v5142_v30 = vpack.c.bf16 %v5014_v61, %v5014_v61  ;;  %vm4791_vm5 = vcmp.ge.f32.partialorder %v4644_v58, 0.0  ;;  %v4919_v10 = vmul.f32 0.01, %v4644_v58  ;;  %vm4726_vm6 = vcmp.ge.f32.partialorder %v4482_v0, 0.0 }
 0x5e5   : > { %v4951_v31 = vsel %vm4695_vm4, %v4404_v5, %v4823_v52  ;;  %v4854_v2 = vmul.f32 0.01, %v4482_v0  ;;  %v4159_v12 = vsel %vm4063_vm13, %v4030_v22, %v3127_v28  ;;  %v3804_v6 = vsel %vm3676_vm11, %v3675_v63, %v11898_v55 }
 0x5e6   : > { %v5079_v9 = vpack.c.bf16 %v4951_v31, %v4951_v31  ;;  %5271 = vst.msk [vmem:[%s9054_s9 + $0x148] sm:$0xf] %vm5188_vm1, %v5142_v30  ;;  %v5047_v59 = vsel %vm4791_vm5, %v4644_v58, %v4919_v10  ;;  %5692 = vmatmul.msk.bf16.gmra.mxu2 %vm4211_vm15, %v4159_v12  ;;  %v4563_v24 = vpop.f32.mrf.mxu2  ;;  %v3933_v49 = vsel %vm3805_vm12, %v3804_v6, %v5812_v35 }
 0x5e7   : > { %v5175_v50 = vpack.c.bf16 %v5047_v59, %v5047_v59  ;;  %v4982_v13 = vsel %vm4726_vm6, %v4482_v0, %v4854_v2  ;;  %v4564_v37 = vadd.f32 %v10072_v14, %v4563_v24  ;;  %v4062_v53 = vsel %vm3934_vm14, %v3933_v49, %v9997_v51  ;;  %v11903_v51 = vld [vmem:[#allocation329_spill] sm:$0xff] }
 0x5e8   : > { %5208 = vst.msk [vmem:[%s9054_s9 + $0x4c] sm:$0xf] %vm5188_vm1, %v5079_v9  ;;  %v5110_v44 = vpack.c.bf16 %v4982_v13, %v4982_v13  ;;  %v2967_v42 = vpop.permute.xlu0 %2966  ;;  %v3450_v32 = vsel %vm3418_vm9, %v3321_v1, %v11903_v51 }
 0x5e9   : > { %5304 = vst.msk [vmem:[%s9054_s9 + $0x1cc] sm:$0xf] %vm5188_vm1, %v5175_v50  ;;  %v3998_v34 = vsel %vm3934_vm14, %v3869_v21, %v2967_v42  ;;  %vm4759_vm0 = vcmp.ge.f32.partialorder %v4564_v37, 0.0  ;;  %v4887_v7 = vmul.f32 0.01, %v4564_v37  ;;  %v4483_v57 = vpop.f32.mrf.mxu1  ;;  %v3579_v20 = vsel %vm3547_vm10, %v3450_v32, %v11904_v43 }
 0x5ea   : > { %5239 = vst.msk [vmem:[%s9054_s9 + $0xc8] sm:$0xf] %vm5188_vm1, %v5110_v44  ;;  %v4484_v33 = vadd.f32 %v10072_v14, %v4483_v57  ;;  %v3159_v40 = vpop.permute.xlu1 %3158  ;;  %v4127_v60 = vsel %vm4063_vm13, %v3998_v34, %v3095_v8  ;;  %v3708_v63 = vsel %vm3676_vm11, %v3579_v20, %v11905_v16 }
 0x5eb   : > { %v5015_v18 = vsel %vm4759_vm0, %v4564_v37, %v4887_v7  ;;  %v4191_v36 = vsel %vm4063_vm13, %v4062_v53, %v3159_v40  ;;  %v3837_v11 = vsel %vm3805_vm12, %v3708_v63, %v11906_v41 }
 0x5ec   : > { %v5143_v17 = vpack.c.bf16 %v5015_v18, %v5015_v18  ;;  %vm4727_vm2 = vcmp.ge.f32.partialorder %v4484_v33, 0.0  ;;  %v4855_v47 = vmul.f32 0.01, %v4484_v33  ;;  %5708 = vmatmul.msk.bf16.gmra.mxu3 %vm4211_vm15, %v4191_v36  ;;  %v3966_v39 = vsel %vm3934_vm14, %v3837_v11, %v10039_v45 }
 0x5ed   : > { %5676 = vmatmul.msk.bf16.gmra.mxu1 %vm4211_vm15, %v4127_v60 }
 0x5ee   : > { %5272 = vst.msk [vmem:[%s9054_s9 + $0x14c] sm:$0xf] %vm5188_vm1, %v5143_v17  ;;  %v4983_v27 = vsel %vm4727_vm2, %v4484_v33, %v4855_v47 }
 0x5ef   : > { %v5111_v54 = vpack.c.bf16 %v4983_v27, %v4983_v27 }
 0x5f0   : > { %v4406_v28 = vpop.f32.mrf.mxu0 }
 0x5f1   : > { %5240 = vst.msk [vmem:[%s9054_s9 + $0xcc] sm:$0xf] %vm5188_vm1, %v5111_v54  ;;  %v4407_v38 = vadd.f32 %v10072_v14, %v4406_v28  ;;  %v4646_v5 = vpop.f32.mrf.mxu3 }
 0x5f2   : > { %v4647_v3 = vadd.f32 %v10072_v14, %v4646_v5  ;;  %v3063_v56 = vpop.permute.xlu1 %3062 }
 0x5f3   : > { %vm4696_vm7 = vcmp.ge.f32.partialorder %v4407_v38, 0.0  ;;  %v4824_v26 = vmul.f32 0.01, %v4407_v38  ;;  %v4095_v19 = vsel %vm4063_vm13, %v3966_v39, %v3063_v56 }
 0x5f4   : > { %vm4792_vm8 = vcmp.ge.f32.partialorder %v4647_v3, 0.0  ;;  %v4920_v35 = vmul.f32 0.01, %v4647_v3  ;;  %5660 = vmatmul.msk.bf16.gmra.mxu0 %vm4211_vm15, %v4095_v19 }
 0x5f5   : > { %v4952_v58 = vsel %vm4696_vm7, %v4407_v38, %v4824_v26 }
 0x5f6   : > { %v5080_v0 = vpack.c.bf16 %v4952_v58, %v4952_v58  ;;  %v5048_v29 = vsel %vm4792_vm8, %v4647_v3, %v4920_v35  ;;  %v4566_v52 = vpop.f32.mrf.mxu2 }
 0x5f7   : > { %v5176_v61 = vpack.c.bf16 %v5048_v29, %v5048_v29  ;;  %v4567_v22 = vadd.f32 %v10072_v14, %v4566_v52 }
 0x5f8   : > { %5209 = vst.msk [vmem:[%s9054_s9 + $0x50] sm:$0xf] %vm5188_vm1, %v5080_v0  ;;  %v4408_v45 = vpop.f32.mrf.mxu0 }
 0x5f9   : > { %5305 = vst.msk [vmem:[%s9054_s9 + $0x1d0] sm:$0xf] %vm5188_vm1, %v5176_v61  ;;  %v4409_v30 = vadd.f32 %v10072_v14, %v4408_v45  ;;  %vm4760_vm9 = vcmp.ge.f32.partialorder %v4567_v22, 0.0  ;;  %v4888_v10 = vmul.f32 0.01, %v4567_v22  ;;  %v4648_v23 = vpop.f32.mrf.mxu3  ;;  %v4486_v46 = vpop.f32.mrf.mxu1 }
 0x5fa   : > { %v4649_v31 = vadd.f32 %v10072_v14, %v4648_v23  ;;  %v4487_v2 = vadd.f32 %v10072_v14, %v4486_v46 }
 0x5fb   : > { %vm4697_vm10 = vcmp.ge.f32.partialorder %v4409_v30, 0.0  ;;  %v4825_v12 = vmul.f32 0.01, %v4409_v30  ;;  %v5016_v55 = vsel %vm4760_vm9, %v4567_v22, %v4888_v10 }
 0x5fc   : > { %v5144_v6 = vpack.c.bf16 %v5016_v55, %v5016_v55  ;;  %vm4793_vm11 = vcmp.ge.f32.partialorder %v4649_v31, 0.0  ;;  %v4921_v9 = vmul.f32 0.01, %v4649_v31  ;;  %vm4728_vm12 = vcmp.ge.f32.partialorder %v4487_v2, 0.0 }
 0x5fd   : > { %v4953_v59 = vsel %vm4697_vm10, %v4409_v30, %v4825_v12  ;;  %v4856_v24 = vmul.f32 0.01, %v4487_v2 }
 0x5fe   : > { %v5081_v50 = vpack.c.bf16 %v4953_v59, %v4953_v59  ;;  %5273 = vst.msk [vmem:[%s9054_s9 + $0x150] sm:$0xf] %vm5188_vm1, %v5144_v6  ;;  %v5049_v13 = vsel %vm4793_vm11, %v4649_v31, %v4921_v9  ;;  %v4568_v37 = vpop.f32.mrf.mxu2 }
 0x5ff   : > { %v5177_v49 = vpack.c.bf16 %v5049_v13, %v5049_v13  ;;  %v4984_v15 = vsel %vm4728_vm12, %v4487_v2, %v4856_v24  ;;  %v4569_v21 = vadd.f32 %v10072_v14, %v4568_v37 }
 0x600   : > { %5210 = vst.msk [vmem:[%s9054_s9 + $0x54] sm:$0xf] %vm5188_vm1, %v5081_v50  ;;  %v5112_v44 = vpack.c.bf16 %v4984_v15, %v4984_v15 }
 0x601   : > { %5306 = vst.msk [vmem:[%s9054_s9 + $0x1d4] sm:$0xf] %vm5188_vm1, %v5177_v49  ;;  %vm4761_vm13 = vcmp.ge.f32.partialorder %v4569_v21, 0.0  ;;  %v4889_v42 = vmul.f32 0.01, %v4569_v21  ;;  %v4488_v34 = vpop.f32.mrf.mxu1 }
 0x602   : > { %5241 = vst.msk [vmem:[%s9054_s9 + $0xd0] sm:$0xf] %vm5188_vm1, %v5112_v44  ;;  %v4489_v8 = vadd.f32 %v10072_v14, %v4488_v34 }
 0x603   : > { %v5017_v7 = vsel %vm4761_vm13, %v4569_v21, %v4889_v42 }
 0x604   : > { %v5145_v57 = vpack.c.bf16 %v5017_v7, %v5017_v7  ;;  %vm4729_vm14 = vcmp.ge.f32.partialorder %v4489_v8, 0.0  ;;  %v4857_v33 = vmul.f32 0.01, %v4489_v8 }
 0x606   : > { %5274 = vst.msk [vmem:[%s9054_s9 + $0x154] sm:$0xf] %vm5188_vm1, %v5145_v57  ;;  %v4985_v40 = vsel %vm4729_vm14, %v4489_v8, %v4857_v33 }
 0x607   : > { %v5113_v53 = vpack.c.bf16 %v4985_v40, %v4985_v40 }
 0x608   : > { %v4411_v48 = vpop.f32.mrf.mxu0 }
 0x609   : > { %5242 = vst.msk [vmem:[%s9054_s9 + $0xd4] sm:$0xf] %vm5188_vm1, %v5113_v53  ;;  %v4412_v62 = vadd.f32 %v10072_v14, %v4411_v48  ;;  %v4651_v25 = vpop.f32.mrf.mxu3 }
 0x60a   : > { %v4652_v18 = vadd.f32 %v10072_v14, %v4651_v25 }
 0x60b   : > { %vm4698_vm15 = vcmp.ge.f32.partialorder %v4412_v62, 0.0  ;;  %v4826_v36 = vmul.f32 0.01, %v4412_v62 }
 0x60c   : > { %vm4794_vm3 = vcmp.ge.f32.partialorder %v4652_v18, 0.0  ;;  %v4922_v60 = vmul.f32 0.01, %v4652_v18 }
 0x60d   : > { %v4954_v17 = vsel %vm4698_vm15, %v4412_v62, %v4826_v36 }
 0x60e   : > { %v5082_v47 = vpack.c.bf16 %v4954_v17, %v4954_v17  ;;  %v5050_v4 = vsel %vm4794_vm3, %v4652_v18, %v4922_v60  ;;  %v4571_v1 = vpop.f32.mrf.mxu2 }
 0x60f   : > { %v5178_v51 = vpack.c.bf16 %v5050_v4, %v5050_v4  ;;  %v4572_v32 = vadd.f32 %v10072_v14, %v4571_v1 }
 0x610   : > { %5211 = vst.msk [vmem:[%s9054_s9 + $0x58] sm:$0xf] %vm5188_vm1, %v5082_v47  ;;  %v4413_v27 = vpop.f32.mrf.mxu0 }
 0x611   : > { %5307 = vst.msk [vmem:[%s9054_s9 + $0x1d8] sm:$0xf] %vm5188_vm1, %v5178_v51  ;;  %v4414_v43 = vadd.f32 %v10072_v14, %v4413_v27  ;;  %vm4762_vm4 = vcmp.ge.f32.partialorder %v4572_v32, 0.0  ;;  %v4890_v20 = vmul.f32 0.01, %v4572_v32  ;;  %v4653_v54 = vpop.f32.mrf.mxu3  ;;  %v4491_v16 = vpop.f32.mrf.mxu1 }
 0x612   : > { %v4654_v63 = vadd.f32 %v10072_v14, %v4653_v54  ;;  %v4492_v28 = vadd.f32 %v10072_v14, %v4491_v16 }
 0x613   : > { %vm4699_vm5 = vcmp.ge.f32.partialorder %v4414_v43, 0.0  ;;  %v4827_v41 = vmul.f32 0.01, %v4414_v43  ;;  %v5018_v11 = vsel %vm4762_vm4, %v4572_v32, %v4890_v20 }
 0x614   : > { %v5146_v38 = vpack.c.bf16 %v5018_v11, %v5018_v11  ;;  %vm4795_vm6 = vcmp.ge.f32.partialorder %v4654_v63, 0.0  ;;  %v4923_v5 = vmul.f32 0.01, %v4654_v63  ;;  %vm4730_vm0 = vcmp.ge.f32.partialorder %v4492_v28, 0.0 }
 0x615   : > { %v4955_v39 = vsel %vm4699_vm5, %v4414_v43, %v4827_v41  ;;  %v4858_v3 = vmul.f32 0.01, %v4492_v28 }
 0x616   : > { %v5083_v56 = vpack.c.bf16 %v4955_v39, %v4955_v39  ;;  %5275 = vst.msk [vmem:[%s9054_s9 + $0x158] sm:$0xf] %vm5188_vm1, %v5146_v38  ;;  %v5051_v26 = vsel %vm4795_vm6, %v4654_v63, %v4923_v5  ;;  %v4573_v19 = vpop.f32.mrf.mxu2 }
 0x617   : > { %v5179_v35 = vpack.c.bf16 %v5051_v26, %v5051_v26  ;;  %v4986_v58 = vsel %vm4730_vm0, %v4492_v28, %v4858_v3  ;;  %v4574_v0 = vadd.f32 %v10072_v14, %v4573_v19 }
 0x618   : > { %5212 = vst.msk [vmem:[%s9054_s9 + $0x5c] sm:$0xf] %vm5188_vm1, %v5083_v56  ;;  %v5114_v29 = vpack.c.bf16 %v4986_v58, %v4986_v58 }
 0x619   : > { %5308 = vst.msk [vmem:[%s9054_s9 + $0x1dc] sm:$0xf] %vm5188_vm1, %v5179_v35  ;;  %vm4763_vm2 = vcmp.ge.f32.partialorder %v4574_v0, 0.0  ;;  %v4891_v52 = vmul.f32 0.01, %v4574_v0  ;;  %v4493_v61 = vpop.f32.mrf.mxu1 }
 0x61a   : > { %5243 = vst.msk [vmem:[%s9054_s9 + $0xd8] sm:$0xf] %vm5188_vm1, %v5114_v29  ;;  %v4494_v22 = vadd.f32 %v10072_v14, %v4493_v61 }
 0x61b   : > { %v5019_v45 = vsel %vm4763_vm2, %v4574_v0, %v4891_v52 }
 0x61c   : > { %v5147_v30 = vpack.c.bf16 %v5019_v45, %v5019_v45  ;;  %vm4731_vm7 = vcmp.ge.f32.partialorder %v4494_v22, 0.0  ;;  %v4859_v10 = vmul.f32 0.01, %v4494_v22 }
 0x61e   : > { %5276 = vst.msk [vmem:[%s9054_s9 + $0x15c] sm:$0xf] %vm5188_vm1, %v5147_v30  ;;  %v4987_v23 = vsel %vm4731_vm7, %v4494_v22, %v4859_v10 }
 0x61f   : > { %v5115_v46 = vpack.c.bf16 %v4987_v23, %v4987_v23 }
 0x620   : > { %v4416_v31 = vpop.f32.mrf.mxu0 }
 0x621   : > { %5244 = vst.msk [vmem:[%s9054_s9 + $0xdc] sm:$0xf] %vm5188_vm1, %v5115_v46  ;;  %v4417_v2 = vadd.f32 %v10072_v14, %v4416_v31 }
 0x622   : > { %v4656_v12 = vpop.f32.mrf.mxu3 }
 0x623   : > { %vm4700_vm8 = vcmp.ge.f32.partialorder %v4417_v2, 0.0  ;;  %v4828_v55 = vmul.f32 0.01, %v4417_v2  ;;  %v4657_v6 = vadd.f32 %v10072_v14, %v4656_v12 }
 0x625   : > { %v4956_v9 = vsel %vm4700_vm8, %v4417_v2, %v4828_v55  ;;  %vm4796_vm9 = vcmp.ge.f32.partialorder %v4657_v6, 0.0  ;;  %v4924_v59 = vmul.f32 0.01, %v4657_v6 }
 0x626   : > { %v5084_v24 = vpack.c.bf16 %v4956_v9, %v4956_v9 }
 0x627   : > { %v5052_v50 = vsel %vm4796_vm9, %v4657_v6, %v4924_v59  ;;  %v4576_v13 = vpop.f32.mrf.mxu2 }
 0x628   : > { %5213 = vst.msk [vmem:[%s9054_s9 + $0x60] sm:$0xf] %vm5188_vm1, %v5084_v24  ;;  %v5180_v37 = vpack.c.bf16 %v5052_v50, %v5052_v50  ;;  %v4418_v49 = vpop.f32.mrf.mxu0  ;;  %v4577_v15 = vadd.f32 %v10072_v14, %v4576_v13 }
 0x629   : > { %v4419_v21 = vadd.f32 %v10072_v14, %v4418_v49 }
 0x62a   : > { %5309 = vst.msk [vmem:[%s9054_s9 + $0x1e0] sm:$0xf] %vm5188_vm1, %v5180_v37  ;;  %vm4764_vm10 = vcmp.ge.f32.partialorder %v4577_v15, 0.0  ;;  %v4892_v44 = vmul.f32 0.01, %v4577_v15  ;;  %v4658_v42 = vpop.f32.mrf.mxu3  ;;  %v4496_v34 = vpop.f32.mrf.mxu1 }
 0x62b   : > { %vm4701_vm11 = vcmp.ge.f32.partialorder %v4419_v21, 0.0  ;;  %v4829_v8 = vmul.f32 0.01, %v4419_v21  ;;  %v4659_v7 = vadd.f32 %v10072_v14, %v4658_v42  ;;  %v4497_v57 = vadd.f32 %v10072_v14, %v4496_v34 }
 0x62c   : > { %v5020_v33 = vsel %vm4764_vm10, %v4577_v15, %v4892_v44 }
 0x62d   : > { %v4957_v40 = vsel %vm4701_vm11, %v4419_v21, %v4829_v8  ;;  %v5148_v53 = vpack.c.bf16 %v5020_v33, %v5020_v33  ;;  %vm4797_vm12 = vcmp.ge.f32.partialorder %v4659_v7, 0.0  ;;  %v4925_v48 = vmul.f32 0.01, %v4659_v7 }
 0x62e   : > { %v5085_v62 = vpack.c.bf16 %v4957_v40, %v4957_v40  ;;  %vm4732_vm13 = vcmp.ge.f32.partialorder %v4497_v57, 0.0  ;;  %v4860_v25 = vmul.f32 0.01, %v4497_v57 }
 0x62f   : > { %5277 = vst.msk [vmem:[%s9054_s9 + $0x160] sm:$0xf] %vm5188_vm1, %v5148_v53  ;;  %v5053_v18 = vsel %vm4797_vm12, %v4659_v7, %v4925_v48  ;;  %v4578_v36 = vpop.f32.mrf.mxu2 }
 0x630   : > { %5214 = vst.msk [vmem:[%s9054_s9 + $0x64] sm:$0xf] %vm5188_vm1, %v5085_v62  ;;  %v5181_v60 = vpack.c.bf16 %v5053_v18, %v5053_v18  ;;  %v4988_v17 = vsel %vm4732_vm13, %v4497_v57, %v4860_v25  ;;  %v4579_v47 = vadd.f32 %v10072_v14, %v4578_v36 }
 0x631   : > { %v5116_v4 = vpack.c.bf16 %v4988_v17, %v4988_v17 }
 0x632   : > { %5310 = vst.msk [vmem:[%s9054_s9 + $0x1e4] sm:$0xf] %vm5188_vm1, %v5181_v60  ;;  %vm4765_vm14 = vcmp.ge.f32.partialorder %v4579_v47, 0.0  ;;  %v4893_v1 = vmul.f32 0.01, %v4579_v47  ;;  %v4498_v51 = vpop.f32.mrf.mxu1 }
 0x633   : > { %5245 = vst.msk [vmem:[%s9054_s9 + $0xe0] sm:$0xf] %vm5188_vm1, %v5116_v4  ;;  %v4499_v32 = vadd.f32 %v10072_v14, %v4498_v51 }
 0x634   : > { %v5021_v27 = vsel %vm4765_vm14, %v4579_v47, %v4893_v1 }
 0x635   : > { %v5149_v43 = vpack.c.bf16 %v5021_v27, %v5021_v27  ;;  %vm4733_vm15 = vcmp.ge.f32.partialorder %v4499_v32, 0.0  ;;  %v4861_v20 = vmul.f32 0.01, %v4499_v32 }
 0x637   : > { %5278 = vst.msk [vmem:[%s9054_s9 + $0x164] sm:$0xf] %vm5188_vm1, %v5149_v43  ;;  %v4989_v54 = vsel %vm4733_vm15, %v4499_v32, %v4861_v20 }
 0x638   : > { %v5117_v16 = vpack.c.bf16 %v4989_v54, %v4989_v54  ;;  %v4421_v63 = vpop.f32.mrf.mxu0 }
 0x639   : > { %v4422_v28 = vadd.f32 %v10072_v14, %v4421_v63 }
 0x63a   : > { %5246 = vst.msk [vmem:[%s9054_s9 + $0xe4] sm:$0xf] %vm5188_vm1, %v5117_v16  ;;  %v4661_v41 = vpop.f32.mrf.mxu3 }
 0x63b   : > { %vm4702_vm3 = vcmp.ge.f32.partialorder %v4422_v28, 0.0  ;;  %v4830_v11 = vmul.f32 0.01, %v4422_v28  ;;  %v4662_v38 = vadd.f32 %v10072_v14, %v4661_v41 }
 0x63d   : > { %v4958_v5 = vsel %vm4702_vm3, %v4422_v28, %v4830_v11  ;;  %vm4798_vm4 = vcmp.ge.f32.partialorder %v4662_v38, 0.0  ;;  %v4926_v39 = vmul.f32 0.01, %v4662_v38 }
 0x63e   : > { %v5086_v3 = vpack.c.bf16 %v4958_v5, %v4958_v5 }
 0x63f   : > { %v5054_v56 = vsel %vm4798_vm4, %v4662_v38, %v4926_v39  ;;  %v4581_v26 = vpop.f32.mrf.mxu2 }
 0x640   : > { %5215 = vst.msk [vmem:[%s9054_s9 + $0x68] sm:$0xf] %vm5188_vm1, %v5086_v3  ;;  %v5182_v19 = vpack.c.bf16 %v5054_v56, %v5054_v56  ;;  %v4423_v35 = vpop.f32.mrf.mxu0  ;;  %v4582_v58 = vadd.f32 %v10072_v14, %v4581_v26 }
 0x641   : > { %v4424_v0 = vadd.f32 %v10072_v14, %v4423_v35 }
 0x642   : > { %5311 = vst.msk [vmem:[%s9054_s9 + $0x1e8] sm:$0xf] %vm5188_vm1, %v5182_v19  ;;  %vm4766_vm5 = vcmp.ge.f32.partialorder %v4582_v58, 0.0  ;;  %v4894_v29 = vmul.f32 0.01, %v4582_v58  ;;  %v4663_v52 = vpop.f32.mrf.mxu3  ;;  %v4501_v61 = vpop.f32.mrf.mxu1 }
 0x643   : > { %vm4703_vm6 = vcmp.ge.f32.partialorder %v4424_v0, 0.0  ;;  %v4831_v22 = vmul.f32 0.01, %v4424_v0  ;;  %v4664_v45 = vadd.f32 %v10072_v14, %v4663_v52  ;;  %v4502_v30 = vadd.f32 %v10072_v14, %v4501_v61 }
 0x644   : > { %v5022_v10 = vsel %vm4766_vm5, %v4582_v58, %v4894_v29 }
 0x645   : > { %v4959_v23 = vsel %vm4703_vm6, %v4424_v0, %v4831_v22  ;;  %v5150_v46 = vpack.c.bf16 %v5022_v10, %v5022_v10  ;;  %vm4799_vm0 = vcmp.ge.f32.partialorder %v4664_v45, 0.0  ;;  %v4927_v31 = vmul.f32 0.01, %v4664_v45 }
 0x646   : > { %v5087_v2 = vpack.c.bf16 %v4959_v23, %v4959_v23  ;;  %vm4734_vm2 = vcmp.ge.f32.partialorder %v4502_v30, 0.0  ;;  %v4862_v12 = vmul.f32 0.01, %v4502_v30 }
 0x647   : > { %5279 = vst.msk [vmem:[%s9054_s9 + $0x168] sm:$0xf] %vm5188_vm1, %v5150_v46  ;;  %v5055_v55 = vsel %vm4799_vm0, %v4664_v45, %v4927_v31  ;;  %v4583_v6 = vpop.f32.mrf.mxu2 }
 0x648   : > { %5216 = vst.msk [vmem:[%s9054_s9 + $0x6c] sm:$0xf] %vm5188_vm1, %v5087_v2  ;;  %v5183_v9 = vpack.c.bf16 %v5055_v55, %v5055_v55  ;;  %v4990_v59 = vsel %vm4734_vm2, %v4502_v30, %v4862_v12  ;;  %v4584_v24 = vadd.f32 %v10072_v14, %v4583_v6 }
 0x649   : > { %v5118_v50 = vpack.c.bf16 %v4990_v59, %v4990_v59 }
 0x64a   : > { %5312 = vst.msk [vmem:[%s9054_s9 + $0x1ec] sm:$0xf] %vm5188_vm1, %v5183_v9  ;;  %vm4767_vm7 = vcmp.ge.f32.partialorder %v4584_v24, 0.0  ;;  %v4895_v13 = vmul.f32 0.01, %v4584_v24  ;;  %v4503_v37 = vpop.f32.mrf.mxu1 }
 0x64b   : > { %5247 = vst.msk [vmem:[%s9054_s9 + $0xe8] sm:$0xf] %vm5188_vm1, %v5118_v50  ;;  %v4504_v49 = vadd.f32 %v10072_v14, %v4503_v37 }
 0x64c   : > { %v5023_v15 = vsel %vm4767_vm7, %v4584_v24, %v4895_v13 }
 0x64d   : > { %v5151_v21 = vpack.c.bf16 %v5023_v15, %v5023_v15  ;;  %vm4735_vm8 = vcmp.ge.f32.partialorder %v4504_v49, 0.0  ;;  %v4863_v44 = vmul.f32 0.01, %v4504_v49 }
 0x64f   : > { %5280 = vst.msk [vmem:[%s9054_s9 + $0x16c] sm:$0xf] %vm5188_vm1, %v5151_v21  ;;  %v4991_v42 = vsel %vm4735_vm8, %v4504_v49, %v4863_v44 }
 0x650   : > { %v5119_v34 = vpack.c.bf16 %v4991_v42, %v4991_v42  ;;  %v4426_v8 = vpop.f32.mrf.mxu0 }
 0x651   : > { %v4427_v7 = vadd.f32 %v10072_v14, %v4426_v8 }
 0x652   : > { %5248 = vst.msk [vmem:[%s9054_s9 + $0xec] sm:$0xf] %vm5188_vm1, %v5119_v34 }
 0x653   : > { %vm4704_vm9 = vcmp.ge.f32.partialorder %v4427_v7, 0.0  ;;  %v4832_v57 = vmul.f32 0.01, %v4427_v7  ;;  %v4666_v40 = vpop.f32.mrf.mxu3 }
 0x654   : > { %v4667_v48 = vadd.f32 %v10072_v14, %v4666_v40 }
 0x655   : > { %v4960_v33 = vsel %vm4704_vm9, %v4427_v7, %v4832_v57 }
 0x656   : > { %v5088_v53 = vpack.c.bf16 %v4960_v33, %v4960_v33  ;;  %vm4800_vm10 = vcmp.ge.f32.partialorder %v4667_v48, 0.0  ;;  %v4928_v25 = vmul.f32 0.01, %v4667_v48 }
 0x657   : > { %v4586_v62 = vpop.f32.mrf.mxu2 }
 0x658   : > { %5217 = vst.msk [vmem:[%s9054_s9 + $0x70] sm:$0xf] %vm5188_vm1, %v5088_v53  ;;  %v4428_v18 = vpop.f32.mrf.mxu0  ;;  %v4587_v36 = vadd.f32 %v10072_v14, %v4586_v62  ;;  %v5056_v17 = vsel %vm4800_vm10, %v4667_v48, %v4928_v25 }
 0x659   : > { %v4429_v60 = vadd.f32 %v10072_v14, %v4428_v18  ;;  %v5184_v1 = vpack.c.bf16 %v5056_v17, %v5056_v17 }
 0x65a   : > { %vm4768_vm11 = vcmp.ge.f32.partialorder %v4587_v36, 0.0  ;;  %v4896_v47 = vmul.f32 0.01, %v4587_v36  ;;  %v4506_v4 = vpop.f32.mrf.mxu1 }
 0x65b   : > { %vm4705_vm12 = vcmp.ge.f32.partialorder %v4429_v60, 0.0  ;;  %v4833_v51 = vmul.f32 0.01, %v4429_v60  ;;  %v4507_v32 = vadd.f32 %v10072_v14, %v4506_v4  ;;  %5313 = vst.msk [vmem:[%s9054_s9 + $0x1f0] sm:$0xf] %vm5188_vm1, %v5184_v1  ;;  %v4668_v16 = vpop.f32.mrf.mxu3 }
 0x65c   : > { %v5024_v27 = vsel %vm4768_vm11, %v4587_v36, %v4896_v47  ;;  %v4669_v28 = vadd.f32 %v10072_v14, %v4668_v16 }
 0x65d   : > { %v4961_v43 = vsel %vm4705_vm12, %v4429_v60, %v4833_v51  ;;  %v5152_v20 = vpack.c.bf16 %v5024_v27, %v5024_v27  ;;  %vm4736_vm13 = vcmp.ge.f32.partialorder %v4507_v32, 0.0  ;;  %v4864_v54 = vmul.f32 0.01, %v4507_v32 }
 0x65e   : > { %v5089_v63 = vpack.c.bf16 %v4961_v43, %v4961_v43  ;;  %vm4801_vm14 = vcmp.ge.f32.partialorder %v4669_v28, 0.0  ;;  %v4929_v5 = vmul.f32 0.01, %v4669_v28 }
 0x65f   : > { %5281 = vst.msk [vmem:[%s9054_s9 + $0x170] sm:$0xf] %vm5188_vm1, %v5152_v20  ;;  %v4992_v41 = vsel %vm4736_vm13, %v4507_v32, %v4864_v54  ;;  %v4588_v11 = vpop.f32.mrf.mxu2 }
 0x660   : > { %5218 = vst.msk [vmem:[%s9054_s9 + $0x74] sm:$0xf] %vm5188_vm1, %v5089_v63  ;;  %v5120_v38 = vpack.c.bf16 %v4992_v41, %v4992_v41  ;;  %v4589_v39 = vadd.f32 %v10072_v14, %v4588_v11  ;;  %v5057_v3 = vsel %vm4801_vm14, %v4669_v28, %v4929_v5 }
 0x661   : > { %v5185_v19 = vpack.c.bf16 %v5057_v3, %v5057_v3 }
 0x662   : > { %5249 = vst.msk [vmem:[%s9054_s9 + $0xf0] sm:$0xf] %vm5188_vm1, %v5120_v38  ;;  %vm4769_vm15 = vcmp.ge.f32.partialorder %v4589_v39, 0.0  ;;  %v4897_v56 = vmul.f32 0.01, %v4589_v39  ;;  %v4508_v26 = vpop.f32.mrf.mxu1 }
 0x663   : > { %v4509_v35 = vadd.f32 %v10072_v14, %v4508_v26  ;;  %5314 = vst.msk [vmem:[%s9054_s9 + $0x1f4] sm:$0xf] %vm5188_vm1, %v5185_v19 }
 0x664   : > { %v5025_v58 = vsel %vm4769_vm15, %v4589_v39, %v4897_v56 }
 0x665   : > { %v5153_v0 = vpack.c.bf16 %v5025_v58, %v5025_v58  ;;  %vm4737_vm3 = vcmp.ge.f32.partialorder %v4509_v35, 0.0  ;;  %v4865_v29 = vmul.f32 0.01, %v4509_v35 }
 0x667   : > { %5282 = vst.msk [vmem:[%s9054_s9 + $0x174] sm:$0xf] %vm5188_vm1, %v5153_v0  ;;  %v4993_v52 = vsel %vm4737_vm3, %v4509_v35, %v4865_v29 }
 0x668   : > { %v5121_v61 = vpack.c.bf16 %v4993_v52, %v4993_v52 }
 0x669   : > { %v4591_v22 = vpop.f32.mrf.mxu2 }
 0x66a   : > { %5250 = vst.msk [vmem:[%s9054_s9 + $0xf4] sm:$0xf] %vm5188_vm1, %v5121_v61  ;;  %v4592_v45 = vadd.f32 %v10072_v14, %v4591_v22  ;;  %v4511_v30 = vpop.f32.mrf.mxu1 }
 0x66b   : > { %v4512_v10 = vadd.f32 %v10072_v14, %v4511_v30 }
 0x66c   : > { %vm4770_vm4 = vcmp.ge.f32.partialorder %v4592_v45, 0.0  ;;  %v4898_v23 = vmul.f32 0.01, %v4592_v45 }
 0x66d   : > { %vm4738_vm5 = vcmp.ge.f32.partialorder %v4512_v10, 0.0  ;;  %v4866_v46 = vmul.f32 0.01, %v4512_v10 }
 0x66e   : > { %v5026_v31 = vsel %vm4770_vm4, %v4592_v45, %v4898_v23 }
 0x66f   : > { %v5154_v2 = vpack.c.bf16 %v5026_v31, %v5026_v31  ;;  %v4994_v12 = vsel %vm4738_vm5, %v4512_v10, %v4866_v46  ;;  %v4671_v55 = vpop.f32.mrf.mxu3 }
 0x670   : > { %v5122_v6 = vpack.c.bf16 %v4994_v12, %v4994_v12  ;;  %v4672_v9 = vadd.f32 %v10072_v14, %v4671_v55 }
 0x671   : > { %5283 = vst.msk [vmem:[%s9054_s9 + $0x178] sm:$0xf] %vm5188_vm1, %v5154_v2  ;;  %v4593_v59 = vpop.f32.mrf.mxu2  ;;  %v4431_v24 = vpop.f32.mrf.mxu0 }
 0x672   : > { %5251 = vst.msk [vmem:[%s9054_s9 + $0xf8] sm:$0xf] %vm5188_vm1, %v5122_v6  ;;  %vm4802_vm6 = vcmp.ge.f32.partialorder %v4672_v9, 0.0  ;;  %v4930_v50 = vmul.f32 0.01, %v4672_v9  ;;  %v4594_v13 = vadd.f32 %v10072_v14, %v4593_v59  ;;  %v4432_v37 = vadd.f32 %v10072_v14, %v4431_v24  ;;  %v4513_v49 = vpop.f32.mrf.mxu1 }
 0x673   : > { %v4514_v15 = vadd.f32 %v10072_v14, %v4513_v49 }
 0x674   : > { %v5058_v21 = vsel %vm4802_vm6, %v4672_v9, %v4930_v50  ;;  %vm4771_vm0 = vcmp.ge.f32.partialorder %v4594_v13, 0.0  ;;  %v4899_v44 = vmul.f32 0.01, %v4594_v13  ;;  %vm4706_vm2 = vcmp.ge.f32.partialorder %v4432_v37, 0.0 }
 0x675   : > { %v5186_v42 = vpack.c.bf16 %v5058_v21, %v5058_v21  ;;  %v4834_v34 = vmul.f32 0.01, %v4432_v37  ;;  %vm4739_vm7 = vcmp.ge.f32.partialorder %v4514_v15, 0.0  ;;  %v4867_v8 = vmul.f32 0.01, %v4514_v15 }
 0x676   : > { %v5027_v7 = vsel %vm4771_vm0, %v4594_v13, %v4899_v44 }
 0x677   : > { %5315 = vst.msk [vmem:[%s9054_s9 + $0x1f8] sm:$0xf] %vm5188_vm1, %v5186_v42  ;;  %v5155_v57 = vpack.c.bf16 %v5027_v7, %v5027_v7  ;;  %v4962_v33 = vsel %vm4706_vm2, %v4432_v37, %v4834_v34  ;;  %v4995_v40 = vsel %vm4739_vm7, %v4514_v15, %v4867_v8  ;;  %v4673_v53 = vpop.f32.mrf.mxu3 }
 0x678   : > { %v5090_v48 = vpack.c.bf16 %v4962_v33, %v4962_v33  ;;  %v5123_v62 = vpack.c.bf16 %v4995_v40, %v4995_v40  ;;  %v4674_v25 = vadd.f32 %v10072_v14, %v4673_v53 }
 0x679   : > { %5284 = vst.msk [vmem:[%s9054_s9 + $0x17c] sm:$0xf] %vm5188_vm1, %v5155_v57  ;;  %v4433_v18 = vpop.f32.mrf.mxu0 }
 0x67a   : > { %5219 = vst.msk [vmem:[%s9054_s9 + $0x78] sm:$0xf] %vm5188_vm1, %v5090_v48  ;;  %vm4803_vm8 = vcmp.ge.f32.partialorder %v4674_v25, 0.0  ;;  %v4931_v36 = vmul.f32 0.01, %v4674_v25  ;;  %v4434_v60 = vadd.f32 %v10072_v14, %v4433_v18 }
 0x67b   : > { %5252 = vst.msk [vmem:[%s9054_s9 + $0xfc] sm:$0xf] %vm5188_vm1, %v5123_v62 }
 0x67c   : > { %v5059_v17 = vsel %vm4803_vm8, %v4674_v25, %v4931_v36  ;;  %vm4707_vm9 = vcmp.ge.f32.partialorder %v4434_v60, 0.0  ;;  %v4835_v47 = vmul.f32 0.01, %v4434_v60 }
 0x67d   : > { %v5187_v4 = vpack.c.bf16 %v5059_v17, %v5059_v17 }
 0x67e   : > { %v4963_v1 = vsel %vm4707_vm9, %v4434_v60, %v4835_v47 }
 0x67f   : > { %5316 = vst.msk [vmem:[%s9054_s9 + $0x1fc] sm:$0xf] %vm5188_vm1, %v5187_v4  ;;  %v5091_v51 = vpack.c.bf16 %v4963_v1, %v4963_v1 }
 0x681   : > { %5220 = vst.msk [vmem:[%s9054_s9 + $0x7c] sm:$0xf] %vm5188_vm1, %v5091_v51 }
 0x682 PF: > { %s13_s12 = sadd.s32 1, %s5822_s12  }
 0x683   : > { %p10_p4 = scmp.ge.s32.totalorder %s13_s12, 4  }
 0x685   :  { %12 = sbr.rel (!%p10_p4) target bundleno = 1 (0x1), region = 62 }

</bundles_post_ra>
